<compile_context>
chip_gen: v7x
topology: tpu7x:2x2x1
jax: 0.10.0
libtpu: 0.0.40
codegen_flags: <defaults>
</compile_context>

<pallas_src>
import jax
import jax.numpy as jnp
import numpy as np
from jax.experimental import pallas as pl
from jax.experimental.pallas import tpu as pltpu


def _cnn_kernel(x_ref, w1_ref, b1_ref, w2_ref, b2_ref, wf_ref, bf_ref,
                out_ref, pool_ref):
    """Fused conv1+relu+maxpool2x2 -> conv2+relu -> global-avg-pool -> fc1.

    Layout: channels on the lane axis, one batch image per grid step.
      x_ref    : [1, H, W, Cin]
      w1_ref   : [3, 3, Cin, C1]   b1_ref : [1, C1]
      w2_ref   : [3, 3, C1, C2]    b2_ref : [1, C2]
      wf_ref   : [C2, NCLS]        bf_ref : [1, NCLS]
      out_ref  : [1, 1, NCLS]
      pool_ref : [Hp, Wp, C1]  VMEM scratch holding the pooled feature map
    """
    f32 = jnp.float32
    _, H, W, _ = x_ref.shape
    C1 = w1_ref.shape[3]
    C2 = w2_ref.shape[3]
    Hp, Wp, _ = pool_ref.shape
    H1, W1 = H - 2, W - 2          # conv1 "valid" output spatial size
    H2, W2 = Hp - 2, Wp - 2        # conv2 "valid" output spatial size

    b1 = b1_ref[...]               # [1, C1]
    b2 = b2_ref[...]               # [1, C2]

    # ---- conv1 (3x3 valid) + ReLU + 2x2 stride-2 max-pool, one pooled row at a time
    for i in range(Hp):
        pair = []
        for dh in range(2):
            h = 2 * i + dh                               # conv1 output row index
            acc = jnp.zeros((W1, C1), f32)
            for kh in range(3):
                xrow = x_ref[0, h + kh]                  # [W, Cin]
                for kw in range(3):
                    acc = acc + jnp.dot(xrow[kw:kw + W1, :], w1_ref[kh, kw],
                                        preferred_element_type=f32)
            pair.append(jnp.maximum(acc + b1, 0.0))      # [W1, C1]
        rm = jnp.maximum(pair[0], pair[1])               # pooled over H -> [W1, C1]
        for j in range(Wp):                              # pool over W, write to VMEM
            pool_ref[i, j:j + 1, :] = jnp.max(rm[2 * j:2 * j + 2, :],
                                              axis=0, keepdims=True)

    # ---- conv2 (3x3 valid) + ReLU + global average pool -------------------------
    gsum = jnp.zeros((1, C2), f32)
    for h in range(H2):
        acc = jnp.zeros((W2, C2), f32)
        for kh in range(3):
            prow = pool_ref[h + kh]                      # [Wp, C1]
            for kw in range(3):
                acc = acc + jnp.dot(prow[kw:kw + W2, :], w2_ref[kh, kw],
                                    preferred_element_type=f32)
        row = jnp.maximum(acc + b2, 0.0)                 # [W2, C2]
        gsum = gsum + jnp.sum(row, axis=0, keepdims=True)
    gap = gsum * (1.0 / float(H2 * W2))                  # [1, C2]

    # ---- fc1 --------------------------------------------------------------------
    logits = jnp.dot(gap, wf_ref[...], preferred_element_type=f32) + bf_ref[...]
    out_ref[0] = logits.astype(out_ref.dtype)            # [1, NCLS]


@jax.jit
def cnn_forward(x_nchw, conv1_w, conv1_b, conv2_w, conv2_b, fc1_w, fc1_b):
    """PyTorch-layout params (OIHW convs, [out,in] linear), NCHW input -> [B, NCLS]."""
    B, _, H, W = x_nchw.shape
    C1 = conv1_w.shape[0]
    C2 = conv2_w.shape[0]
    ncls = fc1_w.shape[0]
    Hp, Wp = (H - 2) // 2, (W - 2) // 2

    # One-time layout plumbing in XLA: channels-last activations, HWIO weights.
    x = jnp.transpose(x_nchw, (0, 2, 3, 1)).astype(jnp.float32)    # [B, H, W, Cin]
    w1 = jnp.transpose(conv1_w, (2, 3, 1, 0)).astype(jnp.float32)  # [3, 3, Cin, C1]
    w2 = jnp.transpose(conv2_w, (2, 3, 1, 0)).astype(jnp.float32)  # [3, 3, C1, C2]
    wf = jnp.transpose(fc1_w, (1, 0)).astype(jnp.float32)          # [C2, NCLS]
    b1 = conv1_b.reshape(1, C1).astype(jnp.float32)
    b2 = conv2_b.reshape(1, C2).astype(jnp.float32)
    bf = fc1_b.reshape(1, ncls).astype(jnp.float32)
    Cin = x.shape[-1]

    out = pl.pallas_call(
        _cnn_kernel,
        out_shape=jax.ShapeDtypeStruct((B, 1, ncls), jnp.float32),
        grid_spec=pltpu.PrefetchScalarGridSpec(
            num_scalar_prefetch=0,
            grid=(B,),
            in_specs=[
                pl.BlockSpec((1, H, W, Cin), lambda b: (b, 0, 0, 0)),
                # Weights/biases: constant block index -> VMEM-resident across the
                # grid.  (pl.Buffered(1) would drop the pointless second buffer;
                # skipped -- only a few KiB here.)
                pl.BlockSpec((3, 3, Cin, C1), lambda b: (0, 0, 0, 0)),
                pl.BlockSpec((1, C1), lambda b: (0, 0)),
                pl.BlockSpec((3, 3, C1, C2), lambda b: (0, 0, 0, 0)),
                pl.BlockSpec((1, C2), lambda b: (0, 0)),
                pl.BlockSpec((C2, ncls), lambda b: (0, 0)),
                pl.BlockSpec((1, ncls), lambda b: (0, 0)),
            ],
            out_specs=pl.BlockSpec((1, 1, ncls), lambda b: (b, 0, 0)),
            scratch_shapes=[pltpu.VMEM((Hp, Wp, C1), jnp.float32)],
        ),
        compiler_params=pltpu.CompilerParams(
            dimension_semantics=("parallel",)),
    )(x, w1, b1, w2, b2, wf, bf)
    return out[:, 0, :]


def _reference_forward(x, conv1_w, conv1_b, conv2_w, conv2_b, fc1_w, fc1_b):
    """Pure-JAX reference matching the PyTorch module."""
    hi = jax.lax.Precision.HIGHEST
    y = jax.lax.conv_general_dilated(
        x, conv1_w, (1, 1), "VALID",
        dimension_numbers=("NCHW", "OIHW", "NCHW"), precision=hi)
    y = jax.nn.relu(y + conv1_b[None, :, None, None])
    y = jax.lax.reduce_window(y, -jnp.inf, jax.lax.max,
                              (1, 1, 2, 2), (1, 1, 2, 2), "VALID")
    y = jax.lax.conv_general_dilated(
        y, conv2_w, (1, 1), "VALID",
        dimension_numbers=("NCHW", "OIHW", "NCHW"), precision=hi)
    y = jax.nn.relu(y + conv2_b[None, :, None, None])
    y = jnp.mean(y, axis=(2, 3))                                   # [B, C2]
    return jnp.dot(y, fc1_w.T, precision=hi) + fc1_b


if __name__ == "__main__":
    # Module-consistent small shapes: emb_dim=3 input channels, num_classes=8.
    B, emb_dim, Hs, Ws = 2, 3, 16, 16
    num_classes = 8
    C1, C2 = 32, 16

    key = jax.random.PRNGKey(0)
    kx, k1w, k1b, k2w, k2b, kfw, kfb = jax.random.split(key, 7)

    x = jax.random.normal(kx, (B, emb_dim, Hs, Ws), dtype=jnp.float32)

    def uinit(k, shape, fan_in):
        bound = 1.0 / np.sqrt(float(fan_in))
        return jax.random.uniform(k, shape, jnp.float32, -bound, bound)

    # PyTorch-style parameter layouts and init bounds.
    conv1_w = uinit(k1w, (C1, emb_dim, 3, 3), emb_dim * 9)
    conv1_b = uinit(k1b, (C1,), emb_dim * 9)
    conv2_w = uinit(k2w, (C2, C1, 3, 3), C1 * 9)
    conv2_b = uinit(k2b, (C2,), C1 * 9)
    fc1_w = uinit(kfw, (num_classes, C2), C2)
    fc1_b = uinit(kfb, (num_classes,), C2)

    out = cnn_forward(x, conv1_w, conv1_b, conv2_w, conv2_b, fc1_w, fc1_b)
    out = jax.block_until_ready(out)

    ref = _reference_forward(x, conv1_w, conv1_b, conv2_w, conv2_b, fc1_w, fc1_b)
    ref = jax.block_until_ready(ref)

    assert out.shape == (B, num_classes)
    # Tolerance covers possible MXU f32 pass-count differences vs the XLA reference.
    assert float(jnp.max(jnp.abs(out - ref))) < 2e-2

    print("KERNEL_OK")
</pallas_src>

<mosaic_0001>
module attributes {stable_mosaic.version = 11 : i64} {
  func.func @_cnn_kernel(%arg0: i32, %arg1: memref<1x16x16x3xf32, #tpu.memory_space<vmem>>, %arg2: memref<3x3x3x32xf32, #tpu.memory_space<vmem>>, %arg3: memref<1x32xf32, #tpu.memory_space<vmem>>, %arg4: memref<3x3x32x16xf32, #tpu.memory_space<vmem>>, %arg5: memref<1x16xf32, #tpu.memory_space<vmem>>, %arg6: memref<16x8xf32, #tpu.memory_space<vmem>>, %arg7: memref<1x8xf32, #tpu.memory_space<vmem>>, %arg8: memref<1x1x8xf32, #tpu.memory_space<vmem>>, %arg9: memref<7x7x32xf32, #tpu.memory_space<vmem>>) attributes {dimension_semantics = [#tpu.dimension_semantics<parallel>], iteration_bounds = array<i64: 2>, scalar_prefetch = 0 : i64, scratch_operands = 1 : i64, tpu.core_type = #tpu.core_type<tc>, window_params = [{transform_indices = @transform_0, window_bounds = array<i64: 1, 16, 16, 3>}, {pipeline_mode = #tpu.pipeline_mode<synchronous>, transform_indices = @transform_1, window_bounds = array<i64: 3, 3, 3, 32>}, {pipeline_mode = #tpu.pipeline_mode<synchronous>, transform_indices = @transform_2, window_bounds = array<i64: 1, 32>}, {pipeline_mode = #tpu.pipeline_mode<synchronous>, transform_indices = @transform_3, window_bounds = array<i64: 3, 3, 32, 16>}, {pipeline_mode = #tpu.pipeline_mode<synchronous>, transform_indices = @transform_4, window_bounds = array<i64: 1, 16>}, {pipeline_mode = #tpu.pipeline_mode<synchronous>, transform_indices = @transform_5, window_bounds = array<i64: 16, 8>}, {pipeline_mode = #tpu.pipeline_mode<synchronous>, transform_indices = @transform_6, window_bounds = array<i64: 1, 8>}, {transform_indices = @transform_7, window_bounds = array<i64: 1, 1, 8>}]} {
    %c0 = arith.constant 0 : index
    %c0_0 = arith.constant 0 : index
    %0 = vector.load %arg3[%c0, %c0_0] : memref<1x32xf32, #tpu.memory_space<vmem>>, vector<1x32xf32>
    %c0_1 = arith.constant 0 : index
    %c0_2 = arith.constant 0 : index
    %1 = vector.load %arg5[%c0_1, %c0_2] : memref<1x16xf32, #tpu.memory_space<vmem>>, vector<1x16xf32>
    %cst = arith.constant 0.000000e+00 : f32
    %2 = vector.broadcast %cst : f32 to vector<14x32xf32>
    %c0_3 = arith.constant 0 : index
    %c0_4 = arith.constant 0 : index
    %c0_5 = arith.constant 0 : index
    %c0_6 = arith.constant 0 : index
    %3 = vector.load %arg1[%c0_3, %c0_4, %c0_5, %c0_6] : memref<1x16x16x3xf32, #tpu.memory_space<vmem>>, vector<1x1x16x3xf32>
    %4 = vector.shape_cast %3 : vector<1x1x16x3xf32> to vector<16x3xf32>
    %5 = vector.extract_strided_slice %4 {offsets = [0, 0], sizes = [14, 3], strides = [1, 1]} : vector<16x3xf32> to vector<14x3xf32>
    %c0_7 = arith.constant 0 : index
    %c0_8 = arith.constant 0 : index
    %c0_9 = arith.constant 0 : index
    %c0_10 = arith.constant 0 : index
    %6 = vector.load %arg2[%c0_7, %c0_8, %c0_9, %c0_10] : memref<3x3x3x32xf32, #tpu.memory_space<vmem>>, vector<1x1x3x32xf32>
    %7 = vector.shape_cast %6 : vector<1x1x3x32xf32> to vector<3x32xf32>
    %cst_11 = arith.constant dense<0.000000e+00> : vector<14x32xf32>
    %8 = tpu.matmul %5, %7, %cst_11 {dimension_numbers = #tpu.dot_dimension_numbers<[1], [0], [0], [1], [0, 0, 1, 1], [], []>} : vector<14x3xf32>, vector<3x32xf32>, vector<14x32xf32> -> vector<14x32xf32>
    %9 = arith.addf %2, %8 : vector<14x32xf32>
    %10 = vector.extract_strided_slice %4 {offsets = [1, 0], sizes = [14, 3], strides = [1, 1]} : vector<16x3xf32> to vector<14x3xf32>
    %c0_12 = arith.constant 0 : index
    %c1 = arith.constant 1 : index
    %c0_13 = arith.constant 0 : index
    %c0_14 = arith.constant 0 : index
    %11 = vector.load %arg2[%c0_12, %c1, %c0_13, %c0_14] : memref<3x3x3x32xf32, #tpu.memory_space<vmem>>, vector<1x1x3x32xf32>
    %12 = vector.shape_cast %11 : vector<1x1x3x32xf32> to vector<3x32xf32>
    %cst_15 = arith.constant dense<0.000000e+00> : vector<14x32xf32>
    %13 = tpu.matmul %10, %12, %cst_15 {dimension_numbers = #tpu.dot_dimension_numbers<[1], [0], [0], [1], [0, 0, 1, 1], [], []>} : vector<14x3xf32>, vector<3x32xf32>, vector<14x32xf32> -> vector<14x32xf32>
    %14 = arith.addf %9, %13 : vector<14x32xf32>
    %15 = vector.extract_strided_slice %4 {offsets = [2, 0], sizes = [14, 3], strides = [1, 1]} : vector<16x3xf32> to vector<14x3xf32>
    %c0_16 = arith.constant 0 : index
    %c2 = arith.constant 2 : index
    %c0_17 = arith.constant 0 : index
    %c0_18 = arith.constant 0 : index
    %16 = vector.load %arg2[%c0_16, %c2, %c0_17, %c0_18] : memref<3x3x3x32xf32, #tpu.memory_space<vmem>>, vector<1x1x3x32xf32>
    %17 = vector.shape_cast %16 : vector<1x1x3x32xf32> to vector<3x32xf32>
    %cst_19 = arith.constant dense<0.000000e+00> : vector<14x32xf32>
    %18 = tpu.matmul %15, %17, %cst_19 {dimension_numbers = #tpu.dot_dimension_numbers<[1], [0], [0], [1], [0, 0, 1, 1], [], []>} : vector<14x3xf32>, vector<3x32xf32>, vector<14x32xf32> -> vector<14x32xf32>
    %19 = arith.addf %14, %18 : vector<14x32xf32>
    %c0_20 = arith.constant 0 : index
    %c1_21 = arith.constant 1 : index
    %c0_22 = arith.constant 0 : index
    %c0_23 = arith.constant 0 : index
    %20 = vector.load %arg1[%c0_20, %c1_21, %c0_22, %c0_23] : memref<1x16x16x3xf32, #tpu.memory_space<vmem>>, vector<1x1x16x3xf32>
    %21 = vector.shape_cast %20 : vector<1x1x16x3xf32> to vector<16x3xf32>
    %22 = vector.extract_strided_slice %21 {offsets = [0, 0], sizes = [14, 3], strides = [1, 1]} : vector<16x3xf32> to vector<14x3xf32>
    %c1_24 = arith.constant 1 : index
    %c0_25 = arith.constant 0 : index
    %c0_26 = arith.constant 0 : index
    %c0_27 = arith.constant 0 : index
    %23 = vector.load %arg2[%c1_24, %c0_25, %c0_26, %c0_27] : memref<3x3x3x32xf32, #tpu.memory_space<vmem>>, vector<1x1x3x32xf32>
    %24 = vector.shape_cast %23 : vector<1x1x3x32xf32> to vector<3x32xf32>
    %cst_28 = arith.constant dense<0.000000e+00> : vector<14x32xf32>
    %25 = tpu.matmul %22, %24, %cst_28 {dimension_numbers = #tpu.dot_dimension_numbers<[1], [0], [0], [1], [0, 0, 1, 1], [], []>} : vector<14x3xf32>, vector<3x32xf32>, vector<14x32xf32> -> vector<14x32xf32>
    %26 = arith.addf %19, %25 : vector<14x32xf32>
    %27 = vector.extract_strided_slice %21 {offsets = [1, 0], sizes = [14, 3], strides = [1, 1]} : vector<16x3xf32> to vector<14x3xf32>
    %c1_29 = arith.constant 1 : index
    %c1_30 = arith.constant 1 : index
    %c0_31 = arith.constant 0 : index
    %c0_32 = arith.constant 0 : index
    %28 = vector.load %arg2[%c1_29, %c1_30, %c0_31, %c0_32] : memref<3x3x3x32xf32, #tpu.memory_space<vmem>>, vector<1x1x3x32xf32>
    %29 = vector.shape_cast %28 : vector<1x1x3x32xf32> to vector<3x32xf32>
    %cst_33 = arith.constant dense<0.000000e+00> : vector<14x32xf32>
    %30 = tpu.matmul %27, %29, %cst_33 {dimension_numbers = #tpu.dot_dimension_numbers<[1], [0], [0], [1], [0, 0, 1, 1], [], []>} : vector<14x3xf32>, vector<3x32xf32>, vector<14x32xf32> -> vector<14x32xf32>
    %31 = arith.addf %26, %30 : vector<14x32xf32>
    %32 = vector.extract_strided_slice %21 {offsets = [2, 0], sizes = [14, 3], strides = [1, 1]} : vector<16x3xf32> to vector<14x3xf32>
    %c1_34 = arith.constant 1 : index
    %c2_35 = arith.constant 2 : index
    %c0_36 = arith.constant 0 : index
    %c0_37 = arith.constant 0 : index
    %33 = vector.load %arg2[%c1_34, %c2_35, %c0_36, %c0_37] : memref<3x3x3x32xf32, #tpu.memory_space<vmem>>, vector<1x1x3x32xf32>
    %34 = vector.shape_cast %33 : vector<1x1x3x32xf32> to vector<3x32xf32>
    %cst_38 = arith.constant dense<0.000000e+00> : vector<14x32xf32>
    %35 = tpu.matmul %32, %34, %cst_38 {dimension_numbers = #tpu.dot_dimension_numbers<[1], [0], [0], [1], [0, 0, 1, 1], [], []>} : vector<14x3xf32>, vector<3x32xf32>, vector<14x32xf32> -> vector<14x32xf32>
    %36 = arith.addf %31, %35 : vector<14x32xf32>
    %c0_39 = arith.constant 0 : index
    %c2_40 = arith.constant 2 : index
    %c0_41 = arith.constant 0 : index
    %c0_42 = arith.constant 0 : index
    %37 = vector.load %arg1[%c0_39, %c2_40, %c0_41, %c0_42] : memref<1x16x16x3xf32, #tpu.memory_space<vmem>>, vector<1x1x16x3xf32>
    %38 = vector.shape_cast %37 : vector<1x1x16x3xf32> to vector<16x3xf32>
    %39 = vector.extract_strided_slice %38 {offsets = [0, 0], sizes = [14, 3], strides = [1, 1]} : vector<16x3xf32> to vector<14x3xf32>
    %c2_43 = arith.constant 2 : index
    %c0_44 = arith.constant 0 : index
    %c0_45 = arith.constant 0 : index
    %c0_46 = arith.constant 0 : index
    %40 = vector.load %arg2[%c2_43, %c0_44, %c0_45, %c0_46] : memref<3x3x3x32xf32, #tpu.memory_space<vmem>>, vector<1x1x3x32xf32>
    %41 = vector.shape_cast %40 : vector<1x1x3x32xf32> to vector<3x32xf32>
    %cst_47 = arith.constant dense<0.000000e+00> : vector<14x32xf32>
    %42 = tpu.matmul %39, %41, %cst_47 {dimension_numbers = #tpu.dot_dimension_numbers<[1], [0], [0], [1], [0, 0, 1, 1], [], []>} : vector<14x3xf32>, vector<3x32xf32>, vector<14x32xf32> -> vector<14x32xf32>
    %43 = arith.addf %36, %42 : vector<14x32xf32>
    %44 = vector.extract_strided_slice %38 {offsets = [1, 0], sizes = [14, 3], strides = [1, 1]} : vector<16x3xf32> to vector<14x3xf32>
    %c2_48 = arith.constant 2 : index
    %c1_49 = arith.constant 1 : index
    %c0_50 = arith.constant 0 : index
    %c0_51 = arith.constant 0 : index
    %45 = vector.load %arg2[%c2_48, %c1_49, %c0_50, %c0_51] : memref<3x3x3x32xf32, #tpu.memory_space<vmem>>, vector<1x1x3x32xf32>
    %46 = vector.shape_cast %45 : vector<1x1x3x32xf32> to vector<3x32xf32>
    %cst_52 = arith.constant dense<0.000000e+00> : vector<14x32xf32>
    %47 = tpu.matmul %44, %46, %cst_52 {dimension_numbers = #tpu.dot_dimension_numbers<[1], [0], [0], [1], [0, 0, 1, 1], [], []>} : vector<14x3xf32>, vector<3x32xf32>, vector<14x32xf32> -> vector<14x32xf32>
    %48 = arith.addf %43, %47 : vector<14x32xf32>
    %49 = vector.extract_strided_slice %38 {offsets = [2, 0], sizes = [14, 3], strides = [1, 1]} : vector<16x3xf32> to vector<14x3xf32>
    %c2_53 = arith.constant 2 : index
    %c2_54 = arith.constant 2 : index
    %c0_55 = arith.constant 0 : index
    %c0_56 = arith.constant 0 : index
    %50 = vector.load %arg2[%c2_53, %c2_54, %c0_55, %c0_56] : memref<3x3x3x32xf32, #tpu.memory_space<vmem>>, vector<1x1x3x32xf32>
    %51 = vector.shape_cast %50 : vector<1x1x3x32xf32> to vector<3x32xf32>
    %cst_57 = arith.constant dense<0.000000e+00> : vector<14x32xf32>
    %52 = tpu.matmul %49, %51, %cst_57 {dimension_numbers = #tpu.dot_dimension_numbers<[1], [0], [0], [1], [0, 0, 1, 1], [], []>} : vector<14x3xf32>, vector<3x32xf32>, vector<14x32xf32> -> vector<14x32xf32>
    %53 = arith.addf %48, %52 : vector<14x32xf32>
    %54 = vector.broadcast %0 : vector<1x32xf32> to vector<14x32xf32>
    %55 = arith.addf %53, %54 : vector<14x32xf32>
    %cst_58 = arith.constant 0.000000e+00 : f32
    %56 = vector.broadcast %cst_58 : f32 to vector<14x32xf32>
    %57 = arith.maximumf %55, %56 : vector<14x32xf32>
    %cst_59 = arith.constant 0.000000e+00 : f32
    %58 = vector.broadcast %cst_59 : f32 to vector<14x32xf32>
    %c0_60 = arith.constant 0 : index
    %c1_61 = arith.constant 1 : index
    %c0_62 = arith.constant 0 : index
    %c0_63 = arith.constant 0 : index
    %59 = vector.load %arg1[%c0_60, %c1_61, %c0_62, %c0_63] : memref<1x16x16x3xf32, #tpu.memory_space<vmem>>, vector<1x1x16x3xf32>
    %60 = vector.shape_cast %59 : vector<1x1x16x3xf32> to vector<16x3xf32>
    %61 = vector.extract_strided_slice %60 {offsets = [0, 0], sizes = [14, 3], strides = [1, 1]} : vector<16x3xf32> to vector<14x3xf32>
    %c0_64 = arith.constant 0 : index
    %c0_65 = arith.constant 0 : index
    %c0_66 = arith.constant 0 : index
    %c0_67 = arith.constant 0 : index
    %62 = vector.load %arg2[%c0_64, %c0_65, %c0_66, %c0_67] : memref<3x3x3x32xf32, #tpu.memory_space<vmem>>, vector<1x1x3x32xf32>
    %63 = vector.shape_cast %62 : vector<1x1x3x32xf32> to vector<3x32xf32>
    %cst_68 = arith.constant dense<0.000000e+00> : vector<14x32xf32>
    %64 = tpu.matmul %61, %63, %cst_68 {dimension_numbers = #tpu.dot_dimension_numbers<[1], [0], [0], [1], [0, 0, 1, 1], [], []>} : vector<14x3xf32>, vector<3x32xf32>, vector<14x32xf32> -> vector<14x32xf32>
    %65 = arith.addf %58, %64 : vector<14x32xf32>
    %66 = vector.extract_strided_slice %60 {offsets = [1, 0], sizes = [14, 3], strides = [1, 1]} : vector<16x3xf32> to vector<14x3xf32>
    %c0_69 = arith.constant 0 : index
    %c1_70 = arith.constant 1 : index
    %c0_71 = arith.constant 0 : index
    %c0_72 = arith.constant 0 : index
    %67 = vector.load %arg2[%c0_69, %c1_70, %c0_71, %c0_72] : memref<3x3x3x32xf32, #tpu.memory_space<vmem>>, vector<1x1x3x32xf32>
    %68 = vector.shape_cast %67 : vector<1x1x3x32xf32> to vector<3x32xf32>
    %cst_73 = arith.constant dense<0.000000e+00> : vector<14x32xf32>
    %69 = tpu.matmul %66, %68, %cst_73 {dimension_numbers = #tpu.dot_dimension_numbers<[1], [0], [0], [1], [0, 0, 1, 1], [], []>} : vector<14x3xf32>, vector<3x32xf32>, vector<14x32xf32> -> vector<14x32xf32>
    %70 = arith.addf %65, %69 : vector<14x32xf32>
    %71 = vector.extract_strided_slice %60 {offsets = [2, 0], sizes = [14, 3], strides = [1, 1]} : vector<16x3xf32> to vector<14x3xf32>
    %c0_74 = arith.constant 0 : index
    %c2_75 = arith.constant 2 : index
    %c0_76 = arith.constant 0 : index
    %c0_77 = arith.constant 0 : index
    %72 = vector.load %arg2[%c0_74, %c2_75, %c0_76, %c0_77] : memref<3x3x3x32xf32, #tpu.memory_space<vmem>>, vector<1x1x3x32xf32>
    %73 = vector.shape_cast %72 : vector<1x1x3x32xf32> to vector<3x32xf32>
    %cst_78 = arith.constant dense<0.000000e+00> : vector<14x32xf32>
    %74 = tpu.matmul %71, %73, %cst_78 {dimension_numbers = #tpu.dot_dimension_numbers<[1], [0], [0], [1], [0, 0, 1, 1], [], []>} : vector<14x3xf32>, vector<3x32xf32>, vector<14x32xf32> -> vector<14x32xf32>
    %75 = arith.addf %70, %74 : vector<14x32xf32>
    %c0_79 = arith.constant 0 : index
    %c2_80 = arith.constant 2 : index
    %c0_81 = arith.constant 0 : index
    %c0_82 = arith.constant 0 : index
    %76 = vector.load %arg1[%c0_79, %c2_80, %c0_81, %c0_82] : memref<1x16x16x3xf32, #tpu.memory_space<vmem>>, vector<1x1x16x3xf32>
    %77 = vector.shape_cast %76 : vector<1x1x16x3xf32> to vector<16x3xf32>
    %78 = vector.extract_strided_slice %77 {offsets = [0, 0], sizes = [14, 3], strides = [1, 1]} : vector<16x3xf32> to vector<14x3xf32>
    %c1_83 = arith.constant 1 : index
    %c0_84 = arith.constant 0 : index
    %c0_85 = arith.constant 0 : index
    %c0_86 = arith.constant 0 : index
    %79 = vector.load %arg2[%c1_83, %c0_84, %c0_85, %c0_86] : memref<3x3x3x32xf32, #tpu.memory_space<vmem>>, vector<1x1x3x32xf32>
    %80 = vector.shape_cast %79 : vector<1x1x3x32xf32> to vector<3x32xf32>
    %cst_87 = arith.constant dense<0.000000e+00> : vector<14x32xf32>
    %81 = tpu.matmul %78, %80, %cst_87 {dimension_numbers = #tpu.dot_dimension_numbers<[1], [0], [0], [1], [0, 0, 1, 1], [], []>} : vector<14x3xf32>, vector<3x32xf32>, vector<14x32xf32> -> vector<14x32xf32>
    %82 = arith.addf %75, %81 : vector<14x32xf32>
    %83 = vector.extract_strided_slice %77 {offsets = [1, 0], sizes = [14, 3], strides = [1, 1]} : vector<16x3xf32> to vector<14x3xf32>
    %c1_88 = arith.constant 1 : index
    %c1_89 = arith.constant 1 : index
    %c0_90 = arith.constant 0 : index
    %c0_91 = arith.constant 0 : index
    %84 = vector.load %arg2[%c1_88, %c1_89, %c0_90, %c0_91] : memref<3x3x3x32xf32, #tpu.memory_space<vmem>>, vector<1x1x3x32xf32>
    %85 = vector.shape_cast %84 : vector<1x1x3x32xf32> to vector<3x32xf32>
    %cst_92 = arith.constant dense<0.000000e+00> : vector<14x32xf32>
    %86 = tpu.matmul %83, %85, %cst_92 {dimension_numbers = #tpu.dot_dimension_numbers<[1], [0], [0], [1], [0, 0, 1, 1], [], []>} : vector<14x3xf32>, vector<3x32xf32>, vector<14x32xf32> -> vector<14x32xf32>
    %87 = arith.addf %82, %86 : vector<14x32xf32>
    %88 = vector.extract_strided_slice %77 {offsets = [2, 0], sizes = [14, 3], strides = [1, 1]} : vector<16x3xf32> to vector<14x3xf32>
    %c1_93 = arith.constant 1 : index
    %c2_94 = arith.constant 2 : index
    %c0_95 = arith.constant 0 : index
    %c0_96 = arith.constant 0 : index
    %89 = vector.load %arg2[%c1_93, %c2_94, %c0_95, %c0_96] : memref<3x3x3x32xf32, #tpu.memory_space<vmem>>, vector<1x1x3x32xf32>
    %90 = vector.shape_cast %89 : vector<1x1x3x32xf32> to vector<3x32xf32>
    %cst_97 = arith.constant dense<0.000000e+00> : vector<14x32xf32>
    %91 = tpu.matmul %88, %90, %cst_97 {dimension_numbers = #tpu.dot_dimension_numbers<[1], [0], [0], [1], [0, 0, 1, 1], [], []>} : vector<14x3xf32>, vector<3x32xf32>, vector<14x32xf32> -> vector<14x32xf32>
    %92 = arith.addf %87, %91 : vector<14x32xf32>
    %c0_98 = arith.constant 0 : index
    %c3 = arith.constant 3 : index
    %c0_99 = arith.constant 0 : index
    %c0_100 = arith.constant 0 : index
    %93 = vector.load %arg1[%c0_98, %c3, %c0_99, %c0_100] : memref<1x16x16x3xf32, #tpu.memory_space<vmem>>, vector<1x1x16x3xf32>
    %94 = vector.shape_cast %93 : vector<1x1x16x3xf32> to vector<16x3xf32>
    %95 = vector.extract_strided_slice %94 {offsets = [0, 0], sizes = [14, 3], strides = [1, 1]} : vector<16x3xf32> to vector<14x3xf32>
    %c2_101 = arith.constant 2 : index
    %c0_102 = arith.constant 0 : index
    %c0_103 = arith.constant 0 : index
    %c0_104 = arith.constant 0 : index
    %96 = vector.load %arg2[%c2_101, %c0_102, %c0_103, %c0_104] : memref<3x3x3x32xf32, #tpu.memory_space<vmem>>, vector<1x1x3x32xf32>
    %97 = vector.shape_cast %96 : vector<1x1x3x32xf32> to vector<3x32xf32>
    %cst_105 = arith.constant dense<0.000000e+00> : vector<14x32xf32>
    %98 = tpu.matmul %95, %97, %cst_105 {dimension_numbers = #tpu.dot_dimension_numbers<[1], [0], [0], [1], [0, 0, 1, 1], [], []>} : vector<14x3xf32>, vector<3x32xf32>, vector<14x32xf32> -> vector<14x32xf32>
    %99 = arith.addf %92, %98 : vector<14x32xf32>
    %100 = vector.extract_strided_slice %94 {offsets = [1, 0], sizes = [14, 3], strides = [1, 1]} : vector<16x3xf32> to vector<14x3xf32>
    %c2_106 = arith.constant 2 : index
    %c1_107 = arith.constant 1 : index
    %c0_108 = arith.constant 0 : index
    %c0_109 = arith.constant 0 : index
    %101 = vector.load %arg2[%c2_106, %c1_107, %c0_108, %c0_109] : memref<3x3x3x32xf32, #tpu.memory_space<vmem>>, vector<1x1x3x32xf32>
    %102 = vector.shape_cast %101 : vector<1x1x3x32xf32> to vector<3x32xf32>
    %cst_110 = arith.constant dense<0.000000e+00> : vector<14x32xf32>
    %103 = tpu.matmul %100, %102, %cst_110 {dimension_numbers = #tpu.dot_dimension_numbers<[1], [0], [0], [1], [0, 0, 1, 1], [], []>} : vector<14x3xf32>, vector<3x32xf32>, vector<14x32xf32> -> vector<14x32xf32>
    %104 = arith.addf %99, %103 : vector<14x32xf32>
    %105 = vector.extract_strided_slice %94 {offsets = [2, 0], sizes = [14, 3], strides = [1, 1]} : vector<16x3xf32> to vector<14x3xf32>
    %c2_111 = arith.constant 2 : index
    %c2_112 = arith.constant 2 : index
    %c0_113 = arith.constant 0 : index
    %c0_114 = arith.constant 0 : index
    %106 = vector.load %arg2[%c2_111, %c2_112, %c0_113, %c0_114] : memref<3x3x3x32xf32, #tpu.memory_space<vmem>>, vector<1x1x3x32xf32>
    %107 = vector.shape_cast %106 : vector<1x1x3x32xf32> to vector<3x32xf32>
    %cst_115 = arith.constant dense<0.000000e+00> : vector<14x32xf32>
    %108 = tpu.matmul %105, %107, %cst_115 {dimension_numbers = #tpu.dot_dimension_numbers<[1], [0], [0], [1], [0, 0, 1, 1], [], []>} : vector<14x3xf32>, vector<3x32xf32>, vector<14x32xf32> -> vector<14x32xf32>
    %109 = arith.addf %104, %108 : vector<14x32xf32>
    %110 = vector.broadcast %0 : vector<1x32xf32> to vector<14x32xf32>
    %111 = arith.addf %109, %110 : vector<14x32xf32>
    %cst_116 = arith.constant 0.000000e+00 : f32
    %112 = vector.broadcast %cst_116 : f32 to vector<14x32xf32>
    %113 = arith.maximumf %111, %112 : vector<14x32xf32>
    %114 = arith.maximumf %57, %113 : vector<14x32xf32>
    %115 = vector.extract_strided_slice %114 {offsets = [0, 0], sizes = [2, 32], strides = [1, 1]} : vector<14x32xf32> to vector<2x32xf32>
    %cst_117 = arith.constant dense<0xFF800000> : vector<32xf32>
    %116 = vector.multi_reduction <maximumf>, %115, %cst_117 [0] : vector<2x32xf32> to vector<32xf32>
    %117 = vector.shape_cast %116 : vector<32xf32> to vector<1x32xf32>
    %c0_118 = arith.constant 0 : index
    %c0_119 = arith.constant 0 : index
    %c0_120 = arith.constant 0 : index
    %118 = vector.load %arg9[%c0_118, %c0_119, %c0_120] : memref<7x7x32xf32, #tpu.memory_space<vmem>>, vector<1x1x32xf32>
    %119 = vector.shape_cast %118 : vector<1x1x32xf32> to vector<1x32xf32>
    %120 = vector.shape_cast %117 : vector<1x32xf32> to vector<1x1x32xf32>
    tpu.vector_store %arg9[%c0_118, %c0_119, %c0_120], %120 {strides = array<i32>} : memref<7x7x32xf32, #tpu.memory_space<vmem>>, vector<1x1x32xf32>,
    %121 = vector.extract_strided_slice %114 {offsets = [2, 0], sizes = [2, 32], strides = [1, 1]} : vector<14x32xf32> to vector<2x32xf32>
    %cst_121 = arith.constant dense<0xFF800000> : vector<32xf32>
    %122 = vector.multi_reduction <maximumf>, %121, %cst_121 [0] : vector<2x32xf32> to vector<32xf32>
    %123 = vector.shape_cast %122 : vector<32xf32> to vector<1x32xf32>
    %c0_122 = arith.constant 0 : index
    %c1_123 = arith.constant 1 : index
    %c0_124 = arith.constant 0 : index
    %124 = vector.load %arg9[%c0_122, %c1_123, %c0_124] : memref<7x7x32xf32, #tpu.memory_space<vmem>>, vector<1x1x32xf32>
    %125 = vector.shape_cast %124 : vector<1x1x32xf32> to vector<1x32xf32>
    %126 = vector.shape_cast %123 : vector<1x32xf32> to vector<1x1x32xf32>
    tpu.vector_store %arg9[%c0_122, %c1_123, %c0_124], %126 {strides = array<i32>} : memref<7x7x32xf32, #tpu.memory_space<vmem>>, vector<1x1x32xf32>,
    %127 = vector.extract_strided_slice %114 {offsets = [4, 0], sizes = [2, 32], strides = [1, 1]} : vector<14x32xf32> to vector<2x32xf32>
    %cst_125 = arith.constant dense<0xFF800000> : vector<32xf32>
    %128 = vector.multi_reduction <maximumf>, %127, %cst_125 [0] : vector<2x32xf32> to vector<32xf32>
    %129 = vector.shape_cast %128 : vector<32xf32> to vector<1x32xf32>
    %c0_126 = arith.constant 0 : index
    %c2_127 = arith.constant 2 : index
    %c0_128 = arith.constant 0 : index
    %130 = vector.load %arg9[%c0_126, %c2_127, %c0_128] : memref<7x7x32xf32, #tpu.memory_space<vmem>>, vector<1x1x32xf32>
    %131 = vector.shape_cast %130 : vector<1x1x32xf32> to vector<1x32xf32>
    %132 = vector.shape_cast %129 : vector<1x32xf32> to vector<1x1x32xf32>
    tpu.vector_store %arg9[%c0_126, %c2_127, %c0_128], %132 {strides = array<i32>} : memref<7x7x32xf32, #tpu.memory_space<vmem>>, vector<1x1x32xf32>,
    %133 = vector.extract_strided_slice %114 {offsets = [6, 0], sizes = [2, 32], strides = [1, 1]} : vector<14x32xf32> to vector<2x32xf32>
    %cst_129 = arith.constant dense<0xFF800000> : vector<32xf32>
    %134 = vector.multi_reduction <maximumf>, %133, %cst_129 [0] : vector<2x32xf32> to vector<32xf32>
    %135 = vector.shape_cast %134 : vector<32xf32> to vector<1x32xf32>
    %c0_130 = arith.constant 0 : index
    %c3_131 = arith.constant 3 : index
    %c0_132 = arith.constant 0 : index
    %136 = vector.load %arg9[%c0_130, %c3_131, %c0_132] : memref<7x7x32xf32, #tpu.memory_space<vmem>>, vector<1x1x32xf32>
    %137 = vector.shape_cast %136 : vector<1x1x32xf32> to vector<1x32xf32>
    %138 = vector.shape_cast %135 : vector<1x32xf32> to vector<1x1x32xf32>
    tpu.vector_store %arg9[%c0_130, %c3_131, %c0_132], %138 {strides = array<i32>} : memref<7x7x32xf32, #tpu.memory_space<vmem>>, vector<1x1x32xf32>,
    %139 = vector.extract_strided_slice %114 {offsets = [8, 0], sizes = [2, 32], strides = [1, 1]} : vector<14x32xf32> to vector<2x32xf32>
    %cst_133 = arith.constant dense<0xFF800000> : vector<32xf32>
    %140 = vector.multi_reduction <maximumf>, %139, %cst_133 [0] : vector<2x32xf32> to vector<32xf32>
    %141 = vector.shape_cast %140 : vector<32xf32> to vector<1x32xf32>
    %c0_134 = arith.constant 0 : index
    %c4 = arith.constant 4 : index
    %c0_135 = arith.constant 0 : index
    %142 = vector.load %arg9[%c0_134, %c4, %c0_135] : memref<7x7x32xf32, #tpu.memory_space<vmem>>, vector<1x1x32xf32>
    %143 = vector.shape_cast %142 : vector<1x1x32xf32> to vector<1x32xf32>
    %144 = vector.shape_cast %141 : vector<1x32xf32> to vector<1x1x32xf32>
    tpu.vector_store %arg9[%c0_134, %c4, %c0_135], %144 {strides = array<i32>} : memref<7x7x32xf32, #tpu.memory_space<vmem>>, vector<1x1x32xf32>,
    %145 = vector.extract_strided_slice %114 {offsets = [10, 0], sizes = [2, 32], strides = [1, 1]} : vector<14x32xf32> to vector<2x32xf32>
    %cst_136 = arith.constant dense<0xFF800000> : vector<32xf32>
    %146 = vector.multi_reduction <maximumf>, %145, %cst_136 [0] : vector<2x32xf32> to vector<32xf32>
    %147 = vector.shape_cast %146 : vector<32xf32> to vector<1x32xf32>
    %c0_137 = arith.constant 0 : index
    %c5 = arith.constant 5 : index
    %c0_138 = arith.constant 0 : index
    %148 = vector.load %arg9[%c0_137, %c5, %c0_138] : memref<7x7x32xf32, #tpu.memory_space<vmem>>, vector<1x1x32xf32>
    %149 = vector.shape_cast %148 : vector<1x1x32xf32> to vector<1x32xf32>
    %150 = vector.shape_cast %147 : vector<1x32xf32> to vector<1x1x32xf32>
    tpu.vector_store %arg9[%c0_137, %c5, %c0_138], %150 {strides = array<i32>} : memref<7x7x32xf32, #tpu.memory_space<vmem>>, vector<1x1x32xf32>,
    %151 = vector.extract_strided_slice %114 {offsets = [12, 0], sizes = [2, 32], strides = [1, 1]} : vector<14x32xf32> to vector<2x32xf32>
    %cst_139 = arith.constant dense<0xFF800000> : vector<32xf32>
    %152 = vector.multi_reduction <maximumf>, %151, %cst_139 [0] : vector<2x32xf32> to vector<32xf32>
    %153 = vector.shape_cast %152 : vector<32xf32> to vector<1x32xf32>
    %c0_140 = arith.constant 0 : index
    %c6 = arith.constant 6 : index
    %c0_141 = arith.constant 0 : index
    %154 = vector.load %arg9[%c0_140, %c6, %c0_141] : memref<7x7x32xf32, #tpu.memory_space<vmem>>, vector<1x1x32xf32>
    %155 = vector.shape_cast %154 : vector<1x1x32xf32> to vector<1x32xf32>
    %156 = vector.shape_cast %153 : vector<1x32xf32> to vector<1x1x32xf32>
    tpu.vector_store %arg9[%c0_140, %c6, %c0_141], %156 {strides = array<i32>} : memref<7x7x32xf32, #tpu.memory_space<vmem>>, vector<1x1x32xf32>,
    %cst_142 = arith.constant 0.000000e+00 : f32
    %157 = vector.broadcast %cst_142 : f32 to vector<14x32xf32>
    %c0_143 = arith.constant 0 : index
    %c2_144 = arith.constant 2 : index
    %c0_145 = arith.constant 0 : index
    %c0_146 = arith.constant 0 : index
    %158 = vector.load %arg1[%c0_143, %c2_144, %c0_145, %c0_146] : memref<1x16x16x3xf32, #tpu.memory_space<vmem>>, vector<1x1x16x3xf32>
    %159 = vector.shape_cast %158 : vector<1x1x16x3xf32> to vector<16x3xf32>
    %160 = vector.extract_strided_slice %159 {offsets = [0, 0], sizes = [14, 3], strides = [1, 1]} : vector<16x3xf32> to vector<14x3xf32>
    %c0_147 = arith.constant 0 : index
    %c0_148 = arith.constant 0 : index
    %c0_149 = arith.constant 0 : index
    %c0_150 = arith.constant 0 : index
    %161 = vector.load %arg2[%c0_147, %c0_148, %c0_149, %c0_150] : memref<3x3x3x32xf32, #tpu.memory_space<vmem>>, vector<1x1x3x32xf32>
    %162 = vector.shape_cast %161 : vector<1x1x3x32xf32> to vector<3x32xf32>
    %cst_151 = arith.constant dense<0.000000e+00> : vector<14x32xf32>
    %163 = tpu.matmul %160, %162, %cst_151 {dimension_numbers = #tpu.dot_dimension_numbers<[1], [0], [0], [1], [0, 0, 1, 1], [], []>} : vector<14x3xf32>, vector<3x32xf32>, vector<14x32xf32> -> vector<14x32xf32>
    %164 = arith.addf %157, %163 : vector<14x32xf32>
    %165 = vector.extract_strided_slice %159 {offsets = [1, 0], sizes = [14, 3], strides = [1, 1]} : vector<16x3xf32> to vector<14x3xf32>
    %c0_152 = arith.constant 0 : index
    %c1_153 = arith.constant 1 : index
    %c0_154 = arith.constant 0 : index
    %c0_155 = arith.constant 0 : index
    %166 = vector.load %arg2[%c0_152, %c1_153, %c0_154, %c0_155] : memref<3x3x3x32xf32, #tpu.memory_space<vmem>>, vector<1x1x3x32xf32>
    %167 = vector.shape_cast %166 : vector<1x1x3x32xf32> to vector<3x32xf32>
    %cst_156 = arith.constant dense<0.000000e+00> : vector<14x32xf32>
    %168 = tpu.matmul %165, %167, %cst_156 {dimension_numbers = #tpu.dot_dimension_numbers<[1], [0], [0], [1], [0, 0, 1, 1], [], []>} : vector<14x3xf32>, vector<3x32xf32>, vector<14x32xf32> -> vector<14x32xf32>
    %169 = arith.addf %164, %168 : vector<14x32xf32>
    %170 = vector.extract_strided_slice %159 {offsets = [2, 0], sizes = [14, 3], strides = [1, 1]} : vector<16x3xf32> to vector<14x3xf32>
    %c0_157 = arith.constant 0 : index
    %c2_158 = arith.constant 2 : index
    %c0_159 = arith.constant 0 : index
    %c0_160 = arith.constant 0 : index
    %171 = vector.load %arg2[%c0_157, %c2_158, %c0_159, %c0_160] : memref<3x3x3x32xf32, #tpu.memory_space<vmem>>, vector<1x1x3x32xf32>
    %172 = vector.shape_cast %171 : vector<1x1x3x32xf32> to vector<3x32xf32>
    %cst_161 = arith.constant dense<0.000000e+00> : vector<14x32xf32>
    %173 = tpu.matmul %170, %172, %cst_161 {dimension_numbers = #tpu.dot_dimension_numbers<[1], [0], [0], [1], [0, 0, 1, 1], [], []>} : vector<14x3xf32>, vector<3x32xf32>, vector<14x32xf32> -> vector<14x32xf32>
    %174 = arith.addf %169, %173 : vector<14x32xf32>
    %c0_162 = arith.constant 0 : index
    %c3_163 = arith.constant 3 : index
    %c0_164 = arith.constant 0 : index
    %c0_165 = arith.constant 0 : index
    %175 = vector.load %arg1[%c0_162, %c3_163, %c0_164, %c0_165] : memref<1x16x16x3xf32, #tpu.memory_space<vmem>>, vector<1x1x16x3xf32>
    %176 = vector.shape_cast %175 : vector<1x1x16x3xf32> to vector<16x3xf32>
    %177 = vector.extract_strided_slice %176 {offsets = [0, 0], sizes = [14, 3], strides = [1, 1]} : vector<16x3xf32> to vector<14x3xf32>
    %c1_166 = arith.constant 1 : index
    %c0_167 = arith.constant 0 : index
    %c0_168 = arith.constant 0 : index
    %c0_169 = arith.constant 0 : index
    %178 = vector.load %arg2[%c1_166, %c0_167, %c0_168, %c0_169] : memref<3x3x3x32xf32, #tpu.memory_space<vmem>>, vector<1x1x3x32xf32>
    %179 = vector.shape_cast %178 : vector<1x1x3x32xf32> to vector<3x32xf32>
    %cst_170 = arith.constant dense<0.000000e+00> : vector<14x32xf32>
    %180 = tpu.matmul %177, %179, %cst_170 {dimension_numbers = #tpu.dot_dimension_numbers<[1], [0], [0], [1], [0, 0, 1, 1], [], []>} : vector<14x3xf32>, vector<3x32xf32>, vector<14x32xf32> -> vector<14x32xf32>
    %181 = arith.addf %174, %180 : vector<14x32xf32>
    %182 = vector.extract_strided_slice %176 {offsets = [1, 0], sizes = [14, 3], strides = [1, 1]} : vector<16x3xf32> to vector<14x3xf32>
    %c1_171 = arith.constant 1 : index
    %c1_172 = arith.constant 1 : index
    %c0_173 = arith.constant 0 : index
    %c0_174 = arith.constant 0 : index
    %183 = vector.load %arg2[%c1_171, %c1_172, %c0_173, %c0_174] : memref<3x3x3x32xf32, #tpu.memory_space<vmem>>, vector<1x1x3x32xf32>
    %184 = vector.shape_cast %183 : vector<1x1x3x32xf32> to vector<3x32xf32>
    %cst_175 = arith.constant dense<0.000000e+00> : vector<14x32xf32>
    %185 = tpu.matmul %182, %184, %cst_175 {dimension_numbers = #tpu.dot_dimension_numbers<[1], [0], [0], [1], [0, 0, 1, 1], [], []>} : vector<14x3xf32>, vector<3x32xf32>, vector<14x32xf32> -> vector<14x32xf32>
    %186 = arith.addf %181, %185 : vector<14x32xf32>
    %187 = vector.extract_strided_slice %176 {offsets = [2, 0], sizes = [14, 3], strides = [1, 1]} : vector<16x3xf32> to vector<14x3xf32>
    %c1_176 = arith.constant 1 : index
    %c2_177 = arith.constant 2 : index
    %c0_178 = arith.constant 0 : index
    %c0_179 = arith.constant 0 : index
    %188 = vector.load %arg2[%c1_176, %c2_177, %c0_178, %c0_179] : memref<3x3x3x32xf32, #tpu.memory_space<vmem>>, vector<1x1x3x32xf32>
    %189 = vector.shape_cast %188 : vector<1x1x3x32xf32> to vector<3x32xf32>
    %cst_180 = arith.constant dense<0.000000e+00> : vector<14x32xf32>
    %190 = tpu.matmul %187, %189, %cst_180 {dimension_numbers = #tpu.dot_dimension_numbers<[1], [0], [0], [1], [0, 0, 1, 1], [], []>} : vector<14x3xf32>, vector<3x32xf32>, vector<14x32xf32> -> vector<14x32xf32>
    %191 = arith.addf %186, %190 : vector<14x32xf32>
    %c0_181 = arith.constant 0 : index
    %c4_182 = arith.constant 4 : index
    %c0_183 = arith.constant 0 : index
    %c0_184 = arith.constant 0 : index
    %192 = vector.load %arg1[%c0_181, %c4_182, %c0_183, %c0_184] : memref<1x16x16x3xf32, #tpu.memory_space<vmem>>, vector<1x1x16x3xf32>
    %193 = vector.shape_cast %192 : vector<1x1x16x3xf32> to vector<16x3xf32>
    %194 = vector.extract_strided_slice %193 {offsets = [0, 0], sizes = [14, 3], strides = [1, 1]} : vector<16x3xf32> to vector<14x3xf32>
    %c2_185 = arith.constant 2 : index
    %c0_186 = arith.constant 0 : index
    %c0_187 = arith.constant 0 : index
    %c0_188 = arith.constant 0 : index
    %195 = vector.load %arg2[%c2_185, %c0_186, %c0_187, %c0_188] : memref<3x3x3x32xf32, #tpu.memory_space<vmem>>, vector<1x1x3x32xf32>
    %196 = vector.shape_cast %195 : vector<1x1x3x32xf32> to vector<3x32xf32>
    %cst_189 = arith.constant dense<0.000000e+00> : vector<14x32xf32>
    %197 = tpu.matmul %194, %196, %cst_189 {dimension_numbers = #tpu.dot_dimension_numbers<[1], [0], [0], [1], [0, 0, 1, 1], [], []>} : vector<14x3xf32>, vector<3x32xf32>, vector<14x32xf32> -> vector<14x32xf32>
    %198 = arith.addf %191, %197 : vector<14x32xf32>
    %199 = vector.extract_strided_slice %193 {offsets = [1, 0], sizes = [14, 3], strides = [1, 1]} : vector<16x3xf32> to vector<14x3xf32>
    %c2_190 = arith.constant 2 : index
    %c1_191 = arith.constant 1 : index
    %c0_192 = arith.constant 0 : index
    %c0_193 = arith.constant 0 : index
    %200 = vector.load %arg2[%c2_190, %c1_191, %c0_192, %c0_193] : memref<3x3x3x32xf32, #tpu.memory_space<vmem>>, vector<1x1x3x32xf32>
    %201 = vector.shape_cast %200 : vector<1x1x3x32xf32> to vector<3x32xf32>
    %cst_194 = arith.constant dense<0.000000e+00> : vector<14x32xf32>
    %202 = tpu.matmul %199, %201, %cst_194 {dimension_numbers = #tpu.dot_dimension_numbers<[1], [0], [0], [1], [0, 0, 1, 1], [], []>} : vector<14x3xf32>, vector<3x32xf32>, vector<14x32xf32> -> vector<14x32xf32>
    %203 = arith.addf %198, %202 : vector<14x32xf32>
    %204 = vector.extract_strided_slice %193 {offsets = [2, 0], sizes = [14, 3], strides = [1, 1]} : vector<16x3xf32> to vector<14x3xf32>
    %c2_195 = arith.constant 2 : index
    %c2_196 = arith.constant 2 : index
    %c0_197 = arith.constant 0 : index
    %c0_198 = arith.constant 0 : index
    %205 = vector.load %arg2[%c2_195, %c2_196, %c0_197, %c0_198] : memref<3x3x3x32xf32, #tpu.memory_space<vmem>>, vector<1x1x3x32xf32>
    %206 = vector.shape_cast %205 : vector<1x1x3x32xf32> to vector<3x32xf32>
    %cst_199 = arith.constant dense<0.000000e+00> : vector<14x32xf32>
    %207 = tpu.matmul %204, %206, %cst_199 {dimension_numbers = #tpu.dot_dimension_numbers<[1], [0], [0], [1], [0, 0, 1, 1], [], []>} : vector<14x3xf32>, vector<3x32xf32>, vector<14x32xf32> -> vector<14x32xf32>
    %208 = arith.addf %203, %207 : vector<14x32xf32>
    %209 = vector.broadcast %0 : vector<1x32xf32> to vector<14x32xf32>
    %210 = arith.addf %208, %209 : vector<14x32xf32>
    %cst_200 = arith.constant 0.000000e+00 : f32
    %211 = vector.broadcast %cst_200 : f32 to vector<14x32xf32>
    %212 = arith.maximumf %210, %211 : vector<14x32xf32>
    %cst_201 = arith.constant 0.000000e+00 : f32
    %213 = vector.broadcast %cst_201 : f32 to vector<14x32xf32>
    %c0_202 = arith.constant 0 : index
    %c3_203 = arith.constant 3 : index
    %c0_204 = arith.constant 0 : index
    %c0_205 = arith.constant 0 : index
    %214 = vector.load %arg1[%c0_202, %c3_203, %c0_204, %c0_205] : memref<1x16x16x3xf32, #tpu.memory_space<vmem>>, vector<1x1x16x3xf32>
    %215 = vector.shape_cast %214 : vector<1x1x16x3xf32> to vector<16x3xf32>
    %216 = vector.extract_strided_slice %215 {offsets = [0, 0], sizes = [14, 3], strides = [1, 1]} : vector<16x3xf32> to vector<14x3xf32>
    %c0_206 = arith.constant 0 : index
    %c0_207 = arith.constant 0 : index
    %c0_208 = arith.constant 0 : index
    %c0_209 = arith.constant 0 : index
    %217 = vector.load %arg2[%c0_206, %c0_207, %c0_208, %c0_209] : memref<3x3x3x32xf32, #tpu.memory_space<vmem>>, vector<1x1x3x32xf32>
    %218 = vector.shape_cast %217 : vector<1x1x3x32xf32> to vector<3x32xf32>
    %cst_210 = arith.constant dense<0.000000e+00> : vector<14x32xf32>
    %219 = tpu.matmul %216, %218, %cst_210 {dimension_numbers = #tpu.dot_dimension_numbers<[1], [0], [0], [1], [0, 0, 1, 1], [], []>} : vector<14x3xf32>, vector<3x32xf32>, vector<14x32xf32> -> vector<14x32xf32>
    %220 = arith.addf %213, %219 : vector<14x32xf32>
    %221 = vector.extract_strided_slice %215 {offsets = [1, 0], sizes = [14, 3], strides = [1, 1]} : vector<16x3xf32> to vector<14x3xf32>
    %c0_211 = arith.constant 0 : index
    %c1_212 = arith.constant 1 : index
    %c0_213 = arith.constant 0 : index
    %c0_214 = arith.constant 0 : index
    %222 = vector.load %arg2[%c0_211, %c1_212, %c0_213, %c0_214] : memref<3x3x3x32xf32, #tpu.memory_space<vmem>>, vector<1x1x3x32xf32>
    %223 = vector.shape_cast %222 : vector<1x1x3x32xf32> to vector<3x32xf32>
    %cst_215 = arith.constant dense<0.000000e+00> : vector<14x32xf32>
    %224 = tpu.matmul %221, %223, %cst_215 {dimension_numbers = #tpu.dot_dimension_numbers<[1], [0], [0], [1], [0, 0, 1, 1], [], []>} : vector<14x3xf32>, vector<3x32xf32>, vector<14x32xf32> -> vector<14x32xf32>
    %225 = arith.addf %220, %224 : vector<14x32xf32>
    %226 = vector.extract_strided_slice %215 {offsets = [2, 0], sizes = [14, 3], strides = [1, 1]} : vector<16x3xf32> to vector<14x3xf32>
    %c0_216 = arith.constant 0 : index
    %c2_217 = arith.constant 2 : index
    %c0_218 = arith.constant 0 : index
    %c0_219 = arith.constant 0 : index
    %227 = vector.load %arg2[%c0_216, %c2_217, %c0_218, %c0_219] : memref<3x3x3x32xf32, #tpu.memory_space<vmem>>, vector<1x1x3x32xf32>
    %228 = vector.shape_cast %227 : vector<1x1x3x32xf32> to vector<3x32xf32>
    %cst_220 = arith.constant dense<0.000000e+00> : vector<14x32xf32>
    %229 = tpu.matmul %226, %228, %cst_220 {dimension_numbers = #tpu.dot_dimension_numbers<[1], [0], [0], [1], [0, 0, 1, 1], [], []>} : vector<14x3xf32>, vector<3x32xf32>, vector<14x32xf32> -> vector<14x32xf32>
    %230 = arith.addf %225, %229 : vector<14x32xf32>
    %c0_221 = arith.constant 0 : index
    %c4_222 = arith.constant 4 : index
    %c0_223 = arith.constant 0 : index
    %c0_224 = arith.constant 0 : index
    %231 = vector.load %arg1[%c0_221, %c4_222, %c0_223, %c0_224] : memref<1x16x16x3xf32, #tpu.memory_space<vmem>>, vector<1x1x16x3xf32>
    %232 = vector.shape_cast %231 : vector<1x1x16x3xf32> to vector<16x3xf32>
    %233 = vector.extract_strided_slice %232 {offsets = [0, 0], sizes = [14, 3], strides = [1, 1]} : vector<16x3xf32> to vector<14x3xf32>
    %c1_225 = arith.constant 1 : index
    %c0_226 = arith.constant 0 : index
    %c0_227 = arith.constant 0 : index
    %c0_228 = arith.constant 0 : index
    %234 = vector.load %arg2[%c1_225, %c0_226, %c0_227, %c0_228] : memref<3x3x3x32xf32, #tpu.memory_space<vmem>>, vector<1x1x3x32xf32>
    %235 = vector.shape_cast %234 : vector<1x1x3x32xf32> to vector<3x32xf32>
    %cst_229 = arith.constant dense<0.000000e+00> : vector<14x32xf32>
    %236 = tpu.matmul %233, %235, %cst_229 {dimension_numbers = #tpu.dot_dimension_numbers<[1], [0], [0], [1], [0, 0, 1, 1], [], []>} : vector<14x3xf32>, vector<3x32xf32>, vector<14x32xf32> -> vector<14x32xf32>
    %237 = arith.addf %230, %236 : vector<14x32xf32>
    %238 = vector.extract_strided_slice %232 {offsets = [1, 0], sizes = [14, 3], strides = [1, 1]} : vector<16x3xf32> to vector<14x3xf32>
    %c1_230 = arith.constant 1 : index
    %c1_231 = arith.constant 1 : index
    %c0_232 = arith.constant 0 : index
    %c0_233 = arith.constant 0 : index
    %239 = vector.load %arg2[%c1_230, %c1_231, %c0_232, %c0_233] : memref<3x3x3x32xf32, #tpu.memory_space<vmem>>, vector<1x1x3x32xf32>
    %240 = vector.shape_cast %239 : vector<1x1x3x32xf32> to vector<3x32xf32>
    %cst_234 = arith.constant dense<0.000000e+00> : vector<14x32xf32>
    %241 = tpu.matmul %238, %240, %cst_234 {dimension_numbers = #tpu.dot_dimension_numbers<[1], [0], [0], [1], [0, 0, 1, 1], [], []>} : vector<14x3xf32>, vector<3x32xf32>, vector<14x32xf32> -> vector<14x32xf32>
    %242 = arith.addf %237, %241 : vector<14x32xf32>
    %243 = vector.extract_strided_slice %232 {offsets = [2, 0], sizes = [14, 3], strides = [1, 1]} : vector<16x3xf32> to vector<14x3xf32>
    %c1_235 = arith.constant 1 : index
    %c2_236 = arith.constant 2 : index
    %c0_237 = arith.constant 0 : index
    %c0_238 = arith.constant 0 : index
    %244 = vector.load %arg2[%c1_235, %c2_236, %c0_237, %c0_238] : memref<3x3x3x32xf32, #tpu.memory_space<vmem>>, vector<1x1x3x32xf32>
    %245 = vector.shape_cast %244 : vector<1x1x3x32xf32> to vector<3x32xf32>
    %cst_239 = arith.constant dense<0.000000e+00> : vector<14x32xf32>
    %246 = tpu.matmul %243, %245, %cst_239 {dimension_numbers = #tpu.dot_dimension_numbers<[1], [0], [0], [1], [0, 0, 1, 1], [], []>} : vector<14x3xf32>, vector<3x32xf32>, vector<14x32xf32> -> vector<14x32xf32>
    %247 = arith.addf %242, %246 : vector<14x32xf32>
    %c0_240 = arith.constant 0 : index
    %c5_241 = arith.constant 5 : index
    %c0_242 = arith.constant 0 : index
    %c0_243 = arith.constant 0 : index
    %248 = vector.load %arg1[%c0_240, %c5_241, %c0_242, %c0_243] : memref<1x16x16x3xf32, #tpu.memory_space<vmem>>, vector<1x1x16x3xf32>
    %249 = vector.shape_cast %248 : vector<1x1x16x3xf32> to vector<16x3xf32>
    %250 = vector.extract_strided_slice %249 {offsets = [0, 0], sizes = [14, 3], strides = [1, 1]} : vector<16x3xf32> to vector<14x3xf32>
    %c2_244 = arith.constant 2 : index
    %c0_245 = arith.constant 0 : index
    %c0_246 = arith.constant 0 : index
    %c0_247 = arith.constant 0 : index
    %251 = vector.load %arg2[%c2_244, %c0_245, %c0_246, %c0_247] : memref<3x3x3x32xf32, #tpu.memory_space<vmem>>, vector<1x1x3x32xf32>
    %252 = vector.shape_cast %251 : vector<1x1x3x32xf32> to vector<3x32xf32>
    %cst_248 = arith.constant dense<0.000000e+00> : vector<14x32xf32>
    %253 = tpu.matmul %250, %252, %cst_248 {dimension_numbers = #tpu.dot_dimension_numbers<[1], [0], [0], [1], [0, 0, 1, 1], [], []>} : vector<14x3xf32>, vector<3x32xf32>, vector<14x32xf32> -> vector<14x32xf32>
    %254 = arith.addf %247, %253 : vector<14x32xf32>
    %255 = vector.extract_strided_slice %249 {offsets = [1, 0], sizes = [14, 3], strides = [1, 1]} : vector<16x3xf32> to vector<14x3xf32>
    %c2_249 = arith.constant 2 : index
    %c1_250 = arith.constant 1 : index
    %c0_251 = arith.constant 0 : index
    %c0_252 = arith.constant 0 : index
    %256 = vector.load %arg2[%c2_249, %c1_250, %c0_251, %c0_252] : memref<3x3x3x32xf32, #tpu.memory_space<vmem>>, vector<1x1x3x32xf32>
    %257 = vector.shape_cast %256 : vector<1x1x3x32xf32> to vector<3x32xf32>
    %cst_253 = arith.constant dense<0.000000e+00> : vector<14x32xf32>
    %258 = tpu.matmul %255, %257, %cst_253 {dimension_numbers = #tpu.dot_dimension_numbers<[1], [0], [0], [1], [0, 0, 1, 1], [], []>} : vector<14x3xf32>, vector<3x32xf32>, vector<14x32xf32> -> vector<14x32xf32>
    %259 = arith.addf %254, %258 : vector<14x32xf32>
    %260 = vector.extract_strided_slice %249 {offsets = [2, 0], sizes = [14, 3], strides = [1, 1]} : vector<16x3xf32> to vector<14x3xf32>
    %c2_254 = arith.constant 2 : index
    %c2_255 = arith.constant 2 : index
    %c0_256 = arith.constant 0 : index
    %c0_257 = arith.constant 0 : index
    %261 = vector.load %arg2[%c2_254, %c2_255, %c0_256, %c0_257] : memref<3x3x3x32xf32, #tpu.memory_space<vmem>>, vector<1x1x3x32xf32>
    %262 = vector.shape_cast %261 : vector<1x1x3x32xf32> to vector<3x32xf32>
    %cst_258 = arith.constant dense<0.000000e+00> : vector<14x32xf32>
    %263 = tpu.matmul %260, %262, %cst_258 {dimension_numbers = #tpu.dot_dimension_numbers<[1], [0], [0], [1], [0, 0, 1, 1], [], []>} : vector<14x3xf32>, vector<3x32xf32>, vector<14x32xf32> -> vector<14x32xf32>
    %264 = arith.addf %259, %263 : vector<14x32xf32>
    %265 = vector.broadcast %0 : vector<1x32xf32> to vector<14x32xf32>
    %266 = arith.addf %264, %265 : vector<14x32xf32>
    %cst_259 = arith.constant 0.000000e+00 : f32
    %267 = vector.broadcast %cst_259 : f32 to vector<14x32xf32>
    %268 = arith.maximumf %266, %267 : vector<14x32xf32>
    %269 = arith.maximumf %212, %268 : vector<14x32xf32>
    %270 = vector.extract_strided_slice %269 {offsets = [0, 0], sizes = [2, 32], strides = [1, 1]} : vector<14x32xf32> to vector<2x32xf32>
    %cst_260 = arith.constant dense<0xFF800000> : vector<32xf32>
    %271 = vector.multi_reduction <maximumf>, %270, %cst_260 [0] : vector<2x32xf32> to vector<32xf32>
    %272 = vector.shape_cast %271 : vector<32xf32> to vector<1x32xf32>
    %c1_261 = arith.constant 1 : index
    %c0_262 = arith.constant 0 : index
    %c0_263 = arith.constant 0 : index
    %273 = vector.load %arg9[%c1_261, %c0_262, %c0_263] : memref<7x7x32xf32, #tpu.memory_space<vmem>>, vector<1x1x32xf32>
    %274 = vector.shape_cast %273 : vector<1x1x32xf32> to vector<1x32xf32>
    %275 = vector.shape_cast %272 : vector<1x32xf32> to vector<1x1x32xf32>
    tpu.vector_store %arg9[%c1_261, %c0_262, %c0_263], %275 {strides = array<i32>} : memref<7x7x32xf32, #tpu.memory_space<vmem>>, vector<1x1x32xf32>,
    %276 = vector.extract_strided_slice %269 {offsets = [2, 0], sizes = [2, 32], strides = [1, 1]} : vector<14x32xf32> to vector<2x32xf32>
    %cst_264 = arith.constant dense<0xFF800000> : vector<32xf32>
    %277 = vector.multi_reduction <maximumf>, %276, %cst_264 [0] : vector<2x32xf32> to vector<32xf32>
    %278 = vector.shape_cast %277 : vector<32xf32> to vector<1x32xf32>
    %c1_265 = arith.constant 1 : index
    %c1_266 = arith.constant 1 : index
    %c0_267 = arith.constant 0 : index
    %279 = vector.load %arg9[%c1_265, %c1_266, %c0_267] : memref<7x7x32xf32, #tpu.memory_space<vmem>>, vector<1x1x32xf32>
    %280 = vector.shape_cast %279 : vector<1x1x32xf32> to vector<1x32xf32>
    %281 = vector.shape_cast %278 : vector<1x32xf32> to vector<1x1x32xf32>
    tpu.vector_store %arg9[%c1_265, %c1_266, %c0_267], %281 {strides = array<i32>} : memref<7x7x32xf32, #tpu.memory_space<vmem>>, vector<1x1x32xf32>,
    %282 = vector.extract_strided_slice %269 {offsets = [4, 0], sizes = [2, 32], strides = [1, 1]} : vector<14x32xf32> to vector<2x32xf32>
    %cst_268 = arith.constant dense<0xFF800000> : vector<32xf32>
    %283 = vector.multi_reduction <maximumf>, %282, %cst_268 [0] : vector<2x32xf32> to vector<32xf32>
    %284 = vector.shape_cast %283 : vector<32xf32> to vector<1x32xf32>
    %c1_269 = arith.constant 1 : index
    %c2_270 = arith.constant 2 : index
    %c0_271 = arith.constant 0 : index
    %285 = vector.load %arg9[%c1_269, %c2_270, %c0_271] : memref<7x7x32xf32, #tpu.memory_space<vmem>>, vector<1x1x32xf32>
    %286 = vector.shape_cast %285 : vector<1x1x32xf32> to vector<1x32xf32>
    %287 = vector.shape_cast %284 : vector<1x32xf32> to vector<1x1x32xf32>
    tpu.vector_store %arg9[%c1_269, %c2_270, %c0_271], %287 {strides = array<i32>} : memref<7x7x32xf32, #tpu.memory_space<vmem>>, vector<1x1x32xf32>,
    %288 = vector.extract_strided_slice %269 {offsets = [6, 0], sizes = [2, 32], strides = [1, 1]} : vector<14x32xf32> to vector<2x32xf32>
    %cst_272 = arith.constant dense<0xFF800000> : vector<32xf32>
    %289 = vector.multi_reduction <maximumf>, %288, %cst_272 [0] : vector<2x32xf32> to vector<32xf32>
    %290 = vector.shape_cast %289 : vector<32xf32> to vector<1x32xf32>
    %c1_273 = arith.constant 1 : index
    %c3_274 = arith.constant 3 : index
    %c0_275 = arith.constant 0 : index
    %291 = vector.load %arg9[%c1_273, %c3_274, %c0_275] : memref<7x7x32xf32, #tpu.memory_space<vmem>>, vector<1x1x32xf32>
    %292 = vector.shape_cast %291 : vector<1x1x32xf32> to vector<1x32xf32>
    %293 = vector.shape_cast %290 : vector<1x32xf32> to vector<1x1x32xf32>
    tpu.vector_store %arg9[%c1_273, %c3_274, %c0_275], %293 {strides = array<i32>} : memref<7x7x32xf32, #tpu.memory_space<vmem>>, vector<1x1x32xf32>,
    %294 = vector.extract_strided_slice %269 {offsets = [8, 0], sizes = [2, 32], strides = [1, 1]} : vector<14x32xf32> to vector<2x32xf32>
    %cst_276 = arith.constant dense<0xFF800000> : vector<32xf32>
    %295 = vector.multi_reduction <maximumf>, %294, %cst_276 [0] : vector<2x32xf32> to vector<32xf32>
    %296 = vector.shape_cast %295 : vector<32xf32> to vector<1x32xf32>
    %c1_277 = arith.constant 1 : index
    %c4_278 = arith.constant 4 : index
    %c0_279 = arith.constant 0 : index
    %297 = vector.load %arg9[%c1_277, %c4_278, %c0_279] : memref<7x7x32xf32, #tpu.memory_space<vmem>>, vector<1x1x32xf32>
    %298 = vector.shape_cast %297 : vector<1x1x32xf32> to vector<1x32xf32>
    %299 = vector.shape_cast %296 : vector<1x32xf32> to vector<1x1x32xf32>
    tpu.vector_store %arg9[%c1_277, %c4_278, %c0_279], %299 {strides = array<i32>} : memref<7x7x32xf32, #tpu.memory_space<vmem>>, vector<1x1x32xf32>,
    %300 = vector.extract_strided_slice %269 {offsets = [10, 0], sizes = [2, 32], strides = [1, 1]} : vector<14x32xf32> to vector<2x32xf32>
    %cst_280 = arith.constant dense<0xFF800000> : vector<32xf32>
    %301 = vector.multi_reduction <maximumf>, %300, %cst_280 [0] : vector<2x32xf32> to vector<32xf32>
    %302 = vector.shape_cast %301 : vector<32xf32> to vector<1x32xf32>
    %c1_281 = arith.constant 1 : index
    %c5_282 = arith.constant 5 : index
    %c0_283 = arith.constant 0 : index
    %303 = vector.load %arg9[%c1_281, %c5_282, %c0_283] : memref<7x7x32xf32, #tpu.memory_space<vmem>>, vector<1x1x32xf32>
    %304 = vector.shape_cast %303 : vector<1x1x32xf32> to vector<1x32xf32>
    %305 = vector.shape_cast %302 : vector<1x32xf32> to vector<1x1x32xf32>
    tpu.vector_store %arg9[%c1_281, %c5_282, %c0_283], %305 {strides = array<i32>} : memref<7x7x32xf32, #tpu.memory_space<vmem>>, vector<1x1x32xf32>,
    %306 = vector.extract_strided_slice %269 {offsets = [12, 0], sizes = [2, 32], strides = [1, 1]} : vector<14x32xf32> to vector<2x32xf32>
    %cst_284 = arith.constant dense<0xFF800000> : vector<32xf32>
    %307 = vector.multi_reduction <maximumf>, %306, %cst_284 [0] : vector<2x32xf32> to vector<32xf32>
    %308 = vector.shape_cast %307 : vector<32xf32> to vector<1x32xf32>
    %c1_285 = arith.constant 1 : index
    %c6_286 = arith.constant 6 : index
    %c0_287 = arith.constant 0 : index
    %309 = vector.load %arg9[%c1_285, %c6_286, %c0_287] : memref<7x7x32xf32, #tpu.memory_space<vmem>>, vector<1x1x32xf32>
    %310 = vector.shape_cast %309 : vector<1x1x32xf32> to vector<1x32xf32>
    %311 = vector.shape_cast %308 : vector<1x32xf32> to vector<1x1x32xf32>
    tpu.vector_store %arg9[%c1_285, %c6_286, %c0_287], %311 {strides = array<i32>} : memref<7x7x32xf32, #tpu.memory_space<vmem>>, vector<1x1x32xf32>,
    %cst_288 = arith.constant 0.000000e+00 : f32
    %312 = vector.broadcast %cst_288 : f32 to vector<14x32xf32>
    %c0_289 = arith.constant 0 : index
    %c4_290 = arith.constant 4 : index
    %c0_291 = arith.constant 0 : index
    %c0_292 = arith.constant 0 : index
    %313 = vector.load %arg1[%c0_289, %c4_290, %c0_291, %c0_292] : memref<1x16x16x3xf32, #tpu.memory_space<vmem>>, vector<1x1x16x3xf32>
    %314 = vector.shape_cast %313 : vector<1x1x16x3xf32> to vector<16x3xf32>
    %315 = vector.extract_strided_slice %314 {offsets = [0, 0], sizes = [14, 3], strides = [1, 1]} : vector<16x3xf32> to vector<14x3xf32>
    %c0_293 = arith.constant 0 : index
    %c0_294 = arith.constant 0 : index
    %c0_295 = arith.constant 0 : index
    %c0_296 = arith.constant 0 : index
    %316 = vector.load %arg2[%c0_293, %c0_294, %c0_295, %c0_296] : memref<3x3x3x32xf32, #tpu.memory_space<vmem>>, vector<1x1x3x32xf32>
    %317 = vector.shape_cast %316 : vector<1x1x3x32xf32> to vector<3x32xf32>
    %cst_297 = arith.constant dense<0.000000e+00> : vector<14x32xf32>
    %318 = tpu.matmul %315, %317, %cst_297 {dimension_numbers = #tpu.dot_dimension_numbers<[1], [0], [0], [1], [0, 0, 1, 1], [], []>} : vector<14x3xf32>, vector<3x32xf32>, vector<14x32xf32> -> vector<14x32xf32>
    %319 = arith.addf %312, %318 : vector<14x32xf32>
    %320 = vector.extract_strided_slice %314 {offsets = [1, 0], sizes = [14, 3], strides = [1, 1]} : vector<16x3xf32> to vector<14x3xf32>
    %c0_298 = arith.constant 0 : index
    %c1_299 = arith.constant 1 : index
    %c0_300 = arith.constant 0 : index
    %c0_301 = arith.constant 0 : index
    %321 = vector.load %arg2[%c0_298, %c1_299, %c0_300, %c0_301] : memref<3x3x3x32xf32, #tpu.memory_space<vmem>>, vector<1x1x3x32xf32>
    %322 = vector.shape_cast %321 : vector<1x1x3x32xf32> to vector<3x32xf32>
    %cst_302 = arith.constant dense<0.000000e+00> : vector<14x32xf32>
    %323 = tpu.matmul %320, %322, %cst_302 {dimension_numbers = #tpu.dot_dimension_numbers<[1], [0], [0], [1], [0, 0, 1, 1], [], []>} : vector<14x3xf32>, vector<3x32xf32>, vector<14x32xf32> -> vector<14x32xf32>
    %324 = arith.addf %319, %323 : vector<14x32xf32>
    %325 = vector.extract_strided_slice %314 {offsets = [2, 0], sizes = [14, 3], strides = [1, 1]} : vector<16x3xf32> to vector<14x3xf32>
    %c0_303 = arith.constant 0 : index
    %c2_304 = arith.constant 2 : index
    %c0_305 = arith.constant 0 : index
    %c0_306 = arith.constant 0 : index
    %326 = vector.load %arg2[%c0_303, %c2_304, %c0_305, %c0_306] : memref<3x3x3x32xf32, #tpu.memory_space<vmem>>, vector<1x1x3x32xf32>
    %327 = vector.shape_cast %326 : vector<1x1x3x32xf32> to vector<3x32xf32>
    %cst_307 = arith.constant dense<0.000000e+00> : vector<14x32xf32>
    %328 = tpu.matmul %325, %327, %cst_307 {dimension_numbers = #tpu.dot_dimension_numbers<[1], [0], [0], [1], [0, 0, 1, 1], [], []>} : vector<14x3xf32>, vector<3x32xf32>, vector<14x32xf32> -> vector<14x32xf32>
    %329 = arith.addf %324, %328 : vector<14x32xf32>
    %c0_308 = arith.constant 0 : index
    %c5_309 = arith.constant 5 : index
    %c0_310 = arith.constant 0 : index
    %c0_311 = arith.constant 0 : index
    %330 = vector.load %arg1[%c0_308, %c5_309, %c0_310, %c0_311] : memref<1x16x16x3xf32, #tpu.memory_space<vmem>>, vector<1x1x16x3xf32>
    %331 = vector.shape_cast %330 : vector<1x1x16x3xf32> to vector<16x3xf32>
    %332 = vector.extract_strided_slice %331 {offsets = [0, 0], sizes = [14, 3], strides = [1, 1]} : vector<16x3xf32> to vector<14x3xf32>
    %c1_312 = arith.constant 1 : index
    %c0_313 = arith.constant 0 : index
    %c0_314 = arith.constant 0 : index
    %c0_315 = arith.constant 0 : index
    %333 = vector.load %arg2[%c1_312, %c0_313, %c0_314, %c0_315] : memref<3x3x3x32xf32, #tpu.memory_space<vmem>>, vector<1x1x3x32xf32>
    %334 = vector.shape_cast %333 : vector<1x1x3x32xf32> to vector<3x32xf32>
    %cst_316 = arith.constant dense<0.000000e+00> : vector<14x32xf32>
    %335 = tpu.matmul %332, %334, %cst_316 {dimension_numbers = #tpu.dot_dimension_numbers<[1], [0], [0], [1], [0, 0, 1, 1], [], []>} : vector<14x3xf32>, vector<3x32xf32>, vector<14x32xf32> -> vector<14x32xf32>
    %336 = arith.addf %329, %335 : vector<14x32xf32>
    %337 = vector.extract_strided_slice %331 {offsets = [1, 0], sizes = [14, 3], strides = [1, 1]} : vector<16x3xf32> to vector<14x3xf32>
    %c1_317 = arith.constant 1 : index
    %c1_318 = arith.constant 1 : index
    %c0_319 = arith.constant 0 : index
    %c0_320 = arith.constant 0 : index
    %338 = vector.load %arg2[%c1_317, %c1_318, %c0_319, %c0_320] : memref<3x3x3x32xf32, #tpu.memory_space<vmem>>, vector<1x1x3x32xf32>
    %339 = vector.shape_cast %338 : vector<1x1x3x32xf32> to vector<3x32xf32>
    %cst_321 = arith.constant dense<0.000000e+00> : vector<14x32xf32>
    %340 = tpu.matmul %337, %339, %cst_321 {dimension_numbers = #tpu.dot_dimension_numbers<[1], [0], [0], [1], [0, 0, 1, 1], [], []>} : vector<14x3xf32>, vector<3x32xf32>, vector<14x32xf32> -> vector<14x32xf32>
    %341 = arith.addf %336, %340 : vector<14x32xf32>
    %342 = vector.extract_strided_slice %331 {offsets = [2, 0], sizes = [14, 3], strides = [1, 1]} : vector<16x3xf32> to vector<14x3xf32>
    %c1_322 = arith.constant 1 : index
    %c2_323 = arith.constant 2 : index
    %c0_324 = arith.constant 0 : index
    %c0_325 = arith.constant 0 : index
    %343 = vector.load %arg2[%c1_322, %c2_323, %c0_324, %c0_325] : memref<3x3x3x32xf32, #tpu.memory_space<vmem>>, vector<1x1x3x32xf32>
    %344 = vector.shape_cast %343 : vector<1x1x3x32xf32> to vector<3x32xf32>
    %cst_326 = arith.constant dense<0.000000e+00> : vector<14x32xf32>
    %345 = tpu.matmul %342, %344, %cst_326 {dimension_numbers = #tpu.dot_dimension_numbers<[1], [0], [0], [1], [0, 0, 1, 1], [], []>} : vector<14x3xf32>, vector<3x32xf32>, vector<14x32xf32> -> vector<14x32xf32>
    %346 = arith.addf %341, %345 : vector<14x32xf32>
    %c0_327 = arith.constant 0 : index
    %c6_328 = arith.constant 6 : index
    %c0_329 = arith.constant 0 : index
    %c0_330 = arith.constant 0 : index
    %347 = vector.load %arg1[%c0_327, %c6_328, %c0_329, %c0_330] : memref<1x16x16x3xf32, #tpu.memory_space<vmem>>, vector<1x1x16x3xf32>
    %348 = vector.shape_cast %347 : vector<1x1x16x3xf32> to vector<16x3xf32>
    %349 = vector.extract_strided_slice %348 {offsets = [0, 0], sizes = [14, 3], strides = [1, 1]} : vector<16x3xf32> to vector<14x3xf32>
    %c2_331 = arith.constant 2 : index
    %c0_332 = arith.constant 0 : index
    %c0_333 = arith.constant 0 : index
    %c0_334 = arith.constant 0 : index
    %350 = vector.load %arg2[%c2_331, %c0_332, %c0_333, %c0_334] : memref<3x3x3x32xf32, #tpu.memory_space<vmem>>, vector<1x1x3x32xf32>
    %351 = vector.shape_cast %350 : vector<1x1x3x32xf32> to vector<3x32xf32>
    %cst_335 = arith.constant dense<0.000000e+00> : vector<14x32xf32>
    %352 = tpu.matmul %349, %351, %cst_335 {dimension_numbers = #tpu.dot_dimension_numbers<[1], [0], [0], [1], [0, 0, 1, 1], [], []>} : vector<14x3xf32>, vector<3x32xf32>, vector<14x32xf32> -> vector<14x32xf32>
    %353 = arith.addf %346, %352 : vector<14x32xf32>
    %354 = vector.extract_strided_slice %348 {offsets = [1, 0], sizes = [14, 3], strides = [1, 1]} : vector<16x3xf32> to vector<14x3xf32>
    %c2_336 = arith.constant 2 : index
    %c1_337 = arith.constant 1 : index
    %c0_338 = arith.constant 0 : index
    %c0_339 = arith.constant 0 : index
    %355 = vector.load %arg2[%c2_336, %c1_337, %c0_338, %c0_339] : memref<3x3x3x32xf32, #tpu.memory_space<vmem>>, vector<1x1x3x32xf32>
    %356 = vector.shape_cast %355 : vector<1x1x3x32xf32> to vector<3x32xf32>
    %cst_340 = arith.constant dense<0.000000e+00> : vector<14x32xf32>
    %357 = tpu.matmul %354, %356, %cst_340 {dimension_numbers = #tpu.dot_dimension_numbers<[1], [0], [0], [1], [0, 0, 1, 1], [], []>} : vector<14x3xf32>, vector<3x32xf32>, vector<14x32xf32> -> vector<14x32xf32>
    %358 = arith.addf %353, %357 : vector<14x32xf32>
    %359 = vector.extract_strided_slice %348 {offsets = [2, 0], sizes = [14, 3], strides = [1, 1]} : vector<16x3xf32> to vector<14x3xf32>
    %c2_341 = arith.constant 2 : index
    %c2_342 = arith.constant 2 : index
    %c0_343 = arith.constant 0 : index
    %c0_344 = arith.constant 0 : index
    %360 = vector.load %arg2[%c2_341, %c2_342, %c0_343, %c0_344] : memref<3x3x3x32xf32, #tpu.memory_space<vmem>>, vector<1x1x3x32xf32>
    %361 = vector.shape_cast %360 : vector<1x1x3x32xf32> to vector<3x32xf32>
    %cst_345 = arith.constant dense<0.000000e+00> : vector<14x32xf32>
    %362 = tpu.matmul %359, %361, %cst_345 {dimension_numbers = #tpu.dot_dimension_numbers<[1], [0], [0], [1], [0, 0, 1, 1], [], []>} : vector<14x3xf32>, vector<3x32xf32>, vector<14x32xf32> -> vector<14x32xf32>
    %363 = arith.addf %358, %362 : vector<14x32xf32>
    %364 = vector.broadcast %0 : vector<1x32xf32> to vector<14x32xf32>
    %365 = arith.addf %363, %364 : vector<14x32xf32>
    %cst_346 = arith.constant 0.000000e+00 : f32
    %366 = vector.broadcast %cst_346 : f32 to vector<14x32xf32>
    %367 = arith.maximumf %365, %366 : vector<14x32xf32>
    %cst_347 = arith.constant 0.000000e+00 : f32
    %368 = vector.broadcast %cst_347 : f32 to vector<14x32xf32>
    %c0_348 = arith.constant 0 : index
    %c5_349 = arith.constant 5 : index
    %c0_350 = arith.constant 0 : index
    %c0_351 = arith.constant 0 : index
    %369 = vector.load %arg1[%c0_348, %c5_349, %c0_350, %c0_351] : memref<1x16x16x3xf32, #tpu.memory_space<vmem>>, vector<1x1x16x3xf32>
    %370 = vector.shape_cast %369 : vector<1x1x16x3xf32> to vector<16x3xf32>
    %371 = vector.extract_strided_slice %370 {offsets = [0, 0], sizes = [14, 3], strides = [1, 1]} : vector<16x3xf32> to vector<14x3xf32>
    %c0_352 = arith.constant 0 : index
    %c0_353 = arith.constant 0 : index
    %c0_354 = arith.constant 0 : index
    %c0_355 = arith.constant 0 : index
    %372 = vector.load %arg2[%c0_352, %c0_353, %c0_354, %c0_355] : memref<3x3x3x32xf32, #tpu.memory_space<vmem>>, vector<1x1x3x32xf32>
    %373 = vector.shape_cast %372 : vector<1x1x3x32xf32> to vector<3x32xf32>
    %cst_356 = arith.constant dense<0.000000e+00> : vector<14x32xf32>
    %374 = tpu.matmul %371, %373, %cst_356 {dimension_numbers = #tpu.dot_dimension_numbers<[1], [0], [0], [1], [0, 0, 1, 1], [], []>} : vector<14x3xf32>, vector<3x32xf32>, vector<14x32xf32> -> vector<14x32xf32>
    %375 = arith.addf %368, %374 : vector<14x32xf32>
    %376 = vector.extract_strided_slice %370 {offsets = [1, 0], sizes = [14, 3], strides = [1, 1]} : vector<16x3xf32> to vector<14x3xf32>
    %c0_357 = arith.constant 0 : index
    %c1_358 = arith.constant 1 : index
    %c0_359 = arith.constant 0 : index
    %c0_360 = arith.constant 0 : index
    %377 = vector.load %arg2[%c0_357, %c1_358, %c0_359, %c0_360] : memref<3x3x3x32xf32, #tpu.memory_space<vmem>>, vector<1x1x3x32xf32>
    %378 = vector.shape_cast %377 : vector<1x1x3x32xf32> to vector<3x32xf32>
    %cst_361 = arith.constant dense<0.000000e+00> : vector<14x32xf32>
    %379 = tpu.matmul %376, %378, %cst_361 {dimension_numbers = #tpu.dot_dimension_numbers<[1], [0], [0], [1], [0, 0, 1, 1], [], []>} : vector<14x3xf32>, vector<3x32xf32>, vector<14x32xf32> -> vector<14x32xf32>
    %380 = arith.addf %375, %379 : vector<14x32xf32>
    %381 = vector.extract_strided_slice %370 {offsets = [2, 0], sizes = [14, 3], strides = [1, 1]} : vector<16x3xf32> to vector<14x3xf32>
    %c0_362 = arith.constant 0 : index
    %c2_363 = arith.constant 2 : index
    %c0_364 = arith.constant 0 : index
    %c0_365 = arith.constant 0 : index
    %382 = vector.load %arg2[%c0_362, %c2_363, %c0_364, %c0_365] : memref<3x3x3x32xf32, #tpu.memory_space<vmem>>, vector<1x1x3x32xf32>
    %383 = vector.shape_cast %382 : vector<1x1x3x32xf32> to vector<3x32xf32>
    %cst_366 = arith.constant dense<0.000000e+00> : vector<14x32xf32>
    %384 = tpu.matmul %381, %383, %cst_366 {dimension_numbers = #tpu.dot_dimension_numbers<[1], [0], [0], [1], [0, 0, 1, 1], [], []>} : vector<14x3xf32>, vector<3x32xf32>, vector<14x32xf32> -> vector<14x32xf32>
    %385 = arith.addf %380, %384 : vector<14x32xf32>
    %c0_367 = arith.constant 0 : index
    %c6_368 = arith.constant 6 : index
    %c0_369 = arith.constant 0 : index
    %c0_370 = arith.constant 0 : index
    %386 = vector.load %arg1[%c0_367, %c6_368, %c0_369, %c0_370] : memref<1x16x16x3xf32, #tpu.memory_space<vmem>>, vector<1x1x16x3xf32>
    %387 = vector.shape_cast %386 : vector<1x1x16x3xf32> to vector<16x3xf32>
    %388 = vector.extract_strided_slice %387 {offsets = [0, 0], sizes = [14, 3], strides = [1, 1]} : vector<16x3xf32> to vector<14x3xf32>
    %c1_371 = arith.constant 1 : index
    %c0_372 = arith.constant 0 : index
    %c0_373 = arith.constant 0 : index
    %c0_374 = arith.constant 0 : index
    %389 = vector.load %arg2[%c1_371, %c0_372, %c0_373, %c0_374] : memref<3x3x3x32xf32, #tpu.memory_space<vmem>>, vector<1x1x3x32xf32>
    %390 = vector.shape_cast %389 : vector<1x1x3x32xf32> to vector<3x32xf32>
    %cst_375 = arith.constant dense<0.000000e+00> : vector<14x32xf32>
    %391 = tpu.matmul %388, %390, %cst_375 {dimension_numbers = #tpu.dot_dimension_numbers<[1], [0], [0], [1], [0, 0, 1, 1], [], []>} : vector<14x3xf32>, vector<3x32xf32>, vector<14x32xf32> -> vector<14x32xf32>
    %392 = arith.addf %385, %391 : vector<14x32xf32>
    %393 = vector.extract_strided_slice %387 {offsets = [1, 0], sizes = [14, 3], strides = [1, 1]} : vector<16x3xf32> to vector<14x3xf32>
    %c1_376 = arith.constant 1 : index
    %c1_377 = arith.constant 1 : index
    %c0_378 = arith.constant 0 : index
    %c0_379 = arith.constant 0 : index
    %394 = vector.load %arg2[%c1_376, %c1_377, %c0_378, %c0_379] : memref<3x3x3x32xf32, #tpu.memory_space<vmem>>, vector<1x1x3x32xf32>
    %395 = vector.shape_cast %394 : vector<1x1x3x32xf32> to vector<3x32xf32>
    %cst_380 = arith.constant dense<0.000000e+00> : vector<14x32xf32>
    %396 = tpu.matmul %393, %395, %cst_380 {dimension_numbers = #tpu.dot_dimension_numbers<[1], [0], [0], [1], [0, 0, 1, 1], [], []>} : vector<14x3xf32>, vector<3x32xf32>, vector<14x32xf32> -> vector<14x32xf32>
    %397 = arith.addf %392, %396 : vector<14x32xf32>
    %398 = vector.extract_strided_slice %387 {offsets = [2, 0], sizes = [14, 3], strides = [1, 1]} : vector<16x3xf32> to vector<14x3xf32>
    %c1_381 = arith.constant 1 : index
    %c2_382 = arith.constant 2 : index
    %c0_383 = arith.constant 0 : index
    %c0_384 = arith.constant 0 : index
    %399 = vector.load %arg2[%c1_381, %c2_382, %c0_383, %c0_384] : memref<3x3x3x32xf32, #tpu.memory_space<vmem>>, vector<1x1x3x32xf32>
    %400 = vector.shape_cast %399 : vector<1x1x3x32xf32> to vector<3x32xf32>
    %cst_385 = arith.constant dense<0.000000e+00> : vector<14x32xf32>
    %401 = tpu.matmul %398, %400, %cst_385 {dimension_numbers = #tpu.dot_dimension_numbers<[1], [0], [0], [1], [0, 0, 1, 1], [], []>} : vector<14x3xf32>, vector<3x32xf32>, vector<14x32xf32> -> vector<14x32xf32>
    %402 = arith.addf %397, %401 : vector<14x32xf32>
    %c0_386 = arith.constant 0 : index
    %c7 = arith.constant 7 : index
    %c0_387 = arith.constant 0 : index
    %c0_388 = arith.constant 0 : index
    %403 = vector.load %arg1[%c0_386, %c7, %c0_387, %c0_388] : memref<1x16x16x3xf32, #tpu.memory_space<vmem>>, vector<1x1x16x3xf32>
    %404 = vector.shape_cast %403 : vector<1x1x16x3xf32> to vector<16x3xf32>
    %405 = vector.extract_strided_slice %404 {offsets = [0, 0], sizes = [14, 3], strides = [1, 1]} : vector<16x3xf32> to vector<14x3xf32>
    %c2_389 = arith.constant 2 : index
    %c0_390 = arith.constant 0 : index
    %c0_391 = arith.constant 0 : index
    %c0_392 = arith.constant 0 : index
    %406 = vector.load %arg2[%c2_389, %c0_390, %c0_391, %c0_392] : memref<3x3x3x32xf32, #tpu.memory_space<vmem>>, vector<1x1x3x32xf32>
    %407 = vector.shape_cast %406 : vector<1x1x3x32xf32> to vector<3x32xf32>
    %cst_393 = arith.constant dense<0.000000e+00> : vector<14x32xf32>
    %408 = tpu.matmul %405, %407, %cst_393 {dimension_numbers = #tpu.dot_dimension_numbers<[1], [0], [0], [1], [0, 0, 1, 1], [], []>} : vector<14x3xf32>, vector<3x32xf32>, vector<14x32xf32> -> vector<14x32xf32>
    %409 = arith.addf %402, %408 : vector<14x32xf32>
    %410 = vector.extract_strided_slice %404 {offsets = [1, 0], sizes = [14, 3], strides = [1, 1]} : vector<16x3xf32> to vector<14x3xf32>
    %c2_394 = arith.constant 2 : index
    %c1_395 = arith.constant 1 : index
    %c0_396 = arith.constant 0 : index
    %c0_397 = arith.constant 0 : index
    %411 = vector.load %arg2[%c2_394, %c1_395, %c0_396, %c0_397] : memref<3x3x3x32xf32, #tpu.memory_space<vmem>>, vector<1x1x3x32xf32>
    %412 = vector.shape_cast %411 : vector<1x1x3x32xf32> to vector<3x32xf32>
    %cst_398 = arith.constant dense<0.000000e+00> : vector<14x32xf32>
    %413 = tpu.matmul %410, %412, %cst_398 {dimension_numbers = #tpu.dot_dimension_numbers<[1], [0], [0], [1], [0, 0, 1, 1], [], []>} : vector<14x3xf32>, vector<3x32xf32>, vector<14x32xf32> -> vector<14x32xf32>
    %414 = arith.addf %409, %413 : vector<14x32xf32>
    %415 = vector.extract_strided_slice %404 {offsets = [2, 0], sizes = [14, 3], strides = [1, 1]} : vector<16x3xf32> to vector<14x3xf32>
    %c2_399 = arith.constant 2 : index
    %c2_400 = arith.constant 2 : index
    %c0_401 = arith.constant 0 : index
    %c0_402 = arith.constant 0 : index
    %416 = vector.load %arg2[%c2_399, %c2_400, %c0_401, %c0_402] : memref<3x3x3x32xf32, #tpu.memory_space<vmem>>, vector<1x1x3x32xf32>
    %417 = vector.shape_cast %416 : vector<1x1x3x32xf32> to vector<3x32xf32>
    %cst_403 = arith.constant dense<0.000000e+00> : vector<14x32xf32>
    %418 = tpu.matmul %415, %417, %cst_403 {dimension_numbers = #tpu.dot_dimension_numbers<[1], [0], [0], [1], [0, 0, 1, 1], [], []>} : vector<14x3xf32>, vector<3x32xf32>, vector<14x32xf32> -> vector<14x32xf32>
    %419 = arith.addf %414, %418 : vector<14x32xf32>
    %420 = vector.broadcast %0 : vector<1x32xf32> to vector<14x32xf32>
    %421 = arith.addf %419, %420 : vector<14x32xf32>
    %cst_404 = arith.constant 0.000000e+00 : f32
    %422 = vector.broadcast %cst_404 : f32 to vector<14x32xf32>
    %423 = arith.maximumf %421, %422 : vector<14x32xf32>
    %424 = arith.maximumf %367, %423 : vector<14x32xf32>
    %425 = vector.extract_strided_slice %424 {offsets = [0, 0], sizes = [2, 32], strides = [1, 1]} : vector<14x32xf32> to vector<2x32xf32>
    %cst_405 = arith.constant dense<0xFF800000> : vector<32xf32>
    %426 = vector.multi_reduction <maximumf>, %425, %cst_405 [0] : vector<2x32xf32> to vector<32xf32>
    %427 = vector.shape_cast %426 : vector<32xf32> to vector<1x32xf32>
    %c2_406 = arith.constant 2 : index
    %c0_407 = arith.constant 0 : index
    %c0_408 = arith.constant 0 : index
    %428 = vector.load %arg9[%c2_406, %c0_407, %c0_408] : memref<7x7x32xf32, #tpu.memory_space<vmem>>, vector<1x1x32xf32>
    %429 = vector.shape_cast %428 : vector<1x1x32xf32> to vector<1x32xf32>
    %430 = vector.shape_cast %427 : vector<1x32xf32> to vector<1x1x32xf32>
    tpu.vector_store %arg9[%c2_406, %c0_407, %c0_408], %430 {strides = array<i32>} : memref<7x7x32xf32, #tpu.memory_space<vmem>>, vector<1x1x32xf32>,
    %431 = vector.extract_strided_slice %424 {offsets = [2, 0], sizes = [2, 32], strides = [1, 1]} : vector<14x32xf32> to vector<2x32xf32>
    %cst_409 = arith.constant dense<0xFF800000> : vector<32xf32>
    %432 = vector.multi_reduction <maximumf>, %431, %cst_409 [0] : vector<2x32xf32> to vector<32xf32>
    %433 = vector.shape_cast %432 : vector<32xf32> to vector<1x32xf32>
    %c2_410 = arith.constant 2 : index
    %c1_411 = arith.constant 1 : index
    %c0_412 = arith.constant 0 : index
    %434 = vector.load %arg9[%c2_410, %c1_411, %c0_412] : memref<7x7x32xf32, #tpu.memory_space<vmem>>, vector<1x1x32xf32>
    %435 = vector.shape_cast %434 : vector<1x1x32xf32> to vector<1x32xf32>
    %436 = vector.shape_cast %433 : vector<1x32xf32> to vector<1x1x32xf32>
    tpu.vector_store %arg9[%c2_410, %c1_411, %c0_412], %436 {strides = array<i32>} : memref<7x7x32xf32, #tpu.memory_space<vmem>>, vector<1x1x32xf32>,
    %437 = vector.extract_strided_slice %424 {offsets = [4, 0], sizes = [2, 32], strides = [1, 1]} : vector<14x32xf32> to vector<2x32xf32>
    %cst_413 = arith.constant dense<0xFF800000> : vector<32xf32>
    %438 = vector.multi_reduction <maximumf>, %437, %cst_413 [0] : vector<2x32xf32> to vector<32xf32>
    %439 = vector.shape_cast %438 : vector<32xf32> to vector<1x32xf32>
    %c2_414 = arith.constant 2 : index
    %c2_415 = arith.constant 2 : index
    %c0_416 = arith.constant 0 : index
    %440 = vector.load %arg9[%c2_414, %c2_415, %c0_416] : memref<7x7x32xf32, #tpu.memory_space<vmem>>, vector<1x1x32xf32>
    %441 = vector.shape_cast %440 : vector<1x1x32xf32> to vector<1x32xf32>
    %442 = vector.shape_cast %439 : vector<1x32xf32> to vector<1x1x32xf32>
    tpu.vector_store %arg9[%c2_414, %c2_415, %c0_416], %442 {strides = array<i32>} : memref<7x7x32xf32, #tpu.memory_space<vmem>>, vector<1x1x32xf32>,
    %443 = vector.extract_strided_slice %424 {offsets = [6, 0], sizes = [2, 32], strides = [1, 1]} : vector<14x32xf32> to vector<2x32xf32>
    %cst_417 = arith.constant dense<0xFF800000> : vector<32xf32>
    %444 = vector.multi_reduction <maximumf>, %443, %cst_417 [0] : vector<2x32xf32> to vector<32xf32>
    %445 = vector.shape_cast %444 : vector<32xf32> to vector<1x32xf32>
    %c2_418 = arith.constant 2 : index
    %c3_419 = arith.constant 3 : index
    %c0_420 = arith.constant 0 : index
    %446 = vector.load %arg9[%c2_418, %c3_419, %c0_420] : memref<7x7x32xf32, #tpu.memory_space<vmem>>, vector<1x1x32xf32>
    %447 = vector.shape_cast %446 : vector<1x1x32xf32> to vector<1x32xf32>
    %448 = vector.shape_cast %445 : vector<1x32xf32> to vector<1x1x32xf32>
    tpu.vector_store %arg9[%c2_418, %c3_419, %c0_420], %448 {strides = array<i32>} : memref<7x7x32xf32, #tpu.memory_space<vmem>>, vector<1x1x32xf32>,
    %449 = vector.extract_strided_slice %424 {offsets = [8, 0], sizes = [2, 32], strides = [1, 1]} : vector<14x32xf32> to vector<2x32xf32>
    %cst_421 = arith.constant dense<0xFF800000> : vector<32xf32>
    %450 = vector.multi_reduction <maximumf>, %449, %cst_421 [0] : vector<2x32xf32> to vector<32xf32>
    %451 = vector.shape_cast %450 : vector<32xf32> to vector<1x32xf32>
    %c2_422 = arith.constant 2 : index
    %c4_423 = arith.constant 4 : index
    %c0_424 = arith.constant 0 : index
    %452 = vector.load %arg9[%c2_422, %c4_423, %c0_424] : memref<7x7x32xf32, #tpu.memory_space<vmem>>, vector<1x1x32xf32>
    %453 = vector.shape_cast %452 : vector<1x1x32xf32> to vector<1x32xf32>
    %454 = vector.shape_cast %451 : vector<1x32xf32> to vector<1x1x32xf32>
    tpu.vector_store %arg9[%c2_422, %c4_423, %c0_424], %454 {strides = array<i32>} : memref<7x7x32xf32, #tpu.memory_space<vmem>>, vector<1x1x32xf32>,
    %455 = vector.extract_strided_slice %424 {offsets = [10, 0], sizes = [2, 32], strides = [1, 1]} : vector<14x32xf32> to vector<2x32xf32>
    %cst_425 = arith.constant dense<0xFF800000> : vector<32xf32>
    %456 = vector.multi_reduction <maximumf>, %455, %cst_425 [0] : vector<2x32xf32> to vector<32xf32>
    %457 = vector.shape_cast %456 : vector<32xf32> to vector<1x32xf32>
    %c2_426 = arith.constant 2 : index
    %c5_427 = arith.constant 5 : index
    %c0_428 = arith.constant 0 : index
    %458 = vector.load %arg9[%c2_426, %c5_427, %c0_428] : memref<7x7x32xf32, #tpu.memory_space<vmem>>, vector<1x1x32xf32>
    %459 = vector.shape_cast %458 : vector<1x1x32xf32> to vector<1x32xf32>
    %460 = vector.shape_cast %457 : vector<1x32xf32> to vector<1x1x32xf32>
    tpu.vector_store %arg9[%c2_426, %c5_427, %c0_428], %460 {strides = array<i32>} : memref<7x7x32xf32, #tpu.memory_space<vmem>>, vector<1x1x32xf32>,
    %461 = vector.extract_strided_slice %424 {offsets = [12, 0], sizes = [2, 32], strides = [1, 1]} : vector<14x32xf32> to vector<2x32xf32>
    %cst_429 = arith.constant dense<0xFF800000> : vector<32xf32>
    %462 = vector.multi_reduction <maximumf>, %461, %cst_429 [0] : vector<2x32xf32> to vector<32xf32>
    %463 = vector.shape_cast %462 : vector<32xf32> to vector<1x32xf32>
    %c2_430 = arith.constant 2 : index
    %c6_431 = arith.constant 6 : index
    %c0_432 = arith.constant 0 : index
    %464 = vector.load %arg9[%c2_430, %c6_431, %c0_432] : memref<7x7x32xf32, #tpu.memory_space<vmem>>, vector<1x1x32xf32>
    %465 = vector.shape_cast %464 : vector<1x1x32xf32> to vector<1x32xf32>
    %466 = vector.shape_cast %463 : vector<1x32xf32> to vector<1x1x32xf32>
    tpu.vector_store %arg9[%c2_430, %c6_431, %c0_432], %466 {strides = array<i32>} : memref<7x7x32xf32, #tpu.memory_space<vmem>>, vector<1x1x32xf32>,
    %cst_433 = arith.constant 0.000000e+00 : f32
    %467 = vector.broadcast %cst_433 : f32 to vector<14x32xf32>
    %c0_434 = arith.constant 0 : index
    %c6_435 = arith.constant 6 : index
    %c0_436 = arith.constant 0 : index
    %c0_437 = arith.constant 0 : index
    %468 = vector.load %arg1[%c0_434, %c6_435, %c0_436, %c0_437] : memref<1x16x16x3xf32, #tpu.memory_space<vmem>>, vector<1x1x16x3xf32>
    %469 = vector.shape_cast %468 : vector<1x1x16x3xf32> to vector<16x3xf32>
    %470 = vector.extract_strided_slice %469 {offsets = [0, 0], sizes = [14, 3], strides = [1, 1]} : vector<16x3xf32> to vector<14x3xf32>
    %c0_438 = arith.constant 0 : index
    %c0_439 = arith.constant 0 : index
    %c0_440 = arith.constant 0 : index
    %c0_441 = arith.constant 0 : index
    %471 = vector.load %arg2[%c0_438, %c0_439, %c0_440, %c0_441] : memref<3x3x3x32xf32, #tpu.memory_space<vmem>>, vector<1x1x3x32xf32>
    %472 = vector.shape_cast %471 : vector<1x1x3x32xf32> to vector<3x32xf32>
    %cst_442 = arith.constant dense<0.000000e+00> : vector<14x32xf32>
    %473 = tpu.matmul %470, %472, %cst_442 {dimension_numbers = #tpu.dot_dimension_numbers<[1], [0], [0], [1], [0, 0, 1, 1], [], []>} : vector<14x3xf32>, vector<3x32xf32>, vector<14x32xf32> -> vector<14x32xf32>
    %474 = arith.addf %467, %473 : vector<14x32xf32>
    %475 = vector.extract_strided_slice %469 {offsets = [1, 0], sizes = [14, 3], strides = [1, 1]} : vector<16x3xf32> to vector<14x3xf32>
    %c0_443 = arith.constant 0 : index
    %c1_444 = arith.constant 1 : index
    %c0_445 = arith.constant 0 : index
    %c0_446 = arith.constant 0 : index
    %476 = vector.load %arg2[%c0_443, %c1_444, %c0_445, %c0_446] : memref<3x3x3x32xf32, #tpu.memory_space<vmem>>, vector<1x1x3x32xf32>
    %477 = vector.shape_cast %476 : vector<1x1x3x32xf32> to vector<3x32xf32>
    %cst_447 = arith.constant dense<0.000000e+00> : vector<14x32xf32>
    %478 = tpu.matmul %475, %477, %cst_447 {dimension_numbers = #tpu.dot_dimension_numbers<[1], [0], [0], [1], [0, 0, 1, 1], [], []>} : vector<14x3xf32>, vector<3x32xf32>, vector<14x32xf32> -> vector<14x32xf32>
    %479 = arith.addf %474, %478 : vector<14x32xf32>
    %480 = vector.extract_strided_slice %469 {offsets = [2, 0], sizes = [14, 3], strides = [1, 1]} : vector<16x3xf32> to vector<14x3xf32>
    %c0_448 = arith.constant 0 : index
    %c2_449 = arith.constant 2 : index
    %c0_450 = arith.constant 0 : index
    %c0_451 = arith.constant 0 : index
    %481 = vector.load %arg2[%c0_448, %c2_449, %c0_450, %c0_451] : memref<3x3x3x32xf32, #tpu.memory_space<vmem>>, vector<1x1x3x32xf32>
    %482 = vector.shape_cast %481 : vector<1x1x3x32xf32> to vector<3x32xf32>
    %cst_452 = arith.constant dense<0.000000e+00> : vector<14x32xf32>
    %483 = tpu.matmul %480, %482, %cst_452 {dimension_numbers = #tpu.dot_dimension_numbers<[1], [0], [0], [1], [0, 0, 1, 1], [], []>} : vector<14x3xf32>, vector<3x32xf32>, vector<14x32xf32> -> vector<14x32xf32>
    %484 = arith.addf %479, %483 : vector<14x32xf32>
    %c0_453 = arith.constant 0 : index
    %c7_454 = arith.constant 7 : index
    %c0_455 = arith.constant 0 : index
    %c0_456 = arith.constant 0 : index
    %485 = vector.load %arg1[%c0_453, %c7_454, %c0_455, %c0_456] : memref<1x16x16x3xf32, #tpu.memory_space<vmem>>, vector<1x1x16x3xf32>
    %486 = vector.shape_cast %485 : vector<1x1x16x3xf32> to vector<16x3xf32>
    %487 = vector.extract_strided_slice %486 {offsets = [0, 0], sizes = [14, 3], strides = [1, 1]} : vector<16x3xf32> to vector<14x3xf32>
    %c1_457 = arith.constant 1 : index
    %c0_458 = arith.constant 0 : index
    %c0_459 = arith.constant 0 : index
    %c0_460 = arith.constant 0 : index
    %488 = vector.load %arg2[%c1_457, %c0_458, %c0_459, %c0_460] : memref<3x3x3x32xf32, #tpu.memory_space<vmem>>, vector<1x1x3x32xf32>
    %489 = vector.shape_cast %488 : vector<1x1x3x32xf32> to vector<3x32xf32>
    %cst_461 = arith.constant dense<0.000000e+00> : vector<14x32xf32>
    %490 = tpu.matmul %487, %489, %cst_461 {dimension_numbers = #tpu.dot_dimension_numbers<[1], [0], [0], [1], [0, 0, 1, 1], [], []>} : vector<14x3xf32>, vector<3x32xf32>, vector<14x32xf32> -> vector<14x32xf32>
    %491 = arith.addf %484, %490 : vector<14x32xf32>
    %492 = vector.extract_strided_slice %486 {offsets = [1, 0], sizes = [14, 3], strides = [1, 1]} : vector<16x3xf32> to vector<14x3xf32>
    %c1_462 = arith.constant 1 : index
    %c1_463 = arith.constant 1 : index
    %c0_464 = arith.constant 0 : index
    %c0_465 = arith.constant 0 : index
    %493 = vector.load %arg2[%c1_462, %c1_463, %c0_464, %c0_465] : memref<3x3x3x32xf32, #tpu.memory_space<vmem>>, vector<1x1x3x32xf32>
    %494 = vector.shape_cast %493 : vector<1x1x3x32xf32> to vector<3x32xf32>
    %cst_466 = arith.constant dense<0.000000e+00> : vector<14x32xf32>
    %495 = tpu.matmul %492, %494, %cst_466 {dimension_numbers = #tpu.dot_dimension_numbers<[1], [0], [0], [1], [0, 0, 1, 1], [], []>} : vector<14x3xf32>, vector<3x32xf32>, vector<14x32xf32> -> vector<14x32xf32>
    %496 = arith.addf %491, %495 : vector<14x32xf32>
    %497 = vector.extract_strided_slice %486 {offsets = [2, 0], sizes = [14, 3], strides = [1, 1]} : vector<16x3xf32> to vector<14x3xf32>
    %c1_467 = arith.constant 1 : index
    %c2_468 = arith.constant 2 : index
    %c0_469 = arith.constant 0 : index
    %c0_470 = arith.constant 0 : index
    %498 = vector.load %arg2[%c1_467, %c2_468, %c0_469, %c0_470] : memref<3x3x3x32xf32, #tpu.memory_space<vmem>>, vector<1x1x3x32xf32>
    %499 = vector.shape_cast %498 : vector<1x1x3x32xf32> to vector<3x32xf32>
    %cst_471 = arith.constant dense<0.000000e+00> : vector<14x32xf32>
    %500 = tpu.matmul %497, %499, %cst_471 {dimension_numbers = #tpu.dot_dimension_numbers<[1], [0], [0], [1], [0, 0, 1, 1], [], []>} : vector<14x3xf32>, vector<3x32xf32>, vector<14x32xf32> -> vector<14x32xf32>
    %501 = arith.addf %496, %500 : vector<14x32xf32>
    %c0_472 = arith.constant 0 : index
    %c8 = arith.constant 8 : index
    %c0_473 = arith.constant 0 : index
    %c0_474 = arith.constant 0 : index
    %502 = vector.load %arg1[%c0_472, %c8, %c0_473, %c0_474] : memref<1x16x16x3xf32, #tpu.memory_space<vmem>>, vector<1x1x16x3xf32>
    %503 = vector.shape_cast %502 : vector<1x1x16x3xf32> to vector<16x3xf32>
    %504 = vector.extract_strided_slice %503 {offsets = [0, 0], sizes = [14, 3], strides = [1, 1]} : vector<16x3xf32> to vector<14x3xf32>
    %c2_475 = arith.constant 2 : index
    %c0_476 = arith.constant 0 : index
    %c0_477 = arith.constant 0 : index
    %c0_478 = arith.constant 0 : index
    %505 = vector.load %arg2[%c2_475, %c0_476, %c0_477, %c0_478] : memref<3x3x3x32xf32, #tpu.memory_space<vmem>>, vector<1x1x3x32xf32>
    %506 = vector.shape_cast %505 : vector<1x1x3x32xf32> to vector<3x32xf32>
    %cst_479 = arith.constant dense<0.000000e+00> : vector<14x32xf32>
    %507 = tpu.matmul %504, %506, %cst_479 {dimension_numbers = #tpu.dot_dimension_numbers<[1], [0], [0], [1], [0, 0, 1, 1], [], []>} : vector<14x3xf32>, vector<3x32xf32>, vector<14x32xf32> -> vector<14x32xf32>
    %508 = arith.addf %501, %507 : vector<14x32xf32>
    %509 = vector.extract_strided_slice %503 {offsets = [1, 0], sizes = [14, 3], strides = [1, 1]} : vector<16x3xf32> to vector<14x3xf32>
    %c2_480 = arith.constant 2 : index
    %c1_481 = arith.constant 1 : index
    %c0_482 = arith.constant 0 : index
    %c0_483 = arith.constant 0 : index
    %510 = vector.load %arg2[%c2_480, %c1_481, %c0_482, %c0_483] : memref<3x3x3x32xf32, #tpu.memory_space<vmem>>, vector<1x1x3x32xf32>
    %511 = vector.shape_cast %510 : vector<1x1x3x32xf32> to vector<3x32xf32>
    %cst_484 = arith.constant dense<0.000000e+00> : vector<14x32xf32>
    %512 = tpu.matmul %509, %511, %cst_484 {dimension_numbers = #tpu.dot_dimension_numbers<[1], [0], [0], [1], [0, 0, 1, 1], [], []>} : vector<14x3xf32>, vector<3x32xf32>, vector<14x32xf32> -> vector<14x32xf32>
    %513 = arith.addf %508, %512 : vector<14x32xf32>
    %514 = vector.extract_strided_slice %503 {offsets = [2, 0], sizes = [14, 3], strides = [1, 1]} : vector<16x3xf32> to vector<14x3xf32>
    %c2_485 = arith.constant 2 : index
    %c2_486 = arith.constant 2 : index
    %c0_487 = arith.constant 0 : index
    %c0_488 = arith.constant 0 : index
    %515 = vector.load %arg2[%c2_485, %c2_486, %c0_487, %c0_488] : memref<3x3x3x32xf32, #tpu.memory_space<vmem>>, vector<1x1x3x32xf32>
    %516 = vector.shape_cast %515 : vector<1x1x3x32xf32> to vector<3x32xf32>
    %cst_489 = arith.constant dense<0.000000e+00> : vector<14x32xf32>
    %517 = tpu.matmul %514, %516, %cst_489 {dimension_numbers = #tpu.dot_dimension_numbers<[1], [0], [0], [1], [0, 0, 1, 1], [], []>} : vector<14x3xf32>, vector<3x32xf32>, vector<14x32xf32> -> vector<14x32xf32>
    %518 = arith.addf %513, %517 : vector<14x32xf32>
    %519 = vector.broadcast %0 : vector<1x32xf32> to vector<14x32xf32>
    %520 = arith.addf %518, %519 : vector<14x32xf32>
    %cst_490 = arith.constant 0.000000e+00 : f32
    %521 = vector.broadcast %cst_490 : f32 to vector<14x32xf32>
    %522 = arith.maximumf %520, %521 : vector<14x32xf32>
    %cst_491 = arith.constant 0.000000e+00 : f32
    %523 = vector.broadcast %cst_491 : f32 to vector<14x32xf32>
    %c0_492 = arith.constant 0 : index
    %c7_493 = arith.constant 7 : index
    %c0_494 = arith.constant 0 : index
    %c0_495 = arith.constant 0 : index
    %524 = vector.load %arg1[%c0_492, %c7_493, %c0_494, %c0_495] : memref<1x16x16x3xf32, #tpu.memory_space<vmem>>, vector<1x1x16x3xf32>
    %525 = vector.shape_cast %524 : vector<1x1x16x3xf32> to vector<16x3xf32>
    %526 = vector.extract_strided_slice %525 {offsets = [0, 0], sizes = [14, 3], strides = [1, 1]} : vector<16x3xf32> to vector<14x3xf32>
    %c0_496 = arith.constant 0 : index
    %c0_497 = arith.constant 0 : index
    %c0_498 = arith.constant 0 : index
    %c0_499 = arith.constant 0 : index
    %527 = vector.load %arg2[%c0_496, %c0_497, %c0_498, %c0_499] : memref<3x3x3x32xf32, #tpu.memory_space<vmem>>, vector<1x1x3x32xf32>
    %528 = vector.shape_cast %527 : vector<1x1x3x32xf32> to vector<3x32xf32>
    %cst_500 = arith.constant dense<0.000000e+00> : vector<14x32xf32>
    %529 = tpu.matmul %526, %528, %cst_500 {dimension_numbers = #tpu.dot_dimension_numbers<[1], [0], [0], [1], [0, 0, 1, 1], [], []>} : vector<14x3xf32>, vector<3x32xf32>, vector<14x32xf32> -> vector<14x32xf32>
    %530 = arith.addf %523, %529 : vector<14x32xf32>
    %531 = vector.extract_strided_slice %525 {offsets = [1, 0], sizes = [14, 3], strides = [1, 1]} : vector<16x3xf32> to vector<14x3xf32>
    %c0_501 = arith.constant 0 : index
    %c1_502 = arith.constant 1 : index
    %c0_503 = arith.constant 0 : index
    %c0_504 = arith.constant 0 : index
    %532 = vector.load %arg2[%c0_501, %c1_502, %c0_503, %c0_504] : memref<3x3x3x32xf32, #tpu.memory_space<vmem>>, vector<1x1x3x32xf32>
    %533 = vector.shape_cast %532 : vector<1x1x3x32xf32> to vector<3x32xf32>
    %cst_505 = arith.constant dense<0.000000e+00> : vector<14x32xf32>
    %534 = tpu.matmul %531, %533, %cst_505 {dimension_numbers = #tpu.dot_dimension_numbers<[1], [0], [0], [1], [0, 0, 1, 1], [], []>} : vector<14x3xf32>, vector<3x32xf32>, vector<14x32xf32> -> vector<14x32xf32>
    %535 = arith.addf %530, %534 : vector<14x32xf32>
    %536 = vector.extract_strided_slice %525 {offsets = [2, 0], sizes = [14, 3], strides = [1, 1]} : vector<16x3xf32> to vector<14x3xf32>
    %c0_506 = arith.constant 0 : index
    %c2_507 = arith.constant 2 : index
    %c0_508 = arith.constant 0 : index
    %c0_509 = arith.constant 0 : index
    %537 = vector.load %arg2[%c0_506, %c2_507, %c0_508, %c0_509] : memref<3x3x3x32xf32, #tpu.memory_space<vmem>>, vector<1x1x3x32xf32>
    %538 = vector.shape_cast %537 : vector<1x1x3x32xf32> to vector<3x32xf32>
    %cst_510 = arith.constant dense<0.000000e+00> : vector<14x32xf32>
    %539 = tpu.matmul %536, %538, %cst_510 {dimension_numbers = #tpu.dot_dimension_numbers<[1], [0], [0], [1], [0, 0, 1, 1], [], []>} : vector<14x3xf32>, vector<3x32xf32>, vector<14x32xf32> -> vector<14x32xf32>
    %540 = arith.addf %535, %539 : vector<14x32xf32>
    %c0_511 = arith.constant 0 : index
    %c8_512 = arith.constant 8 : index
    %c0_513 = arith.constant 0 : index
    %c0_514 = arith.constant 0 : index
    %541 = vector.load %arg1[%c0_511, %c8_512, %c0_513, %c0_514] : memref<1x16x16x3xf32, #tpu.memory_space<vmem>>, vector<1x1x16x3xf32>
    %542 = vector.shape_cast %541 : vector<1x1x16x3xf32> to vector<16x3xf32>
    %543 = vector.extract_strided_slice %542 {offsets = [0, 0], sizes = [14, 3], strides = [1, 1]} : vector<16x3xf32> to vector<14x3xf32>
    %c1_515 = arith.constant 1 : index
    %c0_516 = arith.constant 0 : index
    %c0_517 = arith.constant 0 : index
    %c0_518 = arith.constant 0 : index
    %544 = vector.load %arg2[%c1_515, %c0_516, %c0_517, %c0_518] : memref<3x3x3x32xf32, #tpu.memory_space<vmem>>, vector<1x1x3x32xf32>
    %545 = vector.shape_cast %544 : vector<1x1x3x32xf32> to vector<3x32xf32>
    %cst_519 = arith.constant dense<0.000000e+00> : vector<14x32xf32>
    %546 = tpu.matmul %543, %545, %cst_519 {dimension_numbers = #tpu.dot_dimension_numbers<[1], [0], [0], [1], [0, 0, 1, 1], [], []>} : vector<14x3xf32>, vector<3x32xf32>, vector<14x32xf32> -> vector<14x32xf32>
    %547 = arith.addf %540, %546 : vector<14x32xf32>
    %548 = vector.extract_strided_slice %542 {offsets = [1, 0], sizes = [14, 3], strides = [1, 1]} : vector<16x3xf32> to vector<14x3xf32>
    %c1_520 = arith.constant 1 : index
    %c1_521 = arith.constant 1 : index
    %c0_522 = arith.constant 0 : index
    %c0_523 = arith.constant 0 : index
    %549 = vector.load %arg2[%c1_520, %c1_521, %c0_522, %c0_523] : memref<3x3x3x32xf32, #tpu.memory_space<vmem>>, vector<1x1x3x32xf32>
    %550 = vector.shape_cast %549 : vector<1x1x3x32xf32> to vector<3x32xf32>
    %cst_524 = arith.constant dense<0.000000e+00> : vector<14x32xf32>
    %551 = tpu.matmul %548, %550, %cst_524 {dimension_numbers = #tpu.dot_dimension_numbers<[1], [0], [0], [1], [0, 0, 1, 1], [], []>} : vector<14x3xf32>, vector<3x32xf32>, vector<14x32xf32> -> vector<14x32xf32>
    %552 = arith.addf %547, %551 : vector<14x32xf32>
    %553 = vector.extract_strided_slice %542 {offsets = [2, 0], sizes = [14, 3], strides = [1, 1]} : vector<16x3xf32> to vector<14x3xf32>
    %c1_525 = arith.constant 1 : index
    %c2_526 = arith.constant 2 : index
    %c0_527 = arith.constant 0 : index
    %c0_528 = arith.constant 0 : index
    %554 = vector.load %arg2[%c1_525, %c2_526, %c0_527, %c0_528] : memref<3x3x3x32xf32, #tpu.memory_space<vmem>>, vector<1x1x3x32xf32>
    %555 = vector.shape_cast %554 : vector<1x1x3x32xf32> to vector<3x32xf32>
    %cst_529 = arith.constant dense<0.000000e+00> : vector<14x32xf32>
    %556 = tpu.matmul %553, %555, %cst_529 {dimension_numbers = #tpu.dot_dimension_numbers<[1], [0], [0], [1], [0, 0, 1, 1], [], []>} : vector<14x3xf32>, vector<3x32xf32>, vector<14x32xf32> -> vector<14x32xf32>
    %557 = arith.addf %552, %556 : vector<14x32xf32>
    %c0_530 = arith.constant 0 : index
    %c9 = arith.constant 9 : index
    %c0_531 = arith.constant 0 : index
    %c0_532 = arith.constant 0 : index
    %558 = vector.load %arg1[%c0_530, %c9, %c0_531, %c0_532] : memref<1x16x16x3xf32, #tpu.memory_space<vmem>>, vector<1x1x16x3xf32>
    %559 = vector.shape_cast %558 : vector<1x1x16x3xf32> to vector<16x3xf32>
    %560 = vector.extract_strided_slice %559 {offsets = [0, 0], sizes = [14, 3], strides = [1, 1]} : vector<16x3xf32> to vector<14x3xf32>
    %c2_533 = arith.constant 2 : index
    %c0_534 = arith.constant 0 : index
    %c0_535 = arith.constant 0 : index
    %c0_536 = arith.constant 0 : index
    %561 = vector.load %arg2[%c2_533, %c0_534, %c0_535, %c0_536] : memref<3x3x3x32xf32, #tpu.memory_space<vmem>>, vector<1x1x3x32xf32>
    %562 = vector.shape_cast %561 : vector<1x1x3x32xf32> to vector<3x32xf32>
    %cst_537 = arith.constant dense<0.000000e+00> : vector<14x32xf32>
    %563 = tpu.matmul %560, %562, %cst_537 {dimension_numbers = #tpu.dot_dimension_numbers<[1], [0], [0], [1], [0, 0, 1, 1], [], []>} : vector<14x3xf32>, vector<3x32xf32>, vector<14x32xf32> -> vector<14x32xf32>
    %564 = arith.addf %557, %563 : vector<14x32xf32>
    %565 = vector.extract_strided_slice %559 {offsets = [1, 0], sizes = [14, 3], strides = [1, 1]} : vector<16x3xf32> to vector<14x3xf32>
    %c2_538 = arith.constant 2 : index
    %c1_539 = arith.constant 1 : index
    %c0_540 = arith.constant 0 : index
    %c0_541 = arith.constant 0 : index
    %566 = vector.load %arg2[%c2_538, %c1_539, %c0_540, %c0_541] : memref<3x3x3x32xf32, #tpu.memory_space<vmem>>, vector<1x1x3x32xf32>
    %567 = vector.shape_cast %566 : vector<1x1x3x32xf32> to vector<3x32xf32>
    %cst_542 = arith.constant dense<0.000000e+00> : vector<14x32xf32>
    %568 = tpu.matmul %565, %567, %cst_542 {dimension_numbers = #tpu.dot_dimension_numbers<[1], [0], [0], [1], [0, 0, 1, 1], [], []>} : vector<14x3xf32>, vector<3x32xf32>, vector<14x32xf32> -> vector<14x32xf32>
    %569 = arith.addf %564, %568 : vector<14x32xf32>
    %570 = vector.extract_strided_slice %559 {offsets = [2, 0], sizes = [14, 3], strides = [1, 1]} : vector<16x3xf32> to vector<14x3xf32>
    %c2_543 = arith.constant 2 : index
    %c2_544 = arith.constant 2 : index
    %c0_545 = arith.constant 0 : index
    %c0_546 = arith.constant 0 : index
    %571 = vector.load %arg2[%c2_543, %c2_544, %c0_545, %c0_546] : memref<3x3x3x32xf32, #tpu.memory_space<vmem>>, vector<1x1x3x32xf32>
    %572 = vector.shape_cast %571 : vector<1x1x3x32xf32> to vector<3x32xf32>
    %cst_547 = arith.constant dense<0.000000e+00> : vector<14x32xf32>
    %573 = tpu.matmul %570, %572, %cst_547 {dimension_numbers = #tpu.dot_dimension_numbers<[1], [0], [0], [1], [0, 0, 1, 1], [], []>} : vector<14x3xf32>, vector<3x32xf32>, vector<14x32xf32> -> vector<14x32xf32>
    %574 = arith.addf %569, %573 : vector<14x32xf32>
    %575 = vector.broadcast %0 : vector<1x32xf32> to vector<14x32xf32>
    %576 = arith.addf %574, %575 : vector<14x32xf32>
    %cst_548 = arith.constant 0.000000e+00 : f32
    %577 = vector.broadcast %cst_548 : f32 to vector<14x32xf32>
    %578 = arith.maximumf %576, %577 : vector<14x32xf32>
    %579 = arith.maximumf %522, %578 : vector<14x32xf32>
    %580 = vector.extract_strided_slice %579 {offsets = [0, 0], sizes = [2, 32], strides = [1, 1]} : vector<14x32xf32> to vector<2x32xf32>
    %cst_549 = arith.constant dense<0xFF800000> : vector<32xf32>
    %581 = vector.multi_reduction <maximumf>, %580, %cst_549 [0] : vector<2x32xf32> to vector<32xf32>
    %582 = vector.shape_cast %581 : vector<32xf32> to vector<1x32xf32>
    %c3_550 = arith.constant 3 : index
    %c0_551 = arith.constant 0 : index
    %c0_552 = arith.constant 0 : index
    %583 = vector.load %arg9[%c3_550, %c0_551, %c0_552] : memref<7x7x32xf32, #tpu.memory_space<vmem>>, vector<1x1x32xf32>
    %584 = vector.shape_cast %583 : vector<1x1x32xf32> to vector<1x32xf32>
    %585 = vector.shape_cast %582 : vector<1x32xf32> to vector<1x1x32xf32>
    tpu.vector_store %arg9[%c3_550, %c0_551, %c0_552], %585 {strides = array<i32>} : memref<7x7x32xf32, #tpu.memory_space<vmem>>, vector<1x1x32xf32>,
    %586 = vector.extract_strided_slice %579 {offsets = [2, 0], sizes = [2, 32], strides = [1, 1]} : vector<14x32xf32> to vector<2x32xf32>
    %cst_553 = arith.constant dense<0xFF800000> : vector<32xf32>
    %587 = vector.multi_reduction <maximumf>, %586, %cst_553 [0] : vector<2x32xf32> to vector<32xf32>
    %588 = vector.shape_cast %587 : vector<32xf32> to vector<1x32xf32>
    %c3_554 = arith.constant 3 : index
    %c1_555 = arith.constant 1 : index
    %c0_556 = arith.constant 0 : index
    %589 = vector.load %arg9[%c3_554, %c1_555, %c0_556] : memref<7x7x32xf32, #tpu.memory_space<vmem>>, vector<1x1x32xf32>
    %590 = vector.shape_cast %589 : vector<1x1x32xf32> to vector<1x32xf32>
    %591 = vector.shape_cast %588 : vector<1x32xf32> to vector<1x1x32xf32>
    tpu.vector_store %arg9[%c3_554, %c1_555, %c0_556], %591 {strides = array<i32>} : memref<7x7x32xf32, #tpu.memory_space<vmem>>, vector<1x1x32xf32>,
    %592 = vector.extract_strided_slice %579 {offsets = [4, 0], sizes = [2, 32], strides = [1, 1]} : vector<14x32xf32> to vector<2x32xf32>
    %cst_557 = arith.constant dense<0xFF800000> : vector<32xf32>
    %593 = vector.multi_reduction <maximumf>, %592, %cst_557 [0] : vector<2x32xf32> to vector<32xf32>
    %594 = vector.shape_cast %593 : vector<32xf32> to vector<1x32xf32>
    %c3_558 = arith.constant 3 : index
    %c2_559 = arith.constant 2 : index
    %c0_560 = arith.constant 0 : index
    %595 = vector.load %arg9[%c3_558, %c2_559, %c0_560] : memref<7x7x32xf32, #tpu.memory_space<vmem>>, vector<1x1x32xf32>
    %596 = vector.shape_cast %595 : vector<1x1x32xf32> to vector<1x32xf32>
    %597 = vector.shape_cast %594 : vector<1x32xf32> to vector<1x1x32xf32>
    tpu.vector_store %arg9[%c3_558, %c2_559, %c0_560], %597 {strides = array<i32>} : memref<7x7x32xf32, #tpu.memory_space<vmem>>, vector<1x1x32xf32>,
    %598 = vector.extract_strided_slice %579 {offsets = [6, 0], sizes = [2, 32], strides = [1, 1]} : vector<14x32xf32> to vector<2x32xf32>
    %cst_561 = arith.constant dense<0xFF800000> : vector<32xf32>
    %599 = vector.multi_reduction <maximumf>, %598, %cst_561 [0] : vector<2x32xf32> to vector<32xf32>
    %600 = vector.shape_cast %599 : vector<32xf32> to vector<1x32xf32>
    %c3_562 = arith.constant 3 : index
    %c3_563 = arith.constant 3 : index
    %c0_564 = arith.constant 0 : index
    %601 = vector.load %arg9[%c3_562, %c3_563, %c0_564] : memref<7x7x32xf32, #tpu.memory_space<vmem>>, vector<1x1x32xf32>
    %602 = vector.shape_cast %601 : vector<1x1x32xf32> to vector<1x32xf32>
    %603 = vector.shape_cast %600 : vector<1x32xf32> to vector<1x1x32xf32>
    tpu.vector_store %arg9[%c3_562, %c3_563, %c0_564], %603 {strides = array<i32>} : memref<7x7x32xf32, #tpu.memory_space<vmem>>, vector<1x1x32xf32>,
    %604 = vector.extract_strided_slice %579 {offsets = [8, 0], sizes = [2, 32], strides = [1, 1]} : vector<14x32xf32> to vector<2x32xf32>
    %cst_565 = arith.constant dense<0xFF800000> : vector<32xf32>
    %605 = vector.multi_reduction <maximumf>, %604, %cst_565 [0] : vector<2x32xf32> to vector<32xf32>
    %606 = vector.shape_cast %605 : vector<32xf32> to vector<1x32xf32>
    %c3_566 = arith.constant 3 : index
    %c4_567 = arith.constant 4 : index
    %c0_568 = arith.constant 0 : index
    %607 = vector.load %arg9[%c3_566, %c4_567, %c0_568] : memref<7x7x32xf32, #tpu.memory_space<vmem>>, vector<1x1x32xf32>
    %608 = vector.shape_cast %607 : vector<1x1x32xf32> to vector<1x32xf32>
    %609 = vector.shape_cast %606 : vector<1x32xf32> to vector<1x1x32xf32>
    tpu.vector_store %arg9[%c3_566, %c4_567, %c0_568], %609 {strides = array<i32>} : memref<7x7x32xf32, #tpu.memory_space<vmem>>, vector<1x1x32xf32>,
    %610 = vector.extract_strided_slice %579 {offsets = [10, 0], sizes = [2, 32], strides = [1, 1]} : vector<14x32xf32> to vector<2x32xf32>
    %cst_569 = arith.constant dense<0xFF800000> : vector<32xf32>
    %611 = vector.multi_reduction <maximumf>, %610, %cst_569 [0] : vector<2x32xf32> to vector<32xf32>
    %612 = vector.shape_cast %611 : vector<32xf32> to vector<1x32xf32>
    %c3_570 = arith.constant 3 : index
    %c5_571 = arith.constant 5 : index
    %c0_572 = arith.constant 0 : index
    %613 = vector.load %arg9[%c3_570, %c5_571, %c0_572] : memref<7x7x32xf32, #tpu.memory_space<vmem>>, vector<1x1x32xf32>
    %614 = vector.shape_cast %613 : vector<1x1x32xf32> to vector<1x32xf32>
    %615 = vector.shape_cast %612 : vector<1x32xf32> to vector<1x1x32xf32>
    tpu.vector_store %arg9[%c3_570, %c5_571, %c0_572], %615 {strides = array<i32>} : memref<7x7x32xf32, #tpu.memory_space<vmem>>, vector<1x1x32xf32>,
    %616 = vector.extract_strided_slice %579 {offsets = [12, 0], sizes = [2, 32], strides = [1, 1]} : vector<14x32xf32> to vector<2x32xf32>
    %cst_573 = arith.constant dense<0xFF800000> : vector<32xf32>
    %617 = vector.multi_reduction <maximumf>, %616, %cst_573 [0] : vector<2x32xf32> to vector<32xf32>
    %618 = vector.shape_cast %617 : vector<32xf32> to vector<1x32xf32>
    %c3_574 = arith.constant 3 : index
    %c6_575 = arith.constant 6 : index
    %c0_576 = arith.constant 0 : index
    %619 = vector.load %arg9[%c3_574, %c6_575, %c0_576] : memref<7x7x32xf32, #tpu.memory_space<vmem>>, vector<1x1x32xf32>
    %620 = vector.shape_cast %619 : vector<1x1x32xf32> to vector<1x32xf32>
    %621 = vector.shape_cast %618 : vector<1x32xf32> to vector<1x1x32xf32>
    tpu.vector_store %arg9[%c3_574, %c6_575, %c0_576], %621 {strides = array<i32>} : memref<7x7x32xf32, #tpu.memory_space<vmem>>, vector<1x1x32xf32>,
    %cst_577 = arith.constant 0.000000e+00 : f32
    %622 = vector.broadcast %cst_577 : f32 to vector<14x32xf32>
    %c0_578 = arith.constant 0 : index
    %c8_579 = arith.constant 8 : index
    %c0_580 = arith.constant 0 : index
    %c0_581 = arith.constant 0 : index
    %623 = vector.load %arg1[%c0_578, %c8_579, %c0_580, %c0_581] : memref<1x16x16x3xf32, #tpu.memory_space<vmem>>, vector<1x1x16x3xf32>
    %624 = vector.shape_cast %623 : vector<1x1x16x3xf32> to vector<16x3xf32>
    %625 = vector.extract_strided_slice %624 {offsets = [0, 0], sizes = [14, 3], strides = [1, 1]} : vector<16x3xf32> to vector<14x3xf32>
    %c0_582 = arith.constant 0 : index
    %c0_583 = arith.constant 0 : index
    %c0_584 = arith.constant 0 : index
    %c0_585 = arith.constant 0 : index
    %626 = vector.load %arg2[%c0_582, %c0_583, %c0_584, %c0_585] : memref<3x3x3x32xf32, #tpu.memory_space<vmem>>, vector<1x1x3x32xf32>
    %627 = vector.shape_cast %626 : vector<1x1x3x32xf32> to vector<3x32xf32>
    %cst_586 = arith.constant dense<0.000000e+00> : vector<14x32xf32>
    %628 = tpu.matmul %625, %627, %cst_586 {dimension_numbers = #tpu.dot_dimension_numbers<[1], [0], [0], [1], [0, 0, 1, 1], [], []>} : vector<14x3xf32>, vector<3x32xf32>, vector<14x32xf32> -> vector<14x32xf32>
    %629 = arith.addf %622, %628 : vector<14x32xf32>
    %630 = vector.extract_strided_slice %624 {offsets = [1, 0], sizes = [14, 3], strides = [1, 1]} : vector<16x3xf32> to vector<14x3xf32>
    %c0_587 = arith.constant 0 : index
    %c1_588 = arith.constant 1 : index
    %c0_589 = arith.constant 0 : index
    %c0_590 = arith.constant 0 : index
    %631 = vector.load %arg2[%c0_587, %c1_588, %c0_589, %c0_590] : memref<3x3x3x32xf32, #tpu.memory_space<vmem>>, vector<1x1x3x32xf32>
    %632 = vector.shape_cast %631 : vector<1x1x3x32xf32> to vector<3x32xf32>
    %cst_591 = arith.constant dense<0.000000e+00> : vector<14x32xf32>
    %633 = tpu.matmul %630, %632, %cst_591 {dimension_numbers = #tpu.dot_dimension_numbers<[1], [0], [0], [1], [0, 0, 1, 1], [], []>} : vector<14x3xf32>, vector<3x32xf32>, vector<14x32xf32> -> vector<14x32xf32>
    %634 = arith.addf %629, %633 : vector<14x32xf32>
    %635 = vector.extract_strided_slice %624 {offsets = [2, 0], sizes = [14, 3], strides = [1, 1]} : vector<16x3xf32> to vector<14x3xf32>
    %c0_592 = arith.constant 0 : index
    %c2_593 = arith.constant 2 : index
    %c0_594 = arith.constant 0 : index
    %c0_595 = arith.constant 0 : index
    %636 = vector.load %arg2[%c0_592, %c2_593, %c0_594, %c0_595] : memref<3x3x3x32xf32, #tpu.memory_space<vmem>>, vector<1x1x3x32xf32>
    %637 = vector.shape_cast %636 : vector<1x1x3x32xf32> to vector<3x32xf32>
    %cst_596 = arith.constant dense<0.000000e+00> : vector<14x32xf32>
    %638 = tpu.matmul %635, %637, %cst_596 {dimension_numbers = #tpu.dot_dimension_numbers<[1], [0], [0], [1], [0, 0, 1, 1], [], []>} : vector<14x3xf32>, vector<3x32xf32>, vector<14x32xf32> -> vector<14x32xf32>
    %639 = arith.addf %634, %638 : vector<14x32xf32>
    %c0_597 = arith.constant 0 : index
    %c9_598 = arith.constant 9 : index
    %c0_599 = arith.constant 0 : index
    %c0_600 = arith.constant 0 : index
    %640 = vector.load %arg1[%c0_597, %c9_598, %c0_599, %c0_600] : memref<1x16x16x3xf32, #tpu.memory_space<vmem>>, vector<1x1x16x3xf32>
    %641 = vector.shape_cast %640 : vector<1x1x16x3xf32> to vector<16x3xf32>
    %642 = vector.extract_strided_slice %641 {offsets = [0, 0], sizes = [14, 3], strides = [1, 1]} : vector<16x3xf32> to vector<14x3xf32>
    %c1_601 = arith.constant 1 : index
    %c0_602 = arith.constant 0 : index
    %c0_603 = arith.constant 0 : index
    %c0_604 = arith.constant 0 : index
    %643 = vector.load %arg2[%c1_601, %c0_602, %c0_603, %c0_604] : memref<3x3x3x32xf32, #tpu.memory_space<vmem>>, vector<1x1x3x32xf32>
    %644 = vector.shape_cast %643 : vector<1x1x3x32xf32> to vector<3x32xf32>
    %cst_605 = arith.constant dense<0.000000e+00> : vector<14x32xf32>
    %645 = tpu.matmul %642, %644, %cst_605 {dimension_numbers = #tpu.dot_dimension_numbers<[1], [0], [0], [1], [0, 0, 1, 1], [], []>} : vector<14x3xf32>, vector<3x32xf32>, vector<14x32xf32> -> vector<14x32xf32>
    %646 = arith.addf %639, %645 : vector<14x32xf32>
    %647 = vector.extract_strided_slice %641 {offsets = [1, 0], sizes = [14, 3], strides = [1, 1]} : vector<16x3xf32> to vector<14x3xf32>
    %c1_606 = arith.constant 1 : index
    %c1_607 = arith.constant 1 : index
    %c0_608 = arith.constant 0 : index
    %c0_609 = arith.constant 0 : index
    %648 = vector.load %arg2[%c1_606, %c1_607, %c0_608, %c0_609] : memref<3x3x3x32xf32, #tpu.memory_space<vmem>>, vector<1x1x3x32xf32>
    %649 = vector.shape_cast %648 : vector<1x1x3x32xf32> to vector<3x32xf32>
    %cst_610 = arith.constant dense<0.000000e+00> : vector<14x32xf32>
    %650 = tpu.matmul %647, %649, %cst_610 {dimension_numbers = #tpu.dot_dimension_numbers<[1], [0], [0], [1], [0, 0, 1, 1], [], []>} : vector<14x3xf32>, vector<3x32xf32>, vector<14x32xf32> -> vector<14x32xf32>
    %651 = arith.addf %646, %650 : vector<14x32xf32>
    %652 = vector.extract_strided_slice %641 {offsets = [2, 0], sizes = [14, 3], strides = [1, 1]} : vector<16x3xf32> to vector<14x3xf32>
    %c1_611 = arith.constant 1 : index
    %c2_612 = arith.constant 2 : index
    %c0_613 = arith.constant 0 : index
    %c0_614 = arith.constant 0 : index
    %653 = vector.load %arg2[%c1_611, %c2_612, %c0_613, %c0_614] : memref<3x3x3x32xf32, #tpu.memory_space<vmem>>, vector<1x1x3x32xf32>
    %654 = vector.shape_cast %653 : vector<1x1x3x32xf32> to vector<3x32xf32>
    %cst_615 = arith.constant dense<0.000000e+00> : vector<14x32xf32>
    %655 = tpu.matmul %652, %654, %cst_615 {dimension_numbers = #tpu.dot_dimension_numbers<[1], [0], [0], [1], [0, 0, 1, 1], [], []>} : vector<14x3xf32>, vector<3x32xf32>, vector<14x32xf32> -> vector<14x32xf32>
    %656 = arith.addf %651, %655 : vector<14x32xf32>
    %c0_616 = arith.constant 0 : index
    %c10 = arith.constant 10 : index
    %c0_617 = arith.constant 0 : index
    %c0_618 = arith.constant 0 : index
    %657 = vector.load %arg1[%c0_616, %c10, %c0_617, %c0_618] : memref<1x16x16x3xf32, #tpu.memory_space<vmem>>, vector<1x1x16x3xf32>
    %658 = vector.shape_cast %657 : vector<1x1x16x3xf32> to vector<16x3xf32>
    %659 = vector.extract_strided_slice %658 {offsets = [0, 0], sizes = [14, 3], strides = [1, 1]} : vector<16x3xf32> to vector<14x3xf32>
    %c2_619 = arith.constant 2 : index
    %c0_620 = arith.constant 0 : index
    %c0_621 = arith.constant 0 : index
    %c0_622 = arith.constant 0 : index
    %660 = vector.load %arg2[%c2_619, %c0_620, %c0_621, %c0_622] : memref<3x3x3x32xf32, #tpu.memory_space<vmem>>, vector<1x1x3x32xf32>
    %661 = vector.shape_cast %660 : vector<1x1x3x32xf32> to vector<3x32xf32>
    %cst_623 = arith.constant dense<0.000000e+00> : vector<14x32xf32>
    %662 = tpu.matmul %659, %661, %cst_623 {dimension_numbers = #tpu.dot_dimension_numbers<[1], [0], [0], [1], [0, 0, 1, 1], [], []>} : vector<14x3xf32>, vector<3x32xf32>, vector<14x32xf32> -> vector<14x32xf32>
    %663 = arith.addf %656, %662 : vector<14x32xf32>
    %664 = vector.extract_strided_slice %658 {offsets = [1, 0], sizes = [14, 3], strides = [1, 1]} : vector<16x3xf32> to vector<14x3xf32>
    %c2_624 = arith.constant 2 : index
    %c1_625 = arith.constant 1 : index
    %c0_626 = arith.constant 0 : index
    %c0_627 = arith.constant 0 : index
    %665 = vector.load %arg2[%c2_624, %c1_625, %c0_626, %c0_627] : memref<3x3x3x32xf32, #tpu.memory_space<vmem>>, vector<1x1x3x32xf32>
    %666 = vector.shape_cast %665 : vector<1x1x3x32xf32> to vector<3x32xf32>
    %cst_628 = arith.constant dense<0.000000e+00> : vector<14x32xf32>
    %667 = tpu.matmul %664, %666, %cst_628 {dimension_numbers = #tpu.dot_dimension_numbers<[1], [0], [0], [1], [0, 0, 1, 1], [], []>} : vector<14x3xf32>, vector<3x32xf32>, vector<14x32xf32> -> vector<14x32xf32>
    %668 = arith.addf %663, %667 : vector<14x32xf32>
    %669 = vector.extract_strided_slice %658 {offsets = [2, 0], sizes = [14, 3], strides = [1, 1]} : vector<16x3xf32> to vector<14x3xf32>
    %c2_629 = arith.constant 2 : index
    %c2_630 = arith.constant 2 : index
    %c0_631 = arith.constant 0 : index
    %c0_632 = arith.constant 0 : index
    %670 = vector.load %arg2[%c2_629, %c2_630, %c0_631, %c0_632] : memref<3x3x3x32xf32, #tpu.memory_space<vmem>>, vector<1x1x3x32xf32>
    %671 = vector.shape_cast %670 : vector<1x1x3x32xf32> to vector<3x32xf32>
    %cst_633 = arith.constant dense<0.000000e+00> : vector<14x32xf32>
    %672 = tpu.matmul %669, %671, %cst_633 {dimension_numbers = #tpu.dot_dimension_numbers<[1], [0], [0], [1], [0, 0, 1, 1], [], []>} : vector<14x3xf32>, vector<3x32xf32>, vector<14x32xf32> -> vector<14x32xf32>
    %673 = arith.addf %668, %672 : vector<14x32xf32>
    %674 = vector.broadcast %0 : vector<1x32xf32> to vector<14x32xf32>
    %675 = arith.addf %673, %674 : vector<14x32xf32>
    %cst_634 = arith.constant 0.000000e+00 : f32
    %676 = vector.broadcast %cst_634 : f32 to vector<14x32xf32>
    %677 = arith.maximumf %675, %676 : vector<14x32xf32>
    %cst_635 = arith.constant 0.000000e+00 : f32
    %678 = vector.broadcast %cst_635 : f32 to vector<14x32xf32>
    %c0_636 = arith.constant 0 : index
    %c9_637 = arith.constant 9 : index
    %c0_638 = arith.constant 0 : index
    %c0_639 = arith.constant 0 : index
    %679 = vector.load %arg1[%c0_636, %c9_637, %c0_638, %c0_639] : memref<1x16x16x3xf32, #tpu.memory_space<vmem>>, vector<1x1x16x3xf32>
    %680 = vector.shape_cast %679 : vector<1x1x16x3xf32> to vector<16x3xf32>
    %681 = vector.extract_strided_slice %680 {offsets = [0, 0], sizes = [14, 3], strides = [1, 1]} : vector<16x3xf32> to vector<14x3xf32>
    %c0_640 = arith.constant 0 : index
    %c0_641 = arith.constant 0 : index
    %c0_642 = arith.constant 0 : index
    %c0_643 = arith.constant 0 : index
    %682 = vector.load %arg2[%c0_640, %c0_641, %c0_642, %c0_643] : memref<3x3x3x32xf32, #tpu.memory_space<vmem>>, vector<1x1x3x32xf32>
    %683 = vector.shape_cast %682 : vector<1x1x3x32xf32> to vector<3x32xf32>
    %cst_644 = arith.constant dense<0.000000e+00> : vector<14x32xf32>
    %684 = tpu.matmul %681, %683, %cst_644 {dimension_numbers = #tpu.dot_dimension_numbers<[1], [0], [0], [1], [0, 0, 1, 1], [], []>} : vector<14x3xf32>, vector<3x32xf32>, vector<14x32xf32> -> vector<14x32xf32>
    %685 = arith.addf %678, %684 : vector<14x32xf32>
    %686 = vector.extract_strided_slice %680 {offsets = [1, 0], sizes = [14, 3], strides = [1, 1]} : vector<16x3xf32> to vector<14x3xf32>
    %c0_645 = arith.constant 0 : index
    %c1_646 = arith.constant 1 : index
    %c0_647 = arith.constant 0 : index
    %c0_648 = arith.constant 0 : index
    %687 = vector.load %arg2[%c0_645, %c1_646, %c0_647, %c0_648] : memref<3x3x3x32xf32, #tpu.memory_space<vmem>>, vector<1x1x3x32xf32>
    %688 = vector.shape_cast %687 : vector<1x1x3x32xf32> to vector<3x32xf32>
    %cst_649 = arith.constant dense<0.000000e+00> : vector<14x32xf32>
    %689 = tpu.matmul %686, %688, %cst_649 {dimension_numbers = #tpu.dot_dimension_numbers<[1], [0], [0], [1], [0, 0, 1, 1], [], []>} : vector<14x3xf32>, vector<3x32xf32>, vector<14x32xf32> -> vector<14x32xf32>
    %690 = arith.addf %685, %689 : vector<14x32xf32>
    %691 = vector.extract_strided_slice %680 {offsets = [2, 0], sizes = [14, 3], strides = [1, 1]} : vector<16x3xf32> to vector<14x3xf32>
    %c0_650 = arith.constant 0 : index
    %c2_651 = arith.constant 2 : index
    %c0_652 = arith.constant 0 : index
    %c0_653 = arith.constant 0 : index
    %692 = vector.load %arg2[%c0_650, %c2_651, %c0_652, %c0_653] : memref<3x3x3x32xf32, #tpu.memory_space<vmem>>, vector<1x1x3x32xf32>
    %693 = vector.shape_cast %692 : vector<1x1x3x32xf32> to vector<3x32xf32>
    %cst_654 = arith.constant dense<0.000000e+00> : vector<14x32xf32>
    %694 = tpu.matmul %691, %693, %cst_654 {dimension_numbers = #tpu.dot_dimension_numbers<[1], [0], [0], [1], [0, 0, 1, 1], [], []>} : vector<14x3xf32>, vector<3x32xf32>, vector<14x32xf32> -> vector<14x32xf32>
    %695 = arith.addf %690, %694 : vector<14x32xf32>
    %c0_655 = arith.constant 0 : index
    %c10_656 = arith.constant 10 : index
    %c0_657 = arith.constant 0 : index
    %c0_658 = arith.constant 0 : index
    %696 = vector.load %arg1[%c0_655, %c10_656, %c0_657, %c0_658] : memref<1x16x16x3xf32, #tpu.memory_space<vmem>>, vector<1x1x16x3xf32>
    %697 = vector.shape_cast %696 : vector<1x1x16x3xf32> to vector<16x3xf32>
    %698 = vector.extract_strided_slice %697 {offsets = [0, 0], sizes = [14, 3], strides = [1, 1]} : vector<16x3xf32> to vector<14x3xf32>
    %c1_659 = arith.constant 1 : index
    %c0_660 = arith.constant 0 : index
    %c0_661 = arith.constant 0 : index
    %c0_662 = arith.constant 0 : index
    %699 = vector.load %arg2[%c1_659, %c0_660, %c0_661, %c0_662] : memref<3x3x3x32xf32, #tpu.memory_space<vmem>>, vector<1x1x3x32xf32>
    %700 = vector.shape_cast %699 : vector<1x1x3x32xf32> to vector<3x32xf32>
    %cst_663 = arith.constant dense<0.000000e+00> : vector<14x32xf32>
    %701 = tpu.matmul %698, %700, %cst_663 {dimension_numbers = #tpu.dot_dimension_numbers<[1], [0], [0], [1], [0, 0, 1, 1], [], []>} : vector<14x3xf32>, vector<3x32xf32>, vector<14x32xf32> -> vector<14x32xf32>
    %702 = arith.addf %695, %701 : vector<14x32xf32>
    %703 = vector.extract_strided_slice %697 {offsets = [1, 0], sizes = [14, 3], strides = [1, 1]} : vector<16x3xf32> to vector<14x3xf32>
    %c1_664 = arith.constant 1 : index
    %c1_665 = arith.constant 1 : index
    %c0_666 = arith.constant 0 : index
    %c0_667 = arith.constant 0 : index
    %704 = vector.load %arg2[%c1_664, %c1_665, %c0_666, %c0_667] : memref<3x3x3x32xf32, #tpu.memory_space<vmem>>, vector<1x1x3x32xf32>
    %705 = vector.shape_cast %704 : vector<1x1x3x32xf32> to vector<3x32xf32>
    %cst_668 = arith.constant dense<0.000000e+00> : vector<14x32xf32>
    %706 = tpu.matmul %703, %705, %cst_668 {dimension_numbers = #tpu.dot_dimension_numbers<[1], [0], [0], [1], [0, 0, 1, 1], [], []>} : vector<14x3xf32>, vector<3x32xf32>, vector<14x32xf32> -> vector<14x32xf32>
    %707 = arith.addf %702, %706 : vector<14x32xf32>
    %708 = vector.extract_strided_slice %697 {offsets = [2, 0], sizes = [14, 3], strides = [1, 1]} : vector<16x3xf32> to vector<14x3xf32>
    %c1_669 = arith.constant 1 : index
    %c2_670 = arith.constant 2 : index
    %c0_671 = arith.constant 0 : index
    %c0_672 = arith.constant 0 : index
    %709 = vector.load %arg2[%c1_669, %c2_670, %c0_671, %c0_672] : memref<3x3x3x32xf32, #tpu.memory_space<vmem>>, vector<1x1x3x32xf32>
    %710 = vector.shape_cast %709 : vector<1x1x3x32xf32> to vector<3x32xf32>
    %cst_673 = arith.constant dense<0.000000e+00> : vector<14x32xf32>
    %711 = tpu.matmul %708, %710, %cst_673 {dimension_numbers = #tpu.dot_dimension_numbers<[1], [0], [0], [1], [0, 0, 1, 1], [], []>} : vector<14x3xf32>, vector<3x32xf32>, vector<14x32xf32> -> vector<14x32xf32>
    %712 = arith.addf %707, %711 : vector<14x32xf32>
    %c0_674 = arith.constant 0 : index
    %c11 = arith.constant 11 : index
    %c0_675 = arith.constant 0 : index
    %c0_676 = arith.constant 0 : index
    %713 = vector.load %arg1[%c0_674, %c11, %c0_675, %c0_676] : memref<1x16x16x3xf32, #tpu.memory_space<vmem>>, vector<1x1x16x3xf32>
    %714 = vector.shape_cast %713 : vector<1x1x16x3xf32> to vector<16x3xf32>
    %715 = vector.extract_strided_slice %714 {offsets = [0, 0], sizes = [14, 3], strides = [1, 1]} : vector<16x3xf32> to vector<14x3xf32>
    %c2_677 = arith.constant 2 : index
    %c0_678 = arith.constant 0 : index
    %c0_679 = arith.constant 0 : index
    %c0_680 = arith.constant 0 : index
    %716 = vector.load %arg2[%c2_677, %c0_678, %c0_679, %c0_680] : memref<3x3x3x32xf32, #tpu.memory_space<vmem>>, vector<1x1x3x32xf32>
    %717 = vector.shape_cast %716 : vector<1x1x3x32xf32> to vector<3x32xf32>
    %cst_681 = arith.constant dense<0.000000e+00> : vector<14x32xf32>
    %718 = tpu.matmul %715, %717, %cst_681 {dimension_numbers = #tpu.dot_dimension_numbers<[1], [0], [0], [1], [0, 0, 1, 1], [], []>} : vector<14x3xf32>, vector<3x32xf32>, vector<14x32xf32> -> vector<14x32xf32>
    %719 = arith.addf %712, %718 : vector<14x32xf32>
    %720 = vector.extract_strided_slice %714 {offsets = [1, 0], sizes = [14, 3], strides = [1, 1]} : vector<16x3xf32> to vector<14x3xf32>
    %c2_682 = arith.constant 2 : index
    %c1_683 = arith.constant 1 : index
    %c0_684 = arith.constant 0 : index
    %c0_685 = arith.constant 0 : index
    %721 = vector.load %arg2[%c2_682, %c1_683, %c0_684, %c0_685] : memref<3x3x3x32xf32, #tpu.memory_space<vmem>>, vector<1x1x3x32xf32>
    %722 = vector.shape_cast %721 : vector<1x1x3x32xf32> to vector<3x32xf32>
    %cst_686 = arith.constant dense<0.000000e+00> : vector<14x32xf32>
    %723 = tpu.matmul %720, %722, %cst_686 {dimension_numbers = #tpu.dot_dimension_numbers<[1], [0], [0], [1], [0, 0, 1, 1], [], []>} : vector<14x3xf32>, vector<3x32xf32>, vector<14x32xf32> -> vector<14x32xf32>
    %724 = arith.addf %719, %723 : vector<14x32xf32>
    %725 = vector.extract_strided_slice %714 {offsets = [2, 0], sizes = [14, 3], strides = [1, 1]} : vector<16x3xf32> to vector<14x3xf32>
    %c2_687 = arith.constant 2 : index
    %c2_688 = arith.constant 2 : index
    %c0_689 = arith.constant 0 : index
    %c0_690 = arith.constant 0 : index
    %726 = vector.load %arg2[%c2_687, %c2_688, %c0_689, %c0_690] : memref<3x3x3x32xf32, #tpu.memory_space<vmem>>, vector<1x1x3x32xf32>
    %727 = vector.shape_cast %726 : vector<1x1x3x32xf32> to vector<3x32xf32>
    %cst_691 = arith.constant dense<0.000000e+00> : vector<14x32xf32>
    %728 = tpu.matmul %725, %727, %cst_691 {dimension_numbers = #tpu.dot_dimension_numbers<[1], [0], [0], [1], [0, 0, 1, 1], [], []>} : vector<14x3xf32>, vector<3x32xf32>, vector<14x32xf32> -> vector<14x32xf32>
    %729 = arith.addf %724, %728 : vector<14x32xf32>
    %730 = vector.broadcast %0 : vector<1x32xf32> to vector<14x32xf32>
    %731 = arith.addf %729, %730 : vector<14x32xf32>
    %cst_692 = arith.constant 0.000000e+00 : f32
    %732 = vector.broadcast %cst_692 : f32 to vector<14x32xf32>
    %733 = arith.maximumf %731, %732 : vector<14x32xf32>
    %734 = arith.maximumf %677, %733 : vector<14x32xf32>
    %735 = vector.extract_strided_slice %734 {offsets = [0, 0], sizes = [2, 32], strides = [1, 1]} : vector<14x32xf32> to vector<2x32xf32>
    %cst_693 = arith.constant dense<0xFF800000> : vector<32xf32>
    %736 = vector.multi_reduction <maximumf>, %735, %cst_693 [0] : vector<2x32xf32> to vector<32xf32>
    %737 = vector.shape_cast %736 : vector<32xf32> to vector<1x32xf32>
    %c4_694 = arith.constant 4 : index
    %c0_695 = arith.constant 0 : index
    %c0_696 = arith.constant 0 : index
    %738 = vector.load %arg9[%c4_694, %c0_695, %c0_696] : memref<7x7x32xf32, #tpu.memory_space<vmem>>, vector<1x1x32xf32>
    %739 = vector.shape_cast %738 : vector<1x1x32xf32> to vector<1x32xf32>
    %740 = vector.shape_cast %737 : vector<1x32xf32> to vector<1x1x32xf32>
    tpu.vector_store %arg9[%c4_694, %c0_695, %c0_696], %740 {strides = array<i32>} : memref<7x7x32xf32, #tpu.memory_space<vmem>>, vector<1x1x32xf32>,
    %741 = vector.extract_strided_slice %734 {offsets = [2, 0], sizes = [2, 32], strides = [1, 1]} : vector<14x32xf32> to vector<2x32xf32>
    %cst_697 = arith.constant dense<0xFF800000> : vector<32xf32>
    %742 = vector.multi_reduction <maximumf>, %741, %cst_697 [0] : vector<2x32xf32> to vector<32xf32>
    %743 = vector.shape_cast %742 : vector<32xf32> to vector<1x32xf32>
    %c4_698 = arith.constant 4 : index
    %c1_699 = arith.constant 1 : index
    %c0_700 = arith.constant 0 : index
    %744 = vector.load %arg9[%c4_698, %c1_699, %c0_700] : memref<7x7x32xf32, #tpu.memory_space<vmem>>, vector<1x1x32xf32>
    %745 = vector.shape_cast %744 : vector<1x1x32xf32> to vector<1x32xf32>
    %746 = vector.shape_cast %743 : vector<1x32xf32> to vector<1x1x32xf32>
    tpu.vector_store %arg9[%c4_698, %c1_699, %c0_700], %746 {strides = array<i32>} : memref<7x7x32xf32, #tpu.memory_space<vmem>>, vector<1x1x32xf32>,
    %747 = vector.extract_strided_slice %734 {offsets = [4, 0], sizes = [2, 32], strides = [1, 1]} : vector<14x32xf32> to vector<2x32xf32>
    %cst_701 = arith.constant dense<0xFF800000> : vector<32xf32>
    %748 = vector.multi_reduction <maximumf>, %747, %cst_701 [0] : vector<2x32xf32> to vector<32xf32>
    %749 = vector.shape_cast %748 : vector<32xf32> to vector<1x32xf32>
    %c4_702 = arith.constant 4 : index
    %c2_703 = arith.constant 2 : index
    %c0_704 = arith.constant 0 : index
    %750 = vector.load %arg9[%c4_702, %c2_703, %c0_704] : memref<7x7x32xf32, #tpu.memory_space<vmem>>, vector<1x1x32xf32>
    %751 = vector.shape_cast %750 : vector<1x1x32xf32> to vector<1x32xf32>
    %752 = vector.shape_cast %749 : vector<1x32xf32> to vector<1x1x32xf32>
    tpu.vector_store %arg9[%c4_702, %c2_703, %c0_704], %752 {strides = array<i32>} : memref<7x7x32xf32, #tpu.memory_space<vmem>>, vector<1x1x32xf32>,
    %753 = vector.extract_strided_slice %734 {offsets = [6, 0], sizes = [2, 32], strides = [1, 1]} : vector<14x32xf32> to vector<2x32xf32>
    %cst_705 = arith.constant dense<0xFF800000> : vector<32xf32>
    %754 = vector.multi_reduction <maximumf>, %753, %cst_705 [0] : vector<2x32xf32> to vector<32xf32>
    %755 = vector.shape_cast %754 : vector<32xf32> to vector<1x32xf32>
    %c4_706 = arith.constant 4 : index
    %c3_707 = arith.constant 3 : index
    %c0_708 = arith.constant 0 : index
    %756 = vector.load %arg9[%c4_706, %c3_707, %c0_708] : memref<7x7x32xf32, #tpu.memory_space<vmem>>, vector<1x1x32xf32>
    %757 = vector.shape_cast %756 : vector<1x1x32xf32> to vector<1x32xf32>
    %758 = vector.shape_cast %755 : vector<1x32xf32> to vector<1x1x32xf32>
    tpu.vector_store %arg9[%c4_706, %c3_707, %c0_708], %758 {strides = array<i32>} : memref<7x7x32xf32, #tpu.memory_space<vmem>>, vector<1x1x32xf32>,
    %759 = vector.extract_strided_slice %734 {offsets = [8, 0], sizes = [2, 32], strides = [1, 1]} : vector<14x32xf32> to vector<2x32xf32>
    %cst_709 = arith.constant dense<0xFF800000> : vector<32xf32>
    %760 = vector.multi_reduction <maximumf>, %759, %cst_709 [0] : vector<2x32xf32> to vector<32xf32>
    %761 = vector.shape_cast %760 : vector<32xf32> to vector<1x32xf32>
    %c4_710 = arith.constant 4 : index
    %c4_711 = arith.constant 4 : index
    %c0_712 = arith.constant 0 : index
    %762 = vector.load %arg9[%c4_710, %c4_711, %c0_712] : memref<7x7x32xf32, #tpu.memory_space<vmem>>, vector<1x1x32xf32>
    %763 = vector.shape_cast %762 : vector<1x1x32xf32> to vector<1x32xf32>
    %764 = vector.shape_cast %761 : vector<1x32xf32> to vector<1x1x32xf32>
    tpu.vector_store %arg9[%c4_710, %c4_711, %c0_712], %764 {strides = array<i32>} : memref<7x7x32xf32, #tpu.memory_space<vmem>>, vector<1x1x32xf32>,
    %765 = vector.extract_strided_slice %734 {offsets = [10, 0], sizes = [2, 32], strides = [1, 1]} : vector<14x32xf32> to vector<2x32xf32>
    %cst_713 = arith.constant dense<0xFF800000> : vector<32xf32>
    %766 = vector.multi_reduction <maximumf>, %765, %cst_713 [0] : vector<2x32xf32> to vector<32xf32>
    %767 = vector.shape_cast %766 : vector<32xf32> to vector<1x32xf32>
    %c4_714 = arith.constant 4 : index
    %c5_715 = arith.constant 5 : index
    %c0_716 = arith.constant 0 : index
    %768 = vector.load %arg9[%c4_714, %c5_715, %c0_716] : memref<7x7x32xf32, #tpu.memory_space<vmem>>, vector<1x1x32xf32>
    %769 = vector.shape_cast %768 : vector<1x1x32xf32> to vector<1x32xf32>
    %770 = vector.shape_cast %767 : vector<1x32xf32> to vector<1x1x32xf32>
    tpu.vector_store %arg9[%c4_714, %c5_715, %c0_716], %770 {strides = array<i32>} : memref<7x7x32xf32, #tpu.memory_space<vmem>>, vector<1x1x32xf32>,
    %771 = vector.extract_strided_slice %734 {offsets = [12, 0], sizes = [2, 32], strides = [1, 1]} : vector<14x32xf32> to vector<2x32xf32>
    %cst_717 = arith.constant dense<0xFF800000> : vector<32xf32>
    %772 = vector.multi_reduction <maximumf>, %771, %cst_717 [0] : vector<2x32xf32> to vector<32xf32>
    %773 = vector.shape_cast %772 : vector<32xf32> to vector<1x32xf32>
    %c4_718 = arith.constant 4 : index
    %c6_719 = arith.constant 6 : index
    %c0_720 = arith.constant 0 : index
    %774 = vector.load %arg9[%c4_718, %c6_719, %c0_720] : memref<7x7x32xf32, #tpu.memory_space<vmem>>, vector<1x1x32xf32>
    %775 = vector.shape_cast %774 : vector<1x1x32xf32> to vector<1x32xf32>
    %776 = vector.shape_cast %773 : vector<1x32xf32> to vector<1x1x32xf32>
    tpu.vector_store %arg9[%c4_718, %c6_719, %c0_720], %776 {strides = array<i32>} : memref<7x7x32xf32, #tpu.memory_space<vmem>>, vector<1x1x32xf32>,
    %cst_721 = arith.constant 0.000000e+00 : f32
    %777 = vector.broadcast %cst_721 : f32 to vector<14x32xf32>
    %c0_722 = arith.constant 0 : index
    %c10_723 = arith.constant 10 : index
    %c0_724 = arith.constant 0 : index
    %c0_725 = arith.constant 0 : index
    %778 = vector.load %arg1[%c0_722, %c10_723, %c0_724, %c0_725] : memref<1x16x16x3xf32, #tpu.memory_space<vmem>>, vector<1x1x16x3xf32>
    %779 = vector.shape_cast %778 : vector<1x1x16x3xf32> to vector<16x3xf32>
    %780 = vector.extract_strided_slice %779 {offsets = [0, 0], sizes = [14, 3], strides = [1, 1]} : vector<16x3xf32> to vector<14x3xf32>
    %c0_726 = arith.constant 0 : index
    %c0_727 = arith.constant 0 : index
    %c0_728 = arith.constant 0 : index
    %c0_729 = arith.constant 0 : index
    %781 = vector.load %arg2[%c0_726, %c0_727, %c0_728, %c0_729] : memref<3x3x3x32xf32, #tpu.memory_space<vmem>>, vector<1x1x3x32xf32>
    %782 = vector.shape_cast %781 : vector<1x1x3x32xf32> to vector<3x32xf32>
    %cst_730 = arith.constant dense<0.000000e+00> : vector<14x32xf32>
    %783 = tpu.matmul %780, %782, %cst_730 {dimension_numbers = #tpu.dot_dimension_numbers<[1], [0], [0], [1], [0, 0, 1, 1], [], []>} : vector<14x3xf32>, vector<3x32xf32>, vector<14x32xf32> -> vector<14x32xf32>
    %784 = arith.addf %777, %783 : vector<14x32xf32>
    %785 = vector.extract_strided_slice %779 {offsets = [1, 0], sizes = [14, 3], strides = [1, 1]} : vector<16x3xf32> to vector<14x3xf32>
    %c0_731 = arith.constant 0 : index
    %c1_732 = arith.constant 1 : index
    %c0_733 = arith.constant 0 : index
    %c0_734 = arith.constant 0 : index
    %786 = vector.load %arg2[%c0_731, %c1_732, %c0_733, %c0_734] : memref<3x3x3x32xf32, #tpu.memory_space<vmem>>, vector<1x1x3x32xf32>
    %787 = vector.shape_cast %786 : vector<1x1x3x32xf32> to vector<3x32xf32>
    %cst_735 = arith.constant dense<0.000000e+00> : vector<14x32xf32>
    %788 = tpu.matmul %785, %787, %cst_735 {dimension_numbers = #tpu.dot_dimension_numbers<[1], [0], [0], [1], [0, 0, 1, 1], [], []>} : vector<14x3xf32>, vector<3x32xf32>, vector<14x32xf32> -> vector<14x32xf32>
    %789 = arith.addf %784, %788 : vector<14x32xf32>
    %790 = vector.extract_strided_slice %779 {offsets = [2, 0], sizes = [14, 3], strides = [1, 1]} : vector<16x3xf32> to vector<14x3xf32>
    %c0_736 = arith.constant 0 : index
    %c2_737 = arith.constant 2 : index
    %c0_738 = arith.constant 0 : index
    %c0_739 = arith.constant 0 : index
    %791 = vector.load %arg2[%c0_736, %c2_737, %c0_738, %c0_739] : memref<3x3x3x32xf32, #tpu.memory_space<vmem>>, vector<1x1x3x32xf32>
    %792 = vector.shape_cast %791 : vector<1x1x3x32xf32> to vector<3x32xf32>
    %cst_740 = arith.constant dense<0.000000e+00> : vector<14x32xf32>
    %793 = tpu.matmul %790, %792, %cst_740 {dimension_numbers = #tpu.dot_dimension_numbers<[1], [0], [0], [1], [0, 0, 1, 1], [], []>} : vector<14x3xf32>, vector<3x32xf32>, vector<14x32xf32> -> vector<14x32xf32>
    %794 = arith.addf %789, %793 : vector<14x32xf32>
    %c0_741 = arith.constant 0 : index
    %c11_742 = arith.constant 11 : index
    %c0_743 = arith.constant 0 : index
    %c0_744 = arith.constant 0 : index
    %795 = vector.load %arg1[%c0_741, %c11_742, %c0_743, %c0_744] : memref<1x16x16x3xf32, #tpu.memory_space<vmem>>, vector<1x1x16x3xf32>
    %796 = vector.shape_cast %795 : vector<1x1x16x3xf32> to vector<16x3xf32>
    %797 = vector.extract_strided_slice %796 {offsets = [0, 0], sizes = [14, 3], strides = [1, 1]} : vector<16x3xf32> to vector<14x3xf32>
    %c1_745 = arith.constant 1 : index
    %c0_746 = arith.constant 0 : index
    %c0_747 = arith.constant 0 : index
    %c0_748 = arith.constant 0 : index
    %798 = vector.load %arg2[%c1_745, %c0_746, %c0_747, %c0_748] : memref<3x3x3x32xf32, #tpu.memory_space<vmem>>, vector<1x1x3x32xf32>
    %799 = vector.shape_cast %798 : vector<1x1x3x32xf32> to vector<3x32xf32>
    %cst_749 = arith.constant dense<0.000000e+00> : vector<14x32xf32>
    %800 = tpu.matmul %797, %799, %cst_749 {dimension_numbers = #tpu.dot_dimension_numbers<[1], [0], [0], [1], [0, 0, 1, 1], [], []>} : vector<14x3xf32>, vector<3x32xf32>, vector<14x32xf32> -> vector<14x32xf32>
    %801 = arith.addf %794, %800 : vector<14x32xf32>
    %802 = vector.extract_strided_slice %796 {offsets = [1, 0], sizes = [14, 3], strides = [1, 1]} : vector<16x3xf32> to vector<14x3xf32>
    %c1_750 = arith.constant 1 : index
    %c1_751 = arith.constant 1 : index
    %c0_752 = arith.constant 0 : index
    %c0_753 = arith.constant 0 : index
    %803 = vector.load %arg2[%c1_750, %c1_751, %c0_752, %c0_753] : memref<3x3x3x32xf32, #tpu.memory_space<vmem>>, vector<1x1x3x32xf32>
    %804 = vector.shape_cast %803 : vector<1x1x3x32xf32> to vector<3x32xf32>
    %cst_754 = arith.constant dense<0.000000e+00> : vector<14x32xf32>
    %805 = tpu.matmul %802, %804, %cst_754 {dimension_numbers = #tpu.dot_dimension_numbers<[1], [0], [0], [1], [0, 0, 1, 1], [], []>} : vector<14x3xf32>, vector<3x32xf32>, vector<14x32xf32> -> vector<14x32xf32>
    %806 = arith.addf %801, %805 : vector<14x32xf32>
    %807 = vector.extract_strided_slice %796 {offsets = [2, 0], sizes = [14, 3], strides = [1, 1]} : vector<16x3xf32> to vector<14x3xf32>
    %c1_755 = arith.constant 1 : index
    %c2_756 = arith.constant 2 : index
    %c0_757 = arith.constant 0 : index
    %c0_758 = arith.constant 0 : index
    %808 = vector.load %arg2[%c1_755, %c2_756, %c0_757, %c0_758] : memref<3x3x3x32xf32, #tpu.memory_space<vmem>>, vector<1x1x3x32xf32>
    %809 = vector.shape_cast %808 : vector<1x1x3x32xf32> to vector<3x32xf32>
    %cst_759 = arith.constant dense<0.000000e+00> : vector<14x32xf32>
    %810 = tpu.matmul %807, %809, %cst_759 {dimension_numbers = #tpu.dot_dimension_numbers<[1], [0], [0], [1], [0, 0, 1, 1], [], []>} : vector<14x3xf32>, vector<3x32xf32>, vector<14x32xf32> -> vector<14x32xf32>
    %811 = arith.addf %806, %810 : vector<14x32xf32>
    %c0_760 = arith.constant 0 : index
    %c12 = arith.constant 12 : index
    %c0_761 = arith.constant 0 : index
    %c0_762 = arith.constant 0 : index
    %812 = vector.load %arg1[%c0_760, %c12, %c0_761, %c0_762] : memref<1x16x16x3xf32, #tpu.memory_space<vmem>>, vector<1x1x16x3xf32>
    %813 = vector.shape_cast %812 : vector<1x1x16x3xf32> to vector<16x3xf32>
    %814 = vector.extract_strided_slice %813 {offsets = [0, 0], sizes = [14, 3], strides = [1, 1]} : vector<16x3xf32> to vector<14x3xf32>
    %c2_763 = arith.constant 2 : index
    %c0_764 = arith.constant 0 : index
    %c0_765 = arith.constant 0 : index
    %c0_766 = arith.constant 0 : index
    %815 = vector.load %arg2[%c2_763, %c0_764, %c0_765, %c0_766] : memref<3x3x3x32xf32, #tpu.memory_space<vmem>>, vector<1x1x3x32xf32>
    %816 = vector.shape_cast %815 : vector<1x1x3x32xf32> to vector<3x32xf32>
    %cst_767 = arith.constant dense<0.000000e+00> : vector<14x32xf32>
    %817 = tpu.matmul %814, %816, %cst_767 {dimension_numbers = #tpu.dot_dimension_numbers<[1], [0], [0], [1], [0, 0, 1, 1], [], []>} : vector<14x3xf32>, vector<3x32xf32>, vector<14x32xf32> -> vector<14x32xf32>
    %818 = arith.addf %811, %817 : vector<14x32xf32>
    %819 = vector.extract_strided_slice %813 {offsets = [1, 0], sizes = [14, 3], strides = [1, 1]} : vector<16x3xf32> to vector<14x3xf32>
    %c2_768 = arith.constant 2 : index
    %c1_769 = arith.constant 1 : index
    %c0_770 = arith.constant 0 : index
    %c0_771 = arith.constant 0 : index
    %820 = vector.load %arg2[%c2_768, %c1_769, %c0_770, %c0_771] : memref<3x3x3x32xf32, #tpu.memory_space<vmem>>, vector<1x1x3x32xf32>
    %821 = vector.shape_cast %820 : vector<1x1x3x32xf32> to vector<3x32xf32>
    %cst_772 = arith.constant dense<0.000000e+00> : vector<14x32xf32>
    %822 = tpu.matmul %819, %821, %cst_772 {dimension_numbers = #tpu.dot_dimension_numbers<[1], [0], [0], [1], [0, 0, 1, 1], [], []>} : vector<14x3xf32>, vector<3x32xf32>, vector<14x32xf32> -> vector<14x32xf32>
    %823 = arith.addf %818, %822 : vector<14x32xf32>
    %824 = vector.extract_strided_slice %813 {offsets = [2, 0], sizes = [14, 3], strides = [1, 1]} : vector<16x3xf32> to vector<14x3xf32>
    %c2_773 = arith.constant 2 : index
    %c2_774 = arith.constant 2 : index
    %c0_775 = arith.constant 0 : index
    %c0_776 = arith.constant 0 : index
    %825 = vector.load %arg2[%c2_773, %c2_774, %c0_775, %c0_776] : memref<3x3x3x32xf32, #tpu.memory_space<vmem>>, vector<1x1x3x32xf32>
    %826 = vector.shape_cast %825 : vector<1x1x3x32xf32> to vector<3x32xf32>
    %cst_777 = arith.constant dense<0.000000e+00> : vector<14x32xf32>
    %827 = tpu.matmul %824, %826, %cst_777 {dimension_numbers = #tpu.dot_dimension_numbers<[1], [0], [0], [1], [0, 0, 1, 1], [], []>} : vector<14x3xf32>, vector<3x32xf32>, vector<14x32xf32> -> vector<14x32xf32>
    %828 = arith.addf %823, %827 : vector<14x32xf32>
    %829 = vector.broadcast %0 : vector<1x32xf32> to vector<14x32xf32>
    %830 = arith.addf %828, %829 : vector<14x32xf32>
    %cst_778 = arith.constant 0.000000e+00 : f32
    %831 = vector.broadcast %cst_778 : f32 to vector<14x32xf32>
    %832 = arith.maximumf %830, %831 : vector<14x32xf32>
    %cst_779 = arith.constant 0.000000e+00 : f32
    %833 = vector.broadcast %cst_779 : f32 to vector<14x32xf32>
    %c0_780 = arith.constant 0 : index
    %c11_781 = arith.constant 11 : index
    %c0_782 = arith.constant 0 : index
    %c0_783 = arith.constant 0 : index
    %834 = vector.load %arg1[%c0_780, %c11_781, %c0_782, %c0_783] : memref<1x16x16x3xf32, #tpu.memory_space<vmem>>, vector<1x1x16x3xf32>
    %835 = vector.shape_cast %834 : vector<1x1x16x3xf32> to vector<16x3xf32>
    %836 = vector.extract_strided_slice %835 {offsets = [0, 0], sizes = [14, 3], strides = [1, 1]} : vector<16x3xf32> to vector<14x3xf32>
    %c0_784 = arith.constant 0 : index
    %c0_785 = arith.constant 0 : index
    %c0_786 = arith.constant 0 : index
    %c0_787 = arith.constant 0 : index
    %837 = vector.load %arg2[%c0_784, %c0_785, %c0_786, %c0_787] : memref<3x3x3x32xf32, #tpu.memory_space<vmem>>, vector<1x1x3x32xf32>
    %838 = vector.shape_cast %837 : vector<1x1x3x32xf32> to vector<3x32xf32>
    %cst_788 = arith.constant dense<0.000000e+00> : vector<14x32xf32>
    %839 = tpu.matmul %836, %838, %cst_788 {dimension_numbers = #tpu.dot_dimension_numbers<[1], [0], [0], [1], [0, 0, 1, 1], [], []>} : vector<14x3xf32>, vector<3x32xf32>, vector<14x32xf32> -> vector<14x32xf32>
    %840 = arith.addf %833, %839 : vector<14x32xf32>
    %841 = vector.extract_strided_slice %835 {offsets = [1, 0], sizes = [14, 3], strides = [1, 1]} : vector<16x3xf32> to vector<14x3xf32>
    %c0_789 = arith.constant 0 : index
    %c1_790 = arith.constant 1 : index
    %c0_791 = arith.constant 0 : index
    %c0_792 = arith.constant 0 : index
    %842 = vector.load %arg2[%c0_789, %c1_790, %c0_791, %c0_792] : memref<3x3x3x32xf32, #tpu.memory_space<vmem>>, vector<1x1x3x32xf32>
    %843 = vector.shape_cast %842 : vector<1x1x3x32xf32> to vector<3x32xf32>
    %cst_793 = arith.constant dense<0.000000e+00> : vector<14x32xf32>
    %844 = tpu.matmul %841, %843, %cst_793 {dimension_numbers = #tpu.dot_dimension_numbers<[1], [0], [0], [1], [0, 0, 1, 1], [], []>} : vector<14x3xf32>, vector<3x32xf32>, vector<14x32xf32> -> vector<14x32xf32>
    %845 = arith.addf %840, %844 : vector<14x32xf32>
    %846 = vector.extract_strided_slice %835 {offsets = [2, 0], sizes = [14, 3], strides = [1, 1]} : vector<16x3xf32> to vector<14x3xf32>
    %c0_794 = arith.constant 0 : index
    %c2_795 = arith.constant 2 : index
    %c0_796 = arith.constant 0 : index
    %c0_797 = arith.constant 0 : index
    %847 = vector.load %arg2[%c0_794, %c2_795, %c0_796, %c0_797] : memref<3x3x3x32xf32, #tpu.memory_space<vmem>>, vector<1x1x3x32xf32>
    %848 = vector.shape_cast %847 : vector<1x1x3x32xf32> to vector<3x32xf32>
    %cst_798 = arith.constant dense<0.000000e+00> : vector<14x32xf32>
    %849 = tpu.matmul %846, %848, %cst_798 {dimension_numbers = #tpu.dot_dimension_numbers<[1], [0], [0], [1], [0, 0, 1, 1], [], []>} : vector<14x3xf32>, vector<3x32xf32>, vector<14x32xf32> -> vector<14x32xf32>
    %850 = arith.addf %845, %849 : vector<14x32xf32>
    %c0_799 = arith.constant 0 : index
    %c12_800 = arith.constant 12 : index
    %c0_801 = arith.constant 0 : index
    %c0_802 = arith.constant 0 : index
    %851 = vector.load %arg1[%c0_799, %c12_800, %c0_801, %c0_802] : memref<1x16x16x3xf32, #tpu.memory_space<vmem>>, vector<1x1x16x3xf32>
    %852 = vector.shape_cast %851 : vector<1x1x16x3xf32> to vector<16x3xf32>
    %853 = vector.extract_strided_slice %852 {offsets = [0, 0], sizes = [14, 3], strides = [1, 1]} : vector<16x3xf32> to vector<14x3xf32>
    %c1_803 = arith.constant 1 : index
    %c0_804 = arith.constant 0 : index
    %c0_805 = arith.constant 0 : index
    %c0_806 = arith.constant 0 : index
    %854 = vector.load %arg2[%c1_803, %c0_804, %c0_805, %c0_806] : memref<3x3x3x32xf32, #tpu.memory_space<vmem>>, vector<1x1x3x32xf32>
    %855 = vector.shape_cast %854 : vector<1x1x3x32xf32> to vector<3x32xf32>
    %cst_807 = arith.constant dense<0.000000e+00> : vector<14x32xf32>
    %856 = tpu.matmul %853, %855, %cst_807 {dimension_numbers = #tpu.dot_dimension_numbers<[1], [0], [0], [1], [0, 0, 1, 1], [], []>} : vector<14x3xf32>, vector<3x32xf32>, vector<14x32xf32> -> vector<14x32xf32>
    %857 = arith.addf %850, %856 : vector<14x32xf32>
    %858 = vector.extract_strided_slice %852 {offsets = [1, 0], sizes = [14, 3], strides = [1, 1]} : vector<16x3xf32> to vector<14x3xf32>
    %c1_808 = arith.constant 1 : index
    %c1_809 = arith.constant 1 : index
    %c0_810 = arith.constant 0 : index
    %c0_811 = arith.constant 0 : index
    %859 = vector.load %arg2[%c1_808, %c1_809, %c0_810, %c0_811] : memref<3x3x3x32xf32, #tpu.memory_space<vmem>>, vector<1x1x3x32xf32>
    %860 = vector.shape_cast %859 : vector<1x1x3x32xf32> to vector<3x32xf32>
    %cst_812 = arith.constant dense<0.000000e+00> : vector<14x32xf32>
    %861 = tpu.matmul %858, %860, %cst_812 {dimension_numbers = #tpu.dot_dimension_numbers<[1], [0], [0], [1], [0, 0, 1, 1], [], []>} : vector<14x3xf32>, vector<3x32xf32>, vector<14x32xf32> -> vector<14x32xf32>
    %862 = arith.addf %857, %861 : vector<14x32xf32>
    %863 = vector.extract_strided_slice %852 {offsets = [2, 0], sizes = [14, 3], strides = [1, 1]} : vector<16x3xf32> to vector<14x3xf32>
    %c1_813 = arith.constant 1 : index
    %c2_814 = arith.constant 2 : index
    %c0_815 = arith.constant 0 : index
    %c0_816 = arith.constant 0 : index
    %864 = vector.load %arg2[%c1_813, %c2_814, %c0_815, %c0_816] : memref<3x3x3x32xf32, #tpu.memory_space<vmem>>, vector<1x1x3x32xf32>
    %865 = vector.shape_cast %864 : vector<1x1x3x32xf32> to vector<3x32xf32>
    %cst_817 = arith.constant dense<0.000000e+00> : vector<14x32xf32>
    %866 = tpu.matmul %863, %865, %cst_817 {dimension_numbers = #tpu.dot_dimension_numbers<[1], [0], [0], [1], [0, 0, 1, 1], [], []>} : vector<14x3xf32>, vector<3x32xf32>, vector<14x32xf32> -> vector<14x32xf32>
    %867 = arith.addf %862, %866 : vector<14x32xf32>
    %c0_818 = arith.constant 0 : index
    %c13 = arith.constant 13 : index
    %c0_819 = arith.constant 0 : index
    %c0_820 = arith.constant 0 : index
    %868 = vector.load %arg1[%c0_818, %c13, %c0_819, %c0_820] : memref<1x16x16x3xf32, #tpu.memory_space<vmem>>, vector<1x1x16x3xf32>
    %869 = vector.shape_cast %868 : vector<1x1x16x3xf32> to vector<16x3xf32>
    %870 = vector.extract_strided_slice %869 {offsets = [0, 0], sizes = [14, 3], strides = [1, 1]} : vector<16x3xf32> to vector<14x3xf32>
    %c2_821 = arith.constant 2 : index
    %c0_822 = arith.constant 0 : index
    %c0_823 = arith.constant 0 : index
    %c0_824 = arith.constant 0 : index
    %871 = vector.load %arg2[%c2_821, %c0_822, %c0_823, %c0_824] : memref<3x3x3x32xf32, #tpu.memory_space<vmem>>, vector<1x1x3x32xf32>
    %872 = vector.shape_cast %871 : vector<1x1x3x32xf32> to vector<3x32xf32>
    %cst_825 = arith.constant dense<0.000000e+00> : vector<14x32xf32>
    %873 = tpu.matmul %870, %872, %cst_825 {dimension_numbers = #tpu.dot_dimension_numbers<[1], [0], [0], [1], [0, 0, 1, 1], [], []>} : vector<14x3xf32>, vector<3x32xf32>, vector<14x32xf32> -> vector<14x32xf32>
    %874 = arith.addf %867, %873 : vector<14x32xf32>
    %875 = vector.extract_strided_slice %869 {offsets = [1, 0], sizes = [14, 3], strides = [1, 1]} : vector<16x3xf32> to vector<14x3xf32>
    %c2_826 = arith.constant 2 : index
    %c1_827 = arith.constant 1 : index
    %c0_828 = arith.constant 0 : index
    %c0_829 = arith.constant 0 : index
    %876 = vector.load %arg2[%c2_826, %c1_827, %c0_828, %c0_829] : memref<3x3x3x32xf32, #tpu.memory_space<vmem>>, vector<1x1x3x32xf32>
    %877 = vector.shape_cast %876 : vector<1x1x3x32xf32> to vector<3x32xf32>
    %cst_830 = arith.constant dense<0.000000e+00> : vector<14x32xf32>
    %878 = tpu.matmul %875, %877, %cst_830 {dimension_numbers = #tpu.dot_dimension_numbers<[1], [0], [0], [1], [0, 0, 1, 1], [], []>} : vector<14x3xf32>, vector<3x32xf32>, vector<14x32xf32> -> vector<14x32xf32>
    %879 = arith.addf %874, %878 : vector<14x32xf32>
    %880 = vector.extract_strided_slice %869 {offsets = [2, 0], sizes = [14, 3], strides = [1, 1]} : vector<16x3xf32> to vector<14x3xf32>
    %c2_831 = arith.constant 2 : index
    %c2_832 = arith.constant 2 : index
    %c0_833 = arith.constant 0 : index
    %c0_834 = arith.constant 0 : index
    %881 = vector.load %arg2[%c2_831, %c2_832, %c0_833, %c0_834] : memref<3x3x3x32xf32, #tpu.memory_space<vmem>>, vector<1x1x3x32xf32>
    %882 = vector.shape_cast %881 : vector<1x1x3x32xf32> to vector<3x32xf32>
    %cst_835 = arith.constant dense<0.000000e+00> : vector<14x32xf32>
    %883 = tpu.matmul %880, %882, %cst_835 {dimension_numbers = #tpu.dot_dimension_numbers<[1], [0], [0], [1], [0, 0, 1, 1], [], []>} : vector<14x3xf32>, vector<3x32xf32>, vector<14x32xf32> -> vector<14x32xf32>
    %884 = arith.addf %879, %883 : vector<14x32xf32>
    %885 = vector.broadcast %0 : vector<1x32xf32> to vector<14x32xf32>
    %886 = arith.addf %884, %885 : vector<14x32xf32>
    %cst_836 = arith.constant 0.000000e+00 : f32
    %887 = vector.broadcast %cst_836 : f32 to vector<14x32xf32>
    %888 = arith.maximumf %886, %887 : vector<14x32xf32>
    %889 = arith.maximumf %832, %888 : vector<14x32xf32>
    %890 = vector.extract_strided_slice %889 {offsets = [0, 0], sizes = [2, 32], strides = [1, 1]} : vector<14x32xf32> to vector<2x32xf32>
    %cst_837 = arith.constant dense<0xFF800000> : vector<32xf32>
    %891 = vector.multi_reduction <maximumf>, %890, %cst_837 [0] : vector<2x32xf32> to vector<32xf32>
    %892 = vector.shape_cast %891 : vector<32xf32> to vector<1x32xf32>
    %c5_838 = arith.constant 5 : index
    %c0_839 = arith.constant 0 : index
    %c0_840 = arith.constant 0 : index
    %893 = vector.load %arg9[%c5_838, %c0_839, %c0_840] : memref<7x7x32xf32, #tpu.memory_space<vmem>>, vector<1x1x32xf32>
    %894 = vector.shape_cast %893 : vector<1x1x32xf32> to vector<1x32xf32>
    %895 = vector.shape_cast %892 : vector<1x32xf32> to vector<1x1x32xf32>
    tpu.vector_store %arg9[%c5_838, %c0_839, %c0_840], %895 {strides = array<i32>} : memref<7x7x32xf32, #tpu.memory_space<vmem>>, vector<1x1x32xf32>,
    %896 = vector.extract_strided_slice %889 {offsets = [2, 0], sizes = [2, 32], strides = [1, 1]} : vector<14x32xf32> to vector<2x32xf32>
    %cst_841 = arith.constant dense<0xFF800000> : vector<32xf32>
    %897 = vector.multi_reduction <maximumf>, %896, %cst_841 [0] : vector<2x32xf32> to vector<32xf32>
    %898 = vector.shape_cast %897 : vector<32xf32> to vector<1x32xf32>
    %c5_842 = arith.constant 5 : index
    %c1_843 = arith.constant 1 : index
    %c0_844 = arith.constant 0 : index
    %899 = vector.load %arg9[%c5_842, %c1_843, %c0_844] : memref<7x7x32xf32, #tpu.memory_space<vmem>>, vector<1x1x32xf32>
    %900 = vector.shape_cast %899 : vector<1x1x32xf32> to vector<1x32xf32>
    %901 = vector.shape_cast %898 : vector<1x32xf32> to vector<1x1x32xf32>
    tpu.vector_store %arg9[%c5_842, %c1_843, %c0_844], %901 {strides = array<i32>} : memref<7x7x32xf32, #tpu.memory_space<vmem>>, vector<1x1x32xf32>,
    %902 = vector.extract_strided_slice %889 {offsets = [4, 0], sizes = [2, 32], strides = [1, 1]} : vector<14x32xf32> to vector<2x32xf32>
    %cst_845 = arith.constant dense<0xFF800000> : vector<32xf32>
    %903 = vector.multi_reduction <maximumf>, %902, %cst_845 [0] : vector<2x32xf32> to vector<32xf32>
    %904 = vector.shape_cast %903 : vector<32xf32> to vector<1x32xf32>
    %c5_846 = arith.constant 5 : index
    %c2_847 = arith.constant 2 : index
    %c0_848 = arith.constant 0 : index
    %905 = vector.load %arg9[%c5_846, %c2_847, %c0_848] : memref<7x7x32xf32, #tpu.memory_space<vmem>>, vector<1x1x32xf32>
    %906 = vector.shape_cast %905 : vector<1x1x32xf32> to vector<1x32xf32>
    %907 = vector.shape_cast %904 : vector<1x32xf32> to vector<1x1x32xf32>
    tpu.vector_store %arg9[%c5_846, %c2_847, %c0_848], %907 {strides = array<i32>} : memref<7x7x32xf32, #tpu.memory_space<vmem>>, vector<1x1x32xf32>,
    %908 = vector.extract_strided_slice %889 {offsets = [6, 0], sizes = [2, 32], strides = [1, 1]} : vector<14x32xf32> to vector<2x32xf32>
    %cst_849 = arith.constant dense<0xFF800000> : vector<32xf32>
    %909 = vector.multi_reduction <maximumf>, %908, %cst_849 [0] : vector<2x32xf32> to vector<32xf32>
    %910 = vector.shape_cast %909 : vector<32xf32> to vector<1x32xf32>
    %c5_850 = arith.constant 5 : index
    %c3_851 = arith.constant 3 : index
    %c0_852 = arith.constant 0 : index
    %911 = vector.load %arg9[%c5_850, %c3_851, %c0_852] : memref<7x7x32xf32, #tpu.memory_space<vmem>>, vector<1x1x32xf32>
    %912 = vector.shape_cast %911 : vector<1x1x32xf32> to vector<1x32xf32>
    %913 = vector.shape_cast %910 : vector<1x32xf32> to vector<1x1x32xf32>
    tpu.vector_store %arg9[%c5_850, %c3_851, %c0_852], %913 {strides = array<i32>} : memref<7x7x32xf32, #tpu.memory_space<vmem>>, vector<1x1x32xf32>,
    %914 = vector.extract_strided_slice %889 {offsets = [8, 0], sizes = [2, 32], strides = [1, 1]} : vector<14x32xf32> to vector<2x32xf32>
    %cst_853 = arith.constant dense<0xFF800000> : vector<32xf32>
    %915 = vector.multi_reduction <maximumf>, %914, %cst_853 [0] : vector<2x32xf32> to vector<32xf32>
    %916 = vector.shape_cast %915 : vector<32xf32> to vector<1x32xf32>
    %c5_854 = arith.constant 5 : index
    %c4_855 = arith.constant 4 : index
    %c0_856 = arith.constant 0 : index
    %917 = vector.load %arg9[%c5_854, %c4_855, %c0_856] : memref<7x7x32xf32, #tpu.memory_space<vmem>>, vector<1x1x32xf32>
    %918 = vector.shape_cast %917 : vector<1x1x32xf32> to vector<1x32xf32>
    %919 = vector.shape_cast %916 : vector<1x32xf32> to vector<1x1x32xf32>
    tpu.vector_store %arg9[%c5_854, %c4_855, %c0_856], %919 {strides = array<i32>} : memref<7x7x32xf32, #tpu.memory_space<vmem>>, vector<1x1x32xf32>,
    %920 = vector.extract_strided_slice %889 {offsets = [10, 0], sizes = [2, 32], strides = [1, 1]} : vector<14x32xf32> to vector<2x32xf32>
    %cst_857 = arith.constant dense<0xFF800000> : vector<32xf32>
    %921 = vector.multi_reduction <maximumf>, %920, %cst_857 [0] : vector<2x32xf32> to vector<32xf32>
    %922 = vector.shape_cast %921 : vector<32xf32> to vector<1x32xf32>
    %c5_858 = arith.constant 5 : index
    %c5_859 = arith.constant 5 : index
    %c0_860 = arith.constant 0 : index
    %923 = vector.load %arg9[%c5_858, %c5_859, %c0_860] : memref<7x7x32xf32, #tpu.memory_space<vmem>>, vector<1x1x32xf32>
    %924 = vector.shape_cast %923 : vector<1x1x32xf32> to vector<1x32xf32>
    %925 = vector.shape_cast %922 : vector<1x32xf32> to vector<1x1x32xf32>
    tpu.vector_store %arg9[%c5_858, %c5_859, %c0_860], %925 {strides = array<i32>} : memref<7x7x32xf32, #tpu.memory_space<vmem>>, vector<1x1x32xf32>,
    %926 = vector.extract_strided_slice %889 {offsets = [12, 0], sizes = [2, 32], strides = [1, 1]} : vector<14x32xf32> to vector<2x32xf32>
    %cst_861 = arith.constant dense<0xFF800000> : vector<32xf32>
    %927 = vector.multi_reduction <maximumf>, %926, %cst_861 [0] : vector<2x32xf32> to vector<32xf32>
    %928 = vector.shape_cast %927 : vector<32xf32> to vector<1x32xf32>
    %c5_862 = arith.constant 5 : index
    %c6_863 = arith.constant 6 : index
    %c0_864 = arith.constant 0 : index
    %929 = vector.load %arg9[%c5_862, %c6_863, %c0_864] : memref<7x7x32xf32, #tpu.memory_space<vmem>>, vector<1x1x32xf32>
    %930 = vector.shape_cast %929 : vector<1x1x32xf32> to vector<1x32xf32>
    %931 = vector.shape_cast %928 : vector<1x32xf32> to vector<1x1x32xf32>
    tpu.vector_store %arg9[%c5_862, %c6_863, %c0_864], %931 {strides = array<i32>} : memref<7x7x32xf32, #tpu.memory_space<vmem>>, vector<1x1x32xf32>,
    %cst_865 = arith.constant 0.000000e+00 : f32
    %932 = vector.broadcast %cst_865 : f32 to vector<14x32xf32>
    %c0_866 = arith.constant 0 : index
    %c12_867 = arith.constant 12 : index
    %c0_868 = arith.constant 0 : index
    %c0_869 = arith.constant 0 : index
    %933 = vector.load %arg1[%c0_866, %c12_867, %c0_868, %c0_869] : memref<1x16x16x3xf32, #tpu.memory_space<vmem>>, vector<1x1x16x3xf32>
    %934 = vector.shape_cast %933 : vector<1x1x16x3xf32> to vector<16x3xf32>
    %935 = vector.extract_strided_slice %934 {offsets = [0, 0], sizes = [14, 3], strides = [1, 1]} : vector<16x3xf32> to vector<14x3xf32>
    %c0_870 = arith.constant 0 : index
    %c0_871 = arith.constant 0 : index
    %c0_872 = arith.constant 0 : index
    %c0_873 = arith.constant 0 : index
    %936 = vector.load %arg2[%c0_870, %c0_871, %c0_872, %c0_873] : memref<3x3x3x32xf32, #tpu.memory_space<vmem>>, vector<1x1x3x32xf32>
    %937 = vector.shape_cast %936 : vector<1x1x3x32xf32> to vector<3x32xf32>
    %cst_874 = arith.constant dense<0.000000e+00> : vector<14x32xf32>
    %938 = tpu.matmul %935, %937, %cst_874 {dimension_numbers = #tpu.dot_dimension_numbers<[1], [0], [0], [1], [0, 0, 1, 1], [], []>} : vector<14x3xf32>, vector<3x32xf32>, vector<14x32xf32> -> vector<14x32xf32>
    %939 = arith.addf %932, %938 : vector<14x32xf32>
    %940 = vector.extract_strided_slice %934 {offsets = [1, 0], sizes = [14, 3], strides = [1, 1]} : vector<16x3xf32> to vector<14x3xf32>
    %c0_875 = arith.constant 0 : index
    %c1_876 = arith.constant 1 : index
    %c0_877 = arith.constant 0 : index
    %c0_878 = arith.constant 0 : index
    %941 = vector.load %arg2[%c0_875, %c1_876, %c0_877, %c0_878] : memref<3x3x3x32xf32, #tpu.memory_space<vmem>>, vector<1x1x3x32xf32>
    %942 = vector.shape_cast %941 : vector<1x1x3x32xf32> to vector<3x32xf32>
    %cst_879 = arith.constant dense<0.000000e+00> : vector<14x32xf32>
    %943 = tpu.matmul %940, %942, %cst_879 {dimension_numbers = #tpu.dot_dimension_numbers<[1], [0], [0], [1], [0, 0, 1, 1], [], []>} : vector<14x3xf32>, vector<3x32xf32>, vector<14x32xf32> -> vector<14x32xf32>
    %944 = arith.addf %939, %943 : vector<14x32xf32>
    %945 = vector.extract_strided_slice %934 {offsets = [2, 0], sizes = [14, 3], strides = [1, 1]} : vector<16x3xf32> to vector<14x3xf32>
    %c0_880 = arith.constant 0 : index
    %c2_881 = arith.constant 2 : index
    %c0_882 = arith.constant 0 : index
    %c0_883 = arith.constant 0 : index
    %946 = vector.load %arg2[%c0_880, %c2_881, %c0_882, %c0_883] : memref<3x3x3x32xf32, #tpu.memory_space<vmem>>, vector<1x1x3x32xf32>
    %947 = vector.shape_cast %946 : vector<1x1x3x32xf32> to vector<3x32xf32>
    %cst_884 = arith.constant dense<0.000000e+00> : vector<14x32xf32>
    %948 = tpu.matmul %945, %947, %cst_884 {dimension_numbers = #tpu.dot_dimension_numbers<[1], [0], [0], [1], [0, 0, 1, 1], [], []>} : vector<14x3xf32>, vector<3x32xf32>, vector<14x32xf32> -> vector<14x32xf32>
    %949 = arith.addf %944, %948 : vector<14x32xf32>
    %c0_885 = arith.constant 0 : index
    %c13_886 = arith.constant 13 : index
    %c0_887 = arith.constant 0 : index
    %c0_888 = arith.constant 0 : index
    %950 = vector.load %arg1[%c0_885, %c13_886, %c0_887, %c0_888] : memref<1x16x16x3xf32, #tpu.memory_space<vmem>>, vector<1x1x16x3xf32>
    %951 = vector.shape_cast %950 : vector<1x1x16x3xf32> to vector<16x3xf32>
    %952 = vector.extract_strided_slice %951 {offsets = [0, 0], sizes = [14, 3], strides = [1, 1]} : vector<16x3xf32> to vector<14x3xf32>
    %c1_889 = arith.constant 1 : index
    %c0_890 = arith.constant 0 : index
    %c0_891 = arith.constant 0 : index
    %c0_892 = arith.constant 0 : index
    %953 = vector.load %arg2[%c1_889, %c0_890, %c0_891, %c0_892] : memref<3x3x3x32xf32, #tpu.memory_space<vmem>>, vector<1x1x3x32xf32>
    %954 = vector.shape_cast %953 : vector<1x1x3x32xf32> to vector<3x32xf32>
    %cst_893 = arith.constant dense<0.000000e+00> : vector<14x32xf32>
    %955 = tpu.matmul %952, %954, %cst_893 {dimension_numbers = #tpu.dot_dimension_numbers<[1], [0], [0], [1], [0, 0, 1, 1], [], []>} : vector<14x3xf32>, vector<3x32xf32>, vector<14x32xf32> -> vector<14x32xf32>
    %956 = arith.addf %949, %955 : vector<14x32xf32>
    %957 = vector.extract_strided_slice %951 {offsets = [1, 0], sizes = [14, 3], strides = [1, 1]} : vector<16x3xf32> to vector<14x3xf32>
    %c1_894 = arith.constant 1 : index
    %c1_895 = arith.constant 1 : index
    %c0_896 = arith.constant 0 : index
    %c0_897 = arith.constant 0 : index
    %958 = vector.load %arg2[%c1_894, %c1_895, %c0_896, %c0_897] : memref<3x3x3x32xf32, #tpu.memory_space<vmem>>, vector<1x1x3x32xf32>
    %959 = vector.shape_cast %958 : vector<1x1x3x32xf32> to vector<3x32xf32>
    %cst_898 = arith.constant dense<0.000000e+00> : vector<14x32xf32>
    %960 = tpu.matmul %957, %959, %cst_898 {dimension_numbers = #tpu.dot_dimension_numbers<[1], [0], [0], [1], [0, 0, 1, 1], [], []>} : vector<14x3xf32>, vector<3x32xf32>, vector<14x32xf32> -> vector<14x32xf32>
    %961 = arith.addf %956, %960 : vector<14x32xf32>
    %962 = vector.extract_strided_slice %951 {offsets = [2, 0], sizes = [14, 3], strides = [1, 1]} : vector<16x3xf32> to vector<14x3xf32>
    %c1_899 = arith.constant 1 : index
    %c2_900 = arith.constant 2 : index
    %c0_901 = arith.constant 0 : index
    %c0_902 = arith.constant 0 : index
    %963 = vector.load %arg2[%c1_899, %c2_900, %c0_901, %c0_902] : memref<3x3x3x32xf32, #tpu.memory_space<vmem>>, vector<1x1x3x32xf32>
    %964 = vector.shape_cast %963 : vector<1x1x3x32xf32> to vector<3x32xf32>
    %cst_903 = arith.constant dense<0.000000e+00> : vector<14x32xf32>
    %965 = tpu.matmul %962, %964, %cst_903 {dimension_numbers = #tpu.dot_dimension_numbers<[1], [0], [0], [1], [0, 0, 1, 1], [], []>} : vector<14x3xf32>, vector<3x32xf32>, vector<14x32xf32> -> vector<14x32xf32>
    %966 = arith.addf %961, %965 : vector<14x32xf32>
    %c0_904 = arith.constant 0 : index
    %c14 = arith.constant 14 : index
    %c0_905 = arith.constant 0 : index
    %c0_906 = arith.constant 0 : index
    %967 = vector.load %arg1[%c0_904, %c14, %c0_905, %c0_906] : memref<1x16x16x3xf32, #tpu.memory_space<vmem>>, vector<1x1x16x3xf32>
    %968 = vector.shape_cast %967 : vector<1x1x16x3xf32> to vector<16x3xf32>
    %969 = vector.extract_strided_slice %968 {offsets = [0, 0], sizes = [14, 3], strides = [1, 1]} : vector<16x3xf32> to vector<14x3xf32>
    %c2_907 = arith.constant 2 : index
    %c0_908 = arith.constant 0 : index
    %c0_909 = arith.constant 0 : index
    %c0_910 = arith.constant 0 : index
    %970 = vector.load %arg2[%c2_907, %c0_908, %c0_909, %c0_910] : memref<3x3x3x32xf32, #tpu.memory_space<vmem>>, vector<1x1x3x32xf32>
    %971 = vector.shape_cast %970 : vector<1x1x3x32xf32> to vector<3x32xf32>
    %cst_911 = arith.constant dense<0.000000e+00> : vector<14x32xf32>
    %972 = tpu.matmul %969, %971, %cst_911 {dimension_numbers = #tpu.dot_dimension_numbers<[1], [0], [0], [1], [0, 0, 1, 1], [], []>} : vector<14x3xf32>, vector<3x32xf32>, vector<14x32xf32> -> vector<14x32xf32>
    %973 = arith.addf %966, %972 : vector<14x32xf32>
    %974 = vector.extract_strided_slice %968 {offsets = [1, 0], sizes = [14, 3], strides = [1, 1]} : vector<16x3xf32> to vector<14x3xf32>
    %c2_912 = arith.constant 2 : index
    %c1_913 = arith.constant 1 : index
    %c0_914 = arith.constant 0 : index
    %c0_915 = arith.constant 0 : index
    %975 = vector.load %arg2[%c2_912, %c1_913, %c0_914, %c0_915] : memref<3x3x3x32xf32, #tpu.memory_space<vmem>>, vector<1x1x3x32xf32>
    %976 = vector.shape_cast %975 : vector<1x1x3x32xf32> to vector<3x32xf32>
    %cst_916 = arith.constant dense<0.000000e+00> : vector<14x32xf32>
    %977 = tpu.matmul %974, %976, %cst_916 {dimension_numbers = #tpu.dot_dimension_numbers<[1], [0], [0], [1], [0, 0, 1, 1], [], []>} : vector<14x3xf32>, vector<3x32xf32>, vector<14x32xf32> -> vector<14x32xf32>
    %978 = arith.addf %973, %977 : vector<14x32xf32>
    %979 = vector.extract_strided_slice %968 {offsets = [2, 0], sizes = [14, 3], strides = [1, 1]} : vector<16x3xf32> to vector<14x3xf32>
    %c2_917 = arith.constant 2 : index
    %c2_918 = arith.constant 2 : index
    %c0_919 = arith.constant 0 : index
    %c0_920 = arith.constant 0 : index
    %980 = vector.load %arg2[%c2_917, %c2_918, %c0_919, %c0_920] : memref<3x3x3x32xf32, #tpu.memory_space<vmem>>, vector<1x1x3x32xf32>
    %981 = vector.shape_cast %980 : vector<1x1x3x32xf32> to vector<3x32xf32>
    %cst_921 = arith.constant dense<0.000000e+00> : vector<14x32xf32>
    %982 = tpu.matmul %979, %981, %cst_921 {dimension_numbers = #tpu.dot_dimension_numbers<[1], [0], [0], [1], [0, 0, 1, 1], [], []>} : vector<14x3xf32>, vector<3x32xf32>, vector<14x32xf32> -> vector<14x32xf32>
    %983 = arith.addf %978, %982 : vector<14x32xf32>
    %984 = vector.broadcast %0 : vector<1x32xf32> to vector<14x32xf32>
    %985 = arith.addf %983, %984 : vector<14x32xf32>
    %cst_922 = arith.constant 0.000000e+00 : f32
    %986 = vector.broadcast %cst_922 : f32 to vector<14x32xf32>
    %987 = arith.maximumf %985, %986 : vector<14x32xf32>
    %cst_923 = arith.constant 0.000000e+00 : f32
    %988 = vector.broadcast %cst_923 : f32 to vector<14x32xf32>
    %c0_924 = arith.constant 0 : index
    %c13_925 = arith.constant 13 : index
    %c0_926 = arith.constant 0 : index
    %c0_927 = arith.constant 0 : index
    %989 = vector.load %arg1[%c0_924, %c13_925, %c0_926, %c0_927] : memref<1x16x16x3xf32, #tpu.memory_space<vmem>>, vector<1x1x16x3xf32>
    %990 = vector.shape_cast %989 : vector<1x1x16x3xf32> to vector<16x3xf32>
    %991 = vector.extract_strided_slice %990 {offsets = [0, 0], sizes = [14, 3], strides = [1, 1]} : vector<16x3xf32> to vector<14x3xf32>
    %c0_928 = arith.constant 0 : index
    %c0_929 = arith.constant 0 : index
    %c0_930 = arith.constant 0 : index
    %c0_931 = arith.constant 0 : index
    %992 = vector.load %arg2[%c0_928, %c0_929, %c0_930, %c0_931] : memref<3x3x3x32xf32, #tpu.memory_space<vmem>>, vector<1x1x3x32xf32>
    %993 = vector.shape_cast %992 : vector<1x1x3x32xf32> to vector<3x32xf32>
    %cst_932 = arith.constant dense<0.000000e+00> : vector<14x32xf32>
    %994 = tpu.matmul %991, %993, %cst_932 {dimension_numbers = #tpu.dot_dimension_numbers<[1], [0], [0], [1], [0, 0, 1, 1], [], []>} : vector<14x3xf32>, vector<3x32xf32>, vector<14x32xf32> -> vector<14x32xf32>
    %995 = arith.addf %988, %994 : vector<14x32xf32>
    %996 = vector.extract_strided_slice %990 {offsets = [1, 0], sizes = [14, 3], strides = [1, 1]} : vector<16x3xf32> to vector<14x3xf32>
    %c0_933 = arith.constant 0 : index
    %c1_934 = arith.constant 1 : index
    %c0_935 = arith.constant 0 : index
    %c0_936 = arith.constant 0 : index
    %997 = vector.load %arg2[%c0_933, %c1_934, %c0_935, %c0_936] : memref<3x3x3x32xf32, #tpu.memory_space<vmem>>, vector<1x1x3x32xf32>
    %998 = vector.shape_cast %997 : vector<1x1x3x32xf32> to vector<3x32xf32>
    %cst_937 = arith.constant dense<0.000000e+00> : vector<14x32xf32>
    %999 = tpu.matmul %996, %998, %cst_937 {dimension_numbers = #tpu.dot_dimension_numbers<[1], [0], [0], [1], [0, 0, 1, 1], [], []>} : vector<14x3xf32>, vector<3x32xf32>, vector<14x32xf32> -> vector<14x32xf32>
    %1000 = arith.addf %995, %999 : vector<14x32xf32>
    %1001 = vector.extract_strided_slice %990 {offsets = [2, 0], sizes = [14, 3], strides = [1, 1]} : vector<16x3xf32> to vector<14x3xf32>
    %c0_938 = arith.constant 0 : index
    %c2_939 = arith.constant 2 : index
    %c0_940 = arith.constant 0 : index
    %c0_941 = arith.constant 0 : index
    %1002 = vector.load %arg2[%c0_938, %c2_939, %c0_940, %c0_941] : memref<3x3x3x32xf32, #tpu.memory_space<vmem>>, vector<1x1x3x32xf32>
    %1003 = vector.shape_cast %1002 : vector<1x1x3x32xf32> to vector<3x32xf32>
    %cst_942 = arith.constant dense<0.000000e+00> : vector<14x32xf32>
    %1004 = tpu.matmul %1001, %1003, %cst_942 {dimension_numbers = #tpu.dot_dimension_numbers<[1], [0], [0], [1], [0, 0, 1, 1], [], []>} : vector<14x3xf32>, vector<3x32xf32>, vector<14x32xf32> -> vector<14x32xf32>
    %1005 = arith.addf %1000, %1004 : vector<14x32xf32>
    %c0_943 = arith.constant 0 : index
    %c14_944 = arith.constant 14 : index
    %c0_945 = arith.constant 0 : index
    %c0_946 = arith.constant 0 : index
    %1006 = vector.load %arg1[%c0_943, %c14_944, %c0_945, %c0_946] : memref<1x16x16x3xf32, #tpu.memory_space<vmem>>, vector<1x1x16x3xf32>
    %1007 = vector.shape_cast %1006 : vector<1x1x16x3xf32> to vector<16x3xf32>
    %1008 = vector.extract_strided_slice %1007 {offsets = [0, 0], sizes = [14, 3], strides = [1, 1]} : vector<16x3xf32> to vector<14x3xf32>
    %c1_947 = arith.constant 1 : index
    %c0_948 = arith.constant 0 : index
    %c0_949 = arith.constant 0 : index
    %c0_950 = arith.constant 0 : index
    %1009 = vector.load %arg2[%c1_947, %c0_948, %c0_949, %c0_950] : memref<3x3x3x32xf32, #tpu.memory_space<vmem>>, vector<1x1x3x32xf32>
    %1010 = vector.shape_cast %1009 : vector<1x1x3x32xf32> to vector<3x32xf32>
    %cst_951 = arith.constant dense<0.000000e+00> : vector<14x32xf32>
    %1011 = tpu.matmul %1008, %1010, %cst_951 {dimension_numbers = #tpu.dot_dimension_numbers<[1], [0], [0], [1], [0, 0, 1, 1], [], []>} : vector<14x3xf32>, vector<3x32xf32>, vector<14x32xf32> -> vector<14x32xf32>
    %1012 = arith.addf %1005, %1011 : vector<14x32xf32>
    %1013 = vector.extract_strided_slice %1007 {offsets = [1, 0], sizes = [14, 3], strides = [1, 1]} : vector<16x3xf32> to vector<14x3xf32>
    %c1_952 = arith.constant 1 : index
    %c1_953 = arith.constant 1 : index
    %c0_954 = arith.constant 0 : index
    %c0_955 = arith.constant 0 : index
    %1014 = vector.load %arg2[%c1_952, %c1_953, %c0_954, %c0_955] : memref<3x3x3x32xf32, #tpu.memory_space<vmem>>, vector<1x1x3x32xf32>
    %1015 = vector.shape_cast %1014 : vector<1x1x3x32xf32> to vector<3x32xf32>
    %cst_956 = arith.constant dense<0.000000e+00> : vector<14x32xf32>
    %1016 = tpu.matmul %1013, %1015, %cst_956 {dimension_numbers = #tpu.dot_dimension_numbers<[1], [0], [0], [1], [0, 0, 1, 1], [], []>} : vector<14x3xf32>, vector<3x32xf32>, vector<14x32xf32> -> vector<14x32xf32>
    %1017 = arith.addf %1012, %1016 : vector<14x32xf32>
    %1018 = vector.extract_strided_slice %1007 {offsets = [2, 0], sizes = [14, 3], strides = [1, 1]} : vector<16x3xf32> to vector<14x3xf32>
    %c1_957 = arith.constant 1 : index
    %c2_958 = arith.constant 2 : index
    %c0_959 = arith.constant 0 : index
    %c0_960 = arith.constant 0 : index
    %1019 = vector.load %arg2[%c1_957, %c2_958, %c0_959, %c0_960] : memref<3x3x3x32xf32, #tpu.memory_space<vmem>>, vector<1x1x3x32xf32>
    %1020 = vector.shape_cast %1019 : vector<1x1x3x32xf32> to vector<3x32xf32>
    %cst_961 = arith.constant dense<0.000000e+00> : vector<14x32xf32>
    %1021 = tpu.matmul %1018, %1020, %cst_961 {dimension_numbers = #tpu.dot_dimension_numbers<[1], [0], [0], [1], [0, 0, 1, 1], [], []>} : vector<14x3xf32>, vector<3x32xf32>, vector<14x32xf32> -> vector<14x32xf32>
    %1022 = arith.addf %1017, %1021 : vector<14x32xf32>
    %c0_962 = arith.constant 0 : index
    %c15 = arith.constant 15 : index
    %c0_963 = arith.constant 0 : index
    %c0_964 = arith.constant 0 : index
    %1023 = vector.load %arg1[%c0_962, %c15, %c0_963, %c0_964] : memref<1x16x16x3xf32, #tpu.memory_space<vmem>>, vector<1x1x16x3xf32>
    %1024 = vector.shape_cast %1023 : vector<1x1x16x3xf32> to vector<16x3xf32>
    %1025 = vector.extract_strided_slice %1024 {offsets = [0, 0], sizes = [14, 3], strides = [1, 1]} : vector<16x3xf32> to vector<14x3xf32>
    %c2_965 = arith.constant 2 : index
    %c0_966 = arith.constant 0 : index
    %c0_967 = arith.constant 0 : index
    %c0_968 = arith.constant 0 : index
    %1026 = vector.load %arg2[%c2_965, %c0_966, %c0_967, %c0_968] : memref<3x3x3x32xf32, #tpu.memory_space<vmem>>, vector<1x1x3x32xf32>
    %1027 = vector.shape_cast %1026 : vector<1x1x3x32xf32> to vector<3x32xf32>
    %cst_969 = arith.constant dense<0.000000e+00> : vector<14x32xf32>
    %1028 = tpu.matmul %1025, %1027, %cst_969 {dimension_numbers = #tpu.dot_dimension_numbers<[1], [0], [0], [1], [0, 0, 1, 1], [], []>} : vector<14x3xf32>, vector<3x32xf32>, vector<14x32xf32> -> vector<14x32xf32>
    %1029 = arith.addf %1022, %1028 : vector<14x32xf32>
    %1030 = vector.extract_strided_slice %1024 {offsets = [1, 0], sizes = [14, 3], strides = [1, 1]} : vector<16x3xf32> to vector<14x3xf32>
    %c2_970 = arith.constant 2 : index
    %c1_971 = arith.constant 1 : index
    %c0_972 = arith.constant 0 : index
    %c0_973 = arith.constant 0 : index
    %1031 = vector.load %arg2[%c2_970, %c1_971, %c0_972, %c0_973] : memref<3x3x3x32xf32, #tpu.memory_space<vmem>>, vector<1x1x3x32xf32>
    %1032 = vector.shape_cast %1031 : vector<1x1x3x32xf32> to vector<3x32xf32>
    %cst_974 = arith.constant dense<0.000000e+00> : vector<14x32xf32>
    %1033 = tpu.matmul %1030, %1032, %cst_974 {dimension_numbers = #tpu.dot_dimension_numbers<[1], [0], [0], [1], [0, 0, 1, 1], [], []>} : vector<14x3xf32>, vector<3x32xf32>, vector<14x32xf32> -> vector<14x32xf32>
    %1034 = arith.addf %1029, %1033 : vector<14x32xf32>
    %1035 = vector.extract_strided_slice %1024 {offsets = [2, 0], sizes = [14, 3], strides = [1, 1]} : vector<16x3xf32> to vector<14x3xf32>
    %c2_975 = arith.constant 2 : index
    %c2_976 = arith.constant 2 : index
    %c0_977 = arith.constant 0 : index
    %c0_978 = arith.constant 0 : index
    %1036 = vector.load %arg2[%c2_975, %c2_976, %c0_977, %c0_978] : memref<3x3x3x32xf32, #tpu.memory_space<vmem>>, vector<1x1x3x32xf32>
    %1037 = vector.shape_cast %1036 : vector<1x1x3x32xf32> to vector<3x32xf32>
    %cst_979 = arith.constant dense<0.000000e+00> : vector<14x32xf32>
    %1038 = tpu.matmul %1035, %1037, %cst_979 {dimension_numbers = #tpu.dot_dimension_numbers<[1], [0], [0], [1], [0, 0, 1, 1], [], []>} : vector<14x3xf32>, vector<3x32xf32>, vector<14x32xf32> -> vector<14x32xf32>
    %1039 = arith.addf %1034, %1038 : vector<14x32xf32>
    %1040 = vector.broadcast %0 : vector<1x32xf32> to vector<14x32xf32>
    %1041 = arith.addf %1039, %1040 : vector<14x32xf32>
    %cst_980 = arith.constant 0.000000e+00 : f32
    %1042 = vector.broadcast %cst_980 : f32 to vector<14x32xf32>
    %1043 = arith.maximumf %1041, %1042 : vector<14x32xf32>
    %1044 = arith.maximumf %987, %1043 : vector<14x32xf32>
    %1045 = vector.extract_strided_slice %1044 {offsets = [0, 0], sizes = [2, 32], strides = [1, 1]} : vector<14x32xf32> to vector<2x32xf32>
    %cst_981 = arith.constant dense<0xFF800000> : vector<32xf32>
    %1046 = vector.multi_reduction <maximumf>, %1045, %cst_981 [0] : vector<2x32xf32> to vector<32xf32>
    %1047 = vector.shape_cast %1046 : vector<32xf32> to vector<1x32xf32>
    %c6_982 = arith.constant 6 : index
    %c0_983 = arith.constant 0 : index
    %c0_984 = arith.constant 0 : index
    %1048 = vector.load %arg9[%c6_982, %c0_983, %c0_984] : memref<7x7x32xf32, #tpu.memory_space<vmem>>, vector<1x1x32xf32>
    %1049 = vector.shape_cast %1048 : vector<1x1x32xf32> to vector<1x32xf32>
    %1050 = vector.shape_cast %1047 : vector<1x32xf32> to vector<1x1x32xf32>
    tpu.vector_store %arg9[%c6_982, %c0_983, %c0_984], %1050 {strides = array<i32>} : memref<7x7x32xf32, #tpu.memory_space<vmem>>, vector<1x1x32xf32>,
    %1051 = vector.extract_strided_slice %1044 {offsets = [2, 0], sizes = [2, 32], strides = [1, 1]} : vector<14x32xf32> to vector<2x32xf32>
    %cst_985 = arith.constant dense<0xFF800000> : vector<32xf32>
    %1052 = vector.multi_reduction <maximumf>, %1051, %cst_985 [0] : vector<2x32xf32> to vector<32xf32>
    %1053 = vector.shape_cast %1052 : vector<32xf32> to vector<1x32xf32>
    %c6_986 = arith.constant 6 : index
    %c1_987 = arith.constant 1 : index
    %c0_988 = arith.constant 0 : index
    %1054 = vector.load %arg9[%c6_986, %c1_987, %c0_988] : memref<7x7x32xf32, #tpu.memory_space<vmem>>, vector<1x1x32xf32>
    %1055 = vector.shape_cast %1054 : vector<1x1x32xf32> to vector<1x32xf32>
    %1056 = vector.shape_cast %1053 : vector<1x32xf32> to vector<1x1x32xf32>
    tpu.vector_store %arg9[%c6_986, %c1_987, %c0_988], %1056 {strides = array<i32>} : memref<7x7x32xf32, #tpu.memory_space<vmem>>, vector<1x1x32xf32>,
    %1057 = vector.extract_strided_slice %1044 {offsets = [4, 0], sizes = [2, 32], strides = [1, 1]} : vector<14x32xf32> to vector<2x32xf32>
    %cst_989 = arith.constant dense<0xFF800000> : vector<32xf32>
    %1058 = vector.multi_reduction <maximumf>, %1057, %cst_989 [0] : vector<2x32xf32> to vector<32xf32>
    %1059 = vector.shape_cast %1058 : vector<32xf32> to vector<1x32xf32>
    %c6_990 = arith.constant 6 : index
    %c2_991 = arith.constant 2 : index
    %c0_992 = arith.constant 0 : index
    %1060 = vector.load %arg9[%c6_990, %c2_991, %c0_992] : memref<7x7x32xf32, #tpu.memory_space<vmem>>, vector<1x1x32xf32>
    %1061 = vector.shape_cast %1060 : vector<1x1x32xf32> to vector<1x32xf32>
    %1062 = vector.shape_cast %1059 : vector<1x32xf32> to vector<1x1x32xf32>
    tpu.vector_store %arg9[%c6_990, %c2_991, %c0_992], %1062 {strides = array<i32>} : memref<7x7x32xf32, #tpu.memory_space<vmem>>, vector<1x1x32xf32>,
    %1063 = vector.extract_strided_slice %1044 {offsets = [6, 0], sizes = [2, 32], strides = [1, 1]} : vector<14x32xf32> to vector<2x32xf32>
    %cst_993 = arith.constant dense<0xFF800000> : vector<32xf32>
    %1064 = vector.multi_reduction <maximumf>, %1063, %cst_993 [0] : vector<2x32xf32> to vector<32xf32>
    %1065 = vector.shape_cast %1064 : vector<32xf32> to vector<1x32xf32>
    %c6_994 = arith.constant 6 : index
    %c3_995 = arith.constant 3 : index
    %c0_996 = arith.constant 0 : index
    %1066 = vector.load %arg9[%c6_994, %c3_995, %c0_996] : memref<7x7x32xf32, #tpu.memory_space<vmem>>, vector<1x1x32xf32>
    %1067 = vector.shape_cast %1066 : vector<1x1x32xf32> to vector<1x32xf32>
    %1068 = vector.shape_cast %1065 : vector<1x32xf32> to vector<1x1x32xf32>
    tpu.vector_store %arg9[%c6_994, %c3_995, %c0_996], %1068 {strides = array<i32>} : memref<7x7x32xf32, #tpu.memory_space<vmem>>, vector<1x1x32xf32>,
    %1069 = vector.extract_strided_slice %1044 {offsets = [8, 0], sizes = [2, 32], strides = [1, 1]} : vector<14x32xf32> to vector<2x32xf32>
    %cst_997 = arith.constant dense<0xFF800000> : vector<32xf32>
    %1070 = vector.multi_reduction <maximumf>, %1069, %cst_997 [0] : vector<2x32xf32> to vector<32xf32>
    %1071 = vector.shape_cast %1070 : vector<32xf32> to vector<1x32xf32>
    %c6_998 = arith.constant 6 : index
    %c4_999 = arith.constant 4 : index
    %c0_1000 = arith.constant 0 : index
    %1072 = vector.load %arg9[%c6_998, %c4_999, %c0_1000] : memref<7x7x32xf32, #tpu.memory_space<vmem>>, vector<1x1x32xf32>
    %1073 = vector.shape_cast %1072 : vector<1x1x32xf32> to vector<1x32xf32>
    %1074 = vector.shape_cast %1071 : vector<1x32xf32> to vector<1x1x32xf32>
    tpu.vector_store %arg9[%c6_998, %c4_999, %c0_1000], %1074 {strides = array<i32>} : memref<7x7x32xf32, #tpu.memory_space<vmem>>, vector<1x1x32xf32>,
    %1075 = vector.extract_strided_slice %1044 {offsets = [10, 0], sizes = [2, 32], strides = [1, 1]} : vector<14x32xf32> to vector<2x32xf32>
    %cst_1001 = arith.constant dense<0xFF800000> : vector<32xf32>
    %1076 = vector.multi_reduction <maximumf>, %1075, %cst_1001 [0] : vector<2x32xf32> to vector<32xf32>
    %1077 = vector.shape_cast %1076 : vector<32xf32> to vector<1x32xf32>
    %c6_1002 = arith.constant 6 : index
    %c5_1003 = arith.constant 5 : index
    %c0_1004 = arith.constant 0 : index
    %1078 = vector.load %arg9[%c6_1002, %c5_1003, %c0_1004] : memref<7x7x32xf32, #tpu.memory_space<vmem>>, vector<1x1x32xf32>
    %1079 = vector.shape_cast %1078 : vector<1x1x32xf32> to vector<1x32xf32>
    %1080 = vector.shape_cast %1077 : vector<1x32xf32> to vector<1x1x32xf32>
    tpu.vector_store %arg9[%c6_1002, %c5_1003, %c0_1004], %1080 {strides = array<i32>} : memref<7x7x32xf32, #tpu.memory_space<vmem>>, vector<1x1x32xf32>,
    %1081 = vector.extract_strided_slice %1044 {offsets = [12, 0], sizes = [2, 32], strides = [1, 1]} : vector<14x32xf32> to vector<2x32xf32>
    %cst_1005 = arith.constant dense<0xFF800000> : vector<32xf32>
    %1082 = vector.multi_reduction <maximumf>, %1081, %cst_1005 [0] : vector<2x32xf32> to vector<32xf32>
    %1083 = vector.shape_cast %1082 : vector<32xf32> to vector<1x32xf32>
    %c6_1006 = arith.constant 6 : index
    %c6_1007 = arith.constant 6 : index
    %c0_1008 = arith.constant 0 : index
    %1084 = vector.load %arg9[%c6_1006, %c6_1007, %c0_1008] : memref<7x7x32xf32, #tpu.memory_space<vmem>>, vector<1x1x32xf32>
    %1085 = vector.shape_cast %1084 : vector<1x1x32xf32> to vector<1x32xf32>
    %1086 = vector.shape_cast %1083 : vector<1x32xf32> to vector<1x1x32xf32>
    tpu.vector_store %arg9[%c6_1006, %c6_1007, %c0_1008], %1086 {strides = array<i32>} : memref<7x7x32xf32, #tpu.memory_space<vmem>>, vector<1x1x32xf32>,
    %cst_1009 = arith.constant 0.000000e+00 : f32
    %1087 = vector.broadcast %cst_1009 : f32 to vector<1x16xf32>
    %cst_1010 = arith.constant 0.000000e+00 : f32
    %1088 = vector.broadcast %cst_1010 : f32 to vector<5x16xf32>
    %c0_1011 = arith.constant 0 : index
    %c0_1012 = arith.constant 0 : index
    %c0_1013 = arith.constant 0 : index
    %1089 = vector.load %arg9[%c0_1011, %c0_1012, %c0_1013] : memref<7x7x32xf32, #tpu.memory_space<vmem>>, vector<1x7x32xf32>
    %1090 = vector.shape_cast %1089 : vector<1x7x32xf32> to vector<7x32xf32>
    %1091 = vector.extract_strided_slice %1090 {offsets = [0, 0], sizes = [5, 32], strides = [1, 1]} : vector<7x32xf32> to vector<5x32xf32>
    %c0_1014 = arith.constant 0 : index
    %c0_1015 = arith.constant 0 : index
    %c0_1016 = arith.constant 0 : index
    %c0_1017 = arith.constant 0 : index
    %1092 = vector.load %arg4[%c0_1014, %c0_1015, %c0_1016, %c0_1017] : memref<3x3x32x16xf32, #tpu.memory_space<vmem>>, vector<1x1x32x16xf32>
    %1093 = vector.shape_cast %1092 : vector<1x1x32x16xf32> to vector<32x16xf32>
    %cst_1018 = arith.constant dense<0.000000e+00> : vector<5x16xf32>
    %1094 = tpu.matmul %1091, %1093, %cst_1018 {dimension_numbers = #tpu.dot_dimension_numbers<[1], [0], [0], [1], [0, 0, 1, 1], [], []>} : vector<5x32xf32>, vector<32x16xf32>, vector<5x16xf32> -> vector<5x16xf32>
    %1095 = arith.addf %1088, %1094 : vector<5x16xf32>
    %1096 = vector.extract_strided_slice %1090 {offsets = [1, 0], sizes = [5, 32], strides = [1, 1]} : vector<7x32xf32> to vector<5x32xf32>
    %c0_1019 = arith.constant 0 : index
    %c1_1020 = arith.constant 1 : index
    %c0_1021 = arith.constant 0 : index
    %c0_1022 = arith.constant 0 : index
    %1097 = vector.load %arg4[%c0_1019, %c1_1020, %c0_1021, %c0_1022] : memref<3x3x32x16xf32, #tpu.memory_space<vmem>>, vector<1x1x32x16xf32>
    %1098 = vector.shape_cast %1097 : vector<1x1x32x16xf32> to vector<32x16xf32>
    %cst_1023 = arith.constant dense<0.000000e+00> : vector<5x16xf32>
    %1099 = tpu.matmul %1096, %1098, %cst_1023 {dimension_numbers = #tpu.dot_dimension_numbers<[1], [0], [0], [1], [0, 0, 1, 1], [], []>} : vector<5x32xf32>, vector<32x16xf32>, vector<5x16xf32> -> vector<5x16xf32>
    %1100 = arith.addf %1095, %1099 : vector<5x16xf32>
    %1101 = vector.extract_strided_slice %1090 {offsets = [2, 0], sizes = [5, 32], strides = [1, 1]} : vector<7x32xf32> to vector<5x32xf32>
    %c0_1024 = arith.constant 0 : index
    %c2_1025 = arith.constant 2 : index
    %c0_1026 = arith.constant 0 : index
    %c0_1027 = arith.constant 0 : index
    %1102 = vector.load %arg4[%c0_1024, %c2_1025, %c0_1026, %c0_1027] : memref<3x3x32x16xf32, #tpu.memory_space<vmem>>, vector<1x1x32x16xf32>
    %1103 = vector.shape_cast %1102 : vector<1x1x32x16xf32> to vector<32x16xf32>
    %cst_1028 = arith.constant dense<0.000000e+00> : vector<5x16xf32>
    %1104 = tpu.matmul %1101, %1103, %cst_1028 {dimension_numbers = #tpu.dot_dimension_numbers<[1], [0], [0], [1], [0, 0, 1, 1], [], []>} : vector<5x32xf32>, vector<32x16xf32>, vector<5x16xf32> -> vector<5x16xf32>
    %1105 = arith.addf %1100, %1104 : vector<5x16xf32>
    %c1_1029 = arith.constant 1 : index
    %c0_1030 = arith.constant 0 : index
    %c0_1031 = arith.constant 0 : index
    %1106 = vector.load %arg9[%c1_1029, %c0_1030, %c0_1031] : memref<7x7x32xf32, #tpu.memory_space<vmem>>, vector<1x7x32xf32>
    %1107 = vector.shape_cast %1106 : vector<1x7x32xf32> to vector<7x32xf32>
    %1108 = vector.extract_strided_slice %1107 {offsets = [0, 0], sizes = [5, 32], strides = [1, 1]} : vector<7x32xf32> to vector<5x32xf32>
    %c1_1032 = arith.constant 1 : index
    %c0_1033 = arith.constant 0 : index
    %c0_1034 = arith.constant 0 : index
    %c0_1035 = arith.constant 0 : index
    %1109 = vector.load %arg4[%c1_1032, %c0_1033, %c0_1034, %c0_1035] : memref<3x3x32x16xf32, #tpu.memory_space<vmem>>, vector<1x1x32x16xf32>
    %1110 = vector.shape_cast %1109 : vector<1x1x32x16xf32> to vector<32x16xf32>
    %cst_1036 = arith.constant dense<0.000000e+00> : vector<5x16xf32>
    %1111 = tpu.matmul %1108, %1110, %cst_1036 {dimension_numbers = #tpu.dot_dimension_numbers<[1], [0], [0], [1], [0, 0, 1, 1], [], []>} : vector<5x32xf32>, vector<32x16xf32>, vector<5x16xf32> -> vector<5x16xf32>
    %1112 = arith.addf %1105, %1111 : vector<5x16xf32>
    %1113 = vector.extract_strided_slice %1107 {offsets = [1, 0], sizes = [5, 32], strides = [1, 1]} : vector<7x32xf32> to vector<5x32xf32>
    %c1_1037 = arith.constant 1 : index
    %c1_1038 = arith.constant 1 : index
    %c0_1039 = arith.constant 0 : index
    %c0_1040 = arith.constant 0 : index
    %1114 = vector.load %arg4[%c1_1037, %c1_1038, %c0_1039, %c0_1040] : memref<3x3x32x16xf32, #tpu.memory_space<vmem>>, vector<1x1x32x16xf32>
    %1115 = vector.shape_cast %1114 : vector<1x1x32x16xf32> to vector<32x16xf32>
    %cst_1041 = arith.constant dense<0.000000e+00> : vector<5x16xf32>
    %1116 = tpu.matmul %1113, %1115, %cst_1041 {dimension_numbers = #tpu.dot_dimension_numbers<[1], [0], [0], [1], [0, 0, 1, 1], [], []>} : vector<5x32xf32>, vector<32x16xf32>, vector<5x16xf32> -> vector<5x16xf32>
    %1117 = arith.addf %1112, %1116 : vector<5x16xf32>
    %1118 = vector.extract_strided_slice %1107 {offsets = [2, 0], sizes = [5, 32], strides = [1, 1]} : vector<7x32xf32> to vector<5x32xf32>
    %c1_1042 = arith.constant 1 : index
    %c2_1043 = arith.constant 2 : index
    %c0_1044 = arith.constant 0 : index
    %c0_1045 = arith.constant 0 : index
    %1119 = vector.load %arg4[%c1_1042, %c2_1043, %c0_1044, %c0_1045] : memref<3x3x32x16xf32, #tpu.memory_space<vmem>>, vector<1x1x32x16xf32>
    %1120 = vector.shape_cast %1119 : vector<1x1x32x16xf32> to vector<32x16xf32>
    %cst_1046 = arith.constant dense<0.000000e+00> : vector<5x16xf32>
    %1121 = tpu.matmul %1118, %1120, %cst_1046 {dimension_numbers = #tpu.dot_dimension_numbers<[1], [0], [0], [1], [0, 0, 1, 1], [], []>} : vector<5x32xf32>, vector<32x16xf32>, vector<5x16xf32> -> vector<5x16xf32>
    %1122 = arith.addf %1117, %1121 : vector<5x16xf32>
    %c2_1047 = arith.constant 2 : index
    %c0_1048 = arith.constant 0 : index
    %c0_1049 = arith.constant 0 : index
    %1123 = vector.load %arg9[%c2_1047, %c0_1048, %c0_1049] : memref<7x7x32xf32, #tpu.memory_space<vmem>>, vector<1x7x32xf32>
    %1124 = vector.shape_cast %1123 : vector<1x7x32xf32> to vector<7x32xf32>
    %1125 = vector.extract_strided_slice %1124 {offsets = [0, 0], sizes = [5, 32], strides = [1, 1]} : vector<7x32xf32> to vector<5x32xf32>
    %c2_1050 = arith.constant 2 : index
    %c0_1051 = arith.constant 0 : index
    %c0_1052 = arith.constant 0 : index
    %c0_1053 = arith.constant 0 : index
    %1126 = vector.load %arg4[%c2_1050, %c0_1051, %c0_1052, %c0_1053] : memref<3x3x32x16xf32, #tpu.memory_space<vmem>>, vector<1x1x32x16xf32>
    %1127 = vector.shape_cast %1126 : vector<1x1x32x16xf32> to vector<32x16xf32>
    %cst_1054 = arith.constant dense<0.000000e+00> : vector<5x16xf32>
    %1128 = tpu.matmul %1125, %1127, %cst_1054 {dimension_numbers = #tpu.dot_dimension_numbers<[1], [0], [0], [1], [0, 0, 1, 1], [], []>} : vector<5x32xf32>, vector<32x16xf32>, vector<5x16xf32> -> vector<5x16xf32>
    %1129 = arith.addf %1122, %1128 : vector<5x16xf32>
    %1130 = vector.extract_strided_slice %1124 {offsets = [1, 0], sizes = [5, 32], strides = [1, 1]} : vector<7x32xf32> to vector<5x32xf32>
    %c2_1055 = arith.constant 2 : index
    %c1_1056 = arith.constant 1 : index
    %c0_1057 = arith.constant 0 : index
    %c0_1058 = arith.constant 0 : index
    %1131 = vector.load %arg4[%c2_1055, %c1_1056, %c0_1057, %c0_1058] : memref<3x3x32x16xf32, #tpu.memory_space<vmem>>, vector<1x1x32x16xf32>
    %1132 = vector.shape_cast %1131 : vector<1x1x32x16xf32> to vector<32x16xf32>
    %cst_1059 = arith.constant dense<0.000000e+00> : vector<5x16xf32>
    %1133 = tpu.matmul %1130, %1132, %cst_1059 {dimension_numbers = #tpu.dot_dimension_numbers<[1], [0], [0], [1], [0, 0, 1, 1], [], []>} : vector<5x32xf32>, vector<32x16xf32>, vector<5x16xf32> -> vector<5x16xf32>
    %1134 = arith.addf %1129, %1133 : vector<5x16xf32>
    %1135 = vector.extract_strided_slice %1124 {offsets = [2, 0], sizes = [5, 32], strides = [1, 1]} : vector<7x32xf32> to vector<5x32xf32>
    %c2_1060 = arith.constant 2 : index
    %c2_1061 = arith.constant 2 : index
    %c0_1062 = arith.constant 0 : index
    %c0_1063 = arith.constant 0 : index
    %1136 = vector.load %arg4[%c2_1060, %c2_1061, %c0_1062, %c0_1063] : memref<3x3x32x16xf32, #tpu.memory_space<vmem>>, vector<1x1x32x16xf32>
    %1137 = vector.shape_cast %1136 : vector<1x1x32x16xf32> to vector<32x16xf32>
    %cst_1064 = arith.constant dense<0.000000e+00> : vector<5x16xf32>
    %1138 = tpu.matmul %1135, %1137, %cst_1064 {dimension_numbers = #tpu.dot_dimension_numbers<[1], [0], [0], [1], [0, 0, 1, 1], [], []>} : vector<5x32xf32>, vector<32x16xf32>, vector<5x16xf32> -> vector<5x16xf32>
    %1139 = arith.addf %1134, %1138 : vector<5x16xf32>
    %1140 = vector.broadcast %1 : vector<1x16xf32> to vector<5x16xf32>
    %1141 = arith.addf %1139, %1140 : vector<5x16xf32>
    %cst_1065 = arith.constant 0.000000e+00 : f32
    %1142 = vector.broadcast %cst_1065 : f32 to vector<5x16xf32>
    %1143 = arith.maximumf %1141, %1142 : vector<5x16xf32>
    %cst_1066 = arith.constant dense<0.000000e+00> : vector<16xf32>
    %1144 = vector.multi_reduction <add>, %1143, %cst_1066 [0] : vector<5x16xf32> to vector<16xf32>
    %1145 = vector.shape_cast %1144 : vector<16xf32> to vector<1x16xf32>
    %1146 = arith.addf %1087, %1145 : vector<1x16xf32>
    %cst_1067 = arith.constant 0.000000e+00 : f32
    %1147 = vector.broadcast %cst_1067 : f32 to vector<5x16xf32>
    %c1_1068 = arith.constant 1 : index
    %c0_1069 = arith.constant 0 : index
    %c0_1070 = arith.constant 0 : index
    %1148 = vector.load %arg9[%c1_1068, %c0_1069, %c0_1070] : memref<7x7x32xf32, #tpu.memory_space<vmem>>, vector<1x7x32xf32>
    %1149 = vector.shape_cast %1148 : vector<1x7x32xf32> to vector<7x32xf32>
    %1150 = vector.extract_strided_slice %1149 {offsets = [0, 0], sizes = [5, 32], strides = [1, 1]} : vector<7x32xf32> to vector<5x32xf32>
    %c0_1071 = arith.constant 0 : index
    %c0_1072 = arith.constant 0 : index
    %c0_1073 = arith.constant 0 : index
    %c0_1074 = arith.constant 0 : index
    %1151 = vector.load %arg4[%c0_1071, %c0_1072, %c0_1073, %c0_1074] : memref<3x3x32x16xf32, #tpu.memory_space<vmem>>, vector<1x1x32x16xf32>
    %1152 = vector.shape_cast %1151 : vector<1x1x32x16xf32> to vector<32x16xf32>
    %cst_1075 = arith.constant dense<0.000000e+00> : vector<5x16xf32>
    %1153 = tpu.matmul %1150, %1152, %cst_1075 {dimension_numbers = #tpu.dot_dimension_numbers<[1], [0], [0], [1], [0, 0, 1, 1], [], []>} : vector<5x32xf32>, vector<32x16xf32>, vector<5x16xf32> -> vector<5x16xf32>
    %1154 = arith.addf %1147, %1153 : vector<5x16xf32>
    %1155 = vector.extract_strided_slice %1149 {offsets = [1, 0], sizes = [5, 32], strides = [1, 1]} : vector<7x32xf32> to vector<5x32xf32>
    %c0_1076 = arith.constant 0 : index
    %c1_1077 = arith.constant 1 : index
    %c0_1078 = arith.constant 0 : index
    %c0_1079 = arith.constant 0 : index
    %1156 = vector.load %arg4[%c0_1076, %c1_1077, %c0_1078, %c0_1079] : memref<3x3x32x16xf32, #tpu.memory_space<vmem>>, vector<1x1x32x16xf32>
    %1157 = vector.shape_cast %1156 : vector<1x1x32x16xf32> to vector<32x16xf32>
    %cst_1080 = arith.constant dense<0.000000e+00> : vector<5x16xf32>
    %1158 = tpu.matmul %1155, %1157, %cst_1080 {dimension_numbers = #tpu.dot_dimension_numbers<[1], [0], [0], [1], [0, 0, 1, 1], [], []>} : vector<5x32xf32>, vector<32x16xf32>, vector<5x16xf32> -> vector<5x16xf32>
    %1159 = arith.addf %1154, %1158 : vector<5x16xf32>
    %1160 = vector.extract_strided_slice %1149 {offsets = [2, 0], sizes = [5, 32], strides = [1, 1]} : vector<7x32xf32> to vector<5x32xf32>
    %c0_1081 = arith.constant 0 : index
    %c2_1082 = arith.constant 2 : index
    %c0_1083 = arith.constant 0 : index
    %c0_1084 = arith.constant 0 : index
    %1161 = vector.load %arg4[%c0_1081, %c2_1082, %c0_1083, %c0_1084] : memref<3x3x32x16xf32, #tpu.memory_space<vmem>>, vector<1x1x32x16xf32>
    %1162 = vector.shape_cast %1161 : vector<1x1x32x16xf32> to vector<32x16xf32>
    %cst_1085 = arith.constant dense<0.000000e+00> : vector<5x16xf32>
    %1163 = tpu.matmul %1160, %1162, %cst_1085 {dimension_numbers = #tpu.dot_dimension_numbers<[1], [0], [0], [1], [0, 0, 1, 1], [], []>} : vector<5x32xf32>, vector<32x16xf32>, vector<5x16xf32> -> vector<5x16xf32>
    %1164 = arith.addf %1159, %1163 : vector<5x16xf32>
    %c2_1086 = arith.constant 2 : index
    %c0_1087 = arith.constant 0 : index
    %c0_1088 = arith.constant 0 : index
    %1165 = vector.load %arg9[%c2_1086, %c0_1087, %c0_1088] : memref<7x7x32xf32, #tpu.memory_space<vmem>>, vector<1x7x32xf32>
    %1166 = vector.shape_cast %1165 : vector<1x7x32xf32> to vector<7x32xf32>
    %1167 = vector.extract_strided_slice %1166 {offsets = [0, 0], sizes = [5, 32], strides = [1, 1]} : vector<7x32xf32> to vector<5x32xf32>
    %c1_1089 = arith.constant 1 : index
    %c0_1090 = arith.constant 0 : index
    %c0_1091 = arith.constant 0 : index
    %c0_1092 = arith.constant 0 : index
    %1168 = vector.load %arg4[%c1_1089, %c0_1090, %c0_1091, %c0_1092] : memref<3x3x32x16xf32, #tpu.memory_space<vmem>>, vector<1x1x32x16xf32>
    %1169 = vector.shape_cast %1168 : vector<1x1x32x16xf32> to vector<32x16xf32>
    %cst_1093 = arith.constant dense<0.000000e+00> : vector<5x16xf32>
    %1170 = tpu.matmul %1167, %1169, %cst_1093 {dimension_numbers = #tpu.dot_dimension_numbers<[1], [0], [0], [1], [0, 0, 1, 1], [], []>} : vector<5x32xf32>, vector<32x16xf32>, vector<5x16xf32> -> vector<5x16xf32>
    %1171 = arith.addf %1164, %1170 : vector<5x16xf32>
    %1172 = vector.extract_strided_slice %1166 {offsets = [1, 0], sizes = [5, 32], strides = [1, 1]} : vector<7x32xf32> to vector<5x32xf32>
    %c1_1094 = arith.constant 1 : index
    %c1_1095 = arith.constant 1 : index
    %c0_1096 = arith.constant 0 : index
    %c0_1097 = arith.constant 0 : index
    %1173 = vector.load %arg4[%c1_1094, %c1_1095, %c0_1096, %c0_1097] : memref<3x3x32x16xf32, #tpu.memory_space<vmem>>, vector<1x1x32x16xf32>
    %1174 = vector.shape_cast %1173 : vector<1x1x32x16xf32> to vector<32x16xf32>
    %cst_1098 = arith.constant dense<0.000000e+00> : vector<5x16xf32>
    %1175 = tpu.matmul %1172, %1174, %cst_1098 {dimension_numbers = #tpu.dot_dimension_numbers<[1], [0], [0], [1], [0, 0, 1, 1], [], []>} : vector<5x32xf32>, vector<32x16xf32>, vector<5x16xf32> -> vector<5x16xf32>
    %1176 = arith.addf %1171, %1175 : vector<5x16xf32>
    %1177 = vector.extract_strided_slice %1166 {offsets = [2, 0], sizes = [5, 32], strides = [1, 1]} : vector<7x32xf32> to vector<5x32xf32>
    %c1_1099 = arith.constant 1 : index
    %c2_1100 = arith.constant 2 : index
    %c0_1101 = arith.constant 0 : index
    %c0_1102 = arith.constant 0 : index
    %1178 = vector.load %arg4[%c1_1099, %c2_1100, %c0_1101, %c0_1102] : memref<3x3x32x16xf32, #tpu.memory_space<vmem>>, vector<1x1x32x16xf32>
    %1179 = vector.shape_cast %1178 : vector<1x1x32x16xf32> to vector<32x16xf32>
    %cst_1103 = arith.constant dense<0.000000e+00> : vector<5x16xf32>
    %1180 = tpu.matmul %1177, %1179, %cst_1103 {dimension_numbers = #tpu.dot_dimension_numbers<[1], [0], [0], [1], [0, 0, 1, 1], [], []>} : vector<5x32xf32>, vector<32x16xf32>, vector<5x16xf32> -> vector<5x16xf32>
    %1181 = arith.addf %1176, %1180 : vector<5x16xf32>
    %c3_1104 = arith.constant 3 : index
    %c0_1105 = arith.constant 0 : index
    %c0_1106 = arith.constant 0 : index
    %1182 = vector.load %arg9[%c3_1104, %c0_1105, %c0_1106] : memref<7x7x32xf32, #tpu.memory_space<vmem>>, vector<1x7x32xf32>
    %1183 = vector.shape_cast %1182 : vector<1x7x32xf32> to vector<7x32xf32>
    %1184 = vector.extract_strided_slice %1183 {offsets = [0, 0], sizes = [5, 32], strides = [1, 1]} : vector<7x32xf32> to vector<5x32xf32>
    %c2_1107 = arith.constant 2 : index
    %c0_1108 = arith.constant 0 : index
    %c0_1109 = arith.constant 0 : index
    %c0_1110 = arith.constant 0 : index
    %1185 = vector.load %arg4[%c2_1107, %c0_1108, %c0_1109, %c0_1110] : memref<3x3x32x16xf32, #tpu.memory_space<vmem>>, vector<1x1x32x16xf32>
    %1186 = vector.shape_cast %1185 : vector<1x1x32x16xf32> to vector<32x16xf32>
    %cst_1111 = arith.constant dense<0.000000e+00> : vector<5x16xf32>
    %1187 = tpu.matmul %1184, %1186, %cst_1111 {dimension_numbers = #tpu.dot_dimension_numbers<[1], [0], [0], [1], [0, 0, 1, 1], [], []>} : vector<5x32xf32>, vector<32x16xf32>, vector<5x16xf32> -> vector<5x16xf32>
    %1188 = arith.addf %1181, %1187 : vector<5x16xf32>
    %1189 = vector.extract_strided_slice %1183 {offsets = [1, 0], sizes = [5, 32], strides = [1, 1]} : vector<7x32xf32> to vector<5x32xf32>
    %c2_1112 = arith.constant 2 : index
    %c1_1113 = arith.constant 1 : index
    %c0_1114 = arith.constant 0 : index
    %c0_1115 = arith.constant 0 : index
    %1190 = vector.load %arg4[%c2_1112, %c1_1113, %c0_1114, %c0_1115] : memref<3x3x32x16xf32, #tpu.memory_space<vmem>>, vector<1x1x32x16xf32>
    %1191 = vector.shape_cast %1190 : vector<1x1x32x16xf32> to vector<32x16xf32>
    %cst_1116 = arith.constant dense<0.000000e+00> : vector<5x16xf32>
    %1192 = tpu.matmul %1189, %1191, %cst_1116 {dimension_numbers = #tpu.dot_dimension_numbers<[1], [0], [0], [1], [0, 0, 1, 1], [], []>} : vector<5x32xf32>, vector<32x16xf32>, vector<5x16xf32> -> vector<5x16xf32>
    %1193 = arith.addf %1188, %1192 : vector<5x16xf32>
    %1194 = vector.extract_strided_slice %1183 {offsets = [2, 0], sizes = [5, 32], strides = [1, 1]} : vector<7x32xf32> to vector<5x32xf32>
    %c2_1117 = arith.constant 2 : index
    %c2_1118 = arith.constant 2 : index
    %c0_1119 = arith.constant 0 : index
    %c0_1120 = arith.constant 0 : index
    %1195 = vector.load %arg4[%c2_1117, %c2_1118, %c0_1119, %c0_1120] : memref<3x3x32x16xf32, #tpu.memory_space<vmem>>, vector<1x1x32x16xf32>
    %1196 = vector.shape_cast %1195 : vector<1x1x32x16xf32> to vector<32x16xf32>
    %cst_1121 = arith.constant dense<0.000000e+00> : vector<5x16xf32>
    %1197 = tpu.matmul %1194, %1196, %cst_1121 {dimension_numbers = #tpu.dot_dimension_numbers<[1], [0], [0], [1], [0, 0, 1, 1], [], []>} : vector<5x32xf32>, vector<32x16xf32>, vector<5x16xf32> -> vector<5x16xf32>
    %1198 = arith.addf %1193, %1197 : vector<5x16xf32>
    %1199 = vector.broadcast %1 : vector<1x16xf32> to vector<5x16xf32>
    %1200 = arith.addf %1198, %1199 : vector<5x16xf32>
    %cst_1122 = arith.constant 0.000000e+00 : f32
    %1201 = vector.broadcast %cst_1122 : f32 to vector<5x16xf32>
    %1202 = arith.maximumf %1200, %1201 : vector<5x16xf32>
    %cst_1123 = arith.constant dense<0.000000e+00> : vector<16xf32>
    %1203 = vector.multi_reduction <add>, %1202, %cst_1123 [0] : vector<5x16xf32> to vector<16xf32>
    %1204 = vector.shape_cast %1203 : vector<16xf32> to vector<1x16xf32>
    %1205 = arith.addf %1146, %1204 : vector<1x16xf32>
    %cst_1124 = arith.constant 0.000000e+00 : f32
    %1206 = vector.broadcast %cst_1124 : f32 to vector<5x16xf32>
    %c2_1125 = arith.constant 2 : index
    %c0_1126 = arith.constant 0 : index
    %c0_1127 = arith.constant 0 : index
    %1207 = vector.load %arg9[%c2_1125, %c0_1126, %c0_1127] : memref<7x7x32xf32, #tpu.memory_space<vmem>>, vector<1x7x32xf32>
    %1208 = vector.shape_cast %1207 : vector<1x7x32xf32> to vector<7x32xf32>
    %1209 = vector.extract_strided_slice %1208 {offsets = [0, 0], sizes = [5, 32], strides = [1, 1]} : vector<7x32xf32> to vector<5x32xf32>
    %c0_1128 = arith.constant 0 : index
    %c0_1129 = arith.constant 0 : index
    %c0_1130 = arith.constant 0 : index
    %c0_1131 = arith.constant 0 : index
    %1210 = vector.load %arg4[%c0_1128, %c0_1129, %c0_1130, %c0_1131] : memref<3x3x32x16xf32, #tpu.memory_space<vmem>>, vector<1x1x32x16xf32>
    %1211 = vector.shape_cast %1210 : vector<1x1x32x16xf32> to vector<32x16xf32>
    %cst_1132 = arith.constant dense<0.000000e+00> : vector<5x16xf32>
    %1212 = tpu.matmul %1209, %1211, %cst_1132 {dimension_numbers = #tpu.dot_dimension_numbers<[1], [0], [0], [1], [0, 0, 1, 1], [], []>} : vector<5x32xf32>, vector<32x16xf32>, vector<5x16xf32> -> vector<5x16xf32>
    %1213 = arith.addf %1206, %1212 : vector<5x16xf32>
    %1214 = vector.extract_strided_slice %1208 {offsets = [1, 0], sizes = [5, 32], strides = [1, 1]} : vector<7x32xf32> to vector<5x32xf32>
    %c0_1133 = arith.constant 0 : index
    %c1_1134 = arith.constant 1 : index
    %c0_1135 = arith.constant 0 : index
    %c0_1136 = arith.constant 0 : index
    %1215 = vector.load %arg4[%c0_1133, %c1_1134, %c0_1135, %c0_1136] : memref<3x3x32x16xf32, #tpu.memory_space<vmem>>, vector<1x1x32x16xf32>
    %1216 = vector.shape_cast %1215 : vector<1x1x32x16xf32> to vector<32x16xf32>
    %cst_1137 = arith.constant dense<0.000000e+00> : vector<5x16xf32>
    %1217 = tpu.matmul %1214, %1216, %cst_1137 {dimension_numbers = #tpu.dot_dimension_numbers<[1], [0], [0], [1], [0, 0, 1, 1], [], []>} : vector<5x32xf32>, vector<32x16xf32>, vector<5x16xf32> -> vector<5x16xf32>
    %1218 = arith.addf %1213, %1217 : vector<5x16xf32>
    %1219 = vector.extract_strided_slice %1208 {offsets = [2, 0], sizes = [5, 32], strides = [1, 1]} : vector<7x32xf32> to vector<5x32xf32>
    %c0_1138 = arith.constant 0 : index
    %c2_1139 = arith.constant 2 : index
    %c0_1140 = arith.constant 0 : index
    %c0_1141 = arith.constant 0 : index
    %1220 = vector.load %arg4[%c0_1138, %c2_1139, %c0_1140, %c0_1141] : memref<3x3x32x16xf32, #tpu.memory_space<vmem>>, vector<1x1x32x16xf32>
    %1221 = vector.shape_cast %1220 : vector<1x1x32x16xf32> to vector<32x16xf32>
    %cst_1142 = arith.constant dense<0.000000e+00> : vector<5x16xf32>
    %1222 = tpu.matmul %1219, %1221, %cst_1142 {dimension_numbers = #tpu.dot_dimension_numbers<[1], [0], [0], [1], [0, 0, 1, 1], [], []>} : vector<5x32xf32>, vector<32x16xf32>, vector<5x16xf32> -> vector<5x16xf32>
    %1223 = arith.addf %1218, %1222 : vector<5x16xf32>
    %c3_1143 = arith.constant 3 : index
    %c0_1144 = arith.constant 0 : index
    %c0_1145 = arith.constant 0 : index
    %1224 = vector.load %arg9[%c3_1143, %c0_1144, %c0_1145] : memref<7x7x32xf32, #tpu.memory_space<vmem>>, vector<1x7x32xf32>
    %1225 = vector.shape_cast %1224 : vector<1x7x32xf32> to vector<7x32xf32>
    %1226 = vector.extract_strided_slice %1225 {offsets = [0, 0], sizes = [5, 32], strides = [1, 1]} : vector<7x32xf32> to vector<5x32xf32>
    %c1_1146 = arith.constant 1 : index
    %c0_1147 = arith.constant 0 : index
    %c0_1148 = arith.constant 0 : index
    %c0_1149 = arith.constant 0 : index
    %1227 = vector.load %arg4[%c1_1146, %c0_1147, %c0_1148, %c0_1149] : memref<3x3x32x16xf32, #tpu.memory_space<vmem>>, vector<1x1x32x16xf32>
    %1228 = vector.shape_cast %1227 : vector<1x1x32x16xf32> to vector<32x16xf32>
    %cst_1150 = arith.constant dense<0.000000e+00> : vector<5x16xf32>
    %1229 = tpu.matmul %1226, %1228, %cst_1150 {dimension_numbers = #tpu.dot_dimension_numbers<[1], [0], [0], [1], [0, 0, 1, 1], [], []>} : vector<5x32xf32>, vector<32x16xf32>, vector<5x16xf32> -> vector<5x16xf32>
    %1230 = arith.addf %1223, %1229 : vector<5x16xf32>
    %1231 = vector.extract_strided_slice %1225 {offsets = [1, 0], sizes = [5, 32], strides = [1, 1]} : vector<7x32xf32> to vector<5x32xf32>
    %c1_1151 = arith.constant 1 : index
    %c1_1152 = arith.constant 1 : index
    %c0_1153 = arith.constant 0 : index
    %c0_1154 = arith.constant 0 : index
    %1232 = vector.load %arg4[%c1_1151, %c1_1152, %c0_1153, %c0_1154] : memref<3x3x32x16xf32, #tpu.memory_space<vmem>>, vector<1x1x32x16xf32>
    %1233 = vector.shape_cast %1232 : vector<1x1x32x16xf32> to vector<32x16xf32>
    %cst_1155 = arith.constant dense<0.000000e+00> : vector<5x16xf32>
    %1234 = tpu.matmul %1231, %1233, %cst_1155 {dimension_numbers = #tpu.dot_dimension_numbers<[1], [0], [0], [1], [0, 0, 1, 1], [], []>} : vector<5x32xf32>, vector<32x16xf32>, vector<5x16xf32> -> vector<5x16xf32>
    %1235 = arith.addf %1230, %1234 : vector<5x16xf32>
    %1236 = vector.extract_strided_slice %1225 {offsets = [2, 0], sizes = [5, 32], strides = [1, 1]} : vector<7x32xf32> to vector<5x32xf32>
    %c1_1156 = arith.constant 1 : index
    %c2_1157 = arith.constant 2 : index
    %c0_1158 = arith.constant 0 : index
    %c0_1159 = arith.constant 0 : index
    %1237 = vector.load %arg4[%c1_1156, %c2_1157, %c0_1158, %c0_1159] : memref<3x3x32x16xf32, #tpu.memory_space<vmem>>, vector<1x1x32x16xf32>
    %1238 = vector.shape_cast %1237 : vector<1x1x32x16xf32> to vector<32x16xf32>
    %cst_1160 = arith.constant dense<0.000000e+00> : vector<5x16xf32>
    %1239 = tpu.matmul %1236, %1238, %cst_1160 {dimension_numbers = #tpu.dot_dimension_numbers<[1], [0], [0], [1], [0, 0, 1, 1], [], []>} : vector<5x32xf32>, vector<32x16xf32>, vector<5x16xf32> -> vector<5x16xf32>
    %1240 = arith.addf %1235, %1239 : vector<5x16xf32>
    %c4_1161 = arith.constant 4 : index
    %c0_1162 = arith.constant 0 : index
    %c0_1163 = arith.constant 0 : index
    %1241 = vector.load %arg9[%c4_1161, %c0_1162, %c0_1163] : memref<7x7x32xf32, #tpu.memory_space<vmem>>, vector<1x7x32xf32>
    %1242 = vector.shape_cast %1241 : vector<1x7x32xf32> to vector<7x32xf32>
    %1243 = vector.extract_strided_slice %1242 {offsets = [0, 0], sizes = [5, 32], strides = [1, 1]} : vector<7x32xf32> to vector<5x32xf32>
    %c2_1164 = arith.constant 2 : index
    %c0_1165 = arith.constant 0 : index
    %c0_1166 = arith.constant 0 : index
    %c0_1167 = arith.constant 0 : index
    %1244 = vector.load %arg4[%c2_1164, %c0_1165, %c0_1166, %c0_1167] : memref<3x3x32x16xf32, #tpu.memory_space<vmem>>, vector<1x1x32x16xf32>
    %1245 = vector.shape_cast %1244 : vector<1x1x32x16xf32> to vector<32x16xf32>
    %cst_1168 = arith.constant dense<0.000000e+00> : vector<5x16xf32>
    %1246 = tpu.matmul %1243, %1245, %cst_1168 {dimension_numbers = #tpu.dot_dimension_numbers<[1], [0], [0], [1], [0, 0, 1, 1], [], []>} : vector<5x32xf32>, vector<32x16xf32>, vector<5x16xf32> -> vector<5x16xf32>
    %1247 = arith.addf %1240, %1246 : vector<5x16xf32>
    %1248 = vector.extract_strided_slice %1242 {offsets = [1, 0], sizes = [5, 32], strides = [1, 1]} : vector<7x32xf32> to vector<5x32xf32>
    %c2_1169 = arith.constant 2 : index
    %c1_1170 = arith.constant 1 : index
    %c0_1171 = arith.constant 0 : index
    %c0_1172 = arith.constant 0 : index
    %1249 = vector.load %arg4[%c2_1169, %c1_1170, %c0_1171, %c0_1172] : memref<3x3x32x16xf32, #tpu.memory_space<vmem>>, vector<1x1x32x16xf32>
    %1250 = vector.shape_cast %1249 : vector<1x1x32x16xf32> to vector<32x16xf32>
    %cst_1173 = arith.constant dense<0.000000e+00> : vector<5x16xf32>
    %1251 = tpu.matmul %1248, %1250, %cst_1173 {dimension_numbers = #tpu.dot_dimension_numbers<[1], [0], [0], [1], [0, 0, 1, 1], [], []>} : vector<5x32xf32>, vector<32x16xf32>, vector<5x16xf32> -> vector<5x16xf32>
    %1252 = arith.addf %1247, %1251 : vector<5x16xf32>
    %1253 = vector.extract_strided_slice %1242 {offsets = [2, 0], sizes = [5, 32], strides = [1, 1]} : vector<7x32xf32> to vector<5x32xf32>
    %c2_1174 = arith.constant 2 : index
    %c2_1175 = arith.constant 2 : index
    %c0_1176 = arith.constant 0 : index
    %c0_1177 = arith.constant 0 : index
    %1254 = vector.load %arg4[%c2_1174, %c2_1175, %c0_1176, %c0_1177] : memref<3x3x32x16xf32, #tpu.memory_space<vmem>>, vector<1x1x32x16xf32>
    %1255 = vector.shape_cast %1254 : vector<1x1x32x16xf32> to vector<32x16xf32>
    %cst_1178 = arith.constant dense<0.000000e+00> : vector<5x16xf32>
    %1256 = tpu.matmul %1253, %1255, %cst_1178 {dimension_numbers = #tpu.dot_dimension_numbers<[1], [0], [0], [1], [0, 0, 1, 1], [], []>} : vector<5x32xf32>, vector<32x16xf32>, vector<5x16xf32> -> vector<5x16xf32>
    %1257 = arith.addf %1252, %1256 : vector<5x16xf32>
    %1258 = vector.broadcast %1 : vector<1x16xf32> to vector<5x16xf32>
    %1259 = arith.addf %1257, %1258 : vector<5x16xf32>
    %cst_1179 = arith.constant 0.000000e+00 : f32
    %1260 = vector.broadcast %cst_1179 : f32 to vector<5x16xf32>
    %1261 = arith.maximumf %1259, %1260 : vector<5x16xf32>
    %cst_1180 = arith.constant dense<0.000000e+00> : vector<16xf32>
    %1262 = vector.multi_reduction <add>, %1261, %cst_1180 [0] : vector<5x16xf32> to vector<16xf32>
    %1263 = vector.shape_cast %1262 : vector<16xf32> to vector<1x16xf32>
    %1264 = arith.addf %1205, %1263 : vector<1x16xf32>
    %cst_1181 = arith.constant 0.000000e+00 : f32
    %1265 = vector.broadcast %cst_1181 : f32 to vector<5x16xf32>
    %c3_1182 = arith.constant 3 : index
    %c0_1183 = arith.constant 0 : index
    %c0_1184 = arith.constant 0 : index
    %1266 = vector.load %arg9[%c3_1182, %c0_1183, %c0_1184] : memref<7x7x32xf32, #tpu.memory_space<vmem>>, vector<1x7x32xf32>
    %1267 = vector.shape_cast %1266 : vector<1x7x32xf32> to vector<7x32xf32>
    %1268 = vector.extract_strided_slice %1267 {offsets = [0, 0], sizes = [5, 32], strides = [1, 1]} : vector<7x32xf32> to vector<5x32xf32>
    %c0_1185 = arith.constant 0 : index
    %c0_1186 = arith.constant 0 : index
    %c0_1187 = arith.constant 0 : index
    %c0_1188 = arith.constant 0 : index
    %1269 = vector.load %arg4[%c0_1185, %c0_1186, %c0_1187, %c0_1188] : memref<3x3x32x16xf32, #tpu.memory_space<vmem>>, vector<1x1x32x16xf32>
    %1270 = vector.shape_cast %1269 : vector<1x1x32x16xf32> to vector<32x16xf32>
    %cst_1189 = arith.constant dense<0.000000e+00> : vector<5x16xf32>
    %1271 = tpu.matmul %1268, %1270, %cst_1189 {dimension_numbers = #tpu.dot_dimension_numbers<[1], [0], [0], [1], [0, 0, 1, 1], [], []>} : vector<5x32xf32>, vector<32x16xf32>, vector<5x16xf32> -> vector<5x16xf32>
    %1272 = arith.addf %1265, %1271 : vector<5x16xf32>
    %1273 = vector.extract_strided_slice %1267 {offsets = [1, 0], sizes = [5, 32], strides = [1, 1]} : vector<7x32xf32> to vector<5x32xf32>
    %c0_1190 = arith.constant 0 : index
    %c1_1191 = arith.constant 1 : index
    %c0_1192 = arith.constant 0 : index
    %c0_1193 = arith.constant 0 : index
    %1274 = vector.load %arg4[%c0_1190, %c1_1191, %c0_1192, %c0_1193] : memref<3x3x32x16xf32, #tpu.memory_space<vmem>>, vector<1x1x32x16xf32>
    %1275 = vector.shape_cast %1274 : vector<1x1x32x16xf32> to vector<32x16xf32>
    %cst_1194 = arith.constant dense<0.000000e+00> : vector<5x16xf32>
    %1276 = tpu.matmul %1273, %1275, %cst_1194 {dimension_numbers = #tpu.dot_dimension_numbers<[1], [0], [0], [1], [0, 0, 1, 1], [], []>} : vector<5x32xf32>, vector<32x16xf32>, vector<5x16xf32> -> vector<5x16xf32>
    %1277 = arith.addf %1272, %1276 : vector<5x16xf32>
    %1278 = vector.extract_strided_slice %1267 {offsets = [2, 0], sizes = [5, 32], strides = [1, 1]} : vector<7x32xf32> to vector<5x32xf32>
    %c0_1195 = arith.constant 0 : index
    %c2_1196 = arith.constant 2 : index
    %c0_1197 = arith.constant 0 : index
    %c0_1198 = arith.constant 0 : index
    %1279 = vector.load %arg4[%c0_1195, %c2_1196, %c0_1197, %c0_1198] : memref<3x3x32x16xf32, #tpu.memory_space<vmem>>, vector<1x1x32x16xf32>
    %1280 = vector.shape_cast %1279 : vector<1x1x32x16xf32> to vector<32x16xf32>
    %cst_1199 = arith.constant dense<0.000000e+00> : vector<5x16xf32>
    %1281 = tpu.matmul %1278, %1280, %cst_1199 {dimension_numbers = #tpu.dot_dimension_numbers<[1], [0], [0], [1], [0, 0, 1, 1], [], []>} : vector<5x32xf32>, vector<32x16xf32>, vector<5x16xf32> -> vector<5x16xf32>
    %1282 = arith.addf %1277, %1281 : vector<5x16xf32>
    %c4_1200 = arith.constant 4 : index
    %c0_1201 = arith.constant 0 : index
    %c0_1202 = arith.constant 0 : index
    %1283 = vector.load %arg9[%c4_1200, %c0_1201, %c0_1202] : memref<7x7x32xf32, #tpu.memory_space<vmem>>, vector<1x7x32xf32>
    %1284 = vector.shape_cast %1283 : vector<1x7x32xf32> to vector<7x32xf32>
    %1285 = vector.extract_strided_slice %1284 {offsets = [0, 0], sizes = [5, 32], strides = [1, 1]} : vector<7x32xf32> to vector<5x32xf32>
    %c1_1203 = arith.constant 1 : index
    %c0_1204 = arith.constant 0 : index
    %c0_1205 = arith.constant 0 : index
    %c0_1206 = arith.constant 0 : index
    %1286 = vector.load %arg4[%c1_1203, %c0_1204, %c0_1205, %c0_1206] : memref<3x3x32x16xf32, #tpu.memory_space<vmem>>, vector<1x1x32x16xf32>
    %1287 = vector.shape_cast %1286 : vector<1x1x32x16xf32> to vector<32x16xf32>
    %cst_1207 = arith.constant dense<0.000000e+00> : vector<5x16xf32>
    %1288 = tpu.matmul %1285, %1287, %cst_1207 {dimension_numbers = #tpu.dot_dimension_numbers<[1], [0], [0], [1], [0, 0, 1, 1], [], []>} : vector<5x32xf32>, vector<32x16xf32>, vector<5x16xf32> -> vector<5x16xf32>
    %1289 = arith.addf %1282, %1288 : vector<5x16xf32>
    %1290 = vector.extract_strided_slice %1284 {offsets = [1, 0], sizes = [5, 32], strides = [1, 1]} : vector<7x32xf32> to vector<5x32xf32>
    %c1_1208 = arith.constant 1 : index
    %c1_1209 = arith.constant 1 : index
    %c0_1210 = arith.constant 0 : index
    %c0_1211 = arith.constant 0 : index
    %1291 = vector.load %arg4[%c1_1208, %c1_1209, %c0_1210, %c0_1211] : memref<3x3x32x16xf32, #tpu.memory_space<vmem>>, vector<1x1x32x16xf32>
    %1292 = vector.shape_cast %1291 : vector<1x1x32x16xf32> to vector<32x16xf32>
    %cst_1212 = arith.constant dense<0.000000e+00> : vector<5x16xf32>
    %1293 = tpu.matmul %1290, %1292, %cst_1212 {dimension_numbers = #tpu.dot_dimension_numbers<[1], [0], [0], [1], [0, 0, 1, 1], [], []>} : vector<5x32xf32>, vector<32x16xf32>, vector<5x16xf32> -> vector<5x16xf32>
    %1294 = arith.addf %1289, %1293 : vector<5x16xf32>
    %1295 = vector.extract_strided_slice %1284 {offsets = [2, 0], sizes = [5, 32], strides = [1, 1]} : vector<7x32xf32> to vector<5x32xf32>
    %c1_1213 = arith.constant 1 : index
    %c2_1214 = arith.constant 2 : index
    %c0_1215 = arith.constant 0 : index
    %c0_1216 = arith.constant 0 : index
    %1296 = vector.load %arg4[%c1_1213, %c2_1214, %c0_1215, %c0_1216] : memref<3x3x32x16xf32, #tpu.memory_space<vmem>>, vector<1x1x32x16xf32>
    %1297 = vector.shape_cast %1296 : vector<1x1x32x16xf32> to vector<32x16xf32>
    %cst_1217 = arith.constant dense<0.000000e+00> : vector<5x16xf32>
    %1298 = tpu.matmul %1295, %1297, %cst_1217 {dimension_numbers = #tpu.dot_dimension_numbers<[1], [0], [0], [1], [0, 0, 1, 1], [], []>} : vector<5x32xf32>, vector<32x16xf32>, vector<5x16xf32> -> vector<5x16xf32>
    %1299 = arith.addf %1294, %1298 : vector<5x16xf32>
    %c5_1218 = arith.constant 5 : index
    %c0_1219 = arith.constant 0 : index
    %c0_1220 = arith.constant 0 : index
    %1300 = vector.load %arg9[%c5_1218, %c0_1219, %c0_1220] : memref<7x7x32xf32, #tpu.memory_space<vmem>>, vector<1x7x32xf32>
    %1301 = vector.shape_cast %1300 : vector<1x7x32xf32> to vector<7x32xf32>
    %1302 = vector.extract_strided_slice %1301 {offsets = [0, 0], sizes = [5, 32], strides = [1, 1]} : vector<7x32xf32> to vector<5x32xf32>
    %c2_1221 = arith.constant 2 : index
    %c0_1222 = arith.constant 0 : index
    %c0_1223 = arith.constant 0 : index
    %c0_1224 = arith.constant 0 : index
    %1303 = vector.load %arg4[%c2_1221, %c0_1222, %c0_1223, %c0_1224] : memref<3x3x32x16xf32, #tpu.memory_space<vmem>>, vector<1x1x32x16xf32>
    %1304 = vector.shape_cast %1303 : vector<1x1x32x16xf32> to vector<32x16xf32>
    %cst_1225 = arith.constant dense<0.000000e+00> : vector<5x16xf32>
    %1305 = tpu.matmul %1302, %1304, %cst_1225 {dimension_numbers = #tpu.dot_dimension_numbers<[1], [0], [0], [1], [0, 0, 1, 1], [], []>} : vector<5x32xf32>, vector<32x16xf32>, vector<5x16xf32> -> vector<5x16xf32>
    %1306 = arith.addf %1299, %1305 : vector<5x16xf32>
    %1307 = vector.extract_strided_slice %1301 {offsets = [1, 0], sizes = [5, 32], strides = [1, 1]} : vector<7x32xf32> to vector<5x32xf32>
    %c2_1226 = arith.constant 2 : index
    %c1_1227 = arith.constant 1 : index
    %c0_1228 = arith.constant 0 : index
    %c0_1229 = arith.constant 0 : index
    %1308 = vector.load %arg4[%c2_1226, %c1_1227, %c0_1228, %c0_1229] : memref<3x3x32x16xf32, #tpu.memory_space<vmem>>, vector<1x1x32x16xf32>
    %1309 = vector.shape_cast %1308 : vector<1x1x32x16xf32> to vector<32x16xf32>
    %cst_1230 = arith.constant dense<0.000000e+00> : vector<5x16xf32>
    %1310 = tpu.matmul %1307, %1309, %cst_1230 {dimension_numbers = #tpu.dot_dimension_numbers<[1], [0], [0], [1], [0, 0, 1, 1], [], []>} : vector<5x32xf32>, vector<32x16xf32>, vector<5x16xf32> -> vector<5x16xf32>
    %1311 = arith.addf %1306, %1310 : vector<5x16xf32>
    %1312 = vector.extract_strided_slice %1301 {offsets = [2, 0], sizes = [5, 32], strides = [1, 1]} : vector<7x32xf32> to vector<5x32xf32>
    %c2_1231 = arith.constant 2 : index
    %c2_1232 = arith.constant 2 : index
    %c0_1233 = arith.constant 0 : index
    %c0_1234 = arith.constant 0 : index
    %1313 = vector.load %arg4[%c2_1231, %c2_1232, %c0_1233, %c0_1234] : memref<3x3x32x16xf32, #tpu.memory_space<vmem>>, vector<1x1x32x16xf32>
    %1314 = vector.shape_cast %1313 : vector<1x1x32x16xf32> to vector<32x16xf32>
    %cst_1235 = arith.constant dense<0.000000e+00> : vector<5x16xf32>
    %1315 = tpu.matmul %1312, %1314, %cst_1235 {dimension_numbers = #tpu.dot_dimension_numbers<[1], [0], [0], [1], [0, 0, 1, 1], [], []>} : vector<5x32xf32>, vector<32x16xf32>, vector<5x16xf32> -> vector<5x16xf32>
    %1316 = arith.addf %1311, %1315 : vector<5x16xf32>
    %1317 = vector.broadcast %1 : vector<1x16xf32> to vector<5x16xf32>
    %1318 = arith.addf %1316, %1317 : vector<5x16xf32>
    %cst_1236 = arith.constant 0.000000e+00 : f32
    %1319 = vector.broadcast %cst_1236 : f32 to vector<5x16xf32>
    %1320 = arith.maximumf %1318, %1319 : vector<5x16xf32>
    %cst_1237 = arith.constant dense<0.000000e+00> : vector<16xf32>
    %1321 = vector.multi_reduction <add>, %1320, %cst_1237 [0] : vector<5x16xf32> to vector<16xf32>
    %1322 = vector.shape_cast %1321 : vector<16xf32> to vector<1x16xf32>
    %1323 = arith.addf %1264, %1322 : vector<1x16xf32>
    %cst_1238 = arith.constant 0.000000e+00 : f32
    %1324 = vector.broadcast %cst_1238 : f32 to vector<5x16xf32>
    %c4_1239 = arith.constant 4 : index
    %c0_1240 = arith.constant 0 : index
    %c0_1241 = arith.constant 0 : index
    %1325 = vector.load %arg9[%c4_1239, %c0_1240, %c0_1241] : memref<7x7x32xf32, #tpu.memory_space<vmem>>, vector<1x7x32xf32>
    %1326 = vector.shape_cast %1325 : vector<1x7x32xf32> to vector<7x32xf32>
    %1327 = vector.extract_strided_slice %1326 {offsets = [0, 0], sizes = [5, 32], strides = [1, 1]} : vector<7x32xf32> to vector<5x32xf32>
    %c0_1242 = arith.constant 0 : index
    %c0_1243 = arith.constant 0 : index
    %c0_1244 = arith.constant 0 : index
    %c0_1245 = arith.constant 0 : index
    %1328 = vector.load %arg4[%c0_1242, %c0_1243, %c0_1244, %c0_1245] : memref<3x3x32x16xf32, #tpu.memory_space<vmem>>, vector<1x1x32x16xf32>
    %1329 = vector.shape_cast %1328 : vector<1x1x32x16xf32> to vector<32x16xf32>
    %cst_1246 = arith.constant dense<0.000000e+00> : vector<5x16xf32>
    %1330 = tpu.matmul %1327, %1329, %cst_1246 {dimension_numbers = #tpu.dot_dimension_numbers<[1], [0], [0], [1], [0, 0, 1, 1], [], []>} : vector<5x32xf32>, vector<32x16xf32>, vector<5x16xf32> -> vector<5x16xf32>
    %1331 = arith.addf %1324, %1330 : vector<5x16xf32>
    %1332 = vector.extract_strided_slice %1326 {offsets = [1, 0], sizes = [5, 32], strides = [1, 1]} : vector<7x32xf32> to vector<5x32xf32>
    %c0_1247 = arith.constant 0 : index
    %c1_1248 = arith.constant 1 : index
    %c0_1249 = arith.constant 0 : index
    %c0_1250 = arith.constant 0 : index
    %1333 = vector.load %arg4[%c0_1247, %c1_1248, %c0_1249, %c0_1250] : memref<3x3x32x16xf32, #tpu.memory_space<vmem>>, vector<1x1x32x16xf32>
    %1334 = vector.shape_cast %1333 : vector<1x1x32x16xf32> to vector<32x16xf32>
    %cst_1251 = arith.constant dense<0.000000e+00> : vector<5x16xf32>
    %1335 = tpu.matmul %1332, %1334, %cst_1251 {dimension_numbers = #tpu.dot_dimension_numbers<[1], [0], [0], [1], [0, 0, 1, 1], [], []>} : vector<5x32xf32>, vector<32x16xf32>, vector<5x16xf32> -> vector<5x16xf32>
    %1336 = arith.addf %1331, %1335 : vector<5x16xf32>
    %1337 = vector.extract_strided_slice %1326 {offsets = [2, 0], sizes = [5, 32], strides = [1, 1]} : vector<7x32xf32> to vector<5x32xf32>
    %c0_1252 = arith.constant 0 : index
    %c2_1253 = arith.constant 2 : index
    %c0_1254 = arith.constant 0 : index
    %c0_1255 = arith.constant 0 : index
    %1338 = vector.load %arg4[%c0_1252, %c2_1253, %c0_1254, %c0_1255] : memref<3x3x32x16xf32, #tpu.memory_space<vmem>>, vector<1x1x32x16xf32>
    %1339 = vector.shape_cast %1338 : vector<1x1x32x16xf32> to vector<32x16xf32>
    %cst_1256 = arith.constant dense<0.000000e+00> : vector<5x16xf32>
    %1340 = tpu.matmul %1337, %1339, %cst_1256 {dimension_numbers = #tpu.dot_dimension_numbers<[1], [0], [0], [1], [0, 0, 1, 1], [], []>} : vector<5x32xf32>, vector<32x16xf32>, vector<5x16xf32> -> vector<5x16xf32>
    %1341 = arith.addf %1336, %1340 : vector<5x16xf32>
    %c5_1257 = arith.constant 5 : index
    %c0_1258 = arith.constant 0 : index
    %c0_1259 = arith.constant 0 : index
    %1342 = vector.load %arg9[%c5_1257, %c0_1258, %c0_1259] : memref<7x7x32xf32, #tpu.memory_space<vmem>>, vector<1x7x32xf32>
    %1343 = vector.shape_cast %1342 : vector<1x7x32xf32> to vector<7x32xf32>
    %1344 = vector.extract_strided_slice %1343 {offsets = [0, 0], sizes = [5, 32], strides = [1, 1]} : vector<7x32xf32> to vector<5x32xf32>
    %c1_1260 = arith.constant 1 : index
    %c0_1261 = arith.constant 0 : index
    %c0_1262 = arith.constant 0 : index
    %c0_1263 = arith.constant 0 : index
    %1345 = vector.load %arg4[%c1_1260, %c0_1261, %c0_1262, %c0_1263] : memref<3x3x32x16xf32, #tpu.memory_space<vmem>>, vector<1x1x32x16xf32>
    %1346 = vector.shape_cast %1345 : vector<1x1x32x16xf32> to vector<32x16xf32>
    %cst_1264 = arith.constant dense<0.000000e+00> : vector<5x16xf32>
    %1347 = tpu.matmul %1344, %1346, %cst_1264 {dimension_numbers = #tpu.dot_dimension_numbers<[1], [0], [0], [1], [0, 0, 1, 1], [], []>} : vector<5x32xf32>, vector<32x16xf32>, vector<5x16xf32> -> vector<5x16xf32>
    %1348 = arith.addf %1341, %1347 : vector<5x16xf32>
    %1349 = vector.extract_strided_slice %1343 {offsets = [1, 0], sizes = [5, 32], strides = [1, 1]} : vector<7x32xf32> to vector<5x32xf32>
    %c1_1265 = arith.constant 1 : index
    %c1_1266 = arith.constant 1 : index
    %c0_1267 = arith.constant 0 : index
    %c0_1268 = arith.constant 0 : index
    %1350 = vector.load %arg4[%c1_1265, %c1_1266, %c0_1267, %c0_1268] : memref<3x3x32x16xf32, #tpu.memory_space<vmem>>, vector<1x1x32x16xf32>
    %1351 = vector.shape_cast %1350 : vector<1x1x32x16xf32> to vector<32x16xf32>
    %cst_1269 = arith.constant dense<0.000000e+00> : vector<5x16xf32>
    %1352 = tpu.matmul %1349, %1351, %cst_1269 {dimension_numbers = #tpu.dot_dimension_numbers<[1], [0], [0], [1], [0, 0, 1, 1], [], []>} : vector<5x32xf32>, vector<32x16xf32>, vector<5x16xf32> -> vector<5x16xf32>
    %1353 = arith.addf %1348, %1352 : vector<5x16xf32>
    %1354 = vector.extract_strided_slice %1343 {offsets = [2, 0], sizes = [5, 32], strides = [1, 1]} : vector<7x32xf32> to vector<5x32xf32>
    %c1_1270 = arith.constant 1 : index
    %c2_1271 = arith.constant 2 : index
    %c0_1272 = arith.constant 0 : index
    %c0_1273 = arith.constant 0 : index
    %1355 = vector.load %arg4[%c1_1270, %c2_1271, %c0_1272, %c0_1273] : memref<3x3x32x16xf32, #tpu.memory_space<vmem>>, vector<1x1x32x16xf32>
    %1356 = vector.shape_cast %1355 : vector<1x1x32x16xf32> to vector<32x16xf32>
    %cst_1274 = arith.constant dense<0.000000e+00> : vector<5x16xf32>
    %1357 = tpu.matmul %1354, %1356, %cst_1274 {dimension_numbers = #tpu.dot_dimension_numbers<[1], [0], [0], [1], [0, 0, 1, 1], [], []>} : vector<5x32xf32>, vector<32x16xf32>, vector<5x16xf32> -> vector<5x16xf32>
    %1358 = arith.addf %1353, %1357 : vector<5x16xf32>
    %c6_1275 = arith.constant 6 : index
    %c0_1276 = arith.constant 0 : index
    %c0_1277 = arith.constant 0 : index
    %1359 = vector.load %arg9[%c6_1275, %c0_1276, %c0_1277] : memref<7x7x32xf32, #tpu.memory_space<vmem>>, vector<1x7x32xf32>
    %1360 = vector.shape_cast %1359 : vector<1x7x32xf32> to vector<7x32xf32>
    %1361 = vector.extract_strided_slice %1360 {offsets = [0, 0], sizes = [5, 32], strides = [1, 1]} : vector<7x32xf32> to vector<5x32xf32>
    %c2_1278 = arith.constant 2 : index
    %c0_1279 = arith.constant 0 : index
    %c0_1280 = arith.constant 0 : index
    %c0_1281 = arith.constant 0 : index
    %1362 = vector.load %arg4[%c2_1278, %c0_1279, %c0_1280, %c0_1281] : memref<3x3x32x16xf32, #tpu.memory_space<vmem>>, vector<1x1x32x16xf32>
    %1363 = vector.shape_cast %1362 : vector<1x1x32x16xf32> to vector<32x16xf32>
    %cst_1282 = arith.constant dense<0.000000e+00> : vector<5x16xf32>
    %1364 = tpu.matmul %1361, %1363, %cst_1282 {dimension_numbers = #tpu.dot_dimension_numbers<[1], [0], [0], [1], [0, 0, 1, 1], [], []>} : vector<5x32xf32>, vector<32x16xf32>, vector<5x16xf32> -> vector<5x16xf32>
    %1365 = arith.addf %1358, %1364 : vector<5x16xf32>
    %1366 = vector.extract_strided_slice %1360 {offsets = [1, 0], sizes = [5, 32], strides = [1, 1]} : vector<7x32xf32> to vector<5x32xf32>
    %c2_1283 = arith.constant 2 : index
    %c1_1284 = arith.constant 1 : index
    %c0_1285 = arith.constant 0 : index
    %c0_1286 = arith.constant 0 : index
    %1367 = vector.load %arg4[%c2_1283, %c1_1284, %c0_1285, %c0_1286] : memref<3x3x32x16xf32, #tpu.memory_space<vmem>>, vector<1x1x32x16xf32>
    %1368 = vector.shape_cast %1367 : vector<1x1x32x16xf32> to vector<32x16xf32>
    %cst_1287 = arith.constant dense<0.000000e+00> : vector<5x16xf32>
    %1369 = tpu.matmul %1366, %1368, %cst_1287 {dimension_numbers = #tpu.dot_dimension_numbers<[1], [0], [0], [1], [0, 0, 1, 1], [], []>} : vector<5x32xf32>, vector<32x16xf32>, vector<5x16xf32> -> vector<5x16xf32>
    %1370 = arith.addf %1365, %1369 : vector<5x16xf32>
    %1371 = vector.extract_strided_slice %1360 {offsets = [2, 0], sizes = [5, 32], strides = [1, 1]} : vector<7x32xf32> to vector<5x32xf32>
    %c2_1288 = arith.constant 2 : index
    %c2_1289 = arith.constant 2 : index
    %c0_1290 = arith.constant 0 : index
    %c0_1291 = arith.constant 0 : index
    %1372 = vector.load %arg4[%c2_1288, %c2_1289, %c0_1290, %c0_1291] : memref<3x3x32x16xf32, #tpu.memory_space<vmem>>, vector<1x1x32x16xf32>
    %1373 = vector.shape_cast %1372 : vector<1x1x32x16xf32> to vector<32x16xf32>
    %cst_1292 = arith.constant dense<0.000000e+00> : vector<5x16xf32>
    %1374 = tpu.matmul %1371, %1373, %cst_1292 {dimension_numbers = #tpu.dot_dimension_numbers<[1], [0], [0], [1], [0, 0, 1, 1], [], []>} : vector<5x32xf32>, vector<32x16xf32>, vector<5x16xf32> -> vector<5x16xf32>
    %1375 = arith.addf %1370, %1374 : vector<5x16xf32>
    %1376 = vector.broadcast %1 : vector<1x16xf32> to vector<5x16xf32>
    %1377 = arith.addf %1375, %1376 : vector<5x16xf32>
    %cst_1293 = arith.constant 0.000000e+00 : f32
    %1378 = vector.broadcast %cst_1293 : f32 to vector<5x16xf32>
    %1379 = arith.maximumf %1377, %1378 : vector<5x16xf32>
    %cst_1294 = arith.constant dense<0.000000e+00> : vector<16xf32>
    %1380 = vector.multi_reduction <add>, %1379, %cst_1294 [0] : vector<5x16xf32> to vector<16xf32>
    %1381 = vector.shape_cast %1380 : vector<16xf32> to vector<1x16xf32>
    %1382 = arith.addf %1323, %1381 : vector<1x16xf32>
    %cst_1295 = arith.constant 4.000000e-02 : f32
    %1383 = vector.broadcast %cst_1295 : f32 to vector<1x16xf32>
    %1384 = arith.mulf %1382, %1383 : vector<1x16xf32>
    %c0_1296 = arith.constant 0 : index
    %c0_1297 = arith.constant 0 : index
    %1385 = vector.load %arg6[%c0_1296, %c0_1297] : memref<16x8xf32, #tpu.memory_space<vmem>>, vector<16x8xf32>
    %cst_1298 = arith.constant dense<0.000000e+00> : vector<1x8xf32>
    %1386 = tpu.matmul %1384, %1385, %cst_1298 {dimension_numbers = #tpu.dot_dimension_numbers<[1], [0], [0], [1], [0, 0, 1, 1], [], []>} : vector<1x16xf32>, vector<16x8xf32>, vector<1x8xf32> -> vector<1x8xf32>
    %c0_1299 = arith.constant 0 : index
    %c0_1300 = arith.constant 0 : index
    %1387 = vector.load %arg7[%c0_1299, %c0_1300] : memref<1x8xf32, #tpu.memory_space<vmem>>, vector<1x8xf32>
    %1388 = arith.addf %1386, %1387 : vector<1x8xf32>
    %c0_1301 = arith.constant 0 : index
    %c0_1302 = arith.constant 0 : index
    %c0_1303 = arith.constant 0 : index
    %1389 = vector.load %arg8[%c0_1301, %c0_1302, %c0_1303] : memref<1x1x8xf32, #tpu.memory_space<vmem>>, vector<1x1x8xf32>
    %1390 = vector.shape_cast %1389 : vector<1x1x8xf32> to vector<1x8xf32>
    %1391 = vector.shape_cast %1388 : vector<1x8xf32> to vector<1x1x8xf32>
    tpu.vector_store %arg8[%c0_1301, %c0_1302, %c0_1303], %1391 {strides = array<i32>} : memref<1x1x8xf32, #tpu.memory_space<vmem>>, vector<1x1x8xf32>,
    return
  }
  func.func @transform_0(%arg0: i32) -> (i32, i32, i32, i32) {
    %c0_i32 = arith.constant 0 : i32
    %c0_i32_0 = arith.constant 0 : i32
    %c0_i32_1 = arith.constant 0 : i32
    %c0_i32_2 = arith.constant 0 : i32
    return %arg0, %c0_i32, %c0_i32_0, %c0_i32_1 : i32, i32, i32, i32
  }
  func.func @transform_1(%arg0: i32) -> (i32, i32, i32, i32) {
    %c0_i32 = arith.constant 0 : i32
    %c0_i32_0 = arith.constant 0 : i32
    %c0_i32_1 = arith.constant 0 : i32
    %c0_i32_2 = arith.constant 0 : i32
    %c0_i32_3 = arith.constant 0 : i32
    return %c0_i32, %c0_i32_0, %c0_i32_1, %c0_i32_2 : i32, i32, i32, i32
  }
  func.func @transform_2(%arg0: i32) -> (i32, i32) {
    %c0_i32 = arith.constant 0 : i32
    %c0_i32_0 = arith.constant 0 : i32
    %c0_i32_1 = arith.constant 0 : i32
    return %c0_i32, %c0_i32_0 : i32, i32
  }
  func.func @transform_3(%arg0: i32) -> (i32, i32, i32, i32) {
    %c0_i32 = arith.constant 0 : i32
    %c0_i32_0 = arith.constant 0 : i32
    %c0_i32_1 = arith.constant 0 : i32
    %c0_i32_2 = arith.constant 0 : i32
    %c0_i32_3 = arith.constant 0 : i32
    return %c0_i32, %c0_i32_0, %c0_i32_1, %c0_i32_2 : i32, i32, i32, i32
  }
  func.func @transform_4(%arg0: i32) -> (i32, i32) {
    %c0_i32 = arith.constant 0 : i32
    %c0_i32_0 = arith.constant 0 : i32
    %c0_i32_1 = arith.constant 0 : i32
    return %c0_i32, %c0_i32_0 : i32, i32
  }
  func.func @transform_5(%arg0: i32) -> (i32, i32) {
    %c0_i32 = arith.constant 0 : i32
    %c0_i32_0 = arith.constant 0 : i32
    %c0_i32_1 = arith.constant 0 : i32
    return %c0_i32, %c0_i32_0 : i32, i32
  }
  func.func @transform_6(%arg0: i32) -> (i32, i32) {
    %c0_i32 = arith.constant 0 : i32
    %c0_i32_0 = arith.constant 0 : i32
    %c0_i32_1 = arith.constant 0 : i32
    return %c0_i32, %c0_i32_0 : i32, i32
  }
  func.func @transform_7(%arg0: i32) -> (i32, i32, i32) {
    %c0_i32 = arith.constant 0 : i32
    %c0_i32_0 = arith.constant 0 : i32
    %c0_i32_1 = arith.constant 0 : i32
    return %arg0, %c0_i32, %c0_i32_0 : i32, i32, i32
  }
}

</mosaic_0001>

<bundles_post_ra>
// kernel: cnn_forward.1
= control target key start
LH: loop header
LB: loop body
LE: loop exit
PB: predicated region body
PF: predicated region fallthrough
CT: control target
= control target key end

     0   :  { %12 = vsyncpa [#allocation4], 0  ;;  %s19748_s0 = inlined_call_operand.vmem [shape: f32[2,16,16,3], index: 0, kind: input, shape index: {}]   ;;  %s19749_s1 = inlined_call_operand.vmem [shape: f32[3,3,3,32], index: 1, kind: input, shape index: {}]   ;;  %s19750_s2 = inlined_call_operand.vmem [shape: f32[1,32], index: 2, kind: input, shape index: {}]   ;;  %s19751_s3 = inlined_call_operand.vmem [shape: f32[3,3,32,16], index: 3, kind: input, shape index: {}]   ;;  %s19752_s4 = inlined_call_operand.vmem [shape: f32[1,16], index: 4, kind: input, shape index: {}]   ;;  %s19753_s5 = inlined_call_operand.vmem [shape: f32[16,8], index: 5, kind: input, shape index: {}]   ;;  %s19754_s6 = inlined_call_operand.vmem [shape: f32[1,8], index: 6, kind: input, shape index: {}]   ;;  %s19755_s7 = inlined_call_operand.hbm [shape: f32[2,1,8], index: 7, kind: output, shape index: {}]  }
   0x1   :  { %14 = vsyncpa [#allocation4 + $0x1], 0  ;;  %s17768_s24 = smov 0   ;;  %s17770_s25 = smov 0  }
   0x2   :  { %s17772_s26 = smov 0   ;;  %s17774_s27 = smov 0  }
   0x3 LB: > { %s17789_s28 = sadd.s32 4294967295, %s17722_s27   ;;  %s14803_s29 = sadd.s32 4294967294, %s17722_s27   ;;  %s17722_s27 = sphi %s17774_s27, %s19761_s27   ;;  %s17718_s26 = sphi %s17772_s26, %s19760_s26   ;;  %s17714_s25 = sphi %s17770_s25, %s19759_s25   ;;  %s17710_s24 = sphi %s17768_s24, %s19758_s24  }
   0x4   : > { %s17793_s30 = sadd.s32 1, %s17722_s27   ;;  %s179_s8 = sadd.s32 1, %s17718_s26 }
   0x5   : > { %s176_s9 = ssub.s32 %s17722_s27, %s17793_s30  ;;  %p189_p0 = scmp.ne.s32.totalorder %s17718_s26, %s17714_s25 }
   0x6   : > { %p177_p1 = scmp.eq.s32.totalorder %s176_s9, 0  ;;  %p190_p2 = scmp.eq.s32.totalorder %s17789_s28, 1 }
   0x7   : > { %p195_p3 = scmp.ne.s32.totalorder %s17714_s25, %s17710_s24  ;;  %p196_p4 = scmp.eq.s32.totalorder %s14803_s29, 1 }
   0x8   : > { %s17804_s10 = scalar_select %p177_p1, %s17718_s26, %s179_s8  }
   0x9   : > { %p17806_p5 = por %p190_p2, %p189_p0  ;;  %p17810_p6 = por %p196_p4, %p195_p3 }
   0xa   : > { %p14806_p7 = scmp.ge.s32.totalorder %s17722_s27, 1  ;;  %p240_p8 = scmp.lt.s32.totalorder %s17722_s27, 3 }
   0xc   : > { %p241_p9 = pnand %p14806_p7, %p240_p8 }
   0xd   : > { %v14809_v0 = vld [vmem:[%s19749_s1 + $0x4] sm:$0x7] (!%p241_p9)  ;;  %vm294_vm0 = vcmask (!%p241_p9), 1042432   ;;  %p271_p10 = scmp.lt.s32.totalorder (!%p241_p9), %s17789_s28, 1  ;;  %v280_v1 = vld [vmem:[%s19749_s1] sm:$0x7] (!%p241_p9) }
   0xe   : > { %244 = sbr.rel (%p241_p9) target bundleno = 1216 (0x4c0), region = 48  ;;  %15987 = vmatprep.subr.msk.mxu0 (!%p241_p9), %vm294_vm0, %v14809_v0  ;;  %16032 = vmatprep.subr.msk.mxu1 (!%p241_p9), %vm294_vm0, %v14809_v0  ;;  %vm285_vm1 = vcmask (!%p241_p9), 1046528   ;;  %vm289_vm2 = vcmask (!%p241_p9), 23552   ;;  %v14816_v12 = vld [vmem:[%s19749_s1 + $0x8] sm:$0x7] (!%p241_p9)  ;;  %vm457_vm3 = vcmask (!%p241_p9), 1045504  }
   0xf   : > { %15988 = vmatpush3.msk.msra.mxu0 (!%p241_p9), %vm294_vm0, %v14809_v0  ;;  %16033 = vmatpush3.msk.msra.mxu1 (!%p241_p9), %vm294_vm0, %v14809_v0  ;;  %v14822_v18 = vld [vmem:[%s19749_s1 + $0xc] sm:$0x7] (!%p241_p9)  ;;  %v14826_v20 = vld [vmem:[%s19749_s1 + $0x10] sm:$0x7] (!%p241_p9)  ;;  %v14830_v25 = vld [vmem:[%s19749_s1 + $0x14] sm:$0x7] (!%p241_p9) }
  0x10   : > { %15992 = vmatprep.subr.msk.mxu0 (!%p241_p9), %vm294_vm0, %v280_v1  ;;  %16037 = vmatprep.subr.msk.mxu1 (!%p241_p9), %vm294_vm0, %v280_v1  ;;  %v14836_v29 = vld [vmem:[%s19749_s1 + $0x18] sm:$0x7] (!%p241_p9)  ;;  %v14840_v31 = vld [vmem:[%s19749_s1 + $0x1c] sm:$0x7] (!%p241_p9)  ;;  %v14844_v36 = vld [vmem:[%s19749_s1 + $0x20] sm:$0x7] (!%p241_p9) }
  0x11   : > { %v14880_v41 = vld [vmem:[%s19749_s1 + $0x4] sm:$0x7] (!%p241_p9)  ;;  %v1874_v42 = vld [vmem:[%s19749_s1] sm:$0x7] (!%p241_p9)  ;;  %v14887_v43 = vld [vmem:[%s19749_s1 + $0x8] sm:$0x7] (!%p241_p9) }
  0x12   : > { %v14893_v44 = vld [vmem:[%s19749_s1 + $0xc] sm:$0x7] (!%p241_p9)  ;;  %v14897_v45 = vld [vmem:[%s19749_s1 + $0x10] sm:$0x7] (!%p241_p9)  ;;  %v14901_v50 = vld [vmem:[%s19749_s1 + $0x14] sm:$0x7] (!%p241_p9) }
  0x13   : > { %v14907_v54 = vld [vmem:[%s19749_s1 + $0x18] sm:$0x7] (!%p241_p9)  ;;  %v14911_v56 = vld [vmem:[%s19749_s1 + $0x1c] sm:$0x7] (!%p241_p9)  ;;  %v14915_v61 = vld [vmem:[%s19749_s1 + $0x20] sm:$0x7] (!%p241_p9) }
  0x14   : > { %vm1811_vm4 = vcmask (!%p241_p9), 254976   ;;  %vm1821_vm5 = vcmask (!%p241_p9), 257026   ;;  %vm1830_vm6 = vcmask (!%p241_p9), 259076   ;;  %vm1839_vm7 = vcmask (!%p241_p9), 261126   ;;  %s269_s13 = sand.u32 (!%p241_p9), 1, %s17714_s25   ;;  %s15377_s15 = sshll.u32 (!%p241_p9), %s17789_s28, 4 }
  0x15   : > { %s272_s17 = scalar_select %p271_p10, %s17789_s28, 1  ;;  %vm1819_vm8 = vcmask 253952   ;;  %vm17725_vm9 = vmmov 0   ;;  %vm11310_vm10 = vcmask 261120   ;;  %vm12018_vm11 = vcmask 126976  }
  0x16   : > { %vm14659_vm12 = vcmask 130048   ;;  %s270_s16 = scalar_lea.vmem [#allocation3], %s269_s13  ;;  %vm14733_vm13 = vcmask 57344   ;;  %s19706_s20 = scalar_lea.hbm %s19755_s7, %s15377_s15 }
  0x17   : > { %s15380_s18 = sshll.u32 %s272_s17, 8  ;;  %s14748_s17 = sshll.u32 %s270_s16, 4  ;;  %s19708_s17 = int_to_ptr.vmem [resolvable:$true] %s14748_s17 }
  0x18   : > { %s17833_s21 = scalar_lea.vmem %s19748_s0, %s15380_s18  ;;  %s14736_s22 = scalar_lea.sflag [#allocation4], %s269_s13 }
  0x19   : > { %v278_v2 = vld [vmem:[%s17833_s21] sm:$0xff]  ;;  %v279_v3 = vld [vmem:[%s17833_s21 + $0x8] sm:$0xff]  ;;  %v14820_v4 = vld [vmem:[%s17833_s21 + $0x10] sm:$0xff]  ;;  %s17660_s23 = scalar_lea.vmem %s19708_s17, 16  ;;  %s17727_s28 = smov [#allocation3]  }
  0x1a   : > { %v286_v5 = vrot.slane %v278_v2, 1  ;;  %v287_v6 = vrot.slane %v279_v3, 1  ;;  %v14821_v7 = vld [vmem:[%s17833_s21 + $0x18] sm:$0xff]  ;;  %v638_v8 = vrot.slane %v14820_v4, 1  ;;  %v458_v13 = vrot.slane %v278_v2, 2  ;;  %v17872_v21 = vld [vmem:[%s17833_s21 + $0x20] sm:$0xff]  ;;  %p17661_p11 = scmp.ne.s32.totalorder %s19708_s17, %s17660_s23 }
  0x1b   : > { %v639_v9 = vrot.slane %v14821_v7, 1  ;;  %v459_v14 = vrot.slane %v279_v3, 2  ;;  %v727_v15 = vrot.slane %v14820_v4, 2  ;;  %v728_v16 = vrot.slane %v14821_v7, 2  ;;  %v17882_v22 = vld [vmem:[%s17833_s21 + $0x28] sm:$0xff]  ;;  %v17929_v32 = vld [vmem:[%s17833_s21 + $0x30] sm:$0xff] }
  0x1c   : > { %v288_v10 = vsel %vm285_vm1, %v286_v5, %v287_v6  ;;  %v907_v23 = vrot.slane %v17872_v21, 1  ;;  %v17887_v24 = vrot.slane %v17882_v22, 1  ;;  %v996_v27 = vrot.slane %v17872_v21, 2  ;;  %v17941_v33 = vld [vmem:[%s17833_s21 + $0x38] sm:$0xff]  ;;  %v18039_v46 = vld [vmem:[%s17833_s21 + $0x40] sm:$0xff]  ;;  %v18051_v47 = vld [vmem:[%s17833_s21 + $0x48] sm:$0xff]  ;;  %p17662_p12 = pnand %p17661_p11, %p17806_p5 }
  0x1d   : > { %15989 = vmatprep.mubr.msk.f32.mxu0 %vm289_vm2, %v288_v10  ;;  %v640_v11 = vsel %vm285_vm1, %v638_v8, %v639_v9  ;;  %v460_v17 = vsel %vm457_vm3, %v458_v13, %v459_v14  ;;  %v729_v19 = vsel %vm457_vm3, %v727_v15, %v728_v16  ;;  %v17905_v28 = vrot.slane %v17882_v22, 2  ;;  %v18103_v57 = vld [vmem:[%s17833_s21 + $0x50] sm:$0xff]  ;;  %v18115_v58 = vld [vmem:[%s17833_s21 + $0x58] sm:$0xff]  ;;  %v14963_v5 = vld [vmem:[%s19749_s1 + $0xc] sm:$0x7]  ;;  %s17664_s29 = sshll.u32 %s17727_s28, 4  ;;  %s17665_s29 = int_to_ptr.vmem [resolvable:$false] %s17664_s29 }
  0x1e   : > { %16034 = vmatprep.mubr.msk.f32.mxu1 %vm289_vm2, %v640_v11  ;;  %15990 = vmatmul.mubr.msk.f32.vlgmr.msra.gmra.mrb[0].mxu0 %vm289_vm2, %v287_v6  ;;  %v909_v26 = vsel %vm285_vm1, %v907_v23, %v17887_v24  ;;  %v1637_v34 = vrot.slane %v17929_v32, 1  ;;  %v17946_v35 = vrot.slane %v17941_v33, 1  ;;  %v1721_v38 = vrot.slane %v17929_v32, 2  ;;  %v14967_v6 = vld [vmem:[%s19749_s1 + $0x10] sm:$0x7]  ;;  %v18225_v8 = vld [vmem:[%s17833_s21 + $0x68] sm:$0xff]  ;;  %p17663_p13 = pneg %p17662_p12  ;;  %p17667_p0 = scmp.lt.s32.totalorder %s19708_s17, %s17665_s29 }
  0x1f   : > { %15993 = vmatpush3.msk.msra.mxu0 %vm294_vm0, %v280_v1  ;;  %16035 = vmatmul.mubr.msk.f32.vlgmr.msra.gmra.mrb[0].mxu1 %vm289_vm2, %v639_v9  ;;  %v17913_v30 = vsel %vm457_vm3, %v996_v27, %v17905_v28  ;;  %v17968_v39 = vrot.slane %v17941_v33, 2  ;;  %v2489_v48 = vrot.slane %v18039_v46, 1  ;;  %v18056_v49 = vrot.slane %v18051_v47, 1  ;;  %v14977_v15 = vld [vmem:[%s19749_s1 + $0x18] sm:$0x7]  ;;  %s17666_s8 = scalar_lea.vmem %s17665_s29, 32 }
  0x20   : > { %16038 = vmatpush3.msk.msra.mxu1 %vm294_vm0, %v280_v1  ;;  %15994 = vmatprep.mubr.msk.f32.mxu0 %vm289_vm2, %v278_v2  ;;  %v17955_v37 = vsel %vm285_vm1, %v1637_v34, %v17946_v35  ;;  %v2577_v52 = vrot.slane %v18039_v46, 2  ;;  %v18076_v53 = vrot.slane %v18051_v47, 2  ;;  %v3212_v59 = vrot.slane %v18103_v57, 1  ;;  %v14950_v2 = vld [vmem:[%s19749_s1 + $0x4] sm:$0x7]  ;;  %p17668_p1 = scmp.lt.s32.totalorder %s17666_s8, %s17660_s23 }
  0x21   : > { %15997 = vmatprep.subr.msk.mxu0 %vm294_vm0, %v14816_v12  ;;  %16039 = vmatprep.mubr.msk.f32.mxu1 %vm289_vm2, %v14820_v4  ;;  %v17974_v40 = vsel %vm457_vm3, %v1721_v38, %v17968_v39  ;;  %v2491_v51 = vsel %vm285_vm1, %v2489_v48, %v18056_v49  ;;  %v18120_v60 = vrot.slane %v18115_v58, 1  ;;  %v3296_v63 = vrot.slane %v18103_v57, 2  ;;  %v15020_v27 = vld [vmem:[%s19749_s1 + $0x4] sm:$0x7] }
  0x22   : > { %16042 = vmatprep.subr.msk.mxu1 %vm294_vm0, %v14816_v12  ;;  %v18085_v55 = vsel %vm457_vm3, %v2577_v52, %v18076_v53  ;;  %v18142_v0 = vrot.slane %v18115_v58, 2  ;;  %v18230_v10 = vrot.slane %v18225_v8, 1  ;;  %v15090_v52 = vld [vmem:[%s19749_s1 + $0x4] sm:$0x7]  ;;  %p17669_p2 = por %p17668_p1, %p17667_p0 }
  0x23   : > { %v18129_v62 = vsel %vm285_vm1, %v3212_v59, %v18120_v60 }
  0x24   : > { %v18148_v1 = vsel %vm457_vm3, %v3296_v63, %v18142_v0  ;;  %p17670_p3 = pnand %p17669_p2, %p17663_p13 }
  0x26   : > { %15995 = vmatmul.mubr.msk.f32.vlgmr.msra.gmra.mrb[0].mxu0 %vm289_vm2, %v279_v3  ;;  %v3445_v3 = vld [vmem:[%s19749_s1] sm:$0x7] }
  0x27   : > { %15998 = vmatpush3.msk.msra.mxu0 %vm294_vm0, %v14816_v12  ;;  %16040 = vmatmul.mubr.msk.f32.vlgmr.msra.gmra.mrb[0].mxu1 %vm289_vm2, %v14821_v7 }
  0x28   : > { %16043 = vmatpush3.msk.msra.mxu1 %vm294_vm0, %v14816_v12  ;;  %15999 = vmatprep.mubr.msk.f32.mxu0 %vm289_vm2, %v460_v17  ;;  %v14981_v17 = vld [vmem:[%s19749_s1 + $0x1c] sm:$0x7] }
  0x29   : > { %16002 = vmatprep.subr.msk.mxu0 %vm294_vm0, %v14822_v18  ;;  %16044 = vmatprep.mubr.msk.f32.mxu1 %vm289_vm2, %v729_v19 }
  0x2a   : > { %16047 = vmatprep.subr.msk.mxu1 %vm294_vm0, %v14822_v18 }
  0x2e   : > { %16000 = vmatmul.mubr.msk.f32.vlgmr.msra.gmra.mrb[0].mxu0 %vm289_vm2, %v459_v14  ;;  %v18250_v14 = vrot.slane %v18225_v8, 2 }
  0x2f   : > { %16003 = vmatpush3.msk.msra.mxu0 %vm294_vm0, %v14822_v18  ;;  %16045 = vmatmul.mubr.msk.f32.vlgmr.msra.gmra.mrb[0].mxu1 %vm289_vm2, %v728_v16 }
  0x30   : > { %16048 = vmatpush3.msk.msra.mxu1 %vm294_vm0, %v14822_v18  ;;  %16004 = vmatprep.mubr.msk.f32.mxu0 %vm289_vm2, %v14820_v4  ;;  %v14957_v4 = vld [vmem:[%s19749_s1 + $0x8] sm:$0x7]  ;;  %v18277_v18 = vld [vmem:[%s17833_s21 + $0x70] sm:$0xff] }
  0x31   : > { %16007 = vmatprep.subr.msk.mxu0 %vm294_vm0, %v14826_v20  ;;  %16049 = vmatprep.mubr.msk.f32.mxu1 %vm289_vm2, %v17872_v21 }
  0x32   : > { %16052 = vmatprep.subr.msk.mxu1 %vm294_vm0, %v14826_v20 }
  0x36   : > { %16005 = vmatmul.mubr.msk.f32.vlgmr.msra.gmra.mrb[0].mxu0 %vm289_vm2, %v14821_v7  ;;  %v18213_v7 = vld [vmem:[%s17833_s21 + $0x60] sm:$0xff] }
  0x37   : > { %16008 = vmatpush3.msk.msra.mxu0 %vm294_vm0, %v14826_v20  ;;  %16050 = vmatmul.mubr.msk.f32.vlgmr.msra.gmra.mrb[0].mxu1 %vm289_vm2, %v17882_v22  ;;  %v4148_v13 = vrot.slane %v18213_v7, 2 }
  0x38   : > { %16053 = vmatpush3.msk.msra.mxu1 %vm294_vm0, %v14826_v20  ;;  %16009 = vmatprep.mubr.msk.f32.mxu0 %vm289_vm2, %v640_v11  ;;  %v14971_v11 = vld [vmem:[%s19749_s1 + $0x14] sm:$0x7]  ;;  %v4783_v20 = vrot.slane %v18277_v18, 1 }
  0x39   : > { %16012 = vmatprep.subr.msk.mxu0 %vm294_vm0, %v14830_v25  ;;  %16054 = vmatprep.mubr.msk.f32.mxu1 %vm289_vm2, %v909_v26 }
  0x3a   : > { %16057 = vmatprep.subr.msk.mxu1 %vm294_vm0, %v14830_v25 }
  0x3e   : > { %16010 = vmatmul.mubr.msk.f32.vlgmr.msra.gmra.mrb[0].mxu0 %vm289_vm2, %v639_v9  ;;  %v4060_v9 = vrot.slane %v18213_v7, 1 }
  0x3f   : > { %16013 = vmatpush3.msk.msra.mxu0 %vm294_vm0, %v14830_v25  ;;  %16055 = vmatmul.mubr.msk.f32.vlgmr.msra.gmra.mrb[0].mxu1 %vm289_vm2, %v17887_v24 }
  0x40   : > { %16058 = vmatpush3.msk.msra.mxu1 %vm294_vm0, %v14830_v25  ;;  %16014 = vmatprep.mubr.msk.f32.mxu0 %vm289_vm2, %v729_v19  ;;  %v4062_v12 = vsel %vm285_vm1, %v4060_v9, %v18230_v10  ;;  %v18289_v19 = vld [vmem:[%s17833_s21 + $0x78] sm:$0xff] }
  0x41   : > { %16017 = vmatprep.subr.msk.mxu0 %vm294_vm0, %v14836_v29  ;;  %16059 = vmatprep.mubr.msk.f32.mxu1 %vm289_vm2, %v17913_v30  ;;  %v18316_v25 = vrot.slane %v18289_v19, 2 }
  0x42   : > { %16062 = vmatprep.subr.msk.mxu1 %vm294_vm0, %v14836_v29 }
  0x46   : > { %16015 = vmatmul.mubr.msk.f32.vlgmr.msra.gmra.mrb[0].mxu0 %vm289_vm2, %v728_v16  ;;  %v18259_v16 = vsel %vm457_vm3, %v4148_v13, %v18250_v14 }
  0x47   : > { %16018 = vmatpush3.msk.msra.mxu0 %vm294_vm0, %v14836_v29  ;;  %16060 = vmatmul.mubr.msk.f32.vlgmr.msra.gmra.mrb[0].mxu1 %vm289_vm2, %v17905_v28 }
  0x48   : > { %16063 = vmatpush3.msk.msra.mxu1 %vm294_vm0, %v14836_v29  ;;  %16019 = vmatprep.mubr.msk.f32.mxu0 %vm289_vm2, %v17872_v21  ;;  %v15027_v29 = vld [vmem:[%s19749_s1 + $0x8] sm:$0x7] }
  0x49   : > { %16022 = vmatprep.subr.msk.mxu0 %vm294_vm0, %v14840_v31  ;;  %16064 = vmatprep.mubr.msk.f32.mxu1 %vm289_vm2, %v17929_v32 }
  0x4a   : > { %16067 = vmatprep.subr.msk.mxu1 %vm294_vm0, %v14840_v31 }
  0x4e   : > { %16020 = vmatmul.mubr.msk.f32.vlgmr.msra.gmra.mrb[0].mxu0 %vm289_vm2, %v17882_v22 }
  0x4f   : > { %16023 = vmatpush3.msk.msra.mxu0 %vm294_vm0, %v14840_v31  ;;  %16065 = vmatmul.mubr.msk.f32.vlgmr.msra.gmra.mrb[0].mxu1 %vm289_vm2, %v17941_v33 }
  0x50   : > { %16068 = vmatpush3.msk.msra.mxu1 %vm294_vm0, %v14840_v31  ;;  %16024 = vmatprep.mubr.msk.f32.mxu0 %vm289_vm2, %v909_v26  ;;  %v15037_v31 = vld [vmem:[%s19749_s1 + $0x10] sm:$0x7] }
  0x51   : > { %16027 = vmatprep.subr.msk.mxu0 %vm294_vm0, %v14844_v36  ;;  %16069 = vmatprep.mubr.msk.f32.mxu1 %vm289_vm2, %v17955_v37 }
  0x52   : > { %16072 = vmatprep.subr.msk.mxu1 %vm294_vm0, %v14844_v36 }
  0x56   : > { %16025 = vmatmul.mubr.msk.f32.vlgmr.msra.gmra.mrb[0].mxu0 %vm289_vm2, %v17887_v24 }
  0x57   : > { %16028 = vmatpush3.msk.msra.mxu0 %vm294_vm0, %v14844_v36  ;;  %16070 = vmatmul.mubr.msk.f32.vlgmr.msra.gmra.mrb[0].mxu1 %vm289_vm2, %v17946_v35 }
  0x58   : > { %16073 = vmatpush3.msk.msra.mxu1 %vm294_vm0, %v14844_v36  ;;  %16029 = vmatprep.mubr.msk.f32.mxu0 %vm289_vm2, %v17913_v30  ;;  %v15041_v36 = vld [vmem:[%s19749_s1 + $0x14] sm:$0x7] }
  0x59   : > { %16074 = vmatprep.mubr.msk.f32.mxu1 %vm289_vm2, %v17974_v40  ;;  %16077 = vmatprep.subr.msk.mxu0 %vm294_vm0, %v14880_v41 }
  0x5a   : > { %16122 = vmatprep.subr.msk.mxu1 %vm294_vm0, %v14880_v41 }
  0x5e   : > { %16030 = vmatmul.mubr.msk.f32.vlgmr.msra.gmra.mrb[0].mxu0 %vm289_vm2, %v17905_v28 }
  0x5f   : > { %16075 = vmatmul.mubr.msk.f32.vlgmr.msra.gmra.mrb[0].mxu1 %vm289_vm2, %v17968_v39  ;;  %16078 = vmatpush3.msk.msra.mxu0 %vm294_vm0, %v14880_v41 }
  0x60   : > { %16123 = vmatpush3.msk.msra.mxu1 %vm294_vm0, %v14880_v41  ;;  %16079 = vmatprep.mubr.msk.f32.mxu0 %vm289_vm2, %v909_v26 }
  0x61   : > { %16082 = vmatprep.subr.msk.mxu0 %vm294_vm0, %v1874_v42  ;;  %16124 = vmatprep.mubr.msk.f32.mxu1 %vm289_vm2, %v17955_v37 }
  0x62   : > { %16127 = vmatprep.subr.msk.mxu1 %vm294_vm0, %v1874_v42  ;;  %16080 = vmatmul.mubr.msk.f32.vlgmr.msra.gmra.mrb[2].mxu0 %vm289_vm2, %v17887_v24  ;;  %v4867_v24 = vrot.slane %v18277_v18, 2 }
  0x63   : > { %16083 = vmatpush3.msk.msra.mxu0 %vm294_vm0, %v1874_v42  ;;  %16125 = vmatmul.mubr.msk.f32.vlgmr.msra.gmra.mrb[2].mxu1 %vm289_vm2, %v17946_v35 }
  0x64   : > { %16128 = vmatpush3.msk.msra.mxu1 %vm294_vm0, %v1874_v42  ;;  %16084 = vmatprep.mubr.msk.f32.mxu0 %vm289_vm2, %v17872_v21  ;;  %v18294_v21 = vrot.slane %v18289_v19, 1  ;;  %v18322_v26 = vsel %vm457_vm3, %v4867_v24, %v18316_v25  ;;  %v15051_v42 = vld [vmem:[%s19749_s1 + $0x1c] sm:$0x7] }
  0x65   : > { %16087 = vmatprep.subr.msk.mxu0 %vm294_vm0, %v14887_v43  ;;  %16129 = vmatprep.mubr.msk.f32.mxu1 %vm289_vm2, %v17929_v32 }
  0x66   : > { %16132 = vmatprep.subr.msk.mxu1 %vm294_vm0, %v14887_v43  ;;  %v18303_v23 = vsel %vm285_vm1, %v4783_v20, %v18294_v21 }
  0x6a   : > { %16085 = vmatmul.mubr.msk.f32.vlgmr.msra.gmra.mrb[2].mxu0 %vm289_vm2, %v17882_v22  ;;  %v14985_v22 = vld [vmem:[%s19749_s1 + $0x20] sm:$0x7] }
  0x6b   : > { %16088 = vmatpush3.msk.msra.mxu0 %vm294_vm0, %v14887_v43  ;;  %16130 = vmatmul.mubr.msk.f32.vlgmr.msra.gmra.mrb[2].mxu1 %vm289_vm2, %v17941_v33 }
  0x6c   : > { %16133 = vmatpush3.msk.msra.mxu1 %vm294_vm0, %v14887_v43  ;;  %16089 = vmatprep.mubr.msk.f32.mxu0 %vm289_vm2, %v17913_v30  ;;  %v15033_v30 = vld [vmem:[%s19749_s1 + $0xc] sm:$0x7]  ;;  %v18451_v43 = vld [vmem:[%s17833_s21 + $0x90] sm:$0xff] }
  0x6d   : > { %16092 = vmatprep.subr.msk.mxu0 %vm294_vm0, %v14893_v44  ;;  %16134 = vmatprep.mubr.msk.f32.mxu1 %vm289_vm2, %v17974_v40 }
  0x6e   : > { %16137 = vmatprep.subr.msk.mxu1 %vm294_vm0, %v14893_v44 }
  0x72   : > { %16090 = vmatmul.mubr.msk.f32.vlgmr.msra.gmra.mrb[2].mxu0 %vm289_vm2, %v17905_v28  ;;  %v5016_v28 = vld [vmem:[%s19749_s1] sm:$0x7] }
  0x73   : > { %16093 = vmatpush3.msk.msra.mxu0 %vm294_vm0, %v14893_v44  ;;  %16135 = vmatmul.mubr.msk.f32.vlgmr.msra.gmra.mrb[2].mxu1 %vm289_vm2, %v17968_v39 }
  0x74   : > { %16138 = vmatpush3.msk.msra.mxu1 %vm294_vm0, %v14893_v44  ;;  %16094 = vmatprep.mubr.msk.f32.mxu0 %vm289_vm2, %v17929_v32  ;;  %v18387_v32 = vld [vmem:[%s17833_s21 + $0x80] sm:$0xff]  ;;  %v18463_v44 = vld [vmem:[%s17833_s21 + $0x98] sm:$0xff] }
  0x75   : > { %16097 = vmatprep.subr.msk.mxu0 %vm294_vm0, %v14897_v45  ;;  %16139 = vmatprep.mubr.msk.f32.mxu1 %vm289_vm2, %v18039_v46  ;;  %v5631_v34 = vrot.slane %v18387_v32, 1  ;;  %v5719_v38 = vrot.slane %v18387_v32, 2 }
  0x76   : > { %16142 = vmatprep.subr.msk.mxu1 %vm294_vm0, %v14897_v45 }
  0x7a   : > { %16095 = vmatmul.mubr.msk.f32.vlgmr.msra.gmra.mrb[2].mxu0 %vm289_vm2, %v17941_v33  ;;  %v18399_v33 = vld [vmem:[%s17833_s21 + $0x88] sm:$0xff] }
  0x7b   : > { %16098 = vmatpush3.msk.msra.mxu0 %vm294_vm0, %v14897_v45  ;;  %16140 = vmatmul.mubr.msk.f32.vlgmr.msra.gmra.mrb[2].mxu1 %vm289_vm2, %v18051_v47 }
  0x7c   : > { %16143 = vmatpush3.msk.msra.mxu1 %vm294_vm0, %v14897_v45  ;;  %16099 = vmatprep.mubr.msk.f32.mxu0 %vm289_vm2, %v17955_v37  ;;  %v6354_v45 = vrot.slane %v18451_v43, 1 }
  0x7d   : > { %16102 = vmatprep.subr.msk.mxu0 %vm294_vm0, %v14901_v50  ;;  %16144 = vmatprep.mubr.msk.f32.mxu1 %vm289_vm2, %v2491_v51 }
  0x7e   : > { %16147 = vmatprep.subr.msk.mxu1 %vm294_vm0, %v14901_v50 }
  0x82   : > { %16100 = vmatmul.mubr.msk.f32.vlgmr.msra.gmra.mrb[2].mxu0 %vm289_vm2, %v17946_v35  ;;  %v18404_v35 = vrot.slane %v18399_v33, 1 }
  0x83   : > { %16103 = vmatpush3.msk.msra.mxu0 %vm294_vm0, %v14901_v50  ;;  %16145 = vmatmul.mubr.msk.f32.vlgmr.msra.gmra.mrb[2].mxu1 %vm289_vm2, %v18056_v49 }
  0x84   : > { %16148 = vmatpush3.msk.msra.mxu1 %vm294_vm0, %v14901_v50  ;;  %16104 = vmatprep.mubr.msk.f32.mxu0 %vm289_vm2, %v17974_v40  ;;  %v5633_v37 = vsel %vm285_vm1, %v5631_v34, %v18404_v35  ;;  %v15047_v40 = vld [vmem:[%s19749_s1 + $0x18] sm:$0x7]  ;;  %v18490_v50 = vrot.slane %v18463_v44, 2 }
  0x85   : > { %16107 = vmatprep.subr.msk.mxu0 %vm294_vm0, %v14907_v54  ;;  %16149 = vmatprep.mubr.msk.f32.mxu1 %vm289_vm2, %v18085_v55 }
  0x86   : > { %16152 = vmatprep.subr.msk.mxu1 %vm294_vm0, %v14907_v54 }
  0x8a   : > { %16105 = vmatmul.mubr.msk.f32.vlgmr.msra.gmra.mrb[2].mxu0 %vm289_vm2, %v17968_v39  ;;  %v18424_v39 = vrot.slane %v18399_v33, 2 }
  0x8b   : > { %16108 = vmatpush3.msk.msra.mxu0 %vm294_vm0, %v14907_v54  ;;  %16150 = vmatmul.mubr.msk.f32.vlgmr.msra.gmra.mrb[2].mxu1 %vm289_vm2, %v18076_v53 }
  0x8c   : > { %16153 = vmatpush3.msk.msra.mxu1 %vm294_vm0, %v14907_v54  ;;  %16109 = vmatprep.mubr.msk.f32.mxu0 %vm289_vm2, %v18039_v46  ;;  %v18433_v41 = vsel %vm457_vm3, %v5719_v38, %v18424_v39  ;;  %v15097_v54 = vld [vmem:[%s19749_s1 + $0x8] sm:$0x7] }
  0x8d   : > { %16112 = vmatprep.subr.msk.mxu0 %vm294_vm0, %v14911_v56  ;;  %16154 = vmatprep.mubr.msk.f32.mxu1 %vm289_vm2, %v18103_v57 }
  0x8e   : > { %16157 = vmatprep.subr.msk.mxu1 %vm294_vm0, %v14911_v56 }
  0x92   : > { %16110 = vmatmul.mubr.msk.f32.vlgmr.msra.gmra.mrb[2].mxu0 %vm289_vm2, %v18051_v47 }
  0x93   : > { %16113 = vmatpush3.msk.msra.mxu0 %vm294_vm0, %v14911_v56  ;;  %16155 = vmatmul.mubr.msk.f32.vlgmr.msra.gmra.mrb[2].mxu1 %vm289_vm2, %v18115_v58 }
  0x94   : > { %16158 = vmatpush3.msk.msra.mxu1 %vm294_vm0, %v14911_v56  ;;  %16114 = vmatprep.mubr.msk.f32.mxu0 %vm289_vm2, %v2491_v51 }
  0x95   : > { %16117 = vmatprep.subr.msk.mxu0 %vm294_vm0, %v14915_v61  ;;  %16159 = vmatprep.mubr.msk.f32.mxu1 %vm289_vm2, %v18129_v62 }
  0x96   : > { %16162 = vmatprep.subr.msk.mxu1 %vm294_vm0, %v14915_v61 }
  0x9a   : > { %16115 = vmatmul.mubr.msk.f32.vlgmr.msra.gmra.mrb[2].mxu0 %vm289_vm2, %v18056_v49 }
  0x9b   : > { %16118 = vmatpush3.msk.msra.mxu0 %vm294_vm0, %v14915_v61  ;;  %16160 = vmatmul.mubr.msk.f32.vlgmr.msra.gmra.mrb[2].mxu1 %vm289_vm2, %v18120_v60 }
  0x9c   : > { %16163 = vmatpush3.msk.msra.mxu1 %vm294_vm0, %v14915_v61  ;;  %16119 = vmatprep.mubr.msk.f32.mxu0 %vm289_vm2, %v18085_v55 }
  0x9d   : > { %16164 = vmatprep.mubr.msk.f32.mxu1 %vm289_vm2, %v18148_v1  ;;  %16167 = vmatprep.subr.msk.mxu0 %vm294_vm0, %v14950_v2 }
  0x9e   : > { %16212 = vmatprep.subr.msk.mxu1 %vm294_vm0, %v14950_v2 }
  0xa2   : > { %16120 = vmatmul.mubr.msk.f32.vlgmr.msra.gmra.mrb[2].mxu0 %vm289_vm2, %v18076_v53 }
  0xa3   : > { %16165 = vmatmul.mubr.msk.f32.vlgmr.msra.gmra.mrb[2].mxu1 %vm289_vm2, %v18142_v0  ;;  %16168 = vmatpush3.msk.msra.mxu0 %vm294_vm0, %v14950_v2 }
  0xa4   : > { %16213 = vmatpush3.msk.msra.mxu1 %vm294_vm0, %v14950_v2  ;;  %16169 = vmatprep.mubr.msk.f32.mxu0 %vm289_vm2, %v2491_v51 }
  0xa5   : > { %16172 = vmatprep.subr.msk.mxu0 %vm294_vm0, %v3445_v3  ;;  %16214 = vmatprep.mubr.msk.f32.mxu1 %vm289_vm2, %v18129_v62 }
  0xa6   : > { %16217 = vmatprep.subr.msk.mxu1 %vm294_vm0, %v3445_v3  ;;  %16170 = vmatmul.mubr.msk.f32.vlgmr.msra.gmra.mrb[4].mxu0 %vm289_vm2, %v18056_v49  ;;  %v6438_v49 = vrot.slane %v18451_v43, 2 }
  0xa7   : > { %16173 = vmatpush3.msk.msra.mxu0 %vm294_vm0, %v3445_v3  ;;  %16215 = vmatmul.mubr.msk.f32.vlgmr.msra.gmra.mrb[4].mxu1 %vm289_vm2, %v18120_v60 }
  0xa8   : > { %16218 = vmatpush3.msk.msra.mxu1 %vm294_vm0, %v3445_v3  ;;  %16174 = vmatprep.mubr.msk.f32.mxu0 %vm289_vm2, %v18039_v46  ;;  %v18468_v46 = vrot.slane %v18463_v44, 1  ;;  %v18496_v51 = vsel %vm457_vm3, %v6438_v49, %v18490_v50 }
  0xa9   : > { %16177 = vmatprep.subr.msk.mxu0 %vm294_vm0, %v14957_v4  ;;  %16219 = vmatprep.mubr.msk.f32.mxu1 %vm289_vm2, %v18103_v57 }
  0xaa   : > { %16222 = vmatprep.subr.msk.mxu1 %vm294_vm0, %v14957_v4  ;;  %v18477_v48 = vsel %vm285_vm1, %v6354_v45, %v18468_v46 }
  0xae   : > { %16175 = vmatmul.mubr.msk.f32.vlgmr.msra.gmra.mrb[4].mxu0 %vm289_vm2, %v18051_v47  ;;  %v15055_v47 = vld [vmem:[%s19749_s1 + $0x20] sm:$0x7] }
  0xaf   : > { %16178 = vmatpush3.msk.msra.mxu0 %vm294_vm0, %v14957_v4  ;;  %16220 = vmatmul.mubr.msk.f32.vlgmr.msra.gmra.mrb[4].mxu1 %vm289_vm2, %v18115_v58 }
  0xb0   : > { %16223 = vmatpush3.msk.msra.mxu1 %vm294_vm0, %v14957_v4  ;;  %16179 = vmatprep.mubr.msk.f32.mxu0 %vm289_vm2, %v18085_v55  ;;  %v18536_v55 = vld [vmem:[%s19750_s2] ss:$0 sm:$0xff]  ;;  %v15103_v4 = vld [vmem:[%s19749_s1 + $0xc] sm:$0x7] }
  0xb1   : > { %16182 = vmatprep.subr.msk.mxu0 %vm294_vm0, %v14963_v5  ;;  %16224 = vmatprep.mubr.msk.f32.mxu1 %vm289_vm2, %v18148_v1 }
  0xb2   : > { %16227 = vmatprep.subr.msk.mxu1 %vm294_vm0, %v14963_v5 }
  0xb6   : > { %16180 = vmatmul.mubr.msk.f32.vlgmr.msra.gmra.mrb[4].mxu0 %vm289_vm2, %v18076_v53  ;;  %v6587_v53 = vld [vmem:[%s19749_s1] sm:$0x7] }
  0xb7   : > { %16183 = vmatpush3.msk.msra.mxu0 %vm294_vm0, %v14963_v5  ;;  %16225 = vmatmul.mubr.msk.f32.vlgmr.msra.gmra.mrb[4].mxu1 %vm289_vm2, %v18142_v0 }
  0xb8   : > { %16228 = vmatpush3.msk.msra.mxu1 %vm294_vm0, %v14963_v5  ;;  %16184 = vmatprep.mubr.msk.f32.mxu0 %vm289_vm2, %v18103_v57 }
  0xb9   : > { %16187 = vmatprep.subr.msk.mxu0 %vm294_vm0, %v14967_v6  ;;  %16229 = vmatprep.mubr.msk.f32.mxu1 %vm289_vm2, %v18213_v7 }
  0xba   : > { %16232 = vmatprep.subr.msk.mxu1 %vm294_vm0, %v14967_v6 }
  0xbe   : > { %16185 = vmatmul.mubr.msk.f32.vlgmr.msra.gmra.mrb[4].mxu0 %vm289_vm2, %v18115_v58 }
  0xbf   : > { %16188 = vmatpush3.msk.msra.mxu0 %vm294_vm0, %v14967_v6  ;;  %16230 = vmatmul.mubr.msk.f32.vlgmr.msra.gmra.mrb[4].mxu1 %vm289_vm2, %v18225_v8 }
  0xc0   : > { %16233 = vmatpush3.msk.msra.mxu1 %vm294_vm0, %v14967_v6  ;;  %16189 = vmatprep.mubr.msk.f32.mxu0 %vm289_vm2, %v18129_v62 }
  0xc1   : > { %16192 = vmatprep.subr.msk.mxu0 %vm294_vm0, %v14971_v11  ;;  %16234 = vmatprep.mubr.msk.f32.mxu1 %vm289_vm2, %v4062_v12 }
  0xc2   : > { %16237 = vmatprep.subr.msk.mxu1 %vm294_vm0, %v14971_v11 }
  0xc6   : > { %16190 = vmatmul.mubr.msk.f32.vlgmr.msra.gmra.mrb[4].mxu0 %vm289_vm2, %v18120_v60 }
  0xc7   : > { %16193 = vmatpush3.msk.msra.mxu0 %vm294_vm0, %v14971_v11  ;;  %16235 = vmatmul.mubr.msk.f32.vlgmr.msra.gmra.mrb[4].mxu1 %vm289_vm2, %v18230_v10 }
  0xc8   : > { %16238 = vmatpush3.msk.msra.mxu1 %vm294_vm0, %v14971_v11  ;;  %16194 = vmatprep.mubr.msk.f32.mxu0 %vm289_vm2, %v18148_v1 }
  0xc9   : > { %16197 = vmatprep.subr.msk.mxu0 %vm294_vm0, %v14977_v15  ;;  %16239 = vmatprep.mubr.msk.f32.mxu1 %vm289_vm2, %v18259_v16 }
  0xca   : > { %16242 = vmatprep.subr.msk.mxu1 %vm294_vm0, %v14977_v15 }
  0xce   : > { %16195 = vmatmul.mubr.msk.f32.vlgmr.msra.gmra.mrb[4].mxu0 %vm289_vm2, %v18142_v0 }
  0xcf   : > { %16198 = vmatpush3.msk.msra.mxu0 %vm294_vm0, %v14977_v15  ;;  %16240 = vmatmul.mubr.msk.f32.vlgmr.msra.gmra.mrb[4].mxu1 %vm289_vm2, %v18250_v14 }
  0xd0   : > { %16243 = vmatpush3.msk.msra.mxu1 %vm294_vm0, %v14977_v15  ;;  %16199 = vmatprep.mubr.msk.f32.mxu0 %vm289_vm2, %v18213_v7 }
  0xd1   : > { %16202 = vmatprep.subr.msk.mxu0 %vm294_vm0, %v14981_v17  ;;  %16244 = vmatprep.mubr.msk.f32.mxu1 %vm289_vm2, %v18277_v18 }
  0xd2   : > { %16247 = vmatprep.subr.msk.mxu1 %vm294_vm0, %v14981_v17 }
  0xd6   : > { %16200 = vmatmul.mubr.msk.f32.vlgmr.msra.gmra.mrb[4].mxu0 %vm289_vm2, %v18225_v8 }
  0xd7   : > { %16203 = vmatpush3.msk.msra.mxu0 %vm294_vm0, %v14981_v17  ;;  %16245 = vmatmul.mubr.msk.f32.vlgmr.msra.gmra.mrb[4].mxu1 %vm289_vm2, %v18289_v19 }
  0xd8   : > { %16248 = vmatpush3.msk.msra.mxu1 %vm294_vm0, %v14981_v17  ;;  %16204 = vmatprep.mubr.msk.f32.mxu0 %vm289_vm2, %v4062_v12 }
  0xd9   : > { %16207 = vmatprep.subr.msk.mxu0 %vm294_vm0, %v14985_v22  ;;  %16249 = vmatprep.mubr.msk.f32.mxu1 %vm289_vm2, %v18303_v23 }
  0xda   : > { %16252 = vmatprep.subr.msk.mxu1 %vm294_vm0, %v14985_v22 }
  0xde   : > { %16205 = vmatmul.mubr.msk.f32.vlgmr.msra.gmra.mrb[4].mxu0 %vm289_vm2, %v18230_v10 }
  0xdf   : > { %16208 = vmatpush3.msk.msra.mxu0 %vm294_vm0, %v14985_v22  ;;  %16250 = vmatmul.mubr.msk.f32.vlgmr.msra.gmra.mrb[4].mxu1 %vm289_vm2, %v18294_v21 }
  0xe0   : > { %16253 = vmatpush3.msk.msra.mxu1 %vm294_vm0, %v14985_v22  ;;  %16209 = vmatprep.mubr.msk.f32.mxu0 %vm289_vm2, %v18259_v16 }
  0xe1   : > { %16254 = vmatprep.mubr.msk.f32.mxu1 %vm289_vm2, %v18322_v26  ;;  %16257 = vmatprep.subr.msk.mxu0 %vm294_vm0, %v15020_v27 }
  0xe2   : > { %16302 = vmatprep.subr.msk.mxu1 %vm294_vm0, %v15020_v27 }
  0xe6   : > { %16210 = vmatmul.mubr.msk.f32.vlgmr.msra.gmra.mrb[4].mxu0 %vm289_vm2, %v18250_v14 }
  0xe7   : > { %16255 = vmatmul.mubr.msk.f32.vlgmr.msra.gmra.mrb[4].mxu1 %vm289_vm2, %v18316_v25  ;;  %16258 = vmatpush3.msk.msra.mxu0 %vm294_vm0, %v15020_v27 }
  0xe8   : > { %16303 = vmatpush3.msk.msra.mxu1 %vm294_vm0, %v15020_v27  ;;  %16259 = vmatprep.mubr.msk.f32.mxu0 %vm289_vm2, %v4062_v12 }
  0xe9   : > { %16262 = vmatprep.subr.msk.mxu0 %vm294_vm0, %v5016_v28  ;;  %16304 = vmatprep.mubr.msk.f32.mxu1 %vm289_vm2, %v18303_v23 }
  0xea   : > { %16307 = vmatprep.subr.msk.mxu1 %vm294_vm0, %v5016_v28  ;;  %16260 = vmatmul.mubr.msk.f32.vlgmr.msra.gmra.mrb[6].mxu0 %vm289_vm2, %v18230_v10 }
  0xeb   : > { %16263 = vmatpush3.msk.msra.mxu0 %vm294_vm0, %v5016_v28  ;;  %16305 = vmatmul.mubr.msk.f32.vlgmr.msra.gmra.mrb[6].mxu1 %vm289_vm2, %v18294_v21 }
  0xec   : > { %16308 = vmatpush3.msk.msra.mxu1 %vm294_vm0, %v5016_v28  ;;  %16264 = vmatprep.mubr.msk.f32.mxu0 %vm289_vm2, %v18213_v7 }
  0xed   : > { %16267 = vmatprep.subr.msk.mxu0 %vm294_vm0, %v15027_v29  ;;  %16309 = vmatprep.mubr.msk.f32.mxu1 %vm289_vm2, %v18277_v18 }
  0xee   : > { %16312 = vmatprep.subr.msk.mxu1 %vm294_vm0, %v15027_v29 }
  0xf2   : > { %16265 = vmatmul.mubr.msk.f32.vlgmr.msra.gmra.mrb[6].mxu0 %vm289_vm2, %v18225_v8 }
  0xf3   : > { %16268 = vmatpush3.msk.msra.mxu0 %vm294_vm0, %v15027_v29  ;;  %16310 = vmatmul.mubr.msk.f32.vlgmr.msra.gmra.mrb[6].mxu1 %vm289_vm2, %v18289_v19 }
  0xf4   : > { %16313 = vmatpush3.msk.msra.mxu1 %vm294_vm0, %v15027_v29  ;;  %16269 = vmatprep.mubr.msk.f32.mxu0 %vm289_vm2, %v18259_v16  ;;  %v15107_v29 = vld [vmem:[%s19749_s1 + $0x10] sm:$0x7] }
  0xf5   : > { %16272 = vmatprep.subr.msk.mxu0 %vm294_vm0, %v15033_v30  ;;  %16314 = vmatprep.mubr.msk.f32.mxu1 %vm289_vm2, %v18322_v26 }
  0xf6   : > { %16317 = vmatprep.subr.msk.mxu1 %vm294_vm0, %v15033_v30 }
  0xfa   : > { %16270 = vmatmul.mubr.msk.f32.vlgmr.msra.gmra.mrb[6].mxu0 %vm289_vm2, %v18250_v14 }
  0xfb   : > { %16273 = vmatpush3.msk.msra.mxu0 %vm294_vm0, %v15033_v30  ;;  %16315 = vmatmul.mubr.msk.f32.vlgmr.msra.gmra.mrb[6].mxu1 %vm289_vm2, %v18316_v25 }
  0xfc   : > { %16318 = vmatpush3.msk.msra.mxu1 %vm294_vm0, %v15033_v30  ;;  %16274 = vmatprep.mubr.msk.f32.mxu0 %vm289_vm2, %v18277_v18  ;;  %v18577_v30 = vld [vmem:[%s17833_s21 + $0xa0] sm:$0xff] }
  0xfd   : > { %16277 = vmatprep.subr.msk.mxu0 %vm294_vm0, %v15037_v31  ;;  %16319 = vmatprep.mubr.msk.f32.mxu1 %vm289_vm2, %v18387_v32  ;;  %v7202_v34 = vrot.slane %v18577_v30, 1 }
  0xfe   : > { %16322 = vmatprep.subr.msk.mxu1 %vm294_vm0, %v15037_v31 }
 0x102   : > { %16275 = vmatmul.mubr.msk.f32.vlgmr.msra.gmra.mrb[6].mxu0 %vm289_vm2, %v18289_v19 }
 0x103   : > { %16278 = vmatpush3.msk.msra.mxu0 %vm294_vm0, %v15037_v31  ;;  %16320 = vmatmul.mubr.msk.f32.vlgmr.msra.gmra.mrb[6].mxu1 %vm289_vm2, %v18399_v33 }
 0x104   : > { %16323 = vmatpush3.msk.msra.mxu1 %vm294_vm0, %v15037_v31  ;;  %16279 = vmatprep.mubr.msk.f32.mxu0 %vm289_vm2, %v18303_v23 }
 0x105   : > { %16282 = vmatprep.subr.msk.mxu0 %vm294_vm0, %v15041_v36  ;;  %16324 = vmatprep.mubr.msk.f32.mxu1 %vm289_vm2, %v5633_v37 }
 0x106   : > { %16327 = vmatprep.subr.msk.mxu1 %vm294_vm0, %v15041_v36 }
 0x10a   : > { %16280 = vmatmul.mubr.msk.f32.vlgmr.msra.gmra.mrb[6].mxu0 %vm289_vm2, %v18294_v21 }
 0x10b   : > { %16283 = vmatpush3.msk.msra.mxu0 %vm294_vm0, %v15041_v36  ;;  %16325 = vmatmul.mubr.msk.f32.vlgmr.msra.gmra.mrb[6].mxu1 %vm289_vm2, %v18404_v35 }
 0x10c   : > { %16328 = vmatpush3.msk.msra.mxu1 %vm294_vm0, %v15041_v36  ;;  %16284 = vmatprep.mubr.msk.f32.mxu0 %vm289_vm2, %v18322_v26 }
 0x10d   : > { %16287 = vmatprep.subr.msk.mxu0 %vm294_vm0, %v15047_v40  ;;  %16329 = vmatprep.mubr.msk.f32.mxu1 %vm289_vm2, %v18433_v41 }
 0x10e   : > { %16332 = vmatprep.subr.msk.mxu1 %vm294_vm0, %v15047_v40 }
 0x112   : > { %16285 = vmatmul.mubr.msk.f32.vlgmr.msra.gmra.mrb[6].mxu0 %vm289_vm2, %v18316_v25 }
 0x113   : > { %16288 = vmatpush3.msk.msra.mxu0 %vm294_vm0, %v15047_v40  ;;  %16330 = vmatmul.mubr.msk.f32.vlgmr.msra.gmra.mrb[6].mxu1 %vm289_vm2, %v18424_v39 }
 0x114   : > { %16333 = vmatpush3.msk.msra.mxu1 %vm294_vm0, %v15047_v40  ;;  %16289 = vmatprep.mubr.msk.f32.mxu0 %vm289_vm2, %v18387_v32 }
 0x115   : > { %16292 = vmatprep.subr.msk.mxu0 %vm294_vm0, %v15051_v42  ;;  %16334 = vmatprep.mubr.msk.f32.mxu1 %vm289_vm2, %v18451_v43 }
 0x116   : > { %16337 = vmatprep.subr.msk.mxu1 %vm294_vm0, %v15051_v42 }
 0x11a   : > { %16290 = vmatmul.mubr.msk.f32.vlgmr.msra.gmra.mrb[6].mxu0 %vm289_vm2, %v18399_v33 }
 0x11b   : > { %16293 = vmatpush3.msk.msra.mxu0 %vm294_vm0, %v15051_v42  ;;  %16335 = vmatmul.mubr.msk.f32.vlgmr.msra.gmra.mrb[6].mxu1 %vm289_vm2, %v18463_v44 }
 0x11c   : > { %16338 = vmatpush3.msk.msra.mxu1 %vm294_vm0, %v15051_v42  ;;  %16294 = vmatprep.mubr.msk.f32.mxu0 %vm289_vm2, %v5633_v37 }
 0x11d   : > { %16297 = vmatprep.subr.msk.mxu0 %vm294_vm0, %v15055_v47  ;;  %16339 = vmatprep.mubr.msk.f32.mxu1 %vm289_vm2, %v18477_v48 }
 0x11e   : > { %16342 = vmatprep.subr.msk.mxu1 %vm294_vm0, %v15055_v47 }
 0x122   : > { %16295 = vmatmul.mubr.msk.f32.vlgmr.msra.gmra.mrb[6].mxu0 %vm289_vm2, %v18404_v35 }
 0x123   : > { %16298 = vmatpush3.msk.msra.mxu0 %vm294_vm0, %v15055_v47  ;;  %16340 = vmatmul.mubr.msk.f32.vlgmr.msra.gmra.mrb[6].mxu1 %vm289_vm2, %v18468_v46 }
 0x124   : > { %16343 = vmatpush3.msk.msra.mxu1 %vm294_vm0, %v15055_v47  ;;  %16299 = vmatprep.mubr.msk.f32.mxu0 %vm289_vm2, %v18433_v41 }
 0x125   : > { %16344 = vmatprep.mubr.msk.f32.mxu1 %vm289_vm2, %v18496_v51  ;;  %16347 = vmatprep.subr.msk.mxu0 %vm294_vm0, %v15090_v52 }
 0x126   : > { %16392 = vmatprep.subr.msk.mxu1 %vm294_vm0, %v15090_v52 }
 0x12a   : > { %16300 = vmatmul.mubr.msk.f32.vlgmr.msra.gmra.mrb[6].mxu0 %vm289_vm2, %v18424_v39 }
 0x12b   : > { %16345 = vmatmul.mubr.msk.f32.vlgmr.msra.gmra.mrb[6].mxu1 %vm289_vm2, %v18490_v50  ;;  %16348 = vmatpush3.msk.msra.mxu0 %vm294_vm0, %v15090_v52 }
 0x12c   : > { %16393 = vmatpush3.msk.msra.mxu1 %vm294_vm0, %v15090_v52  ;;  %16349 = vmatprep.mubr.msk.f32.mxu0 %vm289_vm2, %v5633_v37 }
 0x12d   : > { %16352 = vmatprep.subr.msk.mxu0 %vm294_vm0, %v6587_v53  ;;  %16394 = vmatprep.mubr.msk.f32.mxu1 %vm289_vm2, %v18477_v48 }
 0x12e   : > { %16397 = vmatprep.subr.msk.mxu1 %vm294_vm0, %v6587_v53  ;;  %16350 = vmatmul.mubr.msk.f32.vlgmr.msra.gmra.mrb[8].mxu0 %vm289_vm2, %v18404_v35 }
 0x12f   : > { %16353 = vmatpush3.msk.msra.mxu0 %vm294_vm0, %v6587_v53  ;;  %16395 = vmatmul.mubr.msk.f32.vlgmr.msra.gmra.mrb[8].mxu1 %vm289_vm2, %v18468_v46 }
 0x130   : > { %16398 = vmatpush3.msk.msra.mxu1 %vm294_vm0, %v6587_v53  ;;  %16354 = vmatprep.mubr.msk.f32.mxu0 %vm289_vm2, %v18387_v32 }
 0x131   : > { %v16031_v56 = vpop.f32.mrb[0].mxu0  ;;  %16357 = vmatprep.subr.msk.mxu0 %vm294_vm0, %v15097_v54  ;;  %16399 = vmatprep.mubr.msk.f32.mxu1 %vm289_vm2, %v18451_v43 }
 0x132   : > { %v1090_v57 = vadd.f32 %v16031_v56, %v18536_v55  ;;  %v16076_v58 = vpop.f32.mrb[0].mxu1  ;;  %v1072_v59 = vpop.f32.mrb[1].mxu0  ;;  %16402 = vmatprep.subr.msk.mxu1 %vm294_vm0, %v15097_v54 }
 0x133   : > { %v1806_v60 = vadd.f32 %v16076_v58, %v18536_v55  ;;  %v1089_v61 = vadd.f32 %v18536_v55, %v1072_v59  ;;  %v1794_v62 = vpop.f32.mrb[1].mxu1 }
 0x134   : > { %v1092_v63 = vmax.f32 %v1090_v57, 0.0  ;;  %v1805_v0 = vadd.f32 %v18536_v55, %v1794_v62 }
 0x135   : > { %v1808_v1 = vmax.f32 %v1806_v60, 0.0  ;;  %v1091_v2 = vmax.f32 %v1089_v61, 0.0 }
 0x136   : > { %v1807_v3 = vmax.f32 %v1805_v0, 0.0  ;;  %16355 = vmatmul.mubr.msk.f32.vlgmr.msra.gmra.mrb[8].mxu0 %vm289_vm2, %v18399_v33 }
 0x137   : > { %v1810_v5 = vmax.f32 %v1092_v63, %v1808_v1  ;;  %16358 = vmatpush3.msk.msra.mxu0 %vm294_vm0, %v15097_v54  ;;  %16400 = vmatmul.mubr.msk.f32.vlgmr.msra.gmra.mrb[8].mxu1 %vm289_vm2, %v18463_v44  ;;  %v15111_v1 = vld [vmem:[%s19749_s1 + $0x14] sm:$0x7] }
 0x138   : > { %v1809_v6 = vmax.f32 %v1091_v2, %v1807_v3  ;;  %16403 = vmatpush3.msk.msra.mxu1 %vm294_vm0, %v15097_v54  ;;  %16359 = vmatprep.mubr.msk.f32.mxu0 %vm289_vm2, %v18433_v41 }
 0x139   : > { %v1848_v7 = vsel %vm1811_vm4, %v1810_v5, -inf  ;;  %v1856_v8 = vsel %vm1821_vm5, %v1810_v5, -inf  ;;  %v1864_v9 = vsel %vm1830_vm6, %v1810_v5, -inf  ;;  %16362 = vmatprep.subr.msk.mxu0 %vm294_vm0, %v15103_v4  ;;  %16404 = vmatprep.mubr.msk.f32.mxu1 %vm289_vm2, %v18496_v51 }
 0x13a   : > { %v1849_v10 = vrot.slane %v1848_v7, 4  ;;  %v1857_v11 = vrot.slane %v1856_v8, 4  ;;  %v1865_v12 = vrot.slane %v1864_v9, 4  ;;  %v1812_v13 = vsel %vm1811_vm4, %v1809_v6, -inf  ;;  %16407 = vmatprep.subr.msk.mxu1 %vm294_vm0, %v15103_v4 }
 0x13b   : > { %v1813_v14 = vrot.slane %v1812_v13, 4  ;;  %v1822_v15 = vsel %vm1821_vm5, %v1809_v6, -inf  ;;  %v1831_v16 = vsel %vm1830_vm6, %v1809_v6, -inf  ;;  %v1840_v17 = vsel %vm1839_vm7, %v1809_v6, -inf }
 0x13c   : > { %v1850_v18 = vmax.f32 %v1848_v7, %v1849_v10  ;;  %v1858_v19 = vmax.f32 %v1856_v8, %v1857_v11  ;;  %v1866_v20 = vmax.f32 %v1864_v9, %v1865_v12  ;;  %v1823_v21 = vrot.slane %v1822_v15, 4  ;;  %v18651_v7 = vld [vmem:[%s17833_s21 + $0xb0] sm:$0xff]  ;;  %v15125_v9 = vld [vmem:[%s19749_s1 + $0x20] sm:$0x7] }
 0x13d   : > { %v1814_v22 = vmax.f32 %v1812_v13, %v1813_v14  ;;  %v1832_v23 = vrot.slane %v1831_v16, 4  ;;  %v1841_v24 = vrot.slane %v1840_v17, 4  ;;  %v8009_v11 = vrot.slane %v18651_v7, 2  ;;  %v15160_v14 = vld [vmem:[%s19749_s1 + $0x4] sm:$0x7] }
 0x13e   : > { %v1851_v25 = vrot.slane %v1850_v18, 2  ;;  %v1859_v26 = vrot.slane %v1858_v19, 2  ;;  %v1867_v27 = vrot.slane %v1866_v20, 2  ;;  %v1824_v28 = vmax.f32 %v1822_v15, %v1823_v21  ;;  %16360 = vmatmul.mubr.msk.f32.vlgmr.msra.gmra.mrb[8].mxu0 %vm289_vm2, %v18424_v39  ;;  %v18587_v39 = vld [vmem:[%s17833_s21 + $0xa8] sm:$0xff]  ;;  %v8158_v15 = vld [vmem:[%s19749_s1] sm:$0x7] }
 0x13f   : > { %v1815_v31 = vrot.slane %v1814_v22, 2  ;;  %v1833_v32 = vmax.f32 %v1831_v16, %v1832_v23  ;;  %v1842_v33 = vmax.f32 %v1840_v17, %v1841_v24  ;;  %16363 = vmatpush3.msk.msra.mxu0 %vm294_vm0, %v15103_v4  ;;  %16405 = vmatmul.mubr.msk.f32.vlgmr.msra.gmra.mrb[8].mxu1 %vm289_vm2, %v18490_v50  ;;  %v18593_v45 = vrot.slane %v18587_v39, 1  ;;  %v15167_v16 = vld [vmem:[%s19749_s1 + $0x8] sm:$0x7] }
 0x140   : > { %v1852_v35 = vmax.f32 %v1850_v18, %v1851_v25  ;;  %v1860_v36 = vmax.f32 %v1858_v19, %v1859_v26  ;;  %v1868_v37 = vmax.f32 %v1866_v20, %v1867_v27  ;;  %v1825_v38 = vrot.slane %v1824_v28, 2  ;;  %16408 = vmatpush3.msk.msra.mxu1 %vm294_vm0, %v15103_v4  ;;  %16364 = vmatprep.mubr.msk.f32.mxu0 %vm289_vm2, %v18451_v43 }
 0x141   : > { %v1816_v40 = vmax.f32 %v1814_v22, %v1815_v31  ;;  %v1834_v41 = vrot.slane %v1833_v32, 2  ;;  %v1843_v42 = vrot.slane %v1842_v33, 2  ;;  %16367 = vmatprep.subr.msk.mxu0 %vm294_vm0, %v15107_v29  ;;  %16409 = vmatprep.mubr.msk.f32.mxu1 %vm289_vm2, %v18577_v30  ;;  %v18606_v2 = vsel %vm285_vm1, %v7202_v34, %v18593_v45 }
 0x142   : > { %v1853_v47 = vrot.slane %v1852_v35, 1  ;;  %v1861_v49 = vrot.slane %v1860_v36, 1  ;;  %v1869_v52 = vrot.slane %v1868_v37, 1  ;;  %v1826_v53 = vmax.f32 %v1824_v28, %v1825_v38  ;;  %16412 = vmatprep.subr.msk.mxu1 %vm294_vm0, %v15107_v29 }
 0x143   : > { %v1817_v43 = vrot.slane %v1816_v40, 1  ;;  %v1835_v54 = vmax.f32 %v1833_v32, %v1834_v41  ;;  %v1844_v56 = vmax.f32 %v1842_v33, %v1843_v42  ;;  %v18624_v5 = vrot.slane %v18587_v39, 2 }
 0x144   : > { %v1854_v57 = vmax.f32 %v1852_v35, %v1853_v47  ;;  %v1862_v58 = vmax.f32 %v1860_v36, %v1861_v49  ;;  %v1870_v59 = vmax.f32 %v1868_v37, %v1869_v52  ;;  %v1827_v60 = vrot.slane %v1826_v53, 1 }
 0x145   : > { %v1818_v61 = vmax.f32 %v1816_v40, %v1817_v43  ;;  %v1836_v62 = vrot.slane %v1835_v54, 1  ;;  %v1845_v63 = vrot.slane %v1844_v56, 1 }
 0x146   : > { %1855 = vst.msk [vmem:[#allocation2 + $0x4] sm:$0x1] %vm1819_vm8, %v1854_v57  ;;  %1863 = vst.msk [vmem:[#allocation2 + $0x5] sm:$0x1] %vm1819_vm8, %v1862_v58  ;;  %v1828_v0 = vmax.f32 %v1826_v53, %v1827_v60  ;;  %16365 = vmatmul.mubr.msk.f32.vlgmr.msra.gmra.mrb[8].mxu0 %vm289_vm2, %v18463_v44  ;;  %v7290_v44 = vrot.slane %v18577_v30, 2 }
 0x147   : > { %1871 = vst.msk [vmem:[#allocation2 + $0x6] sm:$0x1] %vm1819_vm8, %v1870_v59  ;;  %1820 = vst.msk [vmem:[#allocation2] sm:$0x1] %vm1819_vm8, %v1818_v61  ;;  %v1837_v3 = vmax.f32 %v1835_v54, %v1836_v62  ;;  %v1846_v4 = vmax.f32 %v1844_v56, %v1845_v63  ;;  %16368 = vmatpush3.msk.msra.mxu0 %vm294_vm0, %v15107_v29  ;;  %16410 = vmatmul.mubr.msk.f32.vlgmr.msra.gmra.mrb[8].mxu1 %vm289_vm2, %v18587_v39  ;;  %v15177_v60 = vld [vmem:[%s19749_s1 + $0x10] sm:$0x7] }
 0x148   : > { %1829 = vst.msk [vmem:[#allocation2 + $0x1] sm:$0x1] %vm1819_vm8, %v1828_v0  ;;  %16413 = vmatpush3.msk.msra.mxu1 %vm294_vm0, %v15107_v29  ;;  %16369 = vmatprep.mubr.msk.f32.mxu0 %vm289_vm2, %v18477_v48  ;;  %v15117_v48 = vld [vmem:[%s19749_s1 + $0x18] sm:$0x7]  ;;  %v18633_v6 = vsel %vm457_vm3, %v7290_v44, %v18624_v5  ;;  %v15173_v29 = vld [vmem:[%s19749_s1 + $0xc] sm:$0x7] }
 0x149   : > { %1838 = vst.msk [vmem:[#allocation2 + $0x2] sm:$0x1] %vm1819_vm8, %v1837_v3  ;;  %1847 = vst.msk [vmem:[#allocation2 + $0x3] sm:$0x1] %vm1819_vm8, %v1846_v4  ;;  %16372 = vmatprep.subr.msk.mxu0 %vm294_vm0, %v15111_v1  ;;  %16414 = vmatprep.mubr.msk.f32.mxu1 %vm289_vm2, %v18606_v2  ;;  %v18774_v61 = vld [vmem:[%s17833_s21 + $0xc0] sm:$0xff] }
 0x14a   : > { %16417 = vmatprep.subr.msk.mxu1 %vm294_vm0, %v15111_v1 }
 0x14e   : > { %16370 = vmatmul.mubr.msk.f32.vlgmr.msra.gmra.mrb[8].mxu0 %vm289_vm2, %v18468_v46  ;;  %v15121_v46 = vld [vmem:[%s19749_s1 + $0x1c] sm:$0x7] }
 0x14f   : > { %16373 = vmatpush3.msk.msra.mxu0 %vm294_vm0, %v15111_v1  ;;  %16415 = vmatmul.mubr.msk.f32.vlgmr.msra.gmra.mrb[8].mxu1 %vm289_vm2, %v18593_v45 }
 0x150   : > { %16418 = vmatpush3.msk.msra.mxu1 %vm294_vm0, %v15111_v1  ;;  %16374 = vmatprep.mubr.msk.f32.mxu0 %vm289_vm2, %v18496_v51  ;;  %v7925_v51 = vrot.slane %v18651_v7, 1  ;;  %v8773_v1 = vrot.slane %v18774_v61, 1 }
 0x151   : > { %16377 = vmatprep.subr.msk.mxu0 %vm294_vm0, %v15117_v48  ;;  %16419 = vmatprep.mubr.msk.f32.mxu1 %vm289_vm2, %v18633_v6 }
 0x152   : > { %16422 = vmatprep.subr.msk.mxu1 %vm294_vm0, %v15117_v48 }
 0x156   : > { %16375 = vmatmul.mubr.msk.f32.vlgmr.msra.gmra.mrb[8].mxu0 %vm289_vm2, %v18490_v50  ;;  %v18663_v50 = vld [vmem:[%s17833_s21 + $0xb8] sm:$0xff] }
 0x157   : > { %16378 = vmatpush3.msk.msra.mxu0 %vm294_vm0, %v15117_v48  ;;  %16420 = vmatmul.mubr.msk.f32.vlgmr.msra.gmra.mrb[8].mxu1 %vm289_vm2, %v18624_v5  ;;  %v18668_v8 = vrot.slane %v18663_v50, 1  ;;  %v18691_v12 = vrot.slane %v18663_v50, 2 }
 0x158   : > { %16423 = vmatpush3.msk.msra.mxu1 %vm294_vm0, %v15117_v48  ;;  %16379 = vmatprep.mubr.msk.f32.mxu0 %vm289_vm2, %v18577_v30 }
 0x159   : > { %16382 = vmatprep.subr.msk.mxu0 %vm294_vm0, %v15121_v46  ;;  %16424 = vmatprep.mubr.msk.f32.mxu1 %vm289_vm2, %v18651_v7  ;;  %v18677_v10 = vsel %vm285_vm1, %v7925_v51, %v18668_v8  ;;  %v18697_v13 = vsel %vm457_vm3, %v8009_v11, %v18691_v12 }
 0x15a   : > { %16427 = vmatprep.subr.msk.mxu1 %vm294_vm0, %v15121_v46 }
 0x15e   : > { %16380 = vmatmul.mubr.msk.f32.vlgmr.msra.gmra.mrb[8].mxu0 %vm289_vm2, %v18587_v39 }
 0x15f   : > { %16383 = vmatpush3.msk.msra.mxu0 %vm294_vm0, %v15121_v46  ;;  %16425 = vmatmul.mubr.msk.f32.vlgmr.msra.gmra.mrb[8].mxu1 %vm289_vm2, %v18663_v50 }
 0x160   : > { %16428 = vmatpush3.msk.msra.mxu1 %vm294_vm0, %v15121_v46  ;;  %16384 = vmatprep.mubr.msk.f32.mxu0 %vm289_vm2, %v18606_v2 }
 0x161   : > { %16387 = vmatprep.subr.msk.mxu0 %vm294_vm0, %v15125_v9  ;;  %16429 = vmatprep.mubr.msk.f32.mxu1 %vm289_vm2, %v18677_v10 }
 0x162   : > { %16432 = vmatprep.subr.msk.mxu1 %vm294_vm0, %v15125_v9 }
 0x166   : > { %16385 = vmatmul.mubr.msk.f32.vlgmr.msra.gmra.mrb[8].mxu0 %vm289_vm2, %v18593_v45 }
 0x167   : > { %16388 = vmatpush3.msk.msra.mxu0 %vm294_vm0, %v15125_v9  ;;  %16430 = vmatmul.mubr.msk.f32.vlgmr.msra.gmra.mrb[8].mxu1 %vm289_vm2, %v18668_v8 }
 0x168   : > { %16433 = vmatpush3.msk.msra.mxu1 %vm294_vm0, %v15125_v9  ;;  %16389 = vmatprep.mubr.msk.f32.mxu0 %vm289_vm2, %v18633_v6 }
 0x169   : > { %16434 = vmatprep.mubr.msk.f32.mxu1 %vm289_vm2, %v18697_v13  ;;  %16437 = vmatprep.subr.msk.mxu0 %vm294_vm0, %v15160_v14 }
 0x16a   : > { %16482 = vmatprep.subr.msk.mxu1 %vm294_vm0, %v15160_v14 }
 0x16e   : > { %16390 = vmatmul.mubr.msk.f32.vlgmr.msra.gmra.mrb[8].mxu0 %vm289_vm2, %v18624_v5 }
 0x16f   : > { %16435 = vmatmul.mubr.msk.f32.vlgmr.msra.gmra.mrb[8].mxu1 %vm289_vm2, %v18691_v12  ;;  %16438 = vmatpush3.msk.msra.mxu0 %vm294_vm0, %v15160_v14 }
 0x170   : > { %16483 = vmatpush3.msk.msra.mxu1 %vm294_vm0, %v15160_v14  ;;  %16439 = vmatprep.mubr.msk.f32.mxu0 %vm289_vm2, %v18606_v2 }
 0x171   : > { %16442 = vmatprep.subr.msk.mxu0 %vm294_vm0, %v8158_v15  ;;  %16484 = vmatprep.mubr.msk.f32.mxu1 %vm289_vm2, %v18677_v10 }
 0x172   : > { %16487 = vmatprep.subr.msk.mxu1 %vm294_vm0, %v8158_v15  ;;  %16440 = vmatmul.mubr.msk.f32.vlgmr.msra.gmra.mrb[10].mxu0 %vm289_vm2, %v18593_v45 }
 0x173   : > { %16443 = vmatpush3.msk.msra.mxu0 %vm294_vm0, %v8158_v15  ;;  %16485 = vmatmul.mubr.msk.f32.vlgmr.msra.gmra.mrb[10].mxu1 %vm289_vm2, %v18668_v8 }
 0x174   : > { %16488 = vmatpush3.msk.msra.mxu1 %vm294_vm0, %v8158_v15  ;;  %16444 = vmatprep.mubr.msk.f32.mxu0 %vm289_vm2, %v18577_v30 }
 0x175   : > { %v16121_v17 = vpop.f32.mrb[2].mxu0  ;;  %16447 = vmatprep.subr.msk.mxu0 %vm294_vm0, %v15167_v16  ;;  %16489 = vmatprep.mubr.msk.f32.mxu1 %vm289_vm2, %v18651_v7 }
 0x176   : > { %v2665_v18 = vadd.f32 %v16121_v17, %v18536_v55  ;;  %v16166_v19 = vpop.f32.mrb[2].mxu1  ;;  %v2653_v20 = vpop.f32.mrb[3].mxu0  ;;  %16492 = vmatprep.subr.msk.mxu1 %vm294_vm0, %v15167_v16 }
 0x177   : > { %v3381_v21 = vadd.f32 %v16166_v19, %v18536_v55  ;;  %v2664_v22 = vadd.f32 %v18536_v55, %v2653_v20  ;;  %v3369_v23 = vpop.f32.mrb[3].mxu1 }
 0x178   : > { %v2667_v24 = vmax.f32 %v2665_v18, 0.0  ;;  %v3380_v25 = vadd.f32 %v18536_v55, %v3369_v23 }
 0x179   : > { %v3383_v26 = vmax.f32 %v3381_v21, 0.0  ;;  %v2666_v27 = vmax.f32 %v2664_v22, 0.0 }
 0x17a   : > { %v3382_v28 = vmax.f32 %v3380_v25, 0.0  ;;  %16445 = vmatmul.mubr.msk.f32.vlgmr.msra.gmra.mrb[10].mxu0 %vm289_vm2, %v18587_v39 }
 0x17b   : > { %v3385_v30 = vmax.f32 %v2667_v24, %v3383_v26  ;;  %16448 = vmatpush3.msk.msra.mxu0 %vm294_vm0, %v15167_v16  ;;  %16490 = vmatmul.mubr.msk.f32.vlgmr.msra.gmra.mrb[10].mxu1 %vm289_vm2, %v18663_v50  ;;  %v15181_v26 = vld [vmem:[%s19749_s1 + $0x14] sm:$0x7] }
 0x17c   : > { %v3384_v31 = vmax.f32 %v2666_v27, %v3382_v28  ;;  %16493 = vmatpush3.msk.msra.mxu1 %vm294_vm0, %v15167_v16  ;;  %16449 = vmatprep.mubr.msk.f32.mxu0 %vm289_vm2, %v18633_v6 }
 0x17d   : > { %v3419_v32 = vsel %vm1811_vm4, %v3385_v30, -inf  ;;  %v3427_v33 = vsel %vm1821_vm5, %v3385_v30, -inf  ;;  %v3435_v34 = vsel %vm1830_vm6, %v3385_v30, -inf  ;;  %16452 = vmatprep.subr.msk.mxu0 %vm294_vm0, %v15173_v29  ;;  %16494 = vmatprep.mubr.msk.f32.mxu1 %vm289_vm2, %v18697_v13 }
 0x17e   : > { %v3420_v35 = vrot.slane %v3419_v32, 4  ;;  %v3428_v36 = vrot.slane %v3427_v33, 4  ;;  %v3436_v37 = vrot.slane %v3435_v34, 4  ;;  %v3386_v38 = vsel %vm1811_vm4, %v3384_v31, -inf  ;;  %16497 = vmatprep.subr.msk.mxu1 %vm294_vm0, %v15173_v29 }
 0x17f   : > { %v3387_v39 = vrot.slane %v3386_v38, 4  ;;  %v3395_v40 = vsel %vm1821_vm5, %v3384_v31, -inf  ;;  %v3403_v41 = vsel %vm1830_vm6, %v3384_v31, -inf  ;;  %v3411_v42 = vsel %vm1839_vm7, %v3384_v31, -inf }
 0x180   : > { %v3421_v45 = vmax.f32 %v3419_v32, %v3420_v35  ;;  %v3429_v47 = vmax.f32 %v3427_v33, %v3428_v36  ;;  %v3437_v49 = vmax.f32 %v3435_v34, %v3436_v37  ;;  %v3396_v52 = vrot.slane %v3395_v40, 4  ;;  %v18848_v32 = vld [vmem:[%s17833_s21 + $0xd0] sm:$0xff]  ;;  %v15195_v34 = vld [vmem:[%s19749_s1 + $0x20] sm:$0x7] }
 0x181   : > { %v3388_v53 = vmax.f32 %v3386_v38, %v3387_v39  ;;  %v3404_v43 = vrot.slane %v3403_v41, 4  ;;  %v3412_v54 = vrot.slane %v3411_v42, 4  ;;  %v9580_v36 = vrot.slane %v18848_v32, 2  ;;  %v15230_v39 = vld [vmem:[%s19749_s1 + $0x4] sm:$0x7] }
 0x182   : > { %v3422_v56 = vrot.slane %v3421_v45, 2  ;;  %v3430_v57 = vrot.slane %v3429_v47, 2  ;;  %v3438_v58 = vrot.slane %v3437_v49, 2  ;;  %v3397_v59 = vmax.f32 %v3395_v40, %v3396_v52  ;;  %16450 = vmatmul.mubr.msk.f32.vlgmr.msra.gmra.mrb[10].mxu0 %vm289_vm2, %v18624_v5  ;;  %v18784_v5 = vld [vmem:[%s17833_s21 + $0xc8] sm:$0xff]  ;;  %v9729_v40 = vld [vmem:[%s19749_s1] sm:$0x7] }
 0x183   : > { %v3389_v62 = vrot.slane %v3388_v53, 2  ;;  %v3405_v63 = vmax.f32 %v3403_v41, %v3404_v43  ;;  %v3413_v0 = vmax.f32 %v3411_v42, %v3412_v54  ;;  %16453 = vmatpush3.msk.msra.mxu0 %vm294_vm0, %v15173_v29  ;;  %16495 = vmatmul.mubr.msk.f32.vlgmr.msra.gmra.mrb[10].mxu1 %vm289_vm2, %v18691_v12  ;;  %v18790_v51 = vrot.slane %v18784_v5, 1  ;;  %v15237_v41 = vld [vmem:[%s19749_s1 + $0x8] sm:$0x7] }
 0x184   : > { %v3423_v2 = vmax.f32 %v3421_v45, %v3422_v56  ;;  %v3431_v3 = vmax.f32 %v3429_v47, %v3430_v57  ;;  %v3439_v4 = vmax.f32 %v3437_v49, %v3438_v58  ;;  %v3398_v44 = vrot.slane %v3397_v59, 2  ;;  %16498 = vmatpush3.msk.msra.mxu1 %vm294_vm0, %v15173_v29  ;;  %16454 = vmatprep.mubr.msk.f32.mxu0 %vm289_vm2, %v18651_v7 }
 0x185   : > { %v3390_v48 = vmax.f32 %v3388_v53, %v3389_v62  ;;  %v3406_v6 = vrot.slane %v3405_v63, 2  ;;  %v3414_v46 = vrot.slane %v3413_v0, 2  ;;  %16457 = vmatprep.subr.msk.mxu0 %vm294_vm0, %v15177_v60  ;;  %16499 = vmatprep.mubr.msk.f32.mxu1 %vm289_vm2, %v18774_v61  ;;  %v18803_v27 = vsel %vm285_vm1, %v8773_v1, %v18790_v51 }
 0x186   : > { %v3424_v9 = vrot.slane %v3423_v2, 1  ;;  %v3432_v11 = vrot.slane %v3431_v3, 1  ;;  %v3440_v14 = vrot.slane %v3439_v4, 1  ;;  %v3399_v15 = vmax.f32 %v3397_v59, %v3398_v44  ;;  %16502 = vmatprep.subr.msk.mxu1 %vm294_vm0, %v15177_v60 }
 0x187   : > { %v3391_v7 = vrot.slane %v3390_v48, 1  ;;  %v3407_v16 = vmax.f32 %v3405_v63, %v3406_v6  ;;  %v3415_v17 = vmax.f32 %v3413_v0, %v3414_v46  ;;  %v18821_v30 = vrot.slane %v18784_v5, 2 }
 0x188   : > { %v3425_v18 = vmax.f32 %v3423_v2, %v3424_v9  ;;  %v3433_v19 = vmax.f32 %v3431_v3, %v3432_v11  ;;  %v3441_v20 = vmax.f32 %v3439_v4, %v3440_v14  ;;  %v3400_v21 = vrot.slane %v3399_v15, 1 }
 0x189   : > { %v3392_v22 = vmax.f32 %v3390_v48, %v3391_v7  ;;  %v3408_v23 = vrot.slane %v3407_v16, 1  ;;  %v3416_v24 = vrot.slane %v3415_v17, 1 }
 0x18a   : > { %3426 = vst.msk [vmem:[#allocation2 + $0xc] sm:$0x1] %vm1819_vm8, %v3425_v18  ;;  %3434 = vst.msk [vmem:[#allocation2 + $0xd] sm:$0x1] %vm1819_vm8, %v3433_v19  ;;  %v3401_v25 = vmax.f32 %v3399_v15, %v3400_v21  ;;  %16455 = vmatmul.mubr.msk.f32.vlgmr.msra.gmra.mrb[10].mxu0 %vm289_vm2, %v18663_v50  ;;  %v8861_v50 = vrot.slane %v18774_v61, 2  ;;  %v18971_v21 = vld [vmem:[%s17833_s21 + $0xe0] sm:$0xff] }
 0x18b   : > { %3442 = vst.msk [vmem:[#allocation2 + $0xe] sm:$0x1] %vm1819_vm8, %v3441_v20  ;;  %3394 = vst.msk [vmem:[#allocation2 + $0x8] sm:$0x1] %vm1819_vm8, %v3392_v22  ;;  %v3409_v28 = vmax.f32 %v3407_v16, %v3408_v23  ;;  %v3417_v29 = vmax.f32 %v3415_v17, %v3416_v24  ;;  %16458 = vmatpush3.msk.msra.mxu0 %vm294_vm0, %v15177_v60  ;;  %16500 = vmatmul.mubr.msk.f32.vlgmr.msra.gmra.mrb[10].mxu1 %vm289_vm2, %v18784_v5  ;;  %v15247_v20 = vld [vmem:[%s19749_s1 + $0x10] sm:$0x7] }
 0x18c   : > { %3402 = vst.msk [vmem:[#allocation2 + $0x9] sm:$0x1] %vm1819_vm8, %v3401_v25  ;;  %16503 = vmatpush3.msk.msra.mxu1 %vm294_vm0, %v15177_v60  ;;  %16459 = vmatprep.mubr.msk.f32.mxu0 %vm289_vm2, %v18677_v10  ;;  %v15187_v10 = vld [vmem:[%s19749_s1 + $0x18] sm:$0x7]  ;;  %v18830_v31 = vsel %vm457_vm3, %v8861_v50, %v18821_v30  ;;  %v15243_v60 = vld [vmem:[%s19749_s1 + $0xc] sm:$0x7] }
 0x18d   : > { %3410 = vst.msk [vmem:[#allocation2 + $0xa] sm:$0x1] %vm1819_vm8, %v3409_v28  ;;  %3418 = vst.msk [vmem:[#allocation2 + $0xb] sm:$0x1] %vm1819_vm8, %v3417_v29  ;;  %16462 = vmatprep.subr.msk.mxu0 %vm294_vm0, %v15181_v26  ;;  %16504 = vmatprep.mubr.msk.f32.mxu1 %vm289_vm2, %v18803_v27  ;;  %v10344_v25 = vrot.slane %v18971_v21, 1  ;;  %v18981_v50 = vld [vmem:[%s17833_s21 + $0xe8] sm:$0xff] }
 0x18e   : > { %16507 = vmatprep.subr.msk.mxu1 %vm294_vm0, %v15181_v26 }
 0x192   : > { %16460 = vmatmul.mubr.msk.f32.vlgmr.msra.gmra.mrb[10].mxu0 %vm289_vm2, %v18668_v8  ;;  %v15191_v8 = vld [vmem:[%s19749_s1 + $0x1c] sm:$0x7] }
 0x193   : > { %16463 = vmatpush3.msk.msra.mxu0 %vm294_vm0, %v15181_v26  ;;  %16505 = vmatmul.mubr.msk.f32.vlgmr.msra.gmra.mrb[10].mxu1 %vm289_vm2, %v18790_v51 }
 0x194   : > { %16508 = vmatpush3.msk.msra.mxu1 %vm294_vm0, %v15181_v26  ;;  %16464 = vmatprep.mubr.msk.f32.mxu0 %vm289_vm2, %v18697_v13  ;;  %v9496_v13 = vrot.slane %v18848_v32, 1 }
 0x195   : > { %16467 = vmatprep.subr.msk.mxu0 %vm294_vm0, %v15187_v10  ;;  %16509 = vmatprep.mubr.msk.f32.mxu1 %vm289_vm2, %v18830_v31 }
 0x196   : > { %16512 = vmatprep.subr.msk.mxu1 %vm294_vm0, %v15187_v10 }
 0x19a   : > { %16465 = vmatmul.mubr.msk.f32.vlgmr.msra.gmra.mrb[10].mxu0 %vm289_vm2, %v18691_v12  ;;  %v18860_v12 = vld [vmem:[%s17833_s21 + $0xd8] sm:$0xff] }
 0x19b   : > { %16468 = vmatpush3.msk.msra.mxu0 %vm294_vm0, %v15187_v10  ;;  %16510 = vmatmul.mubr.msk.f32.vlgmr.msra.gmra.mrb[10].mxu1 %vm289_vm2, %v18821_v30  ;;  %v18865_v33 = vrot.slane %v18860_v12, 1  ;;  %v18888_v37 = vrot.slane %v18860_v12, 2 }
 0x19c   : > { %16513 = vmatpush3.msk.msra.mxu1 %vm294_vm0, %v15187_v10  ;;  %16469 = vmatprep.mubr.msk.f32.mxu0 %vm289_vm2, %v18774_v61 }
 0x19d   : > { %16472 = vmatprep.subr.msk.mxu0 %vm294_vm0, %v15191_v8  ;;  %16514 = vmatprep.mubr.msk.f32.mxu1 %vm289_vm2, %v18848_v32  ;;  %v18874_v35 = vsel %vm285_vm1, %v9496_v13, %v18865_v33  ;;  %v18894_v38 = vsel %vm457_vm3, %v9580_v36, %v18888_v37 }
 0x19e   : > { %16517 = vmatprep.subr.msk.mxu1 %vm294_vm0, %v15191_v8 }
 0x1a2   : > { %16470 = vmatmul.mubr.msk.f32.vlgmr.msra.gmra.mrb[10].mxu0 %vm289_vm2, %v18784_v5 }
 0x1a3   : > { %16473 = vmatpush3.msk.msra.mxu0 %vm294_vm0, %v15191_v8  ;;  %16515 = vmatmul.mubr.msk.f32.vlgmr.msra.gmra.mrb[10].mxu1 %vm289_vm2, %v18860_v12 }
 0x1a4   : > { %16518 = vmatpush3.msk.msra.mxu1 %vm294_vm0, %v15191_v8  ;;  %16474 = vmatprep.mubr.msk.f32.mxu0 %vm289_vm2, %v18803_v27  ;;  %v18987_v8 = vrot.slane %v18981_v50, 1 }
 0x1a5   : > { %16477 = vmatprep.subr.msk.mxu0 %vm294_vm0, %v15195_v34  ;;  %16519 = vmatprep.mubr.msk.f32.mxu1 %vm289_vm2, %v18874_v35 }
 0x1a6   : > { %16522 = vmatprep.subr.msk.mxu1 %vm294_vm0, %v15195_v34 }
 0x1aa   : > { %16475 = vmatmul.mubr.msk.f32.vlgmr.msra.gmra.mrb[10].mxu0 %vm289_vm2, %v18790_v51 }
 0x1ab   : > { %16478 = vmatpush3.msk.msra.mxu0 %vm294_vm0, %v15195_v34  ;;  %16520 = vmatmul.mubr.msk.f32.vlgmr.msra.gmra.mrb[10].mxu1 %vm289_vm2, %v18865_v33 }
 0x1ac   : > { %16523 = vmatpush3.msk.msra.mxu1 %vm294_vm0, %v15195_v34  ;;  %16479 = vmatprep.mubr.msk.f32.mxu0 %vm289_vm2, %v18830_v31 }
 0x1ad   : > { %16524 = vmatprep.mubr.msk.f32.mxu1 %vm289_vm2, %v18894_v38  ;;  %16527 = vmatprep.subr.msk.mxu0 %vm294_vm0, %v15230_v39 }
 0x1ae   : > { %16572 = vmatprep.subr.msk.mxu1 %vm294_vm0, %v15230_v39 }
 0x1b2   : > { %16480 = vmatmul.mubr.msk.f32.vlgmr.msra.gmra.mrb[10].mxu0 %vm289_vm2, %v18821_v30 }
 0x1b3   : > { %16525 = vmatmul.mubr.msk.f32.vlgmr.msra.gmra.mrb[10].mxu1 %vm289_vm2, %v18888_v37  ;;  %16528 = vmatpush3.msk.msra.mxu0 %vm294_vm0, %v15230_v39 }
 0x1b4   : > { %16573 = vmatpush3.msk.msra.mxu1 %vm294_vm0, %v15230_v39  ;;  %16529 = vmatprep.mubr.msk.f32.mxu0 %vm289_vm2, %v18803_v27 }
 0x1b5   : > { %16532 = vmatprep.subr.msk.mxu0 %vm294_vm0, %v9729_v40  ;;  %16574 = vmatprep.mubr.msk.f32.mxu1 %vm289_vm2, %v18874_v35 }
 0x1b6   : > { %16577 = vmatprep.subr.msk.mxu1 %vm294_vm0, %v9729_v40  ;;  %16530 = vmatmul.mubr.msk.f32.vlgmr.msra.gmra.mrb[12].mxu0 %vm289_vm2, %v18790_v51 }
 0x1b7   : > { %16533 = vmatpush3.msk.msra.mxu0 %vm294_vm0, %v9729_v40  ;;  %16575 = vmatmul.mubr.msk.f32.vlgmr.msra.gmra.mrb[12].mxu1 %vm289_vm2, %v18865_v33 }
 0x1b8   : > { %16578 = vmatpush3.msk.msra.mxu1 %vm294_vm0, %v9729_v40  ;;  %16534 = vmatprep.mubr.msk.f32.mxu0 %vm289_vm2, %v18774_v61 }
 0x1b9   : > { %v16211_v42 = vpop.f32.mrb[4].mxu0  ;;  %16537 = vmatprep.subr.msk.mxu0 %vm294_vm0, %v15237_v41  ;;  %16579 = vmatprep.mubr.msk.f32.mxu1 %vm289_vm2, %v18848_v32 }
 0x1ba   : > { %v4236_v45 = vadd.f32 %v16211_v42, %v18536_v55  ;;  %v16256_v47 = vpop.f32.mrb[4].mxu1  ;;  %v4224_v49 = vpop.f32.mrb[5].mxu0  ;;  %16582 = vmatprep.subr.msk.mxu1 %vm294_vm0, %v15237_v41 }
 0x1bb   : > { %v4952_v52 = vadd.f32 %v16256_v47, %v18536_v55  ;;  %v4235_v53 = vadd.f32 %v18536_v55, %v4224_v49  ;;  %v4940_v43 = vpop.f32.mrb[5].mxu1 }
 0x1bc   : > { %v4238_v54 = vmax.f32 %v4236_v45, 0.0  ;;  %v4951_v56 = vadd.f32 %v18536_v55, %v4940_v43 }
 0x1bd   : > { %v4954_v57 = vmax.f32 %v4952_v52, 0.0  ;;  %v4237_v58 = vmax.f32 %v4235_v53, 0.0 }
 0x1be   : > { %v4953_v59 = vmax.f32 %v4951_v56, 0.0  ;;  %16535 = vmatmul.mubr.msk.f32.vlgmr.msra.gmra.mrb[12].mxu0 %vm289_vm2, %v18784_v5  ;;  %v15251_v56 = vld [vmem:[%s19749_s1 + $0x14] sm:$0x7] }
 0x1bf   : > { %v4956_v61 = vmax.f32 %v4238_v54, %v4954_v57  ;;  %16538 = vmatpush3.msk.msra.mxu0 %vm294_vm0, %v15237_v41  ;;  %16580 = vmatmul.mubr.msk.f32.vlgmr.msra.gmra.mrb[12].mxu1 %vm289_vm2, %v18860_v12  ;;  %v10346_v57 = vsel %vm285_vm1, %v10344_v25, %v18987_v8 }
 0x1c0   : > { %v4955_v62 = vmax.f32 %v4237_v58, %v4953_v59  ;;  %16583 = vmatpush3.msk.msra.mxu1 %vm294_vm0, %v15237_v41  ;;  %16539 = vmatprep.mubr.msk.f32.mxu0 %vm289_vm2, %v18830_v31 }
 0x1c1   : > { %v4990_v55 = vsel %vm1811_vm4, %v4956_v61, -inf  ;;  %v4998_v63 = vsel %vm1821_vm5, %v4956_v61, -inf  ;;  %v5006_v0 = vsel %vm1830_vm6, %v4956_v61, -inf  ;;  %16542 = vmatprep.subr.msk.mxu0 %vm294_vm0, %v15243_v60  ;;  %16584 = vmatprep.mubr.msk.f32.mxu1 %vm289_vm2, %v18894_v38 }
 0x1c2   : > { %v4991_v1 = vrot.slane %v4990_v55, 4  ;;  %v4999_v2 = vrot.slane %v4998_v63, 4  ;;  %v5007_v3 = vrot.slane %v5006_v0, 4  ;;  %v4957_v4 = vsel %vm1811_vm4, %v4955_v62, -inf  ;;  %16587 = vmatprep.subr.msk.mxu1 %vm294_vm0, %v15243_v60 }
 0x1c3   : > { %v4958_v44 = vrot.slane %v4957_v4, 4  ;;  %v4966_v5 = vsel %vm1821_vm5, %v4955_v62, -inf  ;;  %v4974_v48 = vsel %vm1830_vm6, %v4955_v62, -inf  ;;  %v4982_v6 = vsel %vm1839_vm7, %v4955_v62, -inf  ;;  %v15287_v62 = vld [vmem:[%s17833_s21 + $0xf0] sm:$0xff] }
 0x1c4   : > { %v4992_v46 = vmax.f32 %v4990_v55, %v4991_v1  ;;  %v5000_v51 = vmax.f32 %v4998_v63, %v4999_v2  ;;  %v5008_v9 = vmax.f32 %v5006_v0, %v5007_v3  ;;  %v4967_v11 = vrot.slane %v4966_v5, 4  ;;  %v15265_v63 = vld [vmem:[%s19749_s1 + $0x20] sm:$0x7] }
 0x1c5   : > { %v4959_v14 = vmax.f32 %v4957_v4, %v4958_v44  ;;  %v4975_v15 = vrot.slane %v4974_v48, 4  ;;  %v4983_v7 = vrot.slane %v4982_v6, 4  ;;  %v11151_v1 = vrot.slane %v15287_v62, 2  ;;  %v15298_v4 = vld [vmem:[%s19751_s3 + $0x20] sm:$0xff]  ;;  %v15299_v44 = vld [vmem:[%s19751_s3 + $0x28] sm:$0xff] }
 0x1c6   : > { %v4993_v16 = vrot.slane %v4992_v46, 2  ;;  %v5001_v17 = vrot.slane %v5000_v51, 2  ;;  %v5009_v18 = vrot.slane %v5008_v9, 2  ;;  %v4968_v19 = vmax.f32 %v4966_v5, %v4967_v11  ;;  %16540 = vmatmul.mubr.msk.f32.vlgmr.msra.gmra.mrb[12].mxu0 %vm289_vm2, %v18821_v30  ;;  %v15301_v11 = vld [vmem:[%s19751_s3 + $0x38] sm:$0xff] }
 0x1c7   : > { %v4960_v22 = vrot.slane %v4959_v14, 2  ;;  %v4976_v23 = vmax.f32 %v4974_v48, %v4975_v15  ;;  %v4984_v24 = vmax.f32 %v4982_v6, %v4983_v7  ;;  %16543 = vmatpush3.msk.msra.mxu0 %vm294_vm0, %v15243_v60  ;;  %16585 = vmatmul.mubr.msk.f32.vlgmr.msra.gmra.mrb[12].mxu1 %vm289_vm2, %v18888_v37  ;;  %v17724_v5 = vmov 0.0|0.0   ;;  %v11299_v48 = vld [vmem:[%s19751_s3] sm:$0xff]  ;;  %v11300_v6 = vld [vmem:[%s19751_s3 + $0x8] sm:$0xff]  ;;  %v11302_v15 = vld [vmem:[%s19751_s3 + $0x18] sm:$0xff] }
 0x1c8   : > { %v4994_v26 = vmax.f32 %v4992_v46, %v4993_v16  ;;  %v5002_v27 = vmax.f32 %v5000_v51, %v5001_v17  ;;  %v5010_v28 = vmax.f32 %v5008_v9, %v5009_v18  ;;  %v4969_v29 = vrot.slane %v4968_v19, 2  ;;  %16588 = vmatpush3.msk.msra.mxu1 %vm294_vm0, %v15243_v60  ;;  %16544 = vmatprep.mubr.msk.f32.mxu0 %vm289_vm2, %v18848_v32  ;;  %v15300_v9 = vld [vmem:[%s19751_s3 + $0x30] sm:$0xff]  ;;  %v15304_v17 = vld [vmem:[%s19751_s3 + $0x40] sm:$0xff]  ;;  %v15305_v18 = vld [vmem:[%s19751_s3 + $0x48] sm:$0xff] }
 0x1c9   : > { %v4961_v30 = vmax.f32 %v4959_v14, %v4960_v22  ;;  %v4977_v10 = vrot.slane %v4976_v23, 2  ;;  %v4985_v31 = vrot.slane %v4984_v24, 2  ;;  %16547 = vmatprep.subr.msk.mxu0 %vm294_vm0, %v15247_v20  ;;  %16589 = vmatprep.mubr.msk.f32.mxu1 %vm289_vm2, %v18971_v21  ;;  %v10433_v60 = vrot.slane %v18981_v50, 2  ;;  %v11301_v14 = vld [vmem:[%s19751_s3 + $0x10] sm:$0xff]  ;;  %v15310_v22 = vld [vmem:[%s19751_s3 + $0x68] sm:$0xff] }
 0x1ca   : > { %v4995_v13 = vrot.slane %v4994_v26, 1  ;;  %v5003_v34 = vrot.slane %v5002_v27, 1  ;;  %v5011_v36 = vrot.slane %v5010_v28, 1  ;;  %v4970_v39 = vmax.f32 %v4968_v19, %v4969_v29  ;;  %16592 = vmatprep.subr.msk.mxu1 %vm294_vm0, %v15247_v20  ;;  %v15311_v29 = vld [vmem:[%s19751_s3 + $0x70] sm:$0xff] }
 0x1cb   : > { %v4962_v32 = vrot.slane %v4961_v30, 1  ;;  %v4978_v40 = vmax.f32 %v4976_v23, %v4977_v10  ;;  %v4986_v41 = vmax.f32 %v4984_v24, %v4985_v31  ;;  %v19080_v46 = vpack.c.bf16 %v15299_v44, %v15298_v4  ;;  %v15326_v44 = vld [vmem:[%s19751_s3 + $0xd0] sm:$0xff] }
 0x1cc   : > { %v4996_v42 = vmax.f32 %v4994_v26, %v4995_v13  ;;  %v5004_v45 = vmax.f32 %v5002_v27, %v5003_v34  ;;  %v5012_v47 = vmax.f32 %v5010_v28, %v5011_v36  ;;  %v4971_v49 = vrot.slane %v4970_v39, 1  ;;  %v15306_v26 = vld [vmem:[%s19751_s3 + $0x50] sm:$0xff]  ;;  %v15307_v27 = vld [vmem:[%s19751_s3 + $0x58] sm:$0xff]  ;;  %v15314_v13 = vld [vmem:[%s19751_s3 + $0x80] sm:$0xff] }
 0x1cd   : > { %v4963_v52 = vmax.f32 %v4961_v30, %v4962_v32  ;;  %v4979_v53 = vrot.slane %v4978_v40, 1  ;;  %v4987_v43 = vrot.slane %v4986_v41, 1  ;;  %v19082_v51 = vpack.c.bf16 %v11300_v6, %v11299_v48  ;;  %v19148_v30 = vld [vmem:[%s19750_s2] ss:$0 sm:$0xff]  ;;  %v15327_v48 = vld [vmem:[%s19751_s3 + $0xd8] sm:$0xff] }
 0x1ce   : > { %4997 = vst.msk [vmem:[#allocation2 + $0x14] sm:$0x1] %vm1819_vm8, %v4996_v42  ;;  %5005 = vst.msk [vmem:[#allocation2 + $0x15] sm:$0x1] %vm1819_vm8, %v5004_v45  ;;  %v4972_v54 = vmax.f32 %v4970_v39, %v4971_v49  ;;  %16545 = vmatmul.mubr.msk.f32.vlgmr.msra.gmra.mrb[12].mxu0 %vm289_vm2, %v18860_v12  ;;  %v10432_v12 = vrot.slane %v18971_v21, 2  ;;  %v19099_v7 = vpack.c.bf16 %v15301_v11, %v15300_v9  ;;  %v17726_v19 = vmov 0.0  }
 0x1cf   : > { %5013 = vst.msk [vmem:[#allocation2 + $0x16] sm:$0x1] %vm1819_vm8, %v5012_v47  ;;  %4965 = vst.msk [vmem:[#allocation2 + $0x10] sm:$0x1] %vm1819_vm8, %v4963_v52  ;;  %v4980_v58 = vmax.f32 %v4978_v40, %v4979_v53  ;;  %v4988_v59 = vmax.f32 %v4986_v41, %v4987_v43  ;;  %16548 = vmatpush3.msk.msra.mxu0 %vm294_vm0, %v15247_v20  ;;  %16590 = vmatmul.mubr.msk.f32.vlgmr.msra.gmra.mrb[12].mxu1 %vm289_vm2, %v18981_v50  ;;  %v15315_v40 = vld [vmem:[%s19751_s3 + $0x88] sm:$0xff]  ;;  %v15319_v41 = vld [vmem:[%s19751_s3 + $0xa0] sm:$0xff] }
 0x1d0   : > { %4973 = vst.msk [vmem:[#allocation2 + $0x11] sm:$0x1] %vm1819_vm8, %v4972_v54  ;;  %16593 = vmatpush3.msk.msra.mxu1 %vm294_vm0, %v15247_v20  ;;  %16549 = vmatprep.mubr.msk.f32.mxu0 %vm289_vm2, %v18874_v35  ;;  %v15257_v35 = vld [vmem:[%s19749_s1 + $0x18] sm:$0x7]  ;;  %v10434_v61 = vsel %vm457_vm3, %v10432_v12, %v10433_v60  ;;  %v19103_v16 = vpack.c.bf16 %v11302_v15, %v11301_v14  ;;  %v19114_v20 = vld [vmem:[#allocation2] sm:$0x7f] }
 0x1d1   : > { %4981 = vst.msk [vmem:[#allocation2 + $0x12] sm:$0x1] %vm1819_vm8, %v4980_v58  ;;  %4989 = vst.msk [vmem:[#allocation2 + $0x13] sm:$0x1] %vm1819_vm8, %v4988_v59  ;;  %16552 = vmatprep.subr.msk.mxu0 %vm294_vm0, %v15251_v56  ;;  %16594 = vmatprep.mubr.msk.f32.mxu1 %vm289_vm2, %v10346_v57  ;;  %v19125_v23 = vpack.c.bf16 %v15305_v18, %v15304_v17  ;;  %v11309_v24 = vrot.slane %v19114_v20, 1  ;;  %v19160_v32 = vpack.c.bf16 %v15307_v27, %v15306_v26  ;;  %v15320_v42 = vld [vmem:[%s19751_s3 + $0xa8] sm:$0xff] }
 0x1d2   : > { %16597 = vmatprep.subr.msk.mxu1 %vm294_vm0, %v15251_v56  ;;  %v15316_v52 = vld [vmem:[%s19751_s3 + $0x90] sm:$0xff]  ;;  %v15317_v53 = vld [vmem:[%s19751_s3 + $0x98] sm:$0xff]  ;;  %v15324_v58 = vld [vmem:[%s19751_s3 + $0xc0] sm:$0xff] }
 0x1d3   : > { %v15321_v43 = vld [vmem:[%s19751_s3 + $0xb0] sm:$0xff]  ;;  %v15325_v59 = vld [vmem:[%s19751_s3 + $0xc8] sm:$0xff] }
 0x1d4   : > { %v19233_v15 = vld [vmem:[#allocation2 + $0x8] sm:$0x7f] }
 0x1d6   : > { %16550 = vmatmul.mubr.msk.f32.vlgmr.msra.gmra.mrb[12].mxu0 %vm289_vm2, %v18865_v33  ;;  %v15261_v33 = vld [vmem:[%s19749_s1 + $0x1c] sm:$0x7] }
 0x1d7   : > { %16553 = vmatpush3.msk.msra.mxu0 %vm294_vm0, %v15251_v56  ;;  %16595 = vmatmul.mubr.msk.f32.vlgmr.msra.gmra.mrb[12].mxu1 %vm289_vm2, %v18987_v8 }
 0x1d8   : > { %16598 = vmatpush3.msk.msra.mxu1 %vm294_vm0, %v15251_v56  ;;  %16554 = vmatprep.mubr.msk.f32.mxu0 %vm289_vm2, %v18894_v38  ;;  %v15288_v38 = vld [vmem:[%s17833_s21 + $0xf8] sm:$0xff] }
 0x1d9   : > { %16557 = vmatprep.subr.msk.mxu0 %vm294_vm0, %v15257_v35  ;;  %16599 = vmatprep.mubr.msk.f32.mxu1 %vm289_vm2, %v10434_v61  ;;  %v11068_v55 = vrot.slane %v15288_v38, 1  ;;  %v11152_v2 = vrot.slane %v15288_v38, 2 }
 0x1da   : > { %16602 = vmatprep.subr.msk.mxu1 %vm294_vm0, %v15257_v35 }
 0x1db   : > { %v11153_v3 = vsel %vm457_vm3, %v11151_v1, %v11152_v2 }
 0x1de   : > { %16555 = vmatmul.mubr.msk.f32.vlgmr.msra.gmra.mrb[12].mxu0 %vm289_vm2, %v18888_v37  ;;  %v11067_v37 = vrot.slane %v15287_v62, 1 }
 0x1df   : > { %16558 = vmatpush3.msk.msra.mxu0 %vm294_vm0, %v15257_v35  ;;  %16600 = vmatmul.mubr.msk.f32.vlgmr.msra.gmra.mrb[12].mxu1 %vm289_vm2, %v10433_v60 }
 0x1e0   : > { %16603 = vmatpush3.msk.msra.mxu1 %vm294_vm0, %v15257_v35  ;;  %16559 = vmatprep.mubr.msk.f32.mxu0 %vm289_vm2, %v18971_v21  ;;  %v11069_v0 = vsel %vm285_vm1, %v11067_v37, %v11068_v55  ;;  %v15309_v21 = vld [vmem:[%s19751_s3 + $0x60] sm:$0xff]  ;;  %v15330_v35 = vld [vmem:[%s19751_s3 + $0xe8] sm:$0xff] }
 0x1e1   : > { %16562 = vmatprep.subr.msk.mxu0 %vm294_vm0, %v15261_v33  ;;  %16604 = vmatprep.mubr.msk.f32.mxu1 %vm289_vm2, %v15287_v62  ;;  %v19130_v25 = vpack.c.bf16 %v15310_v22, %v15309_v21  ;;  %v19208_v62 = vpack.c.bf16 %v15320_v42, %v15319_v41  ;;  %v11619_v41 = vrot.slane %v19233_v15, 1 }
 0x1e2   : > { %16607 = vmatprep.subr.msk.mxu1 %vm294_vm0, %v15261_v33 }
 0x1e6   : > { %16560 = vmatmul.mubr.msk.f32.vlgmr.msra.gmra.mrb[12].mxu0 %vm289_vm2, %v18981_v50  ;;  %v15312_v50 = vld [vmem:[%s19751_s3 + $0x78] sm:$0xff] }
 0x1e7   : > { %16563 = vmatpush3.msk.msra.mxu0 %vm294_vm0, %v15261_v33  ;;  %16605 = vmatmul.mubr.msk.f32.vlgmr.msra.gmra.mrb[12].mxu1 %vm289_vm2, %v15288_v38  ;;  %v19174_v49 = vpack.c.bf16 %v15312_v50, %v15311_v29  ;;  %v19210_v38 = vpack.c.bf16 %v15317_v53, %v15316_v52  ;;  %v15331_v53 = vld [vmem:[%s19751_s3 + $0xf0] sm:$0xff] }
 0x1e8   : > { %16608 = vmatpush3.msk.msra.mxu1 %vm294_vm0, %v15261_v33  ;;  %16564 = vmatprep.mubr.msk.f32.mxu0 %vm289_vm2, %v10346_v57  ;;  %v15322_v57 = vld [vmem:[%s19751_s3 + $0xb8] sm:$0xff]  ;;  %v19206_v33 = vpack.c.bf16 %v15315_v40, %v15314_v13 }
 0x1e9   : > { %16567 = vmatprep.subr.msk.mxu0 %vm294_vm0, %v15265_v63  ;;  %16609 = vmatprep.mubr.msk.f32.mxu1 %vm289_vm2, %v11069_v0  ;;  %v19217_v0 = vpack.c.bf16 %v15325_v59, %v15324_v58  ;;  %v11698_v58 = vrot.slane %v19233_v15, 2 }
 0x1ea   : > { %16612 = vmatprep.subr.msk.mxu1 %vm294_vm0, %v15265_v63 }
 0x1ee   : > { %16565 = vmatmul.mubr.msk.f32.vlgmr.msra.gmra.mrb[12].mxu0 %vm289_vm2, %v18987_v8 }
 0x1ef   : > { %16568 = vmatpush3.msk.msra.mxu0 %vm294_vm0, %v15265_v63  ;;  %16610 = vmatmul.mubr.msk.f32.vlgmr.msra.gmra.mrb[12].mxu1 %vm289_vm2, %v11068_v55  ;;  %v11460_v55 = vrot.slane %v19114_v20, 2 }
 0x1f0   : > { %16613 = vmatpush3.msk.msra.mxu1 %vm294_vm0, %v15265_v63  ;;  %16569 = vmatprep.mubr.msk.f32.mxu0 %vm289_vm2, %v10434_v61  ;;  %v19215_v63 = vpack.c.bf16 %v15322_v57, %v15321_v43  ;;  %v15332_v43 = vld [vmem:[%s19751_s3 + $0xf8] sm:$0xff] }
 0x1f1   : > { %16614 = vmatprep.mubr.msk.f32.mxu1 %vm289_vm2, %v11153_v3  ;;  %17119 = vmatprep.subr.bf16.mxu0 %v17724_v5 }
 0x1f2   : > { %17125 = vmatprep.subr.bf16.mxu1 %v17724_v5 }
 0x1f6   : > { %16570 = vmatmul.mubr.msk.f32.vlgmr.msra.gmra.mrb[12].mxu0 %vm289_vm2, %v10433_v60  ;;  %v15329_v60 = vld [vmem:[%s19751_s3 + $0xe0] sm:$0xff] }
 0x1f7   : > { %16615 = vmatmul.mubr.msk.f32.vlgmr.msra.gmra.mrb[12].mxu1 %vm289_vm2, %v11152_v2  ;;  %17121 = vmatpush3.bf16.msra.mxu0 %v19080_v46  ;;  %v19223_v4 = vpack.c.bf16 %v15330_v35, %v15329_v60 }
 0x1f8   : > { %17127 = vmatpush3.bf16.msra.mxu1 %v19082_v51  ;;  %17122 = vmatprep.subr.bf16.mxu0 %v17724_v5 }
 0x1f9   : > { %17128 = vmatprep.subr.bf16.mxu1 %v17724_v5  ;;  %16625 = vmatprep.mubr.msk.f32.mxu0 %vm17725_vm9, %v17726_v19 }
 0x1fa   : > { %16636 = vmatprep.mubr.msk.f32.mxu1 %vm17725_vm9, %v17726_v19 }
 0x1fb   : > { %17124 = vmatpush3.bf16.msra.mxu0 %v19099_v7 }
 0x1fc   : > { %17130 = vmatpush3.bf16.msra.mxu1 %v19103_v16  ;;  %17131 = vmatprep.subr.bf16.mxu0 %v17724_v5 }
 0x1fd   : > { %v16301_v28 = vpop.f32.mrb[6].mxu0  ;;  %17137 = vmatprep.subr.bf16.mxu1 %v17724_v5 }
 0x1fe   : > { %v5807_v10 = vadd.f32 %v19148_v30, %v16301_v28  ;;  %v16346_v31 = vpop.f32.mrb[6].mxu1  ;;  %16626 = vmatmul.mubr.msk.f32.vlgmr.msra.gmra.mrb[14].mxu0 %vm11310_vm10, %v11309_v24  ;;  %v5795_v8 = vpop.f32.mrb[7].mxu0 }
 0x1ff   : > { %v6523_v34 = vadd.f32 %v19148_v30, %v16346_v31  ;;  %16637 = vmatmul.mubr.msk.f32.vlgmr.msra.gmra.mrb[14].mxu1 %vm11310_vm10, %v19114_v20  ;;  %v5806_v36 = vadd.f32 %v19148_v30, %v5795_v8  ;;  %v6511_v39 = vpop.f32.mrb[7].mxu1  ;;  %17133 = vmatpush3.bf16.msra.mxu0 %v19125_v23 }
 0x200   : > { %v5809_v45 = vmax.f32 %v5807_v10, 0.0  ;;  %v6522_v47 = vadd.f32 %v19148_v30, %v6511_v39  ;;  %17139 = vmatpush3.bf16.msra.mxu1 %v19130_v25  ;;  %17134 = vmatprep.subr.bf16.mxu0 %v17724_v5  ;;  %v19246_v10 = vpack.c.bf16 %v15327_v48, %v15326_v44 }
 0x201   : > { %v6525_v54 = vmax.f32 %v6523_v34, 0.0  ;;  %v5808_v56 = vmax.f32 %v5806_v36, 0.0  ;;  %17140 = vmatprep.subr.bf16.mxu1 %v17724_v5  ;;  %16647 = vmatprep.mubr.msk.f32.mxu0 %vm17725_vm9, %v17726_v19 }
 0x202   : > { %v6524_v12 = vmax.f32 %v6522_v47, 0.0  ;;  %16658 = vmatprep.mubr.msk.f32.mxu1 %vm17725_vm9, %v17726_v19 }
 0x203   : > { %v6527_v61 = vmax.f32 %v5809_v45, %v6525_v54  ;;  %17136 = vmatpush3.bf16.msra.mxu0 %v19160_v32 }
 0x204   : > { %v6526_v37 = vmax.f32 %v5808_v56, %v6524_v12  ;;  %17142 = vmatpush3.bf16.msra.mxu1 %v19174_v49  ;;  %17143 = vmatprep.subr.bf16.mxu0 %v17724_v5 }
 0x205   : > { %v6561_v1 = vsel %vm1811_vm4, %v6527_v61, -inf  ;;  %v6569_v2 = vsel %vm1821_vm5, %v6527_v61, -inf  ;;  %v6577_v3 = vsel %vm1830_vm6, %v6527_v61, -inf  ;;  %17149 = vmatprep.subr.bf16.mxu1 %v17724_v5 }
 0x206   : > { %v6562_v6 = vrot.slane %v6561_v1, 4  ;;  %v6570_v9 = vrot.slane %v6569_v2, 4  ;;  %v6578_v11 = vrot.slane %v6577_v3, 4  ;;  %v6528_v14 = vsel %vm1811_vm4, %v6526_v37, -inf  ;;  %16648 = vmatmul.mubr.msk.f32.vlgmr.msra.gmra.mrb[16].mxu0 %vm11310_vm10, %v11460_v55 }
 0x207   : > { %v6529_v17 = vrot.slane %v6528_v14, 4  ;;  %v6537_v18 = vsel %vm1821_vm5, %v6526_v37, -inf  ;;  %v6545_v20 = vsel %vm1830_vm6, %v6526_v37, -inf  ;;  %v6553_v21 = vsel %vm1839_vm7, %v6526_v37, -inf  ;;  %16659 = vmatmul.mubr.msk.f32.vlgmr.msra.gmra.mrb[16].mxu1 %vm11310_vm10, %v19233_v15  ;;  %17145 = vmatpush3.bf16.msra.mxu0 %v19206_v33 }
 0x208   : > { %v6563_v22 = vmax.f32 %v6561_v1, %v6562_v6  ;;  %v6571_v24 = vmax.f32 %v6569_v2, %v6570_v9  ;;  %v6579_v26 = vmax.f32 %v6577_v3, %v6578_v11  ;;  %v6538_v27 = vrot.slane %v6537_v18, 4  ;;  %17151 = vmatpush3.bf16.msra.mxu1 %v19208_v62  ;;  %17146 = vmatprep.subr.bf16.mxu0 %v17724_v5  ;;  %v15334_v6 = vld [vmem:[%s19751_s3 + $0x100] sm:$0xff]  ;;  %v15335_v9 = vld [vmem:[%s19751_s3 + $0x108] sm:$0xff] }
 0x209   : > { %v6530_v28 = vmax.f32 %v6528_v14, %v6529_v17  ;;  %v6546_v29 = vrot.slane %v6545_v20, 4  ;;  %v6554_v50 = vrot.slane %v6553_v21, 4  ;;  %17152 = vmatprep.subr.bf16.mxu1 %v17724_v5  ;;  %16669 = vmatprep.mubr.msk.f32.mxu0 %vm17725_vm9, %v17726_v19  ;;  %v19269_v1 = vpack.c.bf16 %v15332_v43, %v15331_v53 }
 0x20a   : > { %v6564_v31 = vrot.slane %v6563_v22, 2  ;;  %v6572_v8 = vrot.slane %v6571_v24, 2  ;;  %v6580_v13 = vrot.slane %v6579_v26, 2  ;;  %v6539_v34 = vmax.f32 %v6537_v18, %v6538_v27  ;;  %16680 = vmatprep.mubr.msk.f32.mxu1 %vm17725_vm9, %v17726_v19  ;;  %v15337_v27 = vld [vmem:[%s19751_s3 + $0x118] sm:$0xff] }
 0x20b   : > { %v6531_v36 = vrot.slane %v6530_v28, 2  ;;  %v6547_v39 = vmax.f32 %v6545_v20, %v6546_v29  ;;  %v6555_v40 = vmax.f32 %v6553_v21, %v6554_v50  ;;  %17148 = vmatpush3.bf16.msra.mxu0 %v19210_v38  ;;  %v19287_v20 = vld [vmem:[#allocation2 + $0x10] sm:$0x7f] }
 0x20c   : > { %v6565_v42 = vmax.f32 %v6563_v22, %v6564_v31  ;;  %v6573_v45 = vmax.f32 %v6571_v24, %v6572_v8  ;;  %v6581_v47 = vmax.f32 %v6579_v26, %v6580_v13  ;;  %v6540_v52 = vrot.slane %v6539_v34, 2  ;;  %17154 = vmatpush3.bf16.msra.mxu1 %v19215_v63  ;;  %17155 = vmatprep.subr.bf16.mxu0 %v17724_v5  ;;  %v15336_v26 = vld [vmem:[%s19751_s3 + $0x110] sm:$0xff] }
 0x20d   : > { %v6532_v54 = vmax.f32 %v6530_v28, %v6531_v36  ;;  %v6548_v56 = vrot.slane %v6547_v39, 2  ;;  %v6556_v57 = vrot.slane %v6555_v40, 2  ;;  %17161 = vmatprep.subr.bf16.mxu1 %v17724_v5  ;;  %v19291_v24 = vpack.c.bf16 %v15335_v9, %v15334_v6 }
 0x20e   : > { %v6566_v59 = vrot.slane %v6565_v42, 1  ;;  %v6574_v12 = vrot.slane %v6573_v45, 1  ;;  %v6582_v60 = vrot.slane %v6581_v47, 1  ;;  %v6541_v35 = vmax.f32 %v6539_v34, %v6540_v52  ;;  %16670 = vmatmul.mubr.msk.f32.vlgmr.msra.gmra.mrb[18].mxu0 %vm11310_vm10, %v11619_v41 }
 0x20f   : > { %v6533_v61 = vrot.slane %v6532_v54, 1  ;;  %v6549_v37 = vmax.f32 %v6547_v39, %v6548_v56  ;;  %v6557_v55 = vmax.f32 %v6555_v40, %v6556_v57  ;;  %16681 = vmatmul.mubr.msk.f32.vlgmr.msra.gmra.mrb[18].mxu1 %vm11310_vm10, %v11698_v58  ;;  %17157 = vmatpush3.bf16.msra.mxu0 %v19217_v0  ;;  %v19305_v28 = vrot.slane %v19287_v20, 1 }
 0x210   : > { %v6567_v2 = vmax.f32 %v6565_v42, %v6566_v59  ;;  %v6575_v3 = vmax.f32 %v6573_v45, %v6574_v12  ;;  %v6583_v44 = vmax.f32 %v6581_v47, %v6582_v60  ;;  %v6542_v48 = vrot.slane %v6541_v35, 1  ;;  %17163 = vmatpush3.bf16.msra.mxu1 %v19223_v4  ;;  %17158 = vmatprep.subr.bf16.mxu0 %v17724_v5 }
 0x211   : > { %v6534_v11 = vmax.f32 %v6532_v54, %v6533_v61  ;;  %v6550_v14 = vrot.slane %v6549_v37, 1  ;;  %v6558_v17 = vrot.slane %v6557_v55, 1  ;;  %17164 = vmatprep.subr.bf16.mxu1 %v17724_v5  ;;  %16691 = vmatprep.mubr.msk.f32.mxu0 %vm17725_vm9, %v17726_v19  ;;  %v19313_v29 = vpack.c.bf16 %v15337_v27, %v15336_v26 }
 0x212   : > { %6568 = vst.msk [vmem:[#allocation2 + $0x1c] sm:$0x1] %vm1819_vm8, %v6567_v2  ;;  %6576 = vst.msk [vmem:[#allocation2 + $0x1d] sm:$0x1] %vm1819_vm8, %v6575_v3  ;;  %v6543_v18 = vmax.f32 %v6541_v35, %v6542_v48  ;;  %16702 = vmatprep.mubr.msk.f32.mxu1 %vm17725_vm9, %v17726_v19  ;;  %v19325_v50 = vrot.slane %v19287_v20, 2 }
 0x213   : > { %6584 = vst.msk [vmem:[#allocation2 + $0x1e] sm:$0x1] %vm1819_vm8, %v6583_v44  ;;  %6536 = vst.msk [vmem:[#allocation2 + $0x18] sm:$0x1] %vm1819_vm8, %v6534_v11  ;;  %v6551_v21 = vmax.f32 %v6549_v37, %v6550_v14  ;;  %v6559_v22 = vmax.f32 %v6557_v55, %v6558_v17  ;;  %17160 = vmatpush3.bf16.msra.mxu0 %v19246_v10 }
 0x214   : > { %6544 = vst.msk [vmem:[#allocation2 + $0x19] sm:$0x1] %vm1819_vm8, %v6543_v18  ;;  %17166 = vmatpush3.bf16.msra.mxu1 %v19269_v1  ;;  %17167 = vmatprep.subr.bf16.mxu0 %v17724_v5 }
 0x215   : > { %6552 = vst.msk [vmem:[#allocation2 + $0x1a] sm:$0x1] %vm1819_vm8, %v6551_v21  ;;  %6560 = vst.msk [vmem:[#allocation2 + $0x1b] sm:$0x1] %vm1819_vm8, %v6559_v22  ;;  %17173 = vmatprep.subr.bf16.mxu1 %v17724_v5 }
 0x216   : > { %16692 = vmatmul.mubr.msk.f32.vlgmr.msra.gmra.mrb[20].mxu0 %vm11310_vm10, %v19287_v20 }
 0x217   : > { %16703 = vmatmul.mubr.msk.f32.vlgmr.msra.gmra.mrb[20].mxu1 %vm11310_vm10, %v19305_v28  ;;  %17169 = vmatpush3.bf16.msra.mxu0 %v19291_v24 }
 0x218   : > { %17175 = vmatpush3.bf16.msra.mxu1 %v19080_v46  ;;  %17170 = vmatprep.subr.bf16.mxu0 %v17724_v5 }
 0x219   : > { %17176 = vmatprep.subr.bf16.mxu1 %v17724_v5  ;;  %16713 = vmatprep.mubr.msk.f32.mxu0 %vm17725_vm9, %v17726_v19 }
 0x21a   : > { %16724 = vmatprep.mubr.msk.f32.mxu1 %vm17725_vm9, %v17726_v19 }
 0x21b   : > { %17172 = vmatpush3.bf16.msra.mxu0 %v19313_v29 }
 0x21c   : > { %17178 = vmatpush3.bf16.msra.mxu1 %v19099_v7  ;;  %17179 = vmatprep.subr.bf16.mxu0 %v17724_v5 }
 0x21d   : > { %17185 = vmatprep.subr.bf16.mxu1 %v17724_v5 }
 0x21e   : > { %16714 = vmatmul.mubr.msk.f32.vlgmr.msra.gmra.mrb[22].mxu0 %vm11310_vm10, %v19325_v50 }
 0x21f   : > { %16725 = vmatmul.mubr.msk.f32.vlgmr.msra.gmra.mrb[22].mxu1 %vm11310_vm10, %v11619_v41  ;;  %17181 = vmatpush3.bf16.msra.mxu0 %v19082_v51 }
 0x220   : > { %17187 = vmatpush3.bf16.msra.mxu1 %v19125_v23  ;;  %17182 = vmatprep.subr.bf16.mxu0 %v17724_v5 }
 0x221   : > { %17188 = vmatprep.subr.bf16.mxu1 %v17724_v5  ;;  %16735 = vmatprep.mubr.msk.f32.mxu0 %vm17725_vm9, %v17726_v19 }
 0x222   : > { %16746 = vmatprep.mubr.msk.f32.mxu1 %vm17725_vm9, %v17726_v19 }
 0x223   : > { %17184 = vmatpush3.bf16.msra.mxu0 %v19103_v16 }
 0x224   : > { %17190 = vmatpush3.bf16.msra.mxu1 %v19160_v32  ;;  %17191 = vmatprep.subr.bf16.mxu0 %v17724_v5 }
 0x225   : > { %17197 = vmatprep.subr.bf16.mxu1 %v17724_v5 }
 0x226   : > { %16736 = vmatmul.mubr.msk.f32.vlgmr.msra.gmra.mrb[24].mxu0 %vm11310_vm10, %v19233_v15  ;;  %v19381_v15 = vld [vmem:[#allocation2 + $0x18] sm:$0x7f] }
 0x227   : > { %16747 = vmatmul.mubr.msk.f32.vlgmr.msra.gmra.mrb[24].mxu1 %vm11310_vm10, %v11698_v58  ;;  %17193 = vmatpush3.bf16.msra.mxu0 %v19130_v25  ;;  %v19396_v31 = vrot.slane %v19381_v15, 1  ;;  %v19400_v8 = vrot.slane %v19381_v15, 2 }
 0x228   : > { %17199 = vmatpush3.bf16.msra.mxu1 %v19206_v33  ;;  %17194 = vmatprep.subr.bf16.mxu0 %v17724_v5 }
 0x229   : > { %17200 = vmatprep.subr.bf16.mxu1 %v17724_v5  ;;  %16757 = vmatprep.mubr.msk.f32.mxu0 %vm17725_vm9, %v17726_v19 }
 0x22a   : > { %16768 = vmatprep.mubr.msk.f32.mxu1 %vm17725_vm9, %v17726_v19 }
 0x22b   : > { %17196 = vmatpush3.bf16.msra.mxu0 %v19174_v49 }
 0x22c   : > { %17202 = vmatpush3.bf16.msra.mxu1 %v19210_v38  ;;  %17203 = vmatprep.subr.bf16.mxu0 %v17724_v5 }
 0x22d   : > { %17209 = vmatprep.subr.bf16.mxu1 %v17724_v5 }
 0x22e   : > { %16758 = vmatmul.mubr.msk.f32.vlgmr.msra.gmra.mrb[26].mxu0 %vm11310_vm10, %v19287_v20 }
 0x22f   : > { %16769 = vmatmul.mubr.msk.f32.vlgmr.msra.gmra.mrb[26].mxu1 %vm11310_vm10, %v19305_v28  ;;  %17205 = vmatpush3.bf16.msra.mxu0 %v19208_v62 }
 0x230   : > { %17211 = vmatpush3.bf16.msra.mxu1 %v19217_v0  ;;  %17206 = vmatprep.subr.bf16.mxu0 %v17724_v5 }
 0x231   : > { %17212 = vmatprep.subr.bf16.mxu1 %v17724_v5  ;;  %16779 = vmatprep.mubr.msk.f32.mxu0 %vm17725_vm9, %v17726_v19 }
 0x232   : > { %16790 = vmatprep.mubr.msk.f32.mxu1 %vm17725_vm9, %v17726_v19 }
 0x233   : > { %17208 = vmatpush3.bf16.msra.mxu0 %v19215_v63 }
 0x234   : > { %17214 = vmatpush3.bf16.msra.mxu1 %v19246_v10  ;;  %17215 = vmatprep.subr.bf16.mxu0 %v17724_v5 }
 0x235   : > { %17221 = vmatprep.subr.bf16.mxu1 %v17724_v5 }
 0x236   : > { %16780 = vmatmul.mubr.msk.f32.vlgmr.msra.gmra.mrb[28].mxu0 %vm11310_vm10, %v19325_v50 }
 0x237   : > { %16791 = vmatmul.mubr.msk.f32.vlgmr.msra.gmra.mrb[28].mxu1 %vm11310_vm10, %v19381_v15  ;;  %17217 = vmatpush3.bf16.msra.mxu0 %v19223_v4 }
 0x238   : > { %17223 = vmatpush3.bf16.msra.mxu1 %v19291_v24  ;;  %17218 = vmatprep.subr.bf16.mxu0 %v17724_v5 }
 0x239   : > { %17224 = vmatprep.subr.bf16.mxu1 %v17724_v5  ;;  %16801 = vmatprep.mubr.msk.f32.mxu0 %vm17725_vm9, %v17726_v19 }
 0x23a   : > { %16812 = vmatprep.mubr.msk.f32.mxu1 %vm17725_vm9, %v17726_v19 }
 0x23b   : > { %17220 = vmatpush3.bf16.msra.mxu0 %v19269_v1 }
 0x23c   : > { %17226 = vmatpush3.bf16.msra.mxu1 %v19313_v29  ;;  %17227 = vmatprep.subr.bf16.mxu0 %v17724_v5 }
 0x23d   : > { %17233 = vmatprep.subr.bf16.mxu1 %v17724_v5 }
 0x23e   : > { %16802 = vmatmul.mubr.msk.f32.vlgmr.msra.gmra.mrb[30].mxu0 %vm11310_vm10, %v19396_v31 }
 0x23f   : > { %16813 = vmatmul.mubr.msk.f32.vlgmr.msra.gmra.mrb[30].mxu1 %vm11310_vm10, %v19400_v8  ;;  %17229 = vmatpush3.bf16.msra.mxu0 %v19080_v46 }
 0x240   : > { %17235 = vmatpush3.bf16.msra.mxu1 %v19082_v51  ;;  %17230 = vmatprep.subr.bf16.mxu0 %v17724_v5 }
 0x241   : > { %v16391_v13 = vpop.f32.mrb[8].mxu0  ;;  %17236 = vmatprep.subr.bf16.mxu1 %v17724_v5  ;;  %16823 = vmatprep.mubr.msk.f32.mxu0 %vm17725_vm9, %v17726_v19 }
 0x242   : > { %v7378_v34 = vadd.f32 %v19148_v30, %v16391_v13  ;;  %v16436_v36 = vpop.f32.mrb[8].mxu1  ;;  %v7366_v39 = vpop.f32.mrb[9].mxu0  ;;  %16834 = vmatprep.mubr.msk.f32.mxu1 %vm17725_vm9, %v17726_v19 }
 0x243   : > { %v8094_v40 = vadd.f32 %v19148_v30, %v16436_v36  ;;  %v7377_v41 = vadd.f32 %v19148_v30, %v7366_v39  ;;  %v8082_v42 = vpop.f32.mrb[9].mxu1  ;;  %17232 = vmatpush3.bf16.msra.mxu0 %v19099_v7 }
 0x244   : > { %v7380_v45 = vmax.f32 %v7378_v34, 0.0  ;;  %v8093_v47 = vadd.f32 %v19148_v30, %v8082_v42  ;;  %17238 = vmatpush3.bf16.msra.mxu1 %v19103_v16  ;;  %17239 = vmatprep.subr.bf16.mxu0 %v17724_v5 }
 0x245   : > { %v8096_v52 = vmax.f32 %v8094_v40, 0.0  ;;  %v7379_v53 = vmax.f32 %v7377_v41, 0.0  ;;  %17245 = vmatprep.subr.bf16.mxu1 %v17724_v5 }
 0x246   : > { %v8095_v43 = vmax.f32 %v8093_v47, 0.0  ;;  %16824 = vmatmul.mubr.msk.f32.vlgmr.msra.gmra.mrb[32].mxu0 %vm11310_vm10, %v19305_v28 }
 0x247   : > { %v8098_v54 = vmax.f32 %v7380_v45, %v8096_v52  ;;  %16835 = vmatmul.mubr.msk.f32.vlgmr.msra.gmra.mrb[32].mxu1 %vm11310_vm10, %v19287_v20  ;;  %17241 = vmatpush3.bf16.msra.mxu0 %v19125_v23 }
 0x248   : > { %v8097_v56 = vmax.f32 %v7379_v53, %v8095_v43  ;;  %17247 = vmatpush3.bf16.msra.mxu1 %v19130_v25  ;;  %17242 = vmatprep.subr.bf16.mxu0 %v17724_v5 }
 0x249   : > { %v8132_v57 = vsel %vm1811_vm4, %v8098_v54, -inf  ;;  %v8140_v58 = vsel %vm1821_vm5, %v8098_v54, -inf  ;;  %v8148_v59 = vsel %vm1830_vm6, %v8098_v54, -inf  ;;  %17248 = vmatprep.subr.bf16.mxu1 %v17724_v5  ;;  %16845 = vmatprep.mubr.msk.f32.mxu0 %vm17725_vm9, %v17726_v19 }
 0x24a   : > { %v8133_v12 = vrot.slane %v8132_v57, 4  ;;  %v8141_v60 = vrot.slane %v8140_v58, 4  ;;  %v8149_v35 = vrot.slane %v8148_v59, 4  ;;  %v8099_v61 = vsel %vm1811_vm4, %v8097_v56, -inf  ;;  %16856 = vmatprep.mubr.msk.f32.mxu1 %vm17725_vm9, %v17726_v19 }
 0x24b   : > { %v8100_v37 = vrot.slane %v8099_v61, 4  ;;  %v8108_v55 = vsel %vm1821_vm5, %v8097_v56, -inf  ;;  %v8116_v2 = vsel %vm1830_vm6, %v8097_v56, -inf  ;;  %v8124_v3 = vsel %vm1839_vm7, %v8097_v56, -inf  ;;  %17244 = vmatpush3.bf16.msra.mxu0 %v19160_v32 }
 0x24c   : > { %v8134_v44 = vmax.f32 %v8132_v57, %v8133_v12  ;;  %v8142_v48 = vmax.f32 %v8140_v58, %v8141_v60  ;;  %v8150_v6 = vmax.f32 %v8148_v59, %v8149_v35  ;;  %v8109_v9 = vrot.slane %v8108_v55, 4  ;;  %17250 = vmatpush3.bf16.msra.mxu1 %v19174_v49  ;;  %17251 = vmatprep.subr.bf16.mxu0 %v17724_v5 }
 0x24d   : > { %v8101_v11 = vmax.f32 %v8099_v61, %v8100_v37  ;;  %v8117_v14 = vrot.slane %v8116_v2, 4  ;;  %v8125_v17 = vrot.slane %v8124_v3, 4  ;;  %17257 = vmatprep.subr.bf16.mxu1 %v17724_v5 }
 0x24e   : > { %v8135_v18 = vrot.slane %v8134_v44, 2  ;;  %v8143_v20 = vrot.slane %v8142_v48, 2  ;;  %v8151_v21 = vrot.slane %v8150_v6, 2  ;;  %v8110_v22 = vmax.f32 %v8108_v55, %v8109_v9  ;;  %16846 = vmatmul.mubr.msk.f32.vlgmr.msra.gmra.mrb[34].mxu0 %vm11310_vm10, %v19325_v50 }
 0x24f   : > { %v8102_v26 = vrot.slane %v8101_v11, 2  ;;  %v8118_v27 = vmax.f32 %v8116_v2, %v8117_v14  ;;  %v8126_v28 = vmax.f32 %v8124_v3, %v8125_v17  ;;  %16857 = vmatmul.mubr.msk.f32.vlgmr.msra.gmra.mrb[34].mxu1 %vm11310_vm10, %v19381_v15  ;;  %17253 = vmatpush3.bf16.msra.mxu0 %v19206_v33 }
 0x250   : > { %v8136_v13 = vmax.f32 %v8134_v44, %v8135_v18  ;;  %v8144_v34 = vmax.f32 %v8142_v48, %v8143_v20  ;;  %v8152_v36 = vmax.f32 %v8150_v6, %v8151_v21  ;;  %v8111_v39 = vrot.slane %v8110_v22, 2  ;;  %17259 = vmatpush3.bf16.msra.mxu1 %v19208_v62  ;;  %17254 = vmatprep.subr.bf16.mxu0 %v17724_v5 }
 0x251   : > { %v8103_v40 = vmax.f32 %v8101_v11, %v8102_v26  ;;  %v8119_v41 = vrot.slane %v8118_v27, 2  ;;  %v8127_v42 = vrot.slane %v8126_v28, 2  ;;  %17260 = vmatprep.subr.bf16.mxu1 %v17724_v5  ;;  %16867 = vmatprep.mubr.msk.f32.mxu0 %vm17725_vm9, %v17726_v19 }
 0x252   : > { %v8137_v50 = vrot.slane %v8136_v13, 1  ;;  %v8145_v45 = vrot.slane %v8144_v34, 1  ;;  %v8153_v47 = vrot.slane %v8152_v36, 1  ;;  %v8112_v52 = vmax.f32 %v8110_v22, %v8111_v39  ;;  %16878 = vmatprep.mubr.msk.f32.mxu1 %vm17725_vm9, %v17726_v19 }
 0x253   : > { %v8104_v53 = vrot.slane %v8103_v40, 1  ;;  %v8120_v43 = vmax.f32 %v8118_v27, %v8119_v41  ;;  %v8128_v54 = vmax.f32 %v8126_v28, %v8127_v42  ;;  %17256 = vmatpush3.bf16.msra.mxu0 %v19210_v38 }
 0x254   : > { %v8138_v56 = vmax.f32 %v8136_v13, %v8137_v50  ;;  %v8146_v57 = vmax.f32 %v8144_v34, %v8145_v45  ;;  %v8154_v58 = vmax.f32 %v8152_v36, %v8153_v47  ;;  %v8113_v59 = vrot.slane %v8112_v52, 1  ;;  %17262 = vmatpush3.bf16.msra.mxu1 %v19215_v63  ;;  %17263 = vmatprep.subr.bf16.mxu0 %v17724_v5 }
 0x255   : > { %v8105_v12 = vmax.f32 %v8103_v40, %v8104_v53  ;;  %v8121_v60 = vrot.slane %v8120_v43, 1  ;;  %v8129_v35 = vrot.slane %v8128_v54, 1  ;;  %17269 = vmatprep.subr.bf16.mxu1 %v17724_v5 }
 0x256   : > { %8139 = vst.msk [vmem:[#allocation2 + $0x24] sm:$0x1] %vm1819_vm8, %v8138_v56  ;;  %8147 = vst.msk [vmem:[#allocation2 + $0x25] sm:$0x1] %vm1819_vm8, %v8146_v57  ;;  %v8114_v61 = vmax.f32 %v8112_v52, %v8113_v59  ;;  %16868 = vmatmul.mubr.msk.f32.vlgmr.msra.gmra.mrb[36].mxu0 %vm11310_vm10, %v19396_v31 }
 0x257   : > { %8155 = vst.msk [vmem:[#allocation2 + $0x26] sm:$0x1] %vm1819_vm8, %v8154_v58  ;;  %8107 = vst.msk [vmem:[#allocation2 + $0x20] sm:$0x1] %vm1819_vm8, %v8105_v12  ;;  %v8122_v37 = vmax.f32 %v8120_v43, %v8121_v60  ;;  %v8130_v55 = vmax.f32 %v8128_v54, %v8129_v35  ;;  %16879 = vmatmul.mubr.msk.f32.vlgmr.msra.gmra.mrb[36].mxu1 %vm11310_vm10, %v19400_v8  ;;  %17265 = vmatpush3.bf16.msra.mxu0 %v19217_v0 }
 0x258   : > { %8115 = vst.msk [vmem:[#allocation2 + $0x21] sm:$0x1] %vm1819_vm8, %v8114_v61  ;;  %17271 = vmatpush3.bf16.msra.mxu1 %v19223_v4  ;;  %17266 = vmatprep.subr.bf16.mxu0 %v17724_v5 }
 0x259   : > { %8123 = vst.msk [vmem:[#allocation2 + $0x22] sm:$0x1] %vm1819_vm8, %v8122_v37  ;;  %8131 = vst.msk [vmem:[#allocation2 + $0x23] sm:$0x1] %vm1819_vm8, %v8130_v55  ;;  %17272 = vmatprep.subr.bf16.mxu1 %v17724_v5  ;;  %16889 = vmatprep.mubr.msk.f32.mxu0 %vm17725_vm9, %v17726_v19 }
 0x25a   : > { %16900 = vmatprep.mubr.msk.f32.mxu1 %vm17725_vm9, %v17726_v19 }
 0x25b   : > { %17268 = vmatpush3.bf16.msra.mxu0 %v19246_v10 }
 0x25c   : > { %17274 = vmatpush3.bf16.msra.mxu1 %v19269_v1  ;;  %17275 = vmatprep.subr.bf16.mxu0 %v17724_v5 }
 0x25d   : > { %17281 = vmatprep.subr.bf16.mxu1 %v17724_v5 }
 0x260   : > { %v19485_v2 = vld [vmem:[#allocation2 + $0x20] sm:$0x7f] }
 0x261   : > { %16890 = vmatmul.mubr.msk.f32.vlgmr.msra.gmra.mrb[38].mxu0 %vm11310_vm10, %v19485_v2  ;;  %v19490_v3 = vrot.slane %v19485_v2, 1  ;;  %v19504_v44 = vrot.slane %v19485_v2, 2 }
 0x262   : > { %17277 = vmatpush3.bf16.msra.mxu0 %v19291_v24  ;;  %16911 = vmatprep.mubr.msk.f32.mxu0 %vm17725_vm9, %v17726_v19 }
 0x263   : > { %16901 = vmatmul.mubr.msk.f32.vlgmr.msra.gmra.mrb[38].mxu1 %vm11310_vm10, %v19490_v3  ;;  %17278 = vmatprep.subr.bf16.mxu0 %v17724_v5 }
 0x264   : > { %17283 = vmatpush3.bf16.msra.mxu1 %v19080_v46  ;;  %16922 = vmatprep.mubr.msk.f32.mxu1 %vm17725_vm9, %v17726_v19 }
 0x265   : > { %17284 = vmatprep.subr.bf16.mxu1 %v17724_v5 }
 0x266   : > { %17280 = vmatpush3.bf16.msra.mxu0 %v19313_v29 }
 0x267   : > { %17287 = vmatprep.subr.bf16.mxu0 %v17724_v5 }
 0x268   : > { %17286 = vmatpush3.bf16.msra.mxu1 %v19099_v7 }
 0x269   : > { %16912 = vmatmul.mubr.msk.f32.vlgmr.msra.gmra.mrb[40].mxu0 %vm11310_vm10, %v19504_v44  ;;  %17293 = vmatprep.subr.bf16.mxu1 %v17724_v5 }
 0x26a   : > { %17289 = vmatpush3.bf16.msra.mxu0 %v19082_v51  ;;  %16933 = vmatprep.mubr.msk.f32.mxu0 %vm17725_vm9, %v17726_v19 }
 0x26b   : > { %16923 = vmatmul.mubr.msk.f32.vlgmr.msra.gmra.mrb[40].mxu1 %vm11310_vm10, %v19396_v31  ;;  %17290 = vmatprep.subr.bf16.mxu0 %v17724_v5 }
 0x26c   : > { %17295 = vmatpush3.bf16.msra.mxu1 %v19125_v23  ;;  %16944 = vmatprep.mubr.msk.f32.mxu1 %vm17725_vm9, %v17726_v19 }
 0x26d   : > { %17296 = vmatprep.subr.bf16.mxu1 %v17724_v5 }
 0x26e   : > { %17292 = vmatpush3.bf16.msra.mxu0 %v19103_v16 }
 0x26f   : > { %17299 = vmatprep.subr.bf16.mxu0 %v17724_v5 }
 0x270   : > { %17298 = vmatpush3.bf16.msra.mxu1 %v19160_v32 }
 0x271   : > { %16934 = vmatmul.mubr.msk.f32.vlgmr.msra.gmra.mrb[42].mxu0 %vm11310_vm10, %v19381_v15  ;;  %17305 = vmatprep.subr.bf16.mxu1 %v17724_v5 }
 0x272   : > { %17301 = vmatpush3.bf16.msra.mxu0 %v19130_v25  ;;  %16955 = vmatprep.mubr.msk.f32.mxu0 %vm17725_vm9, %v17726_v19 }
 0x273   : > { %16945 = vmatmul.mubr.msk.f32.vlgmr.msra.gmra.mrb[42].mxu1 %vm11310_vm10, %v19400_v8  ;;  %17302 = vmatprep.subr.bf16.mxu0 %v17724_v5 }
 0x274   : > { %17307 = vmatpush3.bf16.msra.mxu1 %v19206_v33  ;;  %16966 = vmatprep.mubr.msk.f32.mxu1 %vm17725_vm9, %v17726_v19 }
 0x275   : > { %17308 = vmatprep.subr.bf16.mxu1 %v17724_v5 }
 0x276   : > { %17304 = vmatpush3.bf16.msra.mxu0 %v19174_v49 }
 0x277   : > { %17311 = vmatprep.subr.bf16.mxu0 %v17724_v5 }
 0x278   : > { %17310 = vmatpush3.bf16.msra.mxu1 %v19210_v38 }
 0x279   : > { %16956 = vmatmul.mubr.msk.f32.vlgmr.msra.gmra.mrb[44].mxu0 %vm11310_vm10, %v19485_v2  ;;  %17317 = vmatprep.subr.bf16.mxu1 %v17724_v5 }
 0x27a   : > { %17313 = vmatpush3.bf16.msra.mxu0 %v19208_v62  ;;  %16977 = vmatprep.mubr.msk.f32.mxu0 %vm17725_vm9, %v17726_v19 }
 0x27b   : > { %16967 = vmatmul.mubr.msk.f32.vlgmr.msra.gmra.mrb[44].mxu1 %vm11310_vm10, %v19490_v3  ;;  %17314 = vmatprep.subr.bf16.mxu0 %v17724_v5 }
 0x27c   : > { %17319 = vmatpush3.bf16.msra.mxu1 %v19217_v0  ;;  %16988 = vmatprep.mubr.msk.f32.mxu1 %vm17725_vm9, %v17726_v19 }
 0x27d   : > { %17320 = vmatprep.subr.bf16.mxu1 %v17724_v5 }
 0x27e   : > { %17316 = vmatpush3.bf16.msra.mxu0 %v19215_v63 }
 0x27f   : > { %17323 = vmatprep.subr.bf16.mxu0 %v17724_v5 }
 0x280   : > { %17322 = vmatpush3.bf16.msra.mxu1 %v19246_v10 }
 0x281   : > { %16978 = vmatmul.mubr.msk.f32.vlgmr.msra.gmra.mrb[46].mxu0 %vm11310_vm10, %v19504_v44  ;;  %17329 = vmatprep.subr.bf16.mxu1 %v17724_v5 }
 0x282   : > { %17325 = vmatpush3.bf16.msra.mxu0 %v19223_v4  ;;  %16999 = vmatprep.mubr.msk.f32.mxu0 %vm17725_vm9, %v17726_v19 }
 0x283   : > { %17326 = vmatprep.subr.bf16.mxu0 %v17724_v5 }
 0x285   : > { %v16481_v15 = vpop.f32.mrb[10].mxu0 }
 0x286   : > { %v8949_v31 = vadd.f32 %v19148_v30, %v16481_v15  ;;  %v16526_v8 = vpop.f32.mrb[10].mxu1  ;;  %v8937_v48 = vpop.f32.mrb[11].mxu0  ;;  %17328 = vmatpush3.bf16.msra.mxu0 %v19269_v1 }
 0x287   : > { %v9665_v6 = vadd.f32 %v19148_v30, %v16526_v8  ;;  %v8948_v9 = vadd.f32 %v19148_v30, %v8937_v48  ;;  %v9653_v11 = vpop.f32.mrb[11].mxu1  ;;  %17335 = vmatprep.subr.bf16.mxu0 %v17724_v5 }
 0x288   : > { %v8951_v14 = vmax.f32 %v8949_v31, 0.0  ;;  %v9664_v17 = vadd.f32 %v19148_v30, %v9653_v11 }
 0x289   : > { %v9667_v18 = vmax.f32 %v9665_v6, 0.0  ;;  %v8950_v20 = vmax.f32 %v8948_v9, 0.0 }
 0x28a   : > { %v9666_v21 = vmax.f32 %v9664_v17, 0.0 }
 0x28b   : > { %v9669_v22 = vmax.f32 %v8951_v14, %v9667_v18 }
 0x28c   : > { %v9668_v26 = vmax.f32 %v8950_v20, %v9666_v21 }
 0x28d   : > { %v9703_v27 = vsel %vm1811_vm4, %v9669_v22, -inf  ;;  %v9711_v28 = vsel %vm1821_vm5, %v9669_v22, -inf  ;;  %v9719_v13 = vsel %vm1830_vm6, %v9669_v22, -inf }
 0x28e   : > { %v9704_v34 = vrot.slane %v9703_v27, 4  ;;  %v9712_v36 = vrot.slane %v9711_v28, 4  ;;  %v9720_v39 = vrot.slane %v9719_v13, 4  ;;  %v9670_v40 = vsel %vm1811_vm4, %v9668_v26, -inf }
 0x28f   : > { %v9671_v41 = vrot.slane %v9670_v40, 4  ;;  %v9679_v42 = vsel %vm1821_vm5, %v9668_v26, -inf  ;;  %v9687_v50 = vsel %vm1830_vm6, %v9668_v26, -inf  ;;  %v9695_v45 = vsel %vm1839_vm7, %v9668_v26, -inf }
 0x290   : > { %v9705_v47 = vmax.f32 %v9703_v27, %v9704_v34  ;;  %v9713_v52 = vmax.f32 %v9711_v28, %v9712_v36  ;;  %v9721_v53 = vmax.f32 %v9719_v13, %v9720_v39  ;;  %v9680_v43 = vrot.slane %v9679_v42, 4 }
 0x291   : > { %v9672_v54 = vmax.f32 %v9670_v40, %v9671_v41  ;;  %v9688_v56 = vrot.slane %v9687_v50, 4  ;;  %v9696_v57 = vrot.slane %v9695_v45, 4 }
 0x292   : > { %v9706_v58 = vrot.slane %v9705_v47, 2  ;;  %v9714_v59 = vrot.slane %v9713_v52, 2  ;;  %v9722_v12 = vrot.slane %v9721_v53, 2  ;;  %v9681_v60 = vmax.f32 %v9679_v42, %v9680_v43 }
 0x293   : > { %v9673_v35 = vrot.slane %v9672_v54, 2  ;;  %v9689_v61 = vmax.f32 %v9687_v50, %v9688_v56  ;;  %v9697_v37 = vmax.f32 %v9695_v45, %v9696_v57 }
 0x294   : > { %v9707_v55 = vmax.f32 %v9705_v47, %v9706_v58  ;;  %v9715_v15 = vmax.f32 %v9713_v52, %v9714_v59  ;;  %v9723_v31 = vmax.f32 %v9721_v53, %v9722_v12  ;;  %v9682_v8 = vrot.slane %v9681_v60, 2 }
 0x295   : > { %v9674_v48 = vmax.f32 %v9672_v54, %v9673_v35  ;;  %v9690_v6 = vrot.slane %v9689_v61, 2  ;;  %v9698_v9 = vrot.slane %v9697_v37, 2 }
 0x296   : > { %v9708_v11 = vrot.slane %v9707_v55, 1  ;;  %v9716_v14 = vrot.slane %v9715_v15, 1  ;;  %v9724_v17 = vrot.slane %v9723_v31, 1  ;;  %v9683_v18 = vmax.f32 %v9681_v60, %v9682_v8 }
 0x297   : > { %v9675_v20 = vrot.slane %v9674_v48, 1  ;;  %v9691_v21 = vmax.f32 %v9689_v61, %v9690_v6  ;;  %v9699_v22 = vmax.f32 %v9697_v37, %v9698_v9 }
 0x298   : > { %v9709_v26 = vmax.f32 %v9707_v55, %v9708_v11  ;;  %v9717_v27 = vmax.f32 %v9715_v15, %v9716_v14  ;;  %v9725_v28 = vmax.f32 %v9723_v31, %v9724_v17  ;;  %v9684_v13 = vrot.slane %v9683_v18, 1 }
 0x299   : > { %v9676_v34 = vmax.f32 %v9674_v48, %v9675_v20  ;;  %v9692_v36 = vrot.slane %v9691_v21, 1  ;;  %v9700_v39 = vrot.slane %v9699_v22, 1 }
 0x29a   : > { %9710 = vst.msk [vmem:[#allocation2 + $0x2c] sm:$0x1] %vm1819_vm8, %v9709_v26  ;;  %9718 = vst.msk [vmem:[#allocation2 + $0x2d] sm:$0x1] %vm1819_vm8, %v9717_v27  ;;  %v9685_v40 = vmax.f32 %v9683_v18, %v9684_v13 }
 0x29b   : > { %9726 = vst.msk [vmem:[#allocation2 + $0x2e] sm:$0x1] %vm1819_vm8, %v9725_v28  ;;  %9678 = vst.msk [vmem:[#allocation2 + $0x28] sm:$0x1] %vm1819_vm8, %v9676_v34  ;;  %v9693_v41 = vmax.f32 %v9691_v21, %v9692_v36  ;;  %v9701_v42 = vmax.f32 %v9699_v22, %v9700_v39 }
 0x29c   : > { %9686 = vst.msk [vmem:[#allocation2 + $0x29] sm:$0x1] %vm1819_vm8, %v9685_v40 }
 0x29d   : > { %9694 = vst.msk [vmem:[#allocation2 + $0x2a] sm:$0x1] %vm1819_vm8, %v9693_v41  ;;  %9702 = vst.msk [vmem:[#allocation2 + $0x2b] sm:$0x1] %vm1819_vm8, %v9701_v42 }
 0x2a4   : > { %v13765_v50 = vld [vmem:[#allocation2 + $0x28] sm:$0x7f] }
 0x2a5   : > { %16989 = vmatmul.mubr.msk.f32.vlgmr.msra.gmra.mrb[46].mxu1 %vm11310_vm10, %v13765_v50  ;;  %v13840_v45 = vrot.slane %v13765_v50, 1  ;;  %v13914_v47 = vrot.slane %v13765_v50, 2 }
 0x2a6   : > { %17331 = vmatpush3.bf16.msra.mxu1 %v19291_v24  ;;  %17010 = vmatprep.mubr.msk.f32.mxu1 %vm17725_vm9, %v17726_v19 }
 0x2a7   : > { %17000 = vmatmul.mubr.msk.f32.vlgmr.msra.gmra.mrb[48].mxu0 %vm11310_vm10, %v13840_v45  ;;  %17332 = vmatprep.subr.bf16.mxu1 %v17724_v5 }
 0x2a8   : > { %17337 = vmatpush3.bf16.msra.mxu0 %v19080_v46  ;;  %17021 = vmatprep.mubr.msk.f32.mxu0 %vm17725_vm9, %v17726_v19 }
 0x2a9   : > { %17338 = vmatprep.subr.bf16.mxu0 %v17724_v5 }
 0x2aa   : > { %17334 = vmatpush3.bf16.msra.mxu1 %v19313_v29 }
 0x2ab   : > { %17341 = vmatprep.subr.bf16.mxu1 %v17724_v5 }
 0x2ac   : > { %17340 = vmatpush3.bf16.msra.mxu0 %v19099_v7 }
 0x2ad   : > { %17011 = vmatmul.mubr.msk.f32.vlgmr.msra.gmra.mrb[48].mxu1 %vm11310_vm10, %v13914_v47  ;;  %17347 = vmatprep.subr.bf16.mxu0 %v17724_v5 }
 0x2ae   : > { %17343 = vmatpush3.bf16.msra.mxu1 %v19082_v51  ;;  %17032 = vmatprep.mubr.msk.f32.mxu1 %vm17725_vm9, %v17726_v19 }
 0x2af   : > { %17022 = vmatmul.mubr.msk.f32.vlgmr.msra.gmra.mrb[50].mxu0 %vm11310_vm10, %v19490_v3  ;;  %17344 = vmatprep.subr.bf16.mxu1 %v17724_v5 }
 0x2b0   : > { %17349 = vmatpush3.bf16.msra.mxu0 %v19125_v23  ;;  %17043 = vmatprep.mubr.msk.f32.mxu0 %vm17725_vm9, %v17726_v19  ;;  %v17659_v23 = vld [vmem:[%s19750_s2] ss:$0 sm:$0xff] }
 0x2b1   : > { %17350 = vmatprep.subr.bf16.mxu0 %v17724_v5 }
 0x2b2   : > { %17346 = vmatpush3.bf16.msra.mxu1 %v19103_v16 }
 0x2b3   : > { %17353 = vmatprep.subr.bf16.mxu1 %v17724_v5 }
 0x2b4   : > { %17352 = vmatpush3.bf16.msra.mxu0 %v19160_v32 }
 0x2b5   : > { %17033 = vmatmul.mubr.msk.f32.vlgmr.msra.gmra.mrb[50].mxu1 %vm11310_vm10, %v19485_v2  ;;  %17359 = vmatprep.subr.bf16.mxu0 %v17724_v5 }
 0x2b6   : > { %17355 = vmatpush3.bf16.msra.mxu1 %v19130_v25  ;;  %17054 = vmatprep.mubr.msk.f32.mxu1 %vm17725_vm9, %v17726_v19 }
 0x2b7   : > { %17044 = vmatmul.mubr.msk.f32.vlgmr.msra.gmra.mrb[52].mxu0 %vm11310_vm10, %v19504_v44  ;;  %17356 = vmatprep.subr.bf16.mxu1 %v17724_v5 }
 0x2b8   : > { %17361 = vmatpush3.bf16.msra.mxu0 %v19206_v33  ;;  %17065 = vmatprep.mubr.msk.f32.mxu0 %vm17725_vm9, %v17726_v19 }
 0x2b9   : > { %17362 = vmatprep.subr.bf16.mxu0 %v17724_v5 }
 0x2ba   : > { %17358 = vmatpush3.bf16.msra.mxu1 %v19174_v49 }
 0x2bb   : > { %17365 = vmatprep.subr.bf16.mxu1 %v17724_v5 }
 0x2bc   : > { %17364 = vmatpush3.bf16.msra.mxu0 %v19210_v38 }
 0x2bd   : > { %17055 = vmatmul.mubr.msk.f32.vlgmr.msra.gmra.mrb[52].mxu1 %vm11310_vm10, %v13765_v50  ;;  %17371 = vmatprep.subr.bf16.mxu0 %v17724_v5 }
 0x2be   : > { %17367 = vmatpush3.bf16.msra.mxu1 %v19208_v62  ;;  %17076 = vmatprep.mubr.msk.f32.mxu1 %vm17725_vm9, %v17726_v19 }
 0x2bf   : > { %17066 = vmatmul.mubr.msk.f32.vlgmr.msra.gmra.mrb[54].mxu0 %vm11310_vm10, %v13840_v45  ;;  %17368 = vmatprep.subr.bf16.mxu1 %v17724_v5 }
 0x2c0   : > { %17373 = vmatpush3.bf16.msra.mxu0 %v19217_v0  ;;  %17087 = vmatprep.mubr.msk.f32.mxu0 %vm17725_vm9, %v17726_v19 }
 0x2c1   : > { %17374 = vmatprep.subr.bf16.mxu0 %v17724_v5 }
 0x2c2   : > { %17370 = vmatpush3.bf16.msra.mxu1 %v19215_v63 }
 0x2c3   : > { %17377 = vmatprep.subr.bf16.mxu1 %v17724_v5 }
 0x2c4   : > { %17376 = vmatpush3.bf16.msra.mxu0 %v19246_v10 }
 0x2c5   : > { %17077 = vmatmul.mubr.msk.f32.vlgmr.msra.gmra.mrb[54].mxu1 %vm11310_vm10, %v13914_v47  ;;  %17383 = vmatprep.subr.bf16.mxu0 %v17724_v5 }
 0x2c6   : > { %17379 = vmatpush3.bf16.msra.mxu1 %v19223_v4  ;;  %17098 = vmatprep.mubr.msk.f32.mxu1 %vm17725_vm9, %v17726_v19 }
 0x2c7   : > { %17380 = vmatprep.subr.bf16.mxu1 %v17724_v5 }
 0x2c9   : > { %v16571_v46 = vpop.f32.mrb[12].mxu0 }
 0x2ca   : > { %v10520_v51 = vadd.f32 %v19148_v30, %v16571_v46  ;;  %v16616_v7 = vpop.f32.mrb[12].mxu1  ;;  %v10508_v16 = vpop.f32.mrb[13].mxu0  ;;  %17382 = vmatpush3.bf16.msra.mxu1 %v19269_v1 }
 0x2cb   : > { %v11236_v25 = vadd.f32 %v17659_v23, %v16616_v7  ;;  %v10519_v32 = vadd.f32 %v17659_v23, %v10508_v16  ;;  %v11224_v49 = vpop.f32.mrb[13].mxu1  ;;  %17389 = vmatprep.subr.bf16.mxu1 %v17724_v5 }
 0x2cc   : > { %v10522_v33 = vmax.f32 %v10520_v51, 0.0  ;;  %v11235_v62 = vadd.f32 %v17659_v23, %v11224_v49 }
 0x2cd   : > { %v11238_v38 = vmax.f32 %v11236_v25, 0.0  ;;  %v10521_v63 = vmax.f32 %v10519_v32, 0.0 }
 0x2ce   : > { %v11237_v0 = vmax.f32 %v11235_v62, 0.0 }
 0x2cf   : > { %v11240_v4 = vmax.f32 %v10522_v33, %v11238_v38 }
 0x2d0   : > { %v11239_v30 = vmax.f32 %v10521_v63, %v11237_v0 }
 0x2d1   : > { %v11274_v10 = vsel %vm1811_vm4, %v11240_v4, -inf  ;;  %v11282_v1 = vsel %vm1821_vm5, %v11240_v4, -inf  ;;  %v11290_v2 = vsel %vm1830_vm6, %v11240_v4, -inf  ;;  %v11379_v3 = vpop.f32.mrb[14].mxu0 }
 0x2d2   : > { %v11275_v44 = vrot.slane %v11274_v10, 4  ;;  %v11283_v52 = vrot.slane %v11282_v1, 4  ;;  %v11291_v53 = vrot.slane %v11290_v2, 4  ;;  %v11241_v43 = vsel %vm1811_vm4, %v11239_v30, -inf  ;;  %v11451_v54 = vpop.f32.mrb[14].mxu1  ;;  %v16627_v56 = vpop.f32.mrb[15].mxu0 }
 0x2d3   : > { %v11242_v57 = vrot.slane %v11241_v43, 4  ;;  %v11250_v58 = vsel %vm1821_vm5, %v11239_v30, -inf  ;;  %v11258_v59 = vsel %vm1830_vm6, %v11239_v30, -inf  ;;  %v11266_v12 = vsel %vm1839_vm7, %v11239_v30, -inf  ;;  %v16638_v60 = vpop.f32.mrb[15].mxu1 }
 0x2d4   : > { %v11276_v35 = vmax.f32 %v11274_v10, %v11275_v44  ;;  %v11284_v61 = vmax.f32 %v11282_v1, %v11283_v52  ;;  %v11292_v37 = vmax.f32 %v11290_v2, %v11291_v53  ;;  %v11251_v55 = vrot.slane %v11250_v58, 4 }
 0x2d5   : > { %v11243_v15 = vmax.f32 %v11241_v43, %v11242_v57  ;;  %v11259_v31 = vrot.slane %v11258_v59, 4  ;;  %v11267_v8 = vrot.slane %v11266_v12, 4  ;;  %v11452_v48 = vadd.f32 %v11451_v54, %v11379_v3 }
 0x2d6   : > { %v11277_v6 = vrot.slane %v11276_v35, 2  ;;  %v11285_v9 = vrot.slane %v11284_v61, 2  ;;  %v11293_v11 = vrot.slane %v11292_v37, 2  ;;  %v11252_v14 = vmax.f32 %v11250_v58, %v11251_v55 }
 0x2d7   : > { %v11244_v17 = vrot.slane %v11243_v15, 2  ;;  %v11260_v18 = vmax.f32 %v11258_v59, %v11259_v31  ;;  %v11268_v20 = vmax.f32 %v11266_v12, %v11267_v8 }
 0x2d8   : > { %v11278_v21 = vmax.f32 %v11276_v35, %v11277_v6  ;;  %v11286_v22 = vmax.f32 %v11284_v61, %v11285_v9  ;;  %v11294_v26 = vmax.f32 %v11292_v37, %v11293_v11  ;;  %v11253_v27 = vrot.slane %v11252_v14, 2 }
 0x2d9   : > { %v11245_v28 = vmax.f32 %v11243_v15, %v11244_v17  ;;  %v11261_v13 = vrot.slane %v11260_v18, 2  ;;  %v11269_v34 = vrot.slane %v11268_v20, 2  ;;  %v11529_v36 = vpop.f32.mrb[16].mxu0 }
 0x2da   : > { %v11279_v39 = vrot.slane %v11278_v21, 1  ;;  %v11287_v40 = vrot.slane %v11286_v22, 1  ;;  %v11295_v41 = vrot.slane %v11294_v26, 1  ;;  %v11254_v42 = vmax.f32 %v11252_v14, %v11253_v27  ;;  %v11609_v50 = vpop.f32.mrb[16].mxu1  ;;  %v16649_v45 = vpop.f32.mrb[17].mxu0 }
 0x2db   : > { %v11246_v47 = vrot.slane %v11245_v28, 1  ;;  %v11262_v46 = vmax.f32 %v11260_v18, %v11261_v13  ;;  %v11270_v51 = vmax.f32 %v11268_v20, %v11269_v34  ;;  %v11533_v7 = vadd.f32 %v11529_v36, %v11452_v48  ;;  %v16660_v16 = vpop.f32.mrb[17].mxu1 }
 0x2dc   : > { %v11280_v23 = vmax.f32 %v11278_v21, %v11279_v39  ;;  %v11288_v25 = vmax.f32 %v11286_v22, %v11287_v40  ;;  %v11296_v32 = vmax.f32 %v11294_v26, %v11295_v41  ;;  %v11255_v49 = vrot.slane %v11254_v42, 1 }
 0x2dd   : > { %v11247_v33 = vmax.f32 %v11245_v28, %v11246_v47  ;;  %v11263_v62 = vrot.slane %v11262_v46, 1  ;;  %v11271_v38 = vrot.slane %v11270_v51, 1  ;;  %v11613_v63 = vadd.f32 %v11609_v50, %v11533_v7 }
 0x2de   : > { %11281 = vst.msk [vmem:[#allocation2 + $0x34] sm:$0x1] %vm1819_vm8, %v11280_v23  ;;  %11289 = vst.msk [vmem:[#allocation2 + $0x35] sm:$0x1] %vm1819_vm8, %v11288_v25  ;;  %v11256_v0 = vmax.f32 %v11254_v42, %v11255_v49 }
 0x2df   : > { %11297 = vst.msk [vmem:[#allocation2 + $0x36] sm:$0x1] %vm1819_vm8, %v11296_v32  ;;  %11249 = vst.msk [vmem:[#allocation2 + $0x30] sm:$0x1] %vm1819_vm8, %v11247_v33  ;;  %v11264_v4 = vmax.f32 %v11262_v46, %v11263_v62  ;;  %v11272_v30 = vmax.f32 %v11270_v51, %v11271_v38 }
 0x2e0   : > { %11257 = vst.msk [vmem:[#allocation2 + $0x31] sm:$0x1] %vm1819_vm8, %v11256_v0 }
 0x2e1   : > { %11265 = vst.msk [vmem:[#allocation2 + $0x32] sm:$0x1] %vm1819_vm8, %v11264_v4  ;;  %11273 = vst.msk [vmem:[#allocation2 + $0x33] sm:$0x1] %vm1819_vm8, %v11272_v30  ;;  %v11688_v10 = vpop.f32.mrb[18].mxu0 }
 0x2e2   : > { %v11692_v1 = vadd.f32 %v11688_v10, %v11613_v63  ;;  %v11767_v2 = vpop.f32.mrb[18].mxu1  ;;  %v16671_v3 = vpop.f32.mrb[19].mxu0 }
 0x2e3   : > { %v16682_v44 = vpop.f32.mrb[19].mxu1 }
 0x2e4   : > { %v11771_v52 = vadd.f32 %v11767_v2, %v11692_v1 }
 0x2e8   : > { %v14422_v53 = vld [vmem:[#allocation2 + $0x30] sm:$0x7f] }
 0x2e9   : > { %17088 = vmatmul.mubr.msk.f32.vlgmr.msra.gmra.mrb[56].mxu0 %vm11310_vm10, %v14422_v53  ;;  %v14497_v43 = vrot.slane %v14422_v53, 1  ;;  %v11847_v54 = vpop.f32.mrb[20].mxu0  ;;  %v14571_v60 = vrot.slane %v14422_v53, 2 }
 0x2ea   : > { %17385 = vmatpush3.bf16.msra.mxu0 %v19291_v24  ;;  %v11851_v56 = vadd.f32 %v11847_v54, %v11771_v52  ;;  %v11926_v57 = vpop.f32.mrb[20].mxu1  ;;  %v16693_v58 = vpop.f32.mrb[21].mxu0  ;;  %17109 = vmatprep.mubr.msk.f32.mxu0 %vm17725_vm9, %v17726_v19 }
 0x2eb   : > { %17099 = vmatmul.mubr.msk.f32.vlgmr.msra.gmra.mrb[56].mxu1 %vm11310_vm10, %v14497_v43  ;;  %v16704_v59 = vpop.f32.mrb[21].mxu1  ;;  %17386 = vmatprep.subr.bf16.mxu0 %v17724_v5 }
 0x2ec   : > { %v11930_v12 = vadd.f32 %v11926_v57, %v11851_v56  ;;  %17116 = vmatprep.mubr.msk.f32.mxu1 %vm17725_vm9, %v17726_v19 }
 0x2ee   : > { %17388 = vmatpush3.bf16.msra.mxu0 %v19313_v29  ;;  %v19680_v29 = vld [vmem:[%s19752_s4] ss:$0 sm:$0xff] }
 0x2f1   : > { %17110 = vmatmul.mubr.msk.f32.vlgmr.msra.gmra.mrb[58].mxu0 %vm11310_vm10, %v14571_v60  ;;  %v12005_v24 = vpop.f32.mrb[22].mxu0 }
 0x2f2   : > { %v12009_v35 = vadd.f32 %v12005_v24, %v11930_v12  ;;  %v12093_v61 = vpop.f32.mrb[22].mxu1  ;;  %v16715_v37 = vpop.f32.mrb[23].mxu0 }
 0x2f3   : > { %v16726_v55 = vpop.f32.mrb[23].mxu1 }
 0x2f4   : > { %v12016_v20 = vadd.f32 %v19680_v29, %v12009_v35 }
 0x2f6   : > { %v12017_v22 = vmax.f32 %v12016_v20, 0.0 }
 0x2f8   : > { %v12019_v36 = vsel %vm12018_vm11, %v12017_v22, 0.0 }
 0x2f9   : > { %v12163_v15 = vpop.f32.mrb[24].mxu0  ;;  %v12020_v39 = vrot.slane %v12019_v36, 4 }
 0x2fa   : > { %v12164_v31 = vadd.f32 %v12163_v15, %v12093_v61  ;;  %v12233_v8 = vpop.f32.mrb[24].mxu1  ;;  %v16737_v48 = vpop.f32.mrb[25].mxu0 }
 0x2fb   : > { %v16748_v6 = vpop.f32.mrb[25].mxu1  ;;  %v12021_v46 = vadd.f32 %v12020_v39, %v12019_v36 }
 0x2fc   : > { %v12237_v5 = vadd.f32 %v12233_v8, %v12164_v31 }
 0x2fd   : > { %v12022_v16 = vrot.slane %v12021_v46, 2 }
 0x2ff   : > { %v12023_v63 = vadd.f32 %v12022_v16, %v12021_v46 }
 0x301   : > { %v12304_v9 = vpop.f32.mrb[26].mxu0  ;;  %v12024_v30 = vrot.slane %v12023_v63, 1 }
 0x302   : > { %v12308_v11 = vadd.f32 %v12304_v9, %v12237_v5  ;;  %v12375_v14 = vpop.f32.mrb[26].mxu1  ;;  %v16759_v19 = vpop.f32.mrb[27].mxu0 }
 0x303   : > { %v16770_v17 = vpop.f32.mrb[27].mxu1  ;;  %v12025_v54 = vadd.f32 %v12024_v30, %v12023_v63 }
 0x304   : > { %v12379_v18 = vadd.f32 %v12375_v14, %v12308_v11 }
 0x309   : > { %v12446_v21 = vpop.f32.mrb[28].mxu0 }
 0x30a   : > { %v12450_v26 = vadd.f32 %v12446_v21, %v12379_v18  ;;  %v12521_v27 = vpop.f32.mrb[28].mxu1  ;;  %v16781_v28 = vpop.f32.mrb[29].mxu0 }
 0x30b   : > { %v16792_v13 = vpop.f32.mrb[29].mxu1 }
 0x30c   : > { %v12525_v34 = vadd.f32 %v12521_v27, %v12450_v26 }
 0x311   : > { %v12595_v40 = vpop.f32.mrb[30].mxu0 }
 0x312   : > { %v12599_v41 = vadd.f32 %v12595_v40, %v12525_v34  ;;  %v12669_v42 = vpop.f32.mrb[30].mxu1  ;;  %v16803_v50 = vpop.f32.mrb[31].mxu0 }
 0x313   : > { %v16814_v45 = vpop.f32.mrb[31].mxu1 }
 0x314   : > { %v12673_v47 = vadd.f32 %v12669_v42, %v12599_v41 }
 0x316   : > { %v12674_v51 = vadd.f32 %v19680_v29, %v12673_v47 }
 0x318   : > { %v12675_v7 = vmax.f32 %v12674_v51, 0.0 }
 0x319   : > { %v12750_v23 = vpop.f32.mrb[32].mxu0 }
 0x31a   : > { %v12676_v25 = vsel %vm12018_vm11, %v12675_v7, 0.0  ;;  %v12820_v32 = vpop.f32.mrb[32].mxu1  ;;  %v16825_v49 = vpop.f32.mrb[33].mxu0 }
 0x31b   : > { %v12677_v33 = vrot.slane %v12676_v25, 4  ;;  %v12821_v62 = vadd.f32 %v12820_v32, %v12750_v23  ;;  %v16836_v38 = vpop.f32.mrb[33].mxu1  ;;  %v14657_v32 = vld [vmem:[%s19753_s5 + $0x8] sm:$0xff] }
 0x31d   : > { %v12678_v0 = vadd.f32 %v12677_v33, %v12676_v25  ;;  %v14656_v25 = vld [vmem:[%s19753_s5] sm:$0xff] }
 0x31e   : > { %v17390_v49 = vpack.c.bf16 %v14657_v32, %v14656_v25 }
 0x31f   : > { %v12679_v4 = vrot.slane %v12678_v0, 2 }
 0x320   : > { %17391 = vmatpush3.bf16.msra.mxu1 %v17390_v49 }
 0x321   : > { %v12680_v10 = vadd.f32 %v12679_v4, %v12678_v0  ;;  %v12890_v1 = vpop.f32.mrb[34].mxu0 }
 0x322   : > { %v12894_v2 = vadd.f32 %v12890_v1, %v12821_v62  ;;  %v12961_v3 = vpop.f32.mrb[34].mxu1  ;;  %v16847_v44 = vpop.f32.mrb[35].mxu0 }
 0x323   : > { %v12681_v52 = vrot.slane %v12680_v10, 1  ;;  %v16858_v53 = vpop.f32.mrb[35].mxu1 }
 0x324   : > { %v12965_v43 = vadd.f32 %v12961_v3, %v12894_v2 }
 0x325   : > { %v12682_v56 = vadd.f32 %v12681_v52, %v12680_v10 }
 0x327   : > { %v12683_v57 = vadd.f32 %v12682_v56, %v12025_v54 }
 0x329   : > { %v13032_v58 = vpop.f32.mrb[36].mxu0 }
 0x32a   : > { %v13036_v59 = vadd.f32 %v13032_v58, %v12965_v43  ;;  %v13103_v12 = vpop.f32.mrb[36].mxu1  ;;  %v16869_v60 = vpop.f32.mrb[37].mxu0 }
 0x32b   : > { %v16880_v24 = vpop.f32.mrb[37].mxu1 }
 0x32c   : > { %v13107_v35 = vadd.f32 %v13103_v12, %v13036_v59 }
 0x334   : > { %v13178_v61 = vpop.f32.mrb[38].mxu0 }
 0x335   : > { %v13182_v37 = vadd.f32 %v13178_v61, %v13107_v35  ;;  %v16891_v55 = vpop.f32.mrb[39].mxu0 }
 0x336   : > { %v13252_v15 = vpop.f32.mrb[38].mxu1 }
 0x337   : > { %v13256_v31 = vadd.f32 %v13252_v15, %v13182_v37  ;;  %v16902_v8 = vpop.f32.mrb[39].mxu1 }
 0x33c   : > { %v13326_v48 = vpop.f32.mrb[40].mxu0 }
 0x33d   : > { %v13330_v6 = vadd.f32 %v13326_v48, %v13256_v31  ;;  %v16913_v5 = vpop.f32.mrb[41].mxu0 }
 0x33e   : > { %v13407_v9 = vpop.f32.mrb[40].mxu1 }
 0x33f   : > { %v13331_v11 = vadd.f32 %v19680_v29, %v13330_v6  ;;  %v16924_v14 = vpop.f32.mrb[41].mxu1 }
 0x341   : > { %v13332_v19 = vmax.f32 %v13331_v11, 0.0 }
 0x343   : > { %v13333_v17 = vsel %vm12018_vm11, %v13332_v19, 0.0 }
 0x344   : > { %v13334_v18 = vrot.slane %v13333_v17, 4  ;;  %v13477_v20 = vpop.f32.mrb[42].mxu0 }
 0x345   : > { %v13478_v21 = vadd.f32 %v13477_v20, %v13407_v9  ;;  %v16935_v22 = vpop.f32.mrb[43].mxu0 }
 0x346   : > { %v13335_v26 = vadd.f32 %v13334_v18, %v13333_v17  ;;  %v13547_v27 = vpop.f32.mrb[42].mxu1 }
 0x347   : > { %v13551_v28 = vadd.f32 %v13547_v27, %v13478_v21  ;;  %v16946_v13 = vpop.f32.mrb[43].mxu1 }
 0x348   : > { %v13336_v34 = vrot.slane %v13335_v26, 2 }
 0x34a   : > { %v13337_v36 = vadd.f32 %v13336_v34, %v13335_v26 }
 0x34c   : > { %v13338_v39 = vrot.slane %v13337_v36, 1  ;;  %v13618_v40 = vpop.f32.mrb[44].mxu0 }
 0x34d   : > { %v13622_v41 = vadd.f32 %v13618_v40, %v13551_v28  ;;  %v16957_v42 = vpop.f32.mrb[45].mxu0 }
 0x34e   : > { %v13339_v50 = vadd.f32 %v13338_v39, %v13337_v36  ;;  %v13689_v45 = vpop.f32.mrb[44].mxu1 }
 0x34f   : > { %v13693_v47 = vadd.f32 %v13689_v45, %v13622_v41  ;;  %v16968_v46 = vpop.f32.mrb[45].mxu1 }
 0x350   : > { %v13340_v51 = vadd.f32 %v13339_v50, %v12683_v57 }
 0x354   : > { %v13760_v7 = vpop.f32.mrb[46].mxu0 }
 0x355   : > { %v13764_v16 = vadd.f32 %v13760_v7, %v13693_v47  ;;  %v16979_v23 = vpop.f32.mrb[47].mxu0 }
 0x378   : > { %v13835_v33 = vpop.f32.mrb[46].mxu1 }
 0x379   : > { %v13839_v62 = vadd.f32 %v13835_v33, %v13764_v16  ;;  %v16990_v38 = vpop.f32.mrb[47].mxu1 }
 0x37a   : > { %v13909_v63 = vpop.f32.mrb[48].mxu0 }
 0x37b   : > { %v13913_v0 = vadd.f32 %v13909_v63, %v13839_v62  ;;  %v17001_v4 = vpop.f32.mrb[49].mxu0 }
 0x380   : > { %v13983_v30 = vpop.f32.mrb[48].mxu1 }
 0x381   : > { %v13987_v10 = vadd.f32 %v13983_v30, %v13913_v0  ;;  %v17012_v1 = vpop.f32.mrb[49].mxu1 }
 0x382   : > { %v14064_v2 = vpop.f32.mrb[50].mxu0 }
 0x383   : > { %v13988_v3 = vadd.f32 %v19680_v29, %v13987_v10  ;;  %v17023_v44 = vpop.f32.mrb[51].mxu0 }
 0x385   : > { %v13989_v52 = vmax.f32 %v13988_v3, 0.0 }
 0x387   : > { %v13990_v53 = vsel %vm12018_vm11, %v13989_v52, 0.0 }
 0x388   : > { %v13991_v43 = vrot.slane %v13990_v53, 4  ;;  %v14134_v54 = vpop.f32.mrb[50].mxu1 }
 0x389   : > { %v14135_v56 = vadd.f32 %v14134_v54, %v14064_v2  ;;  %v17034_v57 = vpop.f32.mrb[51].mxu1 }
 0x38a   : > { %v13992_v58 = vadd.f32 %v13991_v43, %v13990_v53  ;;  %v14204_v59 = vpop.f32.mrb[52].mxu0 }
 0x38b   : > { %v14208_v12 = vadd.f32 %v14204_v59, %v14135_v56  ;;  %v17045_v60 = vpop.f32.mrb[53].mxu0 }
 0x38c   : > { %v13993_v24 = vrot.slane %v13992_v58, 2 }
 0x38e   : > { %v13994_v35 = vadd.f32 %v13993_v24, %v13992_v58 }
 0x390   : > { %v13995_v61 = vrot.slane %v13994_v35, 1  ;;  %v14275_v37 = vpop.f32.mrb[52].mxu1 }
 0x391   : > { %v14279_v55 = vadd.f32 %v14275_v37, %v14208_v12  ;;  %v17056_v15 = vpop.f32.mrb[53].mxu1 }
 0x392   : > { %v13996_v31 = vadd.f32 %v13995_v61, %v13994_v35  ;;  %v14346_v8 = vpop.f32.mrb[54].mxu0 }
 0x393   : > { %v14350_v48 = vadd.f32 %v14346_v8, %v14279_v55  ;;  %v17067_v6 = vpop.f32.mrb[55].mxu0 }
 0x394   : > { %v13997_v5 = vadd.f32 %v13996_v31, %v13340_v51  ;;  %v14658_v51 = vld [vmem:[%s19754_s6] sm:$0x1] }
 0x398   : > { %v14417_v9 = vpop.f32.mrb[54].mxu1 }
 0x399   : > { %v14421_v11 = vadd.f32 %v14417_v9, %v14350_v48  ;;  %v17078_v14 = vpop.f32.mrb[55].mxu1 }
 0x3bc   : > { %v14492_v19 = vpop.f32.mrb[56].mxu0 }
 0x3bd   : > { %v14496_v17 = vadd.f32 %v14492_v19, %v14421_v11  ;;  %v17089_v18 = vpop.f32.mrb[57].mxu0 }
 0x3be   : > { %v14566_v20 = vpop.f32.mrb[56].mxu1 }
 0x3bf   : > { %v14570_v21 = vadd.f32 %v14566_v20, %v14496_v17  ;;  %v17100_v22 = vpop.f32.mrb[57].mxu1 }
 0x3c4   : > { %v14640_v26 = vpop.f32.mrb[58].mxu0 }
 0x3c5   : > { %v14644_v27 = vadd.f32 %v14640_v26, %v14570_v21  ;;  %v17111_v28 = vpop.f32.mrb[59].mxu0 }
 0x3c7   : > { %v14645_v13 = vadd.f32 %v19680_v29, %v14644_v27 }
 0x3c9   : > { %v14646_v34 = vmax.f32 %v14645_v13, 0.0 }
 0x3cb   : > { %v14647_v36 = vsel %vm12018_vm11, %v14646_v34, 0.0 }
 0x3cc   : > { %v14648_v39 = vrot.slane %v14647_v36, 4 }
 0x3ce   : > { %v14649_v40 = vadd.f32 %v14648_v39, %v14647_v36 }
 0x3d0   : > { %v14650_v41 = vrot.slane %v14649_v40, 2 }
 0x3d2   : > { %v14651_v42 = vadd.f32 %v14650_v41, %v14649_v40 }
 0x3d4   : > { %v14652_v50 = vrot.slane %v14651_v42, 1 }
 0x3d6   : > { %v14653_v45 = vadd.f32 %v14652_v50, %v14651_v42 }
 0x3d8   : > { %v14654_v47 = vadd.f32 %v14653_v45, %v13997_v5 }
 0x3da   : > { %v14655_v46 = vmul.f32 0.04, %v14654_v47 }
 0x3dc   : > { %17117 = vmatmul.mubr.msk.f32.vlgmr.msra.gmra.mrb[58].mxu1 %vm14659_vm12, %v14655_v46 }
 0x4af   : > { %v14729_v29 = vpop.f32.mrb[58].mxu1 }
 0x4b0   : > { %v14730_v7 = vadd.f32 %v14729_v29, %v14658_v51  ;;  %v17118_v16 = vpop.f32.mrb[59].mxu1 }
 0x4b2   : > { %14734 = vst.msk [vmem:[%s270_s16] sm:$0x1] %vm14733_vm13, %v14730_v7 }
 0x4b3   : > { %17673 = shalt.err (!%p17670_p3)
}
 0x4b4   : > { %s17674_s9 = scalar_lea.hbm %s19706_s20, 16  ;;  %s17678_s21 = scalar_lea.hbm %s19755_s7, 32 }
 0x4b5   : > { %p17675_p4 = scmp.ne.s32.totalorder %s19706_s20, %s17674_s9  ;;  %p17679_p9 = scmp.lt.u32.totalorder %s19706_s20, %s19755_s7 }
 0x4b6   : > { %p17680_p10 = scmp.lt.u32.totalorder %s17678_s21, %s17674_s9  ;;  %p17682_p12 = scmp.lt.u32.totalorder %s17674_s9, %s19706_s20 }
 0x4b7   : > { %p17676_p7 = pnand %p17675_p4, %p17806_p5 }
 0x4b8   : > { %p17681_p11 = por %p17680_p10, %p17679_p9 }
 0x4b9   : > { %p17677_p8 = pneg %p17676_p7 }
 0x4ba   : > { %p17683_p13 = por %p17682_p12, %p17681_p11 }
 0x4bc   : > { %p17684_p0 = pnand %p17683_p13, %p17677_p8 }
 0x4be   : > { %17687 = shalt.err (!%p17684_p0)
}
 0x4bf   : > { %17616 = dma.vmem_to_hbm [thread:$0]  (%p17806_p5), %s19708_s17, 16, %s19706_s20, %s14736_s22  }
 0x4c0 PF: > { %p17622_p1 = scmp.ge.s32.totalorder %s17722_s27, 2  ;;  %s14760_s18 = sand.u32 1, %s17710_s24  }
 0x4c1   : > { %s14761_s19 = scalar_lea.sflag [#allocation4], %s14760_s18 }
 0x4c2   : > { %p17619_p2 = pnand %p17622_p1, %p17810_p6 }
 0x4c4   : > { %17705 = dma.done.wait (!%p17619_p2), %s14761_s19, 16  }
 0x4c5   : > { %17707 = vsyncadd (!%p17619_p2), %s14761_s19, 4294967280  ;;  %p17_p3 = scmp.ge.s32.totalorder %s17793_s30, 4   ;;  %s19758_s24 = smov %s17714_s25 }
 0x4c6   : > { %s19759_s25 = smov %s17718_s26  ;;  %s19760_s26 = smov %s17804_s10 }
 0x4c7   : > { %s19761_s27 = smov %s17793_s30  ;;  %19 = sbr.rel (!%p17_p3) target bundleno = 3 (0x3), region = 120 }
 0x4ce   :  { %14765 = vsyncpa [#allocation4], 1 }
 0x4cf   :  { %14767 = vsyncpa [#allocation4 + $0x1], 1 }

</bundles_post_ra>
